<compile_context>
chip_gen: v6e
topology: v6e:2x2x1
jax: 0.10.0
libtpu: 0.0.40
codegen_flags: <defaults>
</compile_context>

<pallas_src>
import functools

import jax
import jax.numpy as jnp
from jax import lax
from jax.experimental import pallas as pl
from jax.experimental.pallas import tpu as pltpu


# ----------------------------- Pallas kernels ------------------------------

def _conv_relu_pool_kernel(a_ref, w0_ref, w1_ref, b_ref, o_ref, *, hi, ho, wj, cf):
    """Fused 5x5 'same' conv + bias + ReLU + 2x2 max-pool for one batch block.

    a_ref : (TB, 2*hi, wj, cf)   packed input, A[n, p*hi+i, j, c*Cin+ci]
                                 = x_pad[n, 2i+p, 2j+c, ci]   (p = row parity, c = col offset)
    w0_ref: (5*cf, Cout)         weights for pool-column offset d2 = 0
    w1_ref: (5*cf, Cout)         weights for pool-column offset d2 = 1
    b_ref : (1, Cout)
    o_ref : (TB, ho, wj, Cout)   pooled output (cols >= W/2 are junk, dropped by the caller)
    """
    av = a_ref[...]
    tb = av.shape[0]

    def slab(r):                      # rows 2i + r of the padded input, r = d1 + kh
        start = (r % 2) * hi + (r // 2)
        return av[:, start:start + ho, :, :]           # (TB, ho, wj, cf)

    # Patch matrices for the two pool-row offsets d1 = 0, 1 (features kh-major, then c, ci).
    p0 = jnp.concatenate([slab(kh) for kh in range(5)], axis=-1)
    p1 = jnp.concatenate([slab(1 + kh) for kh in range(5)], axis=-1)
    m = tb * ho * wj
    p = jnp.concatenate([p0, p1], axis=0).reshape(2 * m, 5 * cf)

    # One MXU matmul per pool-column offset d2 (each covers both d1 taps -> 2*m rows).
    r0 = jnp.dot(p, w0_ref[...], preferred_element_type=jnp.float32)
    r1 = jnp.dot(p, w1_ref[...], preferred_element_type=jnp.float32)

    # Max over the four 2x2-pool taps first, then a single bias add + ReLU (exact:
    # max_i relu(x_i + b) == relu(max_i x_i + b)).
    s = jnp.maximum(jnp.maximum(r0[:m], r0[m:]), jnp.maximum(r1[:m], r1[m:]))
    y = jnp.maximum(s + b_ref[...], 0.0)
    o_ref[...] = y.reshape(tb, ho, wj, -1)


def _linear_kernel(x_ref, w_ref, b_ref, o_ref):
    o_ref[...] = (jnp.dot(x_ref[...], w_ref[...],
                          preferred_element_type=jnp.float32) + b_ref[...])


# --------------------------- pallas_call wrappers ---------------------------

def conv_relu_pool(a, w0, w1, b2d, *, hi, ho, wj, cf, cout, tb):
    B = a.shape[0]
    kernel = functools.partial(_conv_relu_pool_kernel, hi=hi, ho=ho, wj=wj, cf=cf)
    return pl.pallas_call(
        kernel,
        out_shape=jax.ShapeDtypeStruct((B, ho, wj, cout), jnp.float32),
        grid_spec=pltpu.PrefetchScalarGridSpec(
            num_scalar_prefetch=0,
            grid=(B // tb,),
            in_specs=[
                pl.BlockSpec((tb, 2 * hi, wj, cf), lambda n: (n, 0, 0, 0)),
                pl.BlockSpec((5 * cf, cout), lambda n: (0, 0)),
                pl.BlockSpec((5 * cf, cout), lambda n: (0, 0)),
                pl.BlockSpec((1, cout), lambda n: (0, 0)),
            ],
            out_specs=pl.BlockSpec((tb, ho, wj, cout), lambda n: (n, 0, 0, 0)),
        ),
        compiler_params=pltpu.CompilerParams(dimension_semantics=("parallel",)),
    )(a, w0, w1, b2d)


def linear(x, w, b2d):
    return pl.pallas_call(
        _linear_kernel,
        out_shape=jax.ShapeDtypeStruct((x.shape[0], w.shape[1]), jnp.float32),
        in_specs=[pl.BlockSpec(memory_space=pltpu.MemorySpace.VMEM)] * 3,
        out_specs=pl.BlockSpec(memory_space=pltpu.MemorySpace.VMEM),
    )(x, w, b2d)


# ------------------------------- JAX glue ----------------------------------

def _pack_conv_input(x_nhwc, hi, wj):
    """A[n, p*hi + i, j, c*Cin + ci] = x_pad[n, 2i+p, 2j+c, ci]  (zero pad = 2, extra zeros right)."""
    B, H, W, Cin = x_nhwc.shape
    xp = jnp.pad(x_nhwc, ((0, 0), (2, 2 * hi - H - 2), (2, 2 * wj + 6 - W - 2), (0, 0)))
    cols = [xp[:, :, c:c + 2 * wj:2, :] for c in range(8)]    # each (B, 2*hi, wj, Cin)
    a = jnp.stack(cols, axis=3)                               # (B, 2*hi, wj, 8, Cin)
    a = a.reshape(B, hi, 2, wj, 8, Cin)                       # row 2i+p -> (i, p)
    a = jnp.transpose(a, (0, 2, 1, 3, 4, 5))                  # (B, 2, hi, wj, 8, Cin)
    return a.reshape(B, 2 * hi, wj, 8 * Cin)


def _pack_conv_weights(w_oihw, b):
    """(Cout, Cin, 5, 5) -> two (5*8*Cin, Cout) matrices (one per pool-column offset d2)."""
    cout, cin = w_oihw.shape[0], w_oihw.shape[1]
    wt = jnp.transpose(w_oihw, (2, 3, 1, 0))                  # (kh, kw, ci, co)
    w0 = jnp.pad(wt, ((0, 0), (0, 3), (0, 0), (0, 0))).reshape(5 * 8 * cin, cout)
    w1 = jnp.pad(wt, ((0, 0), (1, 2), (0, 0), (0, 0))).reshape(5 * 8 * cin, cout)
    return w0, w1, b.reshape(1, cout)


def _pack_linear_weights(out_w, out_b):
    """(10, 32*7*7) NCHW-flatten weights -> (7*8*32, 10) matching the conv2 (i, j8, c) layout."""
    wl = out_w.reshape(-1, 32, 7, 7)                          # (10, c, i, j)
    wl = jnp.transpose(wl, (2, 3, 1, 0))                      # (i, j, c, 10)
    wl = jnp.pad(wl, ((0, 0), (0, 1), (0, 0), (0, 0)))        # zero rows for junk col j = 7
    return wl.reshape(7 * 8 * 32, -1), out_b.reshape(1, -1)


def _pick_tb(B):
    for t in (8, 4, 2, 1):
        if B % t == 0:
            return t


@jax.jit
def cnn_forward(x_nchw, params):
    B = x_nchw.shape[0]
    tb = _pick_tb(B)
    x = jnp.transpose(x_nchw, (0, 2, 3, 1)).astype(jnp.float32)        # NHWC (B, 28, 28, 1)

    # conv1 (1->16, 5x5, pad 2) + ReLU + maxpool2 -> (B, 14, 16[14 valid], 16)
    a1 = _pack_conv_input(x, hi=16, wj=16)                             # (B, 32, 16, 8)
    w10, w11, b1 = _pack_conv_weights(params["conv1_w"], params["conv1_b"])
    y1 = conv_relu_pool(a1, w10, w11, b1,
                        hi=16, ho=14, wj=16, cf=8, cout=16, tb=tb)

    # conv2 (16->32, 5x5, pad 2) + ReLU + maxpool2 -> (B, 7, 8[7 valid], 32)
    a2 = _pack_conv_input(y1[:, :, :14, :], hi=9, wj=8)                # (B, 18, 8, 128)
    w20, w21, b2 = _pack_conv_weights(params["conv2_w"], params["conv2_b"])
    y2 = conv_relu_pool(a2, w20, w21, b2,
                        hi=9, ho=7, wj=8, cf=128, cout=32, tb=tb)

    # Final Linear: weight rows pre-permuted to the kernel's NHWC(+junk col) layout,
    # so no per-call activation transpose is needed.
    wl, bl = _pack_linear_weights(params["out_w"], params["out_b"])
    return linear(y2.reshape(B, 7 * 8 * 32), wl, bl)


# -------------------------- pure-JAX reference ------------------------------

def cnn_reference(x, params):
    def conv(x, w, b):
        y = lax.conv_general_dilated(x, w, (1, 1), ((2, 2), (2, 2)),
                                     dimension_numbers=("NCHW", "OIHW", "NCHW"))
        return y + b.reshape(1, -1, 1, 1)

    def pool(x):
        return lax.reduce_window(x, -jnp.inf, lax.max,
                                 (1, 1, 2, 2), (1, 1, 2, 2), "VALID")

    y = pool(jax.nn.relu(conv(x, params["conv1_w"], params["conv1_b"])))
    y = pool(jax.nn.relu(conv(y, params["conv2_w"], params["conv2_b"])))
    y = y.reshape(x.shape[0], -1)
    return y @ params["out_w"].T + params["out_b"]


# --------------------------------- main -------------------------------------

if __name__ == "__main__":
    key = jax.random.PRNGKey(0)
    ks = jax.random.split(key, 7)
    params = {
        "conv1_w": 0.10 * jax.random.normal(ks[0], (16, 1, 5, 5), jnp.float32),
        "conv1_b": 0.10 * jax.random.normal(ks[1], (16,), jnp.float32),
        "conv2_w": 0.05 * jax.random.normal(ks[2], (32, 16, 5, 5), jnp.float32),
        "conv2_b": 0.10 * jax.random.normal(ks[3], (32,), jnp.float32),
        "out_w": 0.02 * jax.random.normal(ks[4], (10, 32 * 7 * 7), jnp.float32),
        "out_b": 0.10 * jax.random.normal(ks[5], (10,), jnp.float32),
    }
    # 28x28 spatial is required by the module (Linear expects 32*7*7 features).
    x = jax.random.normal(ks[6], (2, 1, 28, 28), jnp.float32)  # NCHW, like PyTorch

    out = jax.block_until_ready(cnn_forward(x, params))
    ref = cnn_reference(x, params)
    assert out.shape == (2, 10), out.shape
    assert jnp.allclose(out, ref, rtol=2e-3, atol=2e-3), (out, ref)
    print("KERNEL_OK")
</pallas_src>

<mosaic_0001>
module attributes {stable_mosaic.version = 11 : i64} {
  func.func @_conv_relu_pool_kernel(%arg0: i32, %arg1: memref<2x32x16x8xf32, #tpu.memory_space<vmem>>, %arg2: memref<40x16xf32, #tpu.memory_space<vmem>>, %arg3: memref<40x16xf32, #tpu.memory_space<vmem>>, %arg4: memref<1x16xf32, #tpu.memory_space<vmem>>, %arg5: memref<2x14x16x16xf32, #tpu.memory_space<vmem>>) attributes {dimension_semantics = [#tpu.dimension_semantics<parallel>], iteration_bounds = array<i64: 1>, scalar_prefetch = 0 : i64, scratch_operands = 0 : i64, tpu.core_type = #tpu.core_type<tc>, window_params = [{transform_indices = @transform_0, window_bounds = array<i64: 2, 32, 16, 8>}, {pipeline_mode = #tpu.pipeline_mode<synchronous>, transform_indices = @transform_1, window_bounds = array<i64: 40, 16>}, {pipeline_mode = #tpu.pipeline_mode<synchronous>, transform_indices = @transform_2, window_bounds = array<i64: 40, 16>}, {pipeline_mode = #tpu.pipeline_mode<synchronous>, transform_indices = @transform_3, window_bounds = array<i64: 1, 16>}, {transform_indices = @transform_4, window_bounds = array<i64: 2, 14, 16, 16>}]} {
    %c0 = arith.constant 0 : index
    %c0_0 = arith.constant 0 : index
    %c0_1 = arith.constant 0 : index
    %c0_2 = arith.constant 0 : index
    %0 = vector.load %arg1[%c0, %c0_0, %c0_1, %c0_2] : memref<2x32x16x8xf32, #tpu.memory_space<vmem>>, vector<2x32x16x8xf32>
    %1 = vector.extract_strided_slice %0 {offsets = [0, 0, 0, 0], sizes = [2, 14, 16, 8], strides = [1, 1, 1, 1]} : vector<2x32x16x8xf32> to vector<2x14x16x8xf32>
    %2 = vector.extract_strided_slice %0 {offsets = [0, 16, 0, 0], sizes = [2, 14, 16, 8], strides = [1, 1, 1, 1]} : vector<2x32x16x8xf32> to vector<2x14x16x8xf32>
    %3 = vector.extract_strided_slice %0 {offsets = [0, 1, 0, 0], sizes = [2, 14, 16, 8], strides = [1, 1, 1, 1]} : vector<2x32x16x8xf32> to vector<2x14x16x8xf32>
    %4 = vector.extract_strided_slice %0 {offsets = [0, 17, 0, 0], sizes = [2, 14, 16, 8], strides = [1, 1, 1, 1]} : vector<2x32x16x8xf32> to vector<2x14x16x8xf32>
    %5 = vector.extract_strided_slice %0 {offsets = [0, 2, 0, 0], sizes = [2, 14, 16, 8], strides = [1, 1, 1, 1]} : vector<2x32x16x8xf32> to vector<2x14x16x8xf32>
    %6 = tpu.concatenate %1, %2, %3, %4, %5 in 3 : vector<2x14x16x8xf32>, vector<2x14x16x8xf32>, vector<2x14x16x8xf32>, vector<2x14x16x8xf32>, vector<2x14x16x8xf32> -> vector<2x14x16x40xf32>
    %7 = vector.extract_strided_slice %0 {offsets = [0, 16, 0, 0], sizes = [2, 14, 16, 8], strides = [1, 1, 1, 1]} : vector<2x32x16x8xf32> to vector<2x14x16x8xf32>
    %8 = vector.extract_strided_slice %0 {offsets = [0, 1, 0, 0], sizes = [2, 14, 16, 8], strides = [1, 1, 1, 1]} : vector<2x32x16x8xf32> to vector<2x14x16x8xf32>
    %9 = vector.extract_strided_slice %0 {offsets = [0, 17, 0, 0], sizes = [2, 14, 16, 8], strides = [1, 1, 1, 1]} : vector<2x32x16x8xf32> to vector<2x14x16x8xf32>
    %10 = vector.extract_strided_slice %0 {offsets = [0, 2, 0, 0], sizes = [2, 14, 16, 8], strides = [1, 1, 1, 1]} : vector<2x32x16x8xf32> to vector<2x14x16x8xf32>
    %11 = vector.extract_strided_slice %0 {offsets = [0, 18, 0, 0], sizes = [2, 14, 16, 8], strides = [1, 1, 1, 1]} : vector<2x32x16x8xf32> to vector<2x14x16x8xf32>
    %12 = tpu.concatenate %7, %8, %9, %10, %11 in 3 : vector<2x14x16x8xf32>, vector<2x14x16x8xf32>, vector<2x14x16x8xf32>, vector<2x14x16x8xf32>, vector<2x14x16x8xf32> -> vector<2x14x16x40xf32>
    %13 = tpu.concatenate %6, %12 in 0 : vector<2x14x16x40xf32>, vector<2x14x16x40xf32> -> vector<4x14x16x40xf32>
    %14 = vector.shape_cast %13 : vector<4x14x16x40xf32> to vector<896x40xf32>
    %c0_3 = arith.constant 0 : index
    %c0_4 = arith.constant 0 : index
    %15 = vector.load %arg2[%c0_3, %c0_4] : memref<40x16xf32, #tpu.memory_space<vmem>>, vector<40x16xf32>
    %cst = arith.constant dense<0.000000e+00> : vector<896x16xf32>
    %16 = tpu.matmul %14, %15, %cst {dimension_numbers = #tpu.dot_dimension_numbers<[1], [0], [0], [1], [0, 0, 1, 1], [], []>} : vector<896x40xf32>, vector<40x16xf32>, vector<896x16xf32> -> vector<896x16xf32>
    %c0_5 = arith.constant 0 : index
    %c0_6 = arith.constant 0 : index
    %17 = vector.load %arg3[%c0_5, %c0_6] : memref<40x16xf32, #tpu.memory_space<vmem>>, vector<40x16xf32>
    %cst_7 = arith.constant dense<0.000000e+00> : vector<896x16xf32>
    %18 = tpu.matmul %14, %17, %cst_7 {dimension_numbers = #tpu.dot_dimension_numbers<[1], [0], [0], [1], [0, 0, 1, 1], [], []>} : vector<896x40xf32>, vector<40x16xf32>, vector<896x16xf32> -> vector<896x16xf32>
    %19 = vector.extract_strided_slice %16 {offsets = [0, 0], sizes = [448, 16], strides = [1, 1]} : vector<896x16xf32> to vector<448x16xf32>
    %20 = vector.extract_strided_slice %16 {offsets = [448, 0], sizes = [448, 16], strides = [1, 1]} : vector<896x16xf32> to vector<448x16xf32>
    %21 = arith.maximumf %19, %20 : vector<448x16xf32>
    %22 = vector.extract_strided_slice %18 {offsets = [0, 0], sizes = [448, 16], strides = [1, 1]} : vector<896x16xf32> to vector<448x16xf32>
    %23 = vector.extract_strided_slice %18 {offsets = [448, 0], sizes = [448, 16], strides = [1, 1]} : vector<896x16xf32> to vector<448x16xf32>
    %24 = arith.maximumf %22, %23 : vector<448x16xf32>
    %25 = arith.maximumf %21, %24 : vector<448x16xf32>
    %c0_8 = arith.constant 0 : index
    %c0_9 = arith.constant 0 : index
    %26 = vector.load %arg4[%c0_8, %c0_9] : memref<1x16xf32, #tpu.memory_space<vmem>>, vector<1x16xf32>
    %27 = vector.broadcast %26 : vector<1x16xf32> to vector<448x16xf32>
    %28 = arith.addf %25, %27 : vector<448x16xf32>
    %cst_10 = arith.constant 0.000000e+00 : f32
    %29 = vector.broadcast %cst_10 : f32 to vector<448x16xf32>
    %30 = arith.maximumf %28, %29 : vector<448x16xf32>
    %31 = vector.shape_cast %30 : vector<448x16xf32> to vector<2x14x16x16xf32>
    %c0_11 = arith.constant 0 : index
    %c0_12 = arith.constant 0 : index
    %c0_13 = arith.constant 0 : index
    %c0_14 = arith.constant 0 : index
    %32 = vector.load %arg5[%c0_11, %c0_12, %c0_13, %c0_14] : memref<2x14x16x16xf32, #tpu.memory_space<vmem>>, vector<2x14x16x16xf32>
    tpu.vector_store %arg5[%c0_11, %c0_12, %c0_13, %c0_14], %31 {strides = array<i32>} : memref<2x14x16x16xf32, #tpu.memory_space<vmem>>, vector<2x14x16x16xf32>,
    return
  }
  func.func @transform_0(%arg0: i32) -> (i32, i32, i32, i32) {
    %c0_i32 = arith.constant 0 : i32
    %c0_i32_0 = arith.constant 0 : i32
    %c0_i32_1 = arith.constant 0 : i32
    %c0_i32_2 = arith.constant 0 : i32
    return %arg0, %c0_i32, %c0_i32_0, %c0_i32_1 : i32, i32, i32, i32
  }
  func.func @transform_1(%arg0: i32) -> (i32, i32) {
    %c0_i32 = arith.constant 0 : i32
    %c0_i32_0 = arith.constant 0 : i32
    %c0_i32_1 = arith.constant 0 : i32
    return %c0_i32, %c0_i32_0 : i32, i32
  }
  func.func @transform_2(%arg0: i32) -> (i32, i32) {
    %c0_i32 = arith.constant 0 : i32
    %c0_i32_0 = arith.constant 0 : i32
    %c0_i32_1 = arith.constant 0 : i32
    return %c0_i32, %c0_i32_0 : i32, i32
  }
  func.func @transform_3(%arg0: i32) -> (i32, i32) {
    %c0_i32 = arith.constant 0 : i32
    %c0_i32_0 = arith.constant 0 : i32
    %c0_i32_1 = arith.constant 0 : i32
    return %c0_i32, %c0_i32_0 : i32, i32
  }
  func.func @transform_4(%arg0: i32) -> (i32, i32, i32, i32) {
    %c0_i32 = arith.constant 0 : i32
    %c0_i32_0 = arith.constant 0 : i32
    %c0_i32_1 = arith.constant 0 : i32
    %c0_i32_2 = arith.constant 0 : i32
    return %arg0, %c0_i32, %c0_i32_0, %c0_i32_1 : i32, i32, i32, i32
  }
}

module attributes {stable_mosaic.version = 11 : i64} {
  func.func @_conv_relu_pool_kernel(%arg0: i32, %arg1: memref<2x18x8x128xf32, #tpu.memory_space<vmem>>, %arg2: memref<640x32xf32, #tpu.memory_space<vmem>>, %arg3: memref<640x32xf32, #tpu.memory_space<vmem>>, %arg4: memref<1x32xf32, #tpu.memory_space<vmem>>, %arg5: memref<2x7x8x32xf32, #tpu.memory_space<vmem>>) attributes {dimension_semantics = [#tpu.dimension_semantics<parallel>], iteration_bounds = array<i64: 1>, scalar_prefetch = 0 : i64, scratch_operands = 0 : i64, tpu.core_type = #tpu.core_type<tc>, window_params = [{transform_indices = @transform_0, window_bounds = array<i64: 2, 18, 8, 128>}, {pipeline_mode = #tpu.pipeline_mode<synchronous>, transform_indices = @transform_1, window_bounds = array<i64: 640, 32>}, {pipeline_mode = #tpu.pipeline_mode<synchronous>, transform_indices = @transform_2, window_bounds = array<i64: 640, 32>}, {pipeline_mode = #tpu.pipeline_mode<synchronous>, transform_indices = @transform_3, window_bounds = array<i64: 1, 32>}, {transform_indices = @transform_4, window_bounds = array<i64: 2, 7, 8, 32>}]} {
    %c0 = arith.constant 0 : index
    %c0_0 = arith.constant 0 : index
    %c0_1 = arith.constant 0 : index
    %c0_2 = arith.constant 0 : index
    %0 = vector.load %arg1[%c0, %c0_0, %c0_1, %c0_2] : memref<2x18x8x128xf32, #tpu.memory_space<vmem>>, vector<2x18x8x128xf32>
    %1 = vector.extract_strided_slice %0 {offsets = [0, 0, 0, 0], sizes = [2, 7, 8, 128], strides = [1, 1, 1, 1]} : vector<2x18x8x128xf32> to vector<2x7x8x128xf32>
    %2 = vector.extract_strided_slice %0 {offsets = [0, 9, 0, 0], sizes = [2, 7, 8, 128], strides = [1, 1, 1, 1]} : vector<2x18x8x128xf32> to vector<2x7x8x128xf32>
    %3 = vector.extract_strided_slice %0 {offsets = [0, 1, 0, 0], sizes = [2, 7, 8, 128], strides = [1, 1, 1, 1]} : vector<2x18x8x128xf32> to vector<2x7x8x128xf32>
    %4 = vector.extract_strided_slice %0 {offsets = [0, 10, 0, 0], sizes = [2, 7, 8, 128], strides = [1, 1, 1, 1]} : vector<2x18x8x128xf32> to vector<2x7x8x128xf32>
    %5 = vector.extract_strided_slice %0 {offsets = [0, 2, 0, 0], sizes = [2, 7, 8, 128], strides = [1, 1, 1, 1]} : vector<2x18x8x128xf32> to vector<2x7x8x128xf32>
    %6 = tpu.concatenate %1, %2, %3, %4, %5 in 3 : vector<2x7x8x128xf32>, vector<2x7x8x128xf32>, vector<2x7x8x128xf32>, vector<2x7x8x128xf32>, vector<2x7x8x128xf32> -> vector<2x7x8x640xf32>
    %7 = vector.extract_strided_slice %0 {offsets = [0, 9, 0, 0], sizes = [2, 7, 8, 128], strides = [1, 1, 1, 1]} : vector<2x18x8x128xf32> to vector<2x7x8x128xf32>
    %8 = vector.extract_strided_slice %0 {offsets = [0, 1, 0, 0], sizes = [2, 7, 8, 128], strides = [1, 1, 1, 1]} : vector<2x18x8x128xf32> to vector<2x7x8x128xf32>
    %9 = vector.extract_strided_slice %0 {offsets = [0, 10, 0, 0], sizes = [2, 7, 8, 128], strides = [1, 1, 1, 1]} : vector<2x18x8x128xf32> to vector<2x7x8x128xf32>
    %10 = vector.extract_strided_slice %0 {offsets = [0, 2, 0, 0], sizes = [2, 7, 8, 128], strides = [1, 1, 1, 1]} : vector<2x18x8x128xf32> to vector<2x7x8x128xf32>
    %11 = vector.extract_strided_slice %0 {offsets = [0, 11, 0, 0], sizes = [2, 7, 8, 128], strides = [1, 1, 1, 1]} : vector<2x18x8x128xf32> to vector<2x7x8x128xf32>
    %12 = tpu.concatenate %7, %8, %9, %10, %11 in 3 : vector<2x7x8x128xf32>, vector<2x7x8x128xf32>, vector<2x7x8x128xf32>, vector<2x7x8x128xf32>, vector<2x7x8x128xf32> -> vector<2x7x8x640xf32>
    %13 = tpu.concatenate %6, %12 in 0 : vector<2x7x8x640xf32>, vector<2x7x8x640xf32> -> vector<4x7x8x640xf32>
    %14 = vector.shape_cast %13 : vector<4x7x8x640xf32> to vector<224x640xf32>
    %c0_3 = arith.constant 0 : index
    %c0_4 = arith.constant 0 : index
    %15 = vector.load %arg2[%c0_3, %c0_4] : memref<640x32xf32, #tpu.memory_space<vmem>>, vector<640x32xf32>
    %cst = arith.constant dense<0.000000e+00> : vector<224x32xf32>
    %16 = tpu.matmul %14, %15, %cst {dimension_numbers = #tpu.dot_dimension_numbers<[1], [0], [0], [1], [0, 0, 1, 1], [], []>} : vector<224x640xf32>, vector<640x32xf32>, vector<224x32xf32> -> vector<224x32xf32>
    %c0_5 = arith.constant 0 : index
    %c0_6 = arith.constant 0 : index
    %17 = vector.load %arg3[%c0_5, %c0_6] : memref<640x32xf32, #tpu.memory_space<vmem>>, vector<640x32xf32>
    %cst_7 = arith.constant dense<0.000000e+00> : vector<224x32xf32>
    %18 = tpu.matmul %14, %17, %cst_7 {dimension_numbers = #tpu.dot_dimension_numbers<[1], [0], [0], [1], [0, 0, 1, 1], [], []>} : vector<224x640xf32>, vector<640x32xf32>, vector<224x32xf32> -> vector<224x32xf32>
    %19 = vector.extract_strided_slice %16 {offsets = [0, 0], sizes = [112, 32], strides = [1, 1]} : vector<224x32xf32> to vector<112x32xf32>
    %20 = vector.extract_strided_slice %16 {offsets = [112, 0], sizes = [112, 32], strides = [1, 1]} : vector<224x32xf32> to vector<112x32xf32>
    %21 = arith.maximumf %19, %20 : vector<112x32xf32>
    %22 = vector.extract_strided_slice %18 {offsets = [0, 0], sizes = [112, 32], strides = [1, 1]} : vector<224x32xf32> to vector<112x32xf32>
    %23 = vector.extract_strided_slice %18 {offsets = [112, 0], sizes = [112, 32], strides = [1, 1]} : vector<224x32xf32> to vector<112x32xf32>
    %24 = arith.maximumf %22, %23 : vector<112x32xf32>
    %25 = arith.maximumf %21, %24 : vector<112x32xf32>
    %c0_8 = arith.constant 0 : index
    %c0_9 = arith.constant 0 : index
    %26 = vector.load %arg4[%c0_8, %c0_9] : memref<1x32xf32, #tpu.memory_space<vmem>>, vector<1x32xf32>
    %27 = vector.broadcast %26 : vector<1x32xf32> to vector<112x32xf32>
    %28 = arith.addf %25, %27 : vector<112x32xf32>
    %cst_10 = arith.constant 0.000000e+00 : f32
    %29 = vector.broadcast %cst_10 : f32 to vector<112x32xf32>
    %30 = arith.maximumf %28, %29 : vector<112x32xf32>
    %31 = vector.shape_cast %30 : vector<112x32xf32> to vector<2x7x8x32xf32>
    %c0_11 = arith.constant 0 : index
    %c0_12 = arith.constant 0 : index
    %c0_13 = arith.constant 0 : index
    %c0_14 = arith.constant 0 : index
    %32 = vector.load %arg5[%c0_11, %c0_12, %c0_13, %c0_14] : memref<2x7x8x32xf32, #tpu.memory_space<vmem>>, vector<2x7x8x32xf32>
    tpu.vector_store %arg5[%c0_11, %c0_12, %c0_13, %c0_14], %31 {strides = array<i32>} : memref<2x7x8x32xf32, #tpu.memory_space<vmem>>, vector<2x7x8x32xf32>,
    return
  }
  func.func @transform_0(%arg0: i32) -> (i32, i32, i32, i32) {
    %c0_i32 = arith.constant 0 : i32
    %c0_i32_0 = arith.constant 0 : i32
    %c0_i32_1 = arith.constant 0 : i32
    %c0_i32_2 = arith.constant 0 : i32
    return %arg0, %c0_i32, %c0_i32_0, %c0_i32_1 : i32, i32, i32, i32
  }
  func.func @transform_1(%arg0: i32) -> (i32, i32) {
    %c0_i32 = arith.constant 0 : i32
    %c0_i32_0 = arith.constant 0 : i32
    %c0_i32_1 = arith.constant 0 : i32
    return %c0_i32, %c0_i32_0 : i32, i32
  }
  func.func @transform_2(%arg0: i32) -> (i32, i32) {
    %c0_i32 = arith.constant 0 : i32
    %c0_i32_0 = arith.constant 0 : i32
    %c0_i32_1 = arith.constant 0 : i32
    return %c0_i32, %c0_i32_0 : i32, i32
  }
  func.func @transform_3(%arg0: i32) -> (i32, i32) {
    %c0_i32 = arith.constant 0 : i32
    %c0_i32_0 = arith.constant 0 : i32
    %c0_i32_1 = arith.constant 0 : i32
    return %c0_i32, %c0_i32_0 : i32, i32
  }
  func.func @transform_4(%arg0: i32) -> (i32, i32, i32, i32) {
    %c0_i32 = arith.constant 0 : i32
    %c0_i32_0 = arith.constant 0 : i32
    %c0_i32_1 = arith.constant 0 : i32
    %c0_i32_2 = arith.constant 0 : i32
    return %arg0, %c0_i32, %c0_i32_0, %c0_i32_1 : i32, i32, i32, i32
  }
}

module attributes {stable_mosaic.version = 11 : i64} {
  func.func @_linear_kernel(%arg0: memref<2x1792xf32, #tpu.memory_space<vmem>>, %arg1: memref<1792x10xf32, #tpu.memory_space<vmem>>, %arg2: memref<1x10xf32, #tpu.memory_space<vmem>>, %arg3: memref<2x10xf32, #tpu.memory_space<vmem>>) attributes {dimension_semantics = [], scalar_prefetch = 0 : i64, scratch_operands = 0 : i64, tpu.core_type = #tpu.core_type<tc>} {
    %c0 = arith.constant 0 : index
    %c0_0 = arith.constant 0 : index
    %0 = vector.load %arg0[%c0, %c0_0] : memref<2x1792xf32, #tpu.memory_space<vmem>>, vector<2x1792xf32>
    %c0_1 = arith.constant 0 : index
    %c0_2 = arith.constant 0 : index
    %1 = vector.load %arg1[%c0_1, %c0_2] : memref<1792x10xf32, #tpu.memory_space<vmem>>, vector<1792x10xf32>
    %cst = arith.constant dense<0.000000e+00> : vector<2x10xf32>
    %2 = tpu.matmul %0, %1, %cst {dimension_numbers = #tpu.dot_dimension_numbers<[1], [0], [0], [1], [0, 0, 1, 1], [], []>} : vector<2x1792xf32>, vector<1792x10xf32>, vector<2x10xf32> -> vector<2x10xf32>
    %c0_3 = arith.constant 0 : index
    %c0_4 = arith.constant 0 : index
    %3 = vector.load %arg2[%c0_3, %c0_4] : memref<1x10xf32, #tpu.memory_space<vmem>>, vector<1x10xf32>
    %4 = vector.broadcast %3 : vector<1x10xf32> to vector<2x10xf32>
    %5 = arith.addf %2, %4 : vector<2x10xf32>
    %c0_5 = arith.constant 0 : index
    %c0_6 = arith.constant 0 : index
    %6 = vector.load %arg3[%c0_5, %c0_6] : memref<2x10xf32, #tpu.memory_space<vmem>>, vector<2x10xf32>
    tpu.vector_store %arg3[%c0_5, %c0_6], %5 {strides = array<i32>} : memref<2x10xf32, #tpu.memory_space<vmem>>, vector<2x10xf32>,
    return
  }
}

</mosaic_0001>

<bundles_post_ra>
// kernel: cnn_forward.3
= control target key start
LH: loop header
LB: loop body
LE: loop exit
PB: predicated region body
PF: predicated region fallthrough
CT: control target
= control target key end

     0   :  { %s4961_s19 = smov 8   ;;  %s4962_s6 = smov 16   ;;  %vm937_vm0 = vcmask 64512   ;;  %vm994_vm1 = vcmask 130048   ;;  %vm1051_vm2 = vcmask 195584   ;;  %vm1108_vm3 = vcmask 261120   ;;  %s9002_s0 = inlined_call_operand.vmem [shape: f32[2,32,16,8], index: 0, kind: input, shape index: {}]   ;;  %s9003_s1 = inlined_call_operand.vmem [shape: f32[40,16], index: 1, kind: input, shape index: {}]   ;;  %s9004_s2 = inlined_call_operand.vmem [shape: f32[40,16], index: 2, kind: input, shape index: {}]   ;;  %s9005_s3 = inlined_call_operand.vmem [shape: f32[1,16], index: 3, kind: input, shape index: {}]   ;;  %s9006_s4 = inlined_call_operand.vmem [shape: f32[2,14,16,16], index: 4, kind: output, shape index: {}]  }
   0x1   :  { %v4993_v0 = vld [vmem:[%s9002_s0 + $0x110] sm:$0xff]  ;;  %v49_v1 = vld [vmem:[%s9002_s0 + $0x100] sm:$0xff]  ;;  %v5004_v2 = vld [vmem:[%s9002_s0 + $0x118] sm:$0xff]  ;;  %s4963_s20 = smov 24   ;;  %s4964_s24 = smov 32   ;;  %vm2070_vm4 = vcmask 326656  }
   0x2   :  { %205 = vrot.lane.b32.xlu1 %v4993_v0, %s4961_s19  ;;  %201 = vrot.lane.b32.xlu0 %v49_v1, %s4961_s19  ;;  %v50_v3 = vld [vmem:[%s9002_s0 + $0x108] sm:$0xff]  ;;  %v5020_v5 = vld [vmem:[%s9002_s0 + $0x120] sm:$0xff] }
   0x3   :  { %v5015_v4 = vld [vmem:[%s9002_s0 + $0x128] sm:$0xff]  ;;  %v5029_v6 = vld [vmem:[%s9002_s0 + $0x138] sm:$0xff]  ;;  %v5034_v7 = vld [vmem:[%s9002_s0 + $0x130] sm:$0xff] }
   0x4   :  { %v5043_v8 = vld [vmem:[%s9002_s0 + $0x148] sm:$0xff]  ;;  %v5048_v9 = vld [vmem:[%s9002_s0 + $0x140] sm:$0xff]  ;;  %v5057_v10 = vld [vmem:[%s9002_s0 + $0x158] sm:$0xff] }
   0x5   :  { %v5062_v11 = vld [vmem:[%s9002_s0 + $0x150] sm:$0xff]  ;;  %v5071_v12 = vld [vmem:[%s9002_s0 + $0x168] sm:$0xff]  ;;  %v5076_v13 = vld [vmem:[%s9002_s0 + $0x160] sm:$0xff] }
   0x6   :  { %207 = vrot.lane.b32.xlu1 %v5004_v2, %s4961_s19  ;;  %203 = vrot.lane.b32.xlu0 %v50_v3, %s4961_s19  ;;  %v5085_v14 = vld [vmem:[%s9002_s0 + $0x178] sm:$0xff]  ;;  %v5090_v15 = vld [vmem:[%s9002_s0 + $0x170] sm:$0xff] }
   0x7   :  { %v5099_v16 = vld [vmem:[%s9002_s0 + $0x188] sm:$0xff]  ;;  %v5104_v17 = vld [vmem:[%s9002_s0 + $0x180] sm:$0xff]  ;;  %v5113_v18 = vld [vmem:[%s9002_s0 + $0x198] sm:$0xff] }
   0x8   :  { %v5118_v19 = vld [vmem:[%s9002_s0 + $0x190] sm:$0xff]  ;;  %v5127_v20 = vld [vmem:[%s9002_s0 + $0x1a8] sm:$0xff]  ;;  %v5132_v21 = vld [vmem:[%s9002_s0 + $0x1a0] sm:$0xff] }
   0x9   :  { %v5141_v22 = vld [vmem:[%s9002_s0 + $0x1b8] sm:$0xff]  ;;  %v5146_v23 = vld [vmem:[%s9002_s0 + $0x1b0] sm:$0xff]  ;;  %v5155_v24 = vld [vmem:[%s9002_s0 + $0x1c8] sm:$0xff] }
   0xa   :  { %211 = vrot.lane.b32.xlu1 %v5015_v4, %s4961_s19  ;;  %209 = vrot.lane.b32.xlu0 %v5020_v5, %s4961_s19  ;;  %v5160_v25 = vld [vmem:[%s9002_s0 + $0x1c0] sm:$0xff]  ;;  %v5169_v26 = vld [vmem:[%s9002_s0 + $0x1d8] sm:$0xff] }
   0xb   :  { %v5174_v27 = vld [vmem:[%s9002_s0 + $0x1d0] sm:$0xff]  ;;  %v114_v28 = vld [vmem:[%s9002_s0 + $0x308] sm:$0xff]  ;;  %v113_v29 = vld [vmem:[%s9002_s0 + $0x300] sm:$0xff] }
   0xc   :  { %v5191_v30 = vld [vmem:[%s9002_s0 + $0x318] sm:$0xff]  ;;  %v5196_v31 = vld [vmem:[%s9002_s0 + $0x310] sm:$0xff]  ;;  %v5205_v32 = vld [vmem:[%s9002_s0 + $0x328] sm:$0xff] }
   0xd   :  { %v5210_v33 = vld [vmem:[%s9002_s0 + $0x320] sm:$0xff]  ;;  %v5219_v34 = vld [vmem:[%s9002_s0 + $0x338] sm:$0xff]  ;;  %v5224_v35 = vld [vmem:[%s9002_s0 + $0x330] sm:$0xff] }
   0xe   :  { %215 = vrot.lane.b32.xlu1 %v5029_v6, %s4961_s19  ;;  %213 = vrot.lane.b32.xlu0 %v5034_v7, %s4961_s19  ;;  %v5233_v36 = vld [vmem:[%s9002_s0 + $0x348] sm:$0xff]  ;;  %v5238_v37 = vld [vmem:[%s9002_s0 + $0x340] sm:$0xff] }
   0xf   :  { %v5247_v38 = vld [vmem:[%s9002_s0 + $0x358] sm:$0xff]  ;;  %v5252_v39 = vld [vmem:[%s9002_s0 + $0x350] sm:$0xff]  ;;  %v5261_v40 = vld [vmem:[%s9002_s0 + $0x368] sm:$0xff] }
  0x10   :  { %v5266_v41 = vld [vmem:[%s9002_s0 + $0x360] sm:$0xff]  ;;  %v5275_v42 = vld [vmem:[%s9002_s0 + $0x378] sm:$0xff]  ;;  %v5280_v43 = vld [vmem:[%s9002_s0 + $0x370] sm:$0xff] }
  0x11   :  { %v5289_v44 = vld [vmem:[%s9002_s0 + $0x388] sm:$0xff]  ;;  %v5294_v45 = vld [vmem:[%s9002_s0 + $0x380] sm:$0xff]  ;;  %v5303_v46 = vld [vmem:[%s9002_s0 + $0x398] sm:$0xff] }
  0x12   :  { %219 = vrot.lane.b32.xlu1 %v5043_v8, %s4961_s19  ;;  %217 = vrot.lane.b32.xlu0 %v5048_v9, %s4961_s19  ;;  %v5308_v47 = vld [vmem:[%s9002_s0 + $0x390] sm:$0xff]  ;;  %v5317_v48 = vld [vmem:[%s9002_s0 + $0x3a8] sm:$0xff] }
  0x13   :  { %v5322_v49 = vld [vmem:[%s9002_s0 + $0x3a0] sm:$0xff]  ;;  %v5331_v50 = vld [vmem:[%s9002_s0 + $0x3b8] sm:$0xff]  ;;  %v5336_v51 = vld [vmem:[%s9002_s0 + $0x3b0] sm:$0xff] }
  0x14   :  { %v5345_v52 = vld [vmem:[%s9002_s0 + $0x3c8] sm:$0xff]  ;;  %v5350_v53 = vld [vmem:[%s9002_s0 + $0x3c0] sm:$0xff]  ;;  %v5359_v54 = vld [vmem:[%s9002_s0 + $0x3d8] sm:$0xff] }
  0x15   :  { %v5364_v55 = vld [vmem:[%s9002_s0 + $0x3d0] sm:$0xff]  ;;  %v5373_v56 = vld [vmem:[%s9002_s0 + $0x18] sm:$0xff]  ;;  %v5387_v58 = vld [vmem:[%s9002_s0 + $0x28] sm:$0xff] }
  0x16   :  { %223 = vrot.lane.b32.xlu1 %v5057_v10, %s4961_s19  ;;  %221 = vrot.lane.b32.xlu0 %v5062_v11, %s4961_s19  ;;  %9078 = vst [vmem:[#allocation2_spill] sm:$0xff] %v5373_v56  ;;  %v5378_v57 = vld [vmem:[%s9002_s0 + $0x10] sm:$0xff]  ;;  %v5392_v59 = vld [vmem:[%s9002_s0 + $0x20] sm:$0xff] }
  0x17   :  { %9079 = vst [vmem:[#allocation3_spill] sm:$0xff] %v5378_v57  ;;  %v5405_v62 = vld [vmem:[%s9002_s0 + $0x38] sm:$0xff]  ;;  %v5410_v63 = vld [vmem:[%s9002_s0 + $0x30] sm:$0xff] }
  0x1a   :  { %227 = vrot.lane.b32.xlu1 %v5071_v12, %s4961_s19  ;;  %225 = vrot.lane.b32.xlu0 %v5076_v13, %s4961_s19 }
  0x1e   :  { %231 = vrot.lane.b32.xlu1 %v5085_v14, %s4961_s19  ;;  %229 = vrot.lane.b32.xlu0 %v5090_v15, %s4961_s19 }
  0x22   :  { %235 = vrot.lane.b32.xlu1 %v5099_v16, %s4961_s19  ;;  %233 = vrot.lane.b32.xlu0 %v5104_v17, %s4961_s19 }
  0x26   :  { %239 = vrot.lane.b32.xlu1 %v5113_v18, %s4961_s19  ;;  %237 = vrot.lane.b32.xlu0 %v5118_v19, %s4961_s19 }
  0x2a   :  { %243 = vrot.lane.b32.xlu1 %v5127_v20, %s4961_s19  ;;  %241 = vrot.lane.b32.xlu0 %v5132_v21, %s4961_s19 }
  0x2e   :  { %247 = vrot.lane.b32.xlu1 %v5141_v22, %s4961_s19  ;;  %245 = vrot.lane.b32.xlu0 %v5146_v23, %s4961_s19 }
  0x32   :  { %251 = vrot.lane.b32.xlu1 %v5155_v24, %s4961_s19  ;;  %249 = vrot.lane.b32.xlu0 %v5160_v25, %s4961_s19 }
  0x36   :  { %255 = vrot.lane.b32.xlu1 %v5169_v26, %s4961_s19  ;;  %253 = vrot.lane.b32.xlu0 %v5174_v27, %s4961_s19 }
  0x3a   :  { %259 = vrot.lane.b32.xlu1 %v114_v28, %s4961_s19  ;;  %257 = vrot.lane.b32.xlu0 %v113_v29, %s4961_s19  ;;  %v5423_v28 = vld [vmem:[%s9002_s0 + $0x48] sm:$0xff]  ;;  %v5428_v29 = vld [vmem:[%s9002_s0 + $0x40] sm:$0xff] }
  0x3b   :  { %9084 = vst [vmem:[#allocation8_spill] sm:$0xff] %v5423_v28  ;;  %9085 = vst [vmem:[#allocation9_spill] sm:$0xff] %v5428_v29 }
  0x3e   :  { %263 = vrot.lane.b32.xlu1 %v5191_v30, %s4961_s19  ;;  %261 = vrot.lane.b32.xlu0 %v5196_v31, %s4961_s19 }
  0x42   :  { %267 = vrot.lane.b32.xlu1 %v5205_v32, %s4961_s19  ;;  %265 = vrot.lane.b32.xlu0 %v5210_v33, %s4961_s19 }
  0x46   :  { %271 = vrot.lane.b32.xlu1 %v5219_v34, %s4961_s19  ;;  %269 = vrot.lane.b32.xlu0 %v5224_v35, %s4961_s19 }
  0x4a   :  { %275 = vrot.lane.b32.xlu1 %v5233_v36, %s4961_s19  ;;  %273 = vrot.lane.b32.xlu0 %v5238_v37, %s4961_s19 }
  0x4e   :  { %279 = vrot.lane.b32.xlu1 %v5247_v38, %s4961_s19  ;;  %277 = vrot.lane.b32.xlu0 %v5252_v39, %s4961_s19 }
  0x52   :  { %283 = vrot.lane.b32.xlu1 %v5261_v40, %s4961_s19  ;;  %281 = vrot.lane.b32.xlu0 %v5266_v41, %s4961_s19 }
  0x56   :  { %287 = vrot.lane.b32.xlu1 %v5275_v42, %s4961_s19  ;;  %285 = vrot.lane.b32.xlu0 %v5280_v43, %s4961_s19 }
  0x5a   :  { %291 = vrot.lane.b32.xlu1 %v5289_v44, %s4961_s19  ;;  %289 = vrot.lane.b32.xlu0 %v5294_v45, %s4961_s19 }
  0x5e   :  { %295 = vrot.lane.b32.xlu1 %v5303_v46, %s4961_s19  ;;  %293 = vrot.lane.b32.xlu0 %v5308_v47, %s4961_s19 }
  0x62   :  { %299 = vrot.lane.b32.xlu1 %v5317_v48, %s4961_s19  ;;  %297 = vrot.lane.b32.xlu0 %v5322_v49, %s4961_s19 }
  0x66   :  { %303 = vrot.lane.b32.xlu1 %v5331_v50, %s4961_s19  ;;  %301 = vrot.lane.b32.xlu0 %v5336_v51, %s4961_s19 }
  0x6a   :  { %307 = vrot.lane.b32.xlu1 %v5345_v52, %s4961_s19  ;;  %305 = vrot.lane.b32.xlu0 %v5350_v53, %s4961_s19 }
  0x6e   :  { %311 = vrot.lane.b32.xlu1 %v5359_v54, %s4961_s19  ;;  %309 = vrot.lane.b32.xlu0 %v5364_v55, %s4961_s19 }
  0x72   :  { %427 = vrot.lane.b32.xlu1 %v5373_v56, %s4962_s6  ;;  %425 = vrot.lane.b32.xlu0 %v5378_v57, %s4962_s6  ;;  %v5441_v57 = vld [vmem:[%s9002_s0 + $0x58] sm:$0xff]  ;;  %v5446_v56 = vld [vmem:[%s9002_s0 + $0x50] sm:$0xff] }
  0x73   :  { %9088 = vst [vmem:[#allocation12_spill] sm:$0xff] %v5441_v57  ;;  %9089 = vst [vmem:[#allocation13_spill] sm:$0xff] %v5446_v56 }
  0x74   :  { %v5394_v60 = vpop.permute.xlu1 %205  ;;  %v5396_v61 = vpop.permute.xlu0 %201 }
  0x75   :  { %9080 = vst [vmem:[#allocation4_spill] sm:$0xff] %v5394_v60  ;;  %9081 = vst [vmem:[#allocation5_spill] sm:$0xff] %v5396_v61  ;;  %v5464_v61 = vld [vmem:[%s9002_s0 + $0x60] sm:$0xff] }
  0x76   :  { %431 = vrot.lane.b32.xlu1 %v5387_v58, %s4962_s6  ;;  %429 = vrot.lane.b32.xlu0 %v5392_v59, %s4962_s6  ;;  %9093 = vst [vmem:[#allocation17_spill] sm:$0xff] %v5464_v61 }
  0x78   :  { %v5412_v1 = vpop.permute.xlu1 %207  ;;  %v5414_v3 = vpop.permute.xlu0 %203 }
  0x79   :  { %9082 = vst [vmem:[#allocation6_spill] sm:$0xff] %v5412_v1  ;;  %9083 = vst [vmem:[#allocation7_spill] sm:$0xff] %v5414_v3 }
  0x7a   :  { %435 = vrot.lane.b32.xlu1 %v5405_v62, %s4962_s6  ;;  %433 = vrot.lane.b32.xlu0 %v5410_v63, %s4962_s6 }
  0x7c   :  { %v5430_v60 = vpop.permute.xlu1 %211  ;;  %v5432_v1 = vpop.permute.xlu0 %209 }
  0x7d   :  { %9086 = vst [vmem:[#allocation10_spill] sm:$0xff] %v5430_v60  ;;  %9087 = vst [vmem:[#allocation11_spill] sm:$0xff] %v5432_v1  ;;  %v5459_v1 = vld [vmem:[%s9002_s0 + $0x68] sm:$0xff] }
  0x7e   :  { %439 = vrot.lane.b32.xlu1 %v5423_v28, %s4962_s6  ;;  %437 = vrot.lane.b32.xlu0 %v5428_v29, %s4962_s6  ;;  %9092 = vst [vmem:[#allocation16_spill] sm:$0xff] %v5459_v1 }
  0x80   :  { %v5448_v3 = vpop.permute.xlu1 %215  ;;  %v5450_v60 = vpop.permute.xlu0 %213 }
  0x81   :  { %9090 = vst [vmem:[#allocation14_spill] sm:$0xff] %v5448_v3  ;;  %9091 = vst [vmem:[#allocation15_spill] sm:$0xff] %v5450_v60  ;;  %v5477_v60 = vld [vmem:[%s9002_s0 + $0x78] sm:$0xff] }
  0x82   :  { %443 = vrot.lane.b32.xlu1 %v5441_v57, %s4962_s6  ;;  %441 = vrot.lane.b32.xlu0 %v5446_v56, %s4962_s6  ;;  %9096 = vst [vmem:[#allocation20_spill] sm:$0xff] %v5477_v60  ;;  %v5482_v56 = vld [vmem:[%s9002_s0 + $0x70] sm:$0xff] }
  0x83   :  { %9097 = vst [vmem:[#allocation21_spill] sm:$0xff] %v5482_v56 }
  0x84   :  { %v5466_v29 = vpop.permute.xlu1 %219  ;;  %v5468_v3 = vpop.permute.xlu0 %217 }
  0x85   :  { %9094 = vst [vmem:[#allocation18_spill] sm:$0xff] %v5466_v29  ;;  %9095 = vst [vmem:[#allocation19_spill] sm:$0xff] %v5468_v3  ;;  %v5495_v3 = vld [vmem:[%s9002_s0 + $0x88] sm:$0xff] }
  0x86   :  { %447 = vrot.lane.b32.xlu1 %v5459_v1, %s4962_s6  ;;  %445 = vrot.lane.b32.xlu0 %v5464_v61, %s4962_s6  ;;  %9100 = vst [vmem:[#allocation24_spill] sm:$0xff] %v5495_v3  ;;  %v5500_v61 = vld [vmem:[%s9002_s0 + $0x80] sm:$0xff] }
  0x87   :  { %9101 = vst [vmem:[#allocation25_spill] sm:$0xff] %v5500_v61 }
  0x88   :  { %v5484_v57 = vpop.permute.xlu1 %223  ;;  %v5486_v29 = vpop.permute.xlu0 %221 }
  0x89   :  { %9098 = vst [vmem:[#allocation22_spill] sm:$0xff] %v5484_v57  ;;  %9099 = vst [vmem:[#allocation23_spill] sm:$0xff] %v5486_v29  ;;  %v5513_v29 = vld [vmem:[%s9002_s0 + $0x98] sm:$0xff] }
  0x8a   :  { %451 = vrot.lane.b32.xlu1 %v5477_v60, %s4962_s6  ;;  %449 = vrot.lane.b32.xlu0 %v5482_v56, %s4962_s6  ;;  %9104 = vst [vmem:[#allocation28_spill] sm:$0xff] %v5513_v29  ;;  %v5518_v56 = vld [vmem:[%s9002_s0 + $0x90] sm:$0xff] }
  0x8b   :  { %9105 = vst [vmem:[#allocation29_spill] sm:$0xff] %v5518_v56 }
  0x8c   :  { %v5502_v1 = vpop.permute.xlu1 %227  ;;  %v5504_v57 = vpop.permute.xlu0 %225 }
  0x8d   :  { %9102 = vst [vmem:[#allocation26_spill] sm:$0xff] %v5502_v1  ;;  %9103 = vst [vmem:[#allocation27_spill] sm:$0xff] %v5504_v57  ;;  %v5531_v57 = vld [vmem:[%s9002_s0 + $0xa8] sm:$0xff] }
  0x8e   :  { %455 = vrot.lane.b32.xlu1 %v5495_v3, %s4962_s6  ;;  %453 = vrot.lane.b32.xlu0 %v5500_v61, %s4962_s6  ;;  %9108 = vst [vmem:[#allocation32_spill] sm:$0xff] %v5531_v57  ;;  %v5536_v61 = vld [vmem:[%s9002_s0 + $0xa0] sm:$0xff] }
  0x8f   :  { %9109 = vst [vmem:[#allocation33_spill] sm:$0xff] %v5536_v61 }
  0x90   :  { %v5520_v60 = vpop.permute.xlu1 %231  ;;  %v5522_v1 = vpop.permute.xlu0 %229 }
  0x91   :  { %9106 = vst [vmem:[#allocation30_spill] sm:$0xff] %v5520_v60  ;;  %9107 = vst [vmem:[#allocation31_spill] sm:$0xff] %v5522_v1  ;;  %v5549_v1 = vld [vmem:[%s9002_s0 + $0xb8] sm:$0xff] }
  0x92   :  { %459 = vrot.lane.b32.xlu1 %v5513_v29, %s4962_s6  ;;  %457 = vrot.lane.b32.xlu0 %v5518_v56, %s4962_s6  ;;  %9112 = vst [vmem:[#allocation36_spill] sm:$0xff] %v5549_v1  ;;  %v5554_v56 = vld [vmem:[%s9002_s0 + $0xb0] sm:$0xff] }
  0x93   :  { %9113 = vst [vmem:[#allocation37_spill] sm:$0xff] %v5554_v56 }
  0x94   :  { %v5538_v3 = vpop.permute.xlu1 %235  ;;  %v5540_v60 = vpop.permute.xlu0 %233 }
  0x95   :  { %9110 = vst [vmem:[#allocation34_spill] sm:$0xff] %v5538_v3  ;;  %9111 = vst [vmem:[#allocation35_spill] sm:$0xff] %v5540_v60  ;;  %v5567_v60 = vld [vmem:[%s9002_s0 + $0xc8] sm:$0xff] }
  0x96   :  { %463 = vrot.lane.b32.xlu1 %v5531_v57, %s4962_s6  ;;  %461 = vrot.lane.b32.xlu0 %v5536_v61, %s4962_s6  ;;  %9116 = vst [vmem:[#allocation40_spill] sm:$0xff] %v5567_v60  ;;  %v5572_v61 = vld [vmem:[%s9002_s0 + $0xc0] sm:$0xff] }
  0x97   :  { %9117 = vst [vmem:[#allocation41_spill] sm:$0xff] %v5572_v61 }
  0x98   :  { %v5556_v29 = vpop.permute.xlu1 %239  ;;  %v5558_v3 = vpop.permute.xlu0 %237 }
  0x99   :  { %9114 = vst [vmem:[#allocation38_spill] sm:$0xff] %v5556_v29  ;;  %9115 = vst [vmem:[#allocation39_spill] sm:$0xff] %v5558_v3  ;;  %v5585_v3 = vld [vmem:[%s9002_s0 + $0xd8] sm:$0xff] }
  0x9a   :  { %467 = vrot.lane.b32.xlu1 %v5549_v1, %s4962_s6  ;;  %465 = vrot.lane.b32.xlu0 %v5554_v56, %s4962_s6  ;;  %9120 = vst [vmem:[#allocation44_spill] sm:$0xff] %v5585_v3  ;;  %v5590_v56 = vld [vmem:[%s9002_s0 + $0xd0] sm:$0xff] }
  0x9b   :  { %9121 = vst [vmem:[#allocation45_spill] sm:$0xff] %v5590_v56 }
  0x9c   :  { %v5574_v57 = vpop.permute.xlu1 %243  ;;  %v5576_v29 = vpop.permute.xlu0 %241 }
  0x9d   :  { %9118 = vst [vmem:[#allocation42_spill] sm:$0xff] %v5574_v57  ;;  %9119 = vst [vmem:[#allocation43_spill] sm:$0xff] %v5576_v29  ;;  %v5603_v29 = vld [vmem:[%s9002_s0 + $0xe8] sm:$0xff] }
  0x9e   :  { %471 = vrot.lane.b32.xlu1 %v5567_v60, %s4962_s6  ;;  %469 = vrot.lane.b32.xlu0 %v5572_v61, %s4962_s6  ;;  %9124 = vst [vmem:[#allocation48_spill] sm:$0xff] %v5603_v29  ;;  %v5608_v61 = vld [vmem:[%s9002_s0 + $0xe0] sm:$0xff] }
  0x9f   :  { %9125 = vst [vmem:[#allocation49_spill] sm:$0xff] %v5608_v61 }
  0xa0   :  { %v5592_v1 = vpop.permute.xlu1 %247  ;;  %v5594_v57 = vpop.permute.xlu0 %245 }
  0xa1   :  { %9122 = vst [vmem:[#allocation46_spill] sm:$0xff] %v5592_v1  ;;  %9123 = vst [vmem:[#allocation47_spill] sm:$0xff] %v5594_v57  ;;  %v84_v57 = vld [vmem:[%s9002_s0 + $0x218] sm:$0xff] }
  0xa2   :  { %475 = vrot.lane.b32.xlu1 %v5585_v3, %s4962_s6  ;;  %473 = vrot.lane.b32.xlu0 %v5590_v56, %s4962_s6  ;;  %v83_v56 = vld [vmem:[%s9002_s0 + $0x210] sm:$0xff] }
  0xa4   :  { %v5610_v60 = vpop.permute.xlu1 %251  ;;  %v5612_v1 = vpop.permute.xlu0 %249 }
  0xa5   :  { %9126 = vst [vmem:[#allocation50_spill] sm:$0xff] %v5610_v60  ;;  %9127 = vst [vmem:[#allocation51_spill] sm:$0xff] %v5612_v1  ;;  %v5633_v1 = vld [vmem:[%s9002_s0 + $0x228] sm:$0xff]  ;;  %v5638_v60 = vld [vmem:[%s9002_s0 + $0x220] sm:$0xff] }
  0xa6   :  { %479 = vrot.lane.b32.xlu1 %v5603_v29, %s4962_s6  ;;  %477 = vrot.lane.b32.xlu0 %v5608_v61, %s4962_s6  ;;  %9130 = vst [vmem:[#allocation54_spill] sm:$0xff] %v5638_v60 }
  0xa8   :  { %v5624_v3 = vpop.permute.xlu1 %255  ;;  %v5626_v28 = vpop.permute.xlu0 %253 }
  0xa9   :  { %9128 = vst [vmem:[#allocation52_spill] sm:$0xff] %v5624_v3  ;;  %9129 = vst [vmem:[#allocation53_spill] sm:$0xff] %v5626_v28  ;;  %v5674_v3 = vld [vmem:[%s9002_s0 + $0x240] sm:$0xff] }
  0xaa   :  { %483 = vrot.lane.b32.xlu1 %v84_v57, %s4962_s6  ;;  %481 = vrot.lane.b32.xlu0 %v83_v56, %s4962_s6  ;;  %v5651_v56 = vld [vmem:[%s9002_s0 + $0x238] sm:$0xff]  ;;  %v5656_v57 = vld [vmem:[%s9002_s0 + $0x230] sm:$0xff]  ;;  %9138 = vst [vmem:[#allocation62_spill] sm:$0xff] %v5674_v3 }
  0xab   :  { %9133 = vst [vmem:[#allocation57_spill] sm:$0xff] %v5651_v56  ;;  %9134 = vst [vmem:[#allocation58_spill] sm:$0xff] %v5656_v57 }
  0xac   :  { %v5640_v61 = vpop.permute.xlu1 %259  ;;  %v5642_v29 = vpop.permute.xlu0 %257 }
  0xad   :  { %9131 = vst [vmem:[#allocation55_spill] sm:$0xff] %v5640_v61  ;;  %9132 = vst [vmem:[#allocation56_spill] sm:$0xff] %v5642_v29  ;;  %v5669_v29 = vld [vmem:[%s9002_s0 + $0x248] sm:$0xff] }
  0xae   :  { %487 = vrot.lane.b32.xlu1 %v5633_v1, %s4962_s6  ;;  %485 = vrot.lane.b32.xlu0 %v5638_v60, %s4962_s6  ;;  %9137 = vst [vmem:[#allocation61_spill] sm:$0xff] %v5669_v29 }
  0xb0   :  { %v5658_v28 = vpop.permute.xlu1 %263  ;;  %v5660_v61 = vpop.permute.xlu0 %261 }
  0xb1   :  { %9135 = vst [vmem:[#allocation59_spill] sm:$0xff] %v5658_v28  ;;  %9136 = vst [vmem:[#allocation60_spill] sm:$0xff] %v5660_v61  ;;  %v5687_v61 = vld [vmem:[%s9002_s0 + $0x258] sm:$0xff] }
  0xb2   :  { %491 = vrot.lane.b32.xlu1 %v5651_v56, %s4962_s6  ;;  %489 = vrot.lane.b32.xlu0 %v5656_v57, %s4962_s6  ;;  %9141 = vst [vmem:[#allocation65_spill] sm:$0xff] %v5687_v61  ;;  %v5692_v57 = vld [vmem:[%s9002_s0 + $0x250] sm:$0xff] }
  0xb3   :  { %9142 = vst [vmem:[#allocation66_spill] sm:$0xff] %v5692_v57 }
  0xb4   :  { %v5676_v60 = vpop.permute.xlu1 %267  ;;  %v5678_v28 = vpop.permute.xlu0 %265 }
  0xb5   :  { %9139 = vst [vmem:[#allocation63_spill] sm:$0xff] %v5676_v60  ;;  %9140 = vst [vmem:[#allocation64_spill] sm:$0xff] %v5678_v28  ;;  %v5705_v28 = vld [vmem:[%s9002_s0 + $0x268] sm:$0xff] }
  0xb6   :  { %495 = vrot.lane.b32.xlu1 %v5669_v29, %s4962_s6  ;;  %493 = vrot.lane.b32.xlu0 %v5674_v3, %s4962_s6  ;;  %9145 = vst [vmem:[#allocation69_spill] sm:$0xff] %v5705_v28  ;;  %v5710_v3 = vld [vmem:[%s9002_s0 + $0x260] sm:$0xff] }
  0xb7   :  { %9146 = vst [vmem:[#allocation70_spill] sm:$0xff] %v5710_v3 }
  0xb8   :  { %v5694_v56 = vpop.permute.xlu1 %271  ;;  %v5696_v60 = vpop.permute.xlu0 %269 }
  0xb9   :  { %9143 = vst [vmem:[#allocation67_spill] sm:$0xff] %v5694_v56  ;;  %9144 = vst [vmem:[#allocation68_spill] sm:$0xff] %v5696_v60  ;;  %v5723_v60 = vld [vmem:[%s9002_s0 + $0x278] sm:$0xff] }
  0xba   :  { %499 = vrot.lane.b32.xlu1 %v5687_v61, %s4962_s6  ;;  %497 = vrot.lane.b32.xlu0 %v5692_v57, %s4962_s6  ;;  %9149 = vst [vmem:[#allocation73_spill] sm:$0xff] %v5723_v60  ;;  %v5728_v57 = vld [vmem:[%s9002_s0 + $0x270] sm:$0xff] }
  0xbb   :  { %9150 = vst [vmem:[#allocation74_spill] sm:$0xff] %v5728_v57 }
  0xbc   :  { %v5712_v29 = vpop.permute.xlu1 %275  ;;  %v5714_v56 = vpop.permute.xlu0 %273 }
  0xbd   :  { %9147 = vst [vmem:[#allocation71_spill] sm:$0xff] %v5712_v29  ;;  %9148 = vst [vmem:[#allocation72_spill] sm:$0xff] %v5714_v56  ;;  %v5741_v56 = vld [vmem:[%s9002_s0 + $0x288] sm:$0xff] }
  0xbe   :  { %503 = vrot.lane.b32.xlu1 %v5705_v28, %s4962_s6  ;;  %501 = vrot.lane.b32.xlu0 %v5710_v3, %s4962_s6  ;;  %9153 = vst [vmem:[#allocation77_spill] sm:$0xff] %v5741_v56  ;;  %v5746_v3 = vld [vmem:[%s9002_s0 + $0x280] sm:$0xff] }
  0xbf   :  { %9154 = vst [vmem:[#allocation78_spill] sm:$0xff] %v5746_v3 }
  0xc0   :  { %v5730_v61 = vpop.permute.xlu1 %279  ;;  %v5732_v29 = vpop.permute.xlu0 %277 }
  0xc1   :  { %9151 = vst [vmem:[#allocation75_spill] sm:$0xff] %v5730_v61  ;;  %9152 = vst [vmem:[#allocation76_spill] sm:$0xff] %v5732_v29  ;;  %v5759_v29 = vld [vmem:[%s9002_s0 + $0x298] sm:$0xff] }
  0xc2   :  { %507 = vrot.lane.b32.xlu1 %v5723_v60, %s4962_s6  ;;  %505 = vrot.lane.b32.xlu0 %v5728_v57, %s4962_s6  ;;  %9157 = vst [vmem:[#allocation81_spill] sm:$0xff] %v5759_v29  ;;  %v5764_v57 = vld [vmem:[%s9002_s0 + $0x290] sm:$0xff] }
  0xc3   :  { %9158 = vst [vmem:[#allocation82_spill] sm:$0xff] %v5764_v57 }
  0xc4   :  { %v5748_v28 = vpop.permute.xlu1 %283  ;;  %v5750_v61 = vpop.permute.xlu0 %281 }
  0xc5   :  { %9155 = vst [vmem:[#allocation79_spill] sm:$0xff] %v5748_v28  ;;  %9156 = vst [vmem:[#allocation80_spill] sm:$0xff] %v5750_v61  ;;  %v5777_v61 = vld [vmem:[%s9002_s0 + $0x2a8] sm:$0xff] }
  0xc6   :  { %511 = vrot.lane.b32.xlu1 %v5741_v56, %s4962_s6  ;;  %509 = vrot.lane.b32.xlu0 %v5746_v3, %s4962_s6  ;;  %9161 = vst [vmem:[#allocation85_spill] sm:$0xff] %v5777_v61  ;;  %v5782_v3 = vld [vmem:[%s9002_s0 + $0x2a0] sm:$0xff] }
  0xc7   :  { %9162 = vst [vmem:[#allocation86_spill] sm:$0xff] %v5782_v3 }
  0xc8   :  { %v5766_v60 = vpop.permute.xlu1 %287  ;;  %v5768_v28 = vpop.permute.xlu0 %285 }
  0xc9   :  { %9159 = vst [vmem:[#allocation83_spill] sm:$0xff] %v5766_v60  ;;  %9160 = vst [vmem:[#allocation84_spill] sm:$0xff] %v5768_v28  ;;  %v5795_v28 = vld [vmem:[%s9002_s0 + $0x2b8] sm:$0xff] }
  0xca   :  { %515 = vrot.lane.b32.xlu1 %v5759_v29, %s4962_s6  ;;  %513 = vrot.lane.b32.xlu0 %v5764_v57, %s4962_s6  ;;  %9165 = vst [vmem:[#allocation89_spill] sm:$0xff] %v5795_v28  ;;  %v5800_v57 = vld [vmem:[%s9002_s0 + $0x2b0] sm:$0xff] }
  0xcb   :  { %9166 = vst [vmem:[#allocation90_spill] sm:$0xff] %v5800_v57 }
  0xcc   :  { %v5784_v56 = vpop.permute.xlu1 %291  ;;  %v5786_v60 = vpop.permute.xlu0 %289 }
  0xcd   :  { %9163 = vst [vmem:[#allocation87_spill] sm:$0xff] %v5784_v56  ;;  %9164 = vst [vmem:[#allocation88_spill] sm:$0xff] %v5786_v60  ;;  %v5813_v60 = vld [vmem:[%s9002_s0 + $0x2c8] sm:$0xff] }
  0xce   :  { %519 = vrot.lane.b32.xlu1 %v5777_v61, %s4962_s6  ;;  %517 = vrot.lane.b32.xlu0 %v5782_v3, %s4962_s6  ;;  %9169 = vst [vmem:[#allocation93_spill] sm:$0xff] %v5813_v60  ;;  %v5818_v3 = vld [vmem:[%s9002_s0 + $0x2c0] sm:$0xff] }
  0xcf   :  { %9170 = vst [vmem:[#allocation94_spill] sm:$0xff] %v5818_v3 }
  0xd0   :  { %v5802_v29 = vpop.permute.xlu1 %295  ;;  %v5804_v56 = vpop.permute.xlu0 %293 }
  0xd1   :  { %9167 = vst [vmem:[#allocation91_spill] sm:$0xff] %v5802_v29  ;;  %9168 = vst [vmem:[#allocation92_spill] sm:$0xff] %v5804_v56  ;;  %v5831_v56 = vld [vmem:[%s9002_s0 + $0x2d8] sm:$0xff] }
  0xd2   :  { %523 = vrot.lane.b32.xlu1 %v5795_v28, %s4962_s6  ;;  %521 = vrot.lane.b32.xlu0 %v5800_v57, %s4962_s6  ;;  %v5836_v57 = vld [vmem:[%s9002_s0 + $0x2d0] sm:$0xff] }
  0xd3   :  { %9173 = vst [vmem:[#allocation97_spill] sm:$0xff] %v5836_v57 }
  0xd4   :  { %v5820_v61 = vpop.permute.xlu1 %299  ;;  %v5822_v29 = vpop.permute.xlu0 %297 }
  0xd5   :  { %9171 = vst [vmem:[#allocation95_spill] sm:$0xff] %v5820_v61  ;;  %9172 = vst [vmem:[#allocation96_spill] sm:$0xff] %v5822_v29  ;;  %v5849_v29 = vld [vmem:[%s9002_s0 + $0x2e8] sm:$0xff] }
  0xd6   :  { %527 = vrot.lane.b32.xlu1 %v5813_v60, %s4962_s6  ;;  %525 = vrot.lane.b32.xlu0 %v5818_v3, %s4962_s6  ;;  %v5854_v3 = vld [vmem:[%s9002_s0 + $0x2e0] sm:$0xff] }
  0xd8   :  { %v5838_v28 = vpop.permute.xlu1 %303  ;;  %v5840_v61 = vpop.permute.xlu0 %301 }
  0xd9   :  { %9174 = vst [vmem:[#allocation98_spill] sm:$0xff] %v5838_v28  ;;  %9175 = vst [vmem:[#allocation99_spill] sm:$0xff] %v5840_v61 }
  0xda   :  { %531 = vrot.lane.b32.xlu1 %v5831_v56, %s4962_s6  ;;  %529 = vrot.lane.b32.xlu0 %v5836_v57, %s4962_s6 }
  0xdc   :  { %v5856_v60 = vpop.permute.xlu1 %307  ;;  %v5858_v28 = vpop.permute.xlu0 %305 }
  0xdd   :  { %9176 = vst [vmem:[#allocation100_spill] sm:$0xff] %v5856_v60  ;;  %9177 = vst [vmem:[#allocation101_spill] sm:$0xff] %v5858_v28 }
  0xde   :  { %535 = vrot.lane.b32.xlu1 %v5849_v29, %s4962_s6  ;;  %533 = vrot.lane.b32.xlu0 %v5854_v3, %s4962_s6 }
  0xe0   :  { %v5864_v61 = vpop.permute.xlu1 %311  ;;  %v5866_v57 = vpop.permute.xlu0 %309 }
  0xe1   :  { %9178 = vst [vmem:[#allocation102_spill] sm:$0xff] %v5864_v61  ;;  %9179 = vst [vmem:[#allocation103_spill] sm:$0xff] %v5866_v57 }
  0xe2   :  { %599 = vrot.lane.b32.xlu1 %v5004_v2, %s4963_s20  ;;  %597 = vrot.lane.b32.xlu0 %v4993_v0, %s4963_s20 }
  0xe4   :  { %v5872_v60 = vpop.permute.xlu1 %427  ;;  %v5874_v28 = vpop.permute.xlu0 %425 }
  0xe6   :  { %603 = vrot.lane.b32.xlu1 %v5015_v4, %s4963_s20  ;;  %601 = vrot.lane.b32.xlu0 %v5020_v5, %s4963_s20 }
  0xe8   :  { %v5880_v61 = vpop.permute.xlu1 %431  ;;  %v5882_v57 = vpop.permute.xlu0 %429 }
  0xea   :  { %607 = vrot.lane.b32.xlu1 %v5029_v6, %s4963_s20  ;;  %605 = vrot.lane.b32.xlu0 %v5034_v7, %s4963_s20 }
  0xec   :  { %v5888_v0 = vpop.permute.xlu1 %435  ;;  %v5890_v2 = vpop.permute.xlu0 %433 }
  0xee   :  { %611 = vrot.lane.b32.xlu1 %v5043_v8, %s4963_s20  ;;  %609 = vrot.lane.b32.xlu0 %v5048_v9, %s4963_s20 }
  0xf0   :  { %v5896_v4 = vpop.permute.xlu1 %439  ;;  %v5898_v5 = vpop.permute.xlu0 %437 }
  0xf2   :  { %615 = vrot.lane.b32.xlu1 %v5057_v10, %s4963_s20  ;;  %613 = vrot.lane.b32.xlu0 %v5062_v11, %s4963_s20 }
  0xf4   :  { %v5904_v6 = vpop.permute.xlu1 %443  ;;  %v5906_v7 = vpop.permute.xlu0 %441 }
  0xf6   :  { %619 = vrot.lane.b32.xlu1 %v5071_v12, %s4963_s20  ;;  %617 = vrot.lane.b32.xlu0 %v5076_v13, %s4963_s20 }
  0xf8   :  { %v5912_v8 = vpop.permute.xlu1 %447  ;;  %v5914_v9 = vpop.permute.xlu0 %445 }
  0xfa   :  { %623 = vrot.lane.b32.xlu1 %v5085_v14, %s4963_s20  ;;  %621 = vrot.lane.b32.xlu0 %v5090_v15, %s4963_s20 }
  0xfc   :  { %v5920_v10 = vpop.permute.xlu1 %451  ;;  %v5922_v11 = vpop.permute.xlu0 %449 }
  0xfe   :  { %627 = vrot.lane.b32.xlu1 %v5099_v16, %s4963_s20  ;;  %625 = vrot.lane.b32.xlu0 %v5104_v17, %s4963_s20 }
 0x100   :  { %v5928_v12 = vpop.permute.xlu1 %455  ;;  %v5930_v13 = vpop.permute.xlu0 %453 }
 0x102   :  { %631 = vrot.lane.b32.xlu1 %v5113_v18, %s4963_s20  ;;  %629 = vrot.lane.b32.xlu0 %v5118_v19, %s4963_s20 }
 0x104   :  { %v5936_v14 = vpop.permute.xlu1 %459  ;;  %v5938_v15 = vpop.permute.xlu0 %457 }
 0x106   :  { %635 = vrot.lane.b32.xlu1 %v5127_v20, %s4963_s20  ;;  %633 = vrot.lane.b32.xlu0 %v5132_v21, %s4963_s20 }
 0x108   :  { %v5944_v16 = vpop.permute.xlu1 %463  ;;  %v5946_v17 = vpop.permute.xlu0 %461 }
 0x109   :  { %9180 = vst [vmem:[#allocation104_spill] sm:$0xff] %v5946_v17  ;;  %v9239_v17 = vld [vmem:[#allocation44_spill] sm:$0xff] }
 0x10a   :  { %639 = vrot.lane.b32.xlu1 %v5141_v22, %s4963_s20  ;;  %637 = vrot.lane.b32.xlu0 %v5146_v23, %s4963_s20  ;;  %v78_v22 = vld [vmem:[%s9002_s0 + $0x1e8] sm:$0xff]  ;;  %v77_v23 = vld [vmem:[%s9002_s0 + $0x1e0] sm:$0xff] }
 0x10c   :  { %v5952_v18 = vpop.permute.xlu1 %467  ;;  %v5954_v19 = vpop.permute.xlu0 %465 }
 0x10d   :  { %9181 = vst [vmem:[#allocation105_spill] sm:$0xff] %v5952_v18  ;;  %9182 = vst [vmem:[#allocation106_spill] sm:$0xff] %v5954_v19  ;;  %v9235_v19 = vld [vmem:[#allocation40_spill] sm:$0xff] }
 0x10e   :  { %643 = vrot.lane.b32.xlu1 %v5155_v24, %s4963_s20  ;;  %641 = vrot.lane.b32.xlu0 %v5160_v25, %s4963_s20 }
 0x110   :  { %v5960_v20 = vpop.permute.xlu1 %471  ;;  %v5962_v21 = vpop.permute.xlu0 %469 }
 0x111   :  { %9183 = vst [vmem:[#allocation107_spill] sm:$0xff] %v5960_v20  ;;  %9184 = vst [vmem:[#allocation108_spill] sm:$0xff] %v5962_v21 }
 0x112   :  { %647 = vrot.lane.b32.xlu1 %v5169_v26, %s4963_s20  ;;  %645 = vrot.lane.b32.xlu0 %v5174_v27, %s4963_s20 }
 0x114   :  { %v5974_v24 = vpop.permute.xlu1 %475  ;;  %v5976_v25 = vpop.permute.xlu0 %473 }
 0x115   :  { %9185 = vst [vmem:[#allocation109_spill] sm:$0xff] %v5974_v24  ;;  %9186 = vst [vmem:[#allocation110_spill] sm:$0xff] %v5976_v25  ;;  %v9231_v25 = vld [vmem:[#allocation36_spill] sm:$0xff] }
 0x116   :  { %651 = vrot.lane.b32.xlu1 %v78_v22, %s4963_s20  ;;  %649 = vrot.lane.b32.xlu0 %v77_v23, %s4963_s20 }
 0x118   :  { %v5980_v26 = vpop.permute.xlu1 %479  ;;  %v5982_v21 = vpop.permute.xlu0 %477 }
 0x119   :  { %9187 = vst [vmem:[#allocation111_spill] sm:$0xff] %v5980_v26  ;;  %9188 = vst [vmem:[#allocation112_spill] sm:$0xff] %v5982_v21 }
 0x11a   :  { %655 = vrot.lane.b32.xlu1 %v5191_v30, %s4963_s20  ;;  %653 = vrot.lane.b32.xlu0 %v5196_v31, %s4963_s20 }
 0x11c   :  { %v5988_v27 = vpop.permute.xlu1 %483  ;;  %v5990_v20 = vpop.permute.xlu0 %481 }
 0x11d   :  { %9189 = vst [vmem:[#allocation113_spill] sm:$0xff] %v5988_v27  ;;  %9190 = vst [vmem:[#allocation114_spill] sm:$0xff] %v5990_v20  ;;  %v9229_v20 = vld [vmem:[#allocation32_spill] sm:$0xff]  ;;  %v9230_v27 = vld [vmem:[#allocation33_spill] sm:$0xff] }
 0x11e   :  { %659 = vrot.lane.b32.xlu1 %v5205_v32, %s4963_s20  ;;  %657 = vrot.lane.b32.xlu0 %v5210_v33, %s4963_s20 }
 0x120   :  { %v5996_v22 = vpop.permute.xlu1 %487  ;;  %v5998_v23 = vpop.permute.xlu0 %485 }
 0x121   :  { %9191 = vst [vmem:[#allocation115_spill] sm:$0xff] %v5996_v22  ;;  %9192 = vst [vmem:[#allocation116_spill] sm:$0xff] %v5998_v23 }
 0x122   :  { %663 = vrot.lane.b32.xlu1 %v5219_v34, %s4963_s20  ;;  %661 = vrot.lane.b32.xlu0 %v5224_v35, %s4963_s20 }
 0x124   :  { %v6004_v30 = vpop.permute.xlu1 %491  ;;  %v6006_v31 = vpop.permute.xlu0 %489 }
 0x125   :  { %9193 = vst [vmem:[#allocation117_spill] sm:$0xff] %v6004_v30  ;;  %9194 = vst [vmem:[#allocation118_spill] sm:$0xff] %v6006_v31  ;;  %v9227_v31 = vld [vmem:[#allocation28_spill] sm:$0xff]  ;;  %v9228_v30 = vld [vmem:[#allocation29_spill] sm:$0xff] }
 0x126   :  { %667 = vrot.lane.b32.xlu1 %v5233_v36, %s4963_s20  ;;  %665 = vrot.lane.b32.xlu0 %v5238_v37, %s4963_s20 }
 0x128   :  { %v6012_v32 = vpop.permute.xlu1 %495  ;;  %v6014_v33 = vpop.permute.xlu0 %493 }
 0x129   :  { %9195 = vst [vmem:[#allocation119_spill] sm:$0xff] %v6012_v32  ;;  %9196 = vst [vmem:[#allocation120_spill] sm:$0xff] %v6014_v33 }
 0x12a   :  { %671 = vrot.lane.b32.xlu1 %v5247_v38, %s4963_s20  ;;  %669 = vrot.lane.b32.xlu0 %v5252_v39, %s4963_s20 }
 0x12c   :  { %v6020_v34 = vpop.permute.xlu1 %499  ;;  %v6022_v35 = vpop.permute.xlu0 %497 }
 0x12d   :  { %9197 = vst [vmem:[#allocation121_spill] sm:$0xff] %v6020_v34  ;;  %9198 = vst [vmem:[#allocation122_spill] sm:$0xff] %v6022_v35  ;;  %v9225_v35 = vld [vmem:[#allocation24_spill] sm:$0xff]  ;;  %v9226_v34 = vld [vmem:[#allocation25_spill] sm:$0xff] }
 0x12e   :  { %675 = vrot.lane.b32.xlu1 %v5261_v40, %s4963_s20  ;;  %673 = vrot.lane.b32.xlu0 %v5266_v41, %s4963_s20 }
 0x130   :  { %v6028_v36 = vpop.permute.xlu1 %503  ;;  %v6030_v37 = vpop.permute.xlu0 %501 }
 0x131   :  { %9199 = vst [vmem:[#allocation123_spill] sm:$0xff] %v6028_v36  ;;  %9200 = vst [vmem:[#allocation124_spill] sm:$0xff] %v6030_v37 }
 0x132   :  { %679 = vrot.lane.b32.xlu1 %v5275_v42, %s4963_s20  ;;  %677 = vrot.lane.b32.xlu0 %v5280_v43, %s4963_s20 }
 0x134   :  { %v6036_v38 = vpop.permute.xlu1 %507  ;;  %v6038_v39 = vpop.permute.xlu0 %505 }
 0x135   :  { %9201 = vst [vmem:[#allocation125_spill] sm:$0xff] %v6036_v38  ;;  %9202 = vst [vmem:[#allocation126_spill] sm:$0xff] %v6038_v39  ;;  %v9223_v39 = vld [vmem:[#allocation20_spill] sm:$0xff]  ;;  %v9224_v38 = vld [vmem:[#allocation21_spill] sm:$0xff] }
 0x136   :  { %683 = vrot.lane.b32.xlu1 %v5289_v44, %s4963_s20  ;;  %681 = vrot.lane.b32.xlu0 %v5294_v45, %s4963_s20  ;;  %v2069_v44 = vld [vmem:[%s9003_s1 + $0x20] sm:$0xff] }
 0x137   :  { %v3036_v45 = vld [vmem:[%s9004_s2 + $0x20] sm:$0xff]  ;;  %4468 = vmatprep.subr.mxu0 %v2069_v44 }
 0x138   :  { %v6044_v40 = vpop.permute.xlu1 %511  ;;  %v6046_v41 = vpop.permute.xlu0 %509  ;;  %4646 = vmatprep.subr.mxu1 %v3036_v45  ;;  %4469 = vmatpush3.msra.mxu0 %v2069_v44  ;;  %v2066_v44 = vld [vmem:[%s9003_s1 + $0x8] sm:$0xff] }
 0x139   :  { %9203 = vst [vmem:[#allocation127_spill] sm:$0xff] %v6044_v40  ;;  %9204 = vst [vmem:[#allocation128_spill] sm:$0xff] %v6046_v41  ;;  %4647 = vmatpush3.msra.mxu1 %v3036_v45  ;;  %v3033_v45 = vld [vmem:[%s9004_s2 + $0x8] sm:$0xff] }
 0x13a   :  { %687 = vrot.lane.b32.xlu1 %v5303_v46, %s4963_s20  ;;  %685 = vrot.lane.b32.xlu0 %v5308_v47, %s4963_s20  ;;  %v2068_v46 = vld [vmem:[%s9003_s1 + $0x18] sm:$0xff] }
 0x13b   :  { %v3035_v47 = vld [vmem:[%s9004_s2 + $0x18] sm:$0xff]  ;;  %4470 = vmatprep.subr.mxu0 %v2068_v46 }
 0x13c   :  { %v6052_v42 = vpop.permute.xlu1 %515  ;;  %v6054_v43 = vpop.permute.xlu0 %513  ;;  %4648 = vmatprep.subr.mxu1 %v3035_v47  ;;  %4471 = vmatpush3.msra.mxu0 %v2068_v46 }
 0x13d   :  { %9205 = vst [vmem:[#allocation129_spill] sm:$0xff] %v6052_v42  ;;  %9206 = vst [vmem:[#allocation130_spill] sm:$0xff] %v6054_v43  ;;  %4649 = vmatpush3.msra.mxu1 %v3035_v47 }
 0x13e   :  { %691 = vrot.lane.b32.xlu1 %v5317_v48, %s4963_s20  ;;  %689 = vrot.lane.b32.xlu0 %v5322_v49, %s4963_s20  ;;  %v2067_v48 = vld [vmem:[%s9003_s1 + $0x10] sm:$0xff] }
 0x13f   :  { %v3034_v49 = vld [vmem:[%s9004_s2 + $0x10] sm:$0xff]  ;;  %4472 = vmatprep.subr.mxu0 %v2067_v48 }
 0x140   :  { %v6072_v43 = vpop.permute.xlu1 %519  ;;  %v6074_v42 = vpop.permute.xlu0 %517  ;;  %4650 = vmatprep.subr.mxu1 %v3034_v49  ;;  %4473 = vmatpush3.msra.mxu0 %v2067_v48 }
 0x141   :  { %9207 = vst [vmem:[#allocation131_spill] sm:$0xff] %v6072_v43  ;;  %9208 = vst [vmem:[#allocation132_spill] sm:$0xff] %v6074_v42  ;;  %4651 = vmatpush3.msra.mxu1 %v3034_v49  ;;  %4474 = vmatprep.subr.mxu0 %v2066_v44  ;;  %v9222_v43 = vld [vmem:[#allocation17_spill] sm:$0xff] }
 0x142   :  { %695 = vrot.lane.b32.xlu1 %v5331_v50, %s4963_s20  ;;  %693 = vrot.lane.b32.xlu0 %v5336_v51, %s4963_s20  ;;  %v2065_v50 = vld [vmem:[%s9003_s1] sm:$0xff] }
 0x143   :  { %4652 = vmatprep.subr.mxu1 %v3033_v45  ;;  %v3032_v51 = vld [vmem:[%s9004_s2] sm:$0xff]  ;;  %4475 = vmatpush3.msra.mxu0 %v2066_v44 }
 0x144   :  { %v6092_v42 = vpop.permute.xlu1 %523  ;;  %v6094_v46 = vpop.permute.xlu0 %521  ;;  %4653 = vmatpush3.msra.mxu1 %v3033_v45  ;;  %4476 = vmatprep.subr.mxu0 %v2065_v50 }
 0x145   :  { %9209 = vst [vmem:[#allocation133_spill] sm:$0xff] %v6092_v42  ;;  %9210 = vst [vmem:[#allocation134_spill] sm:$0xff] %v6094_v46  ;;  %4654 = vmatprep.subr.mxu1 %v3032_v51  ;;  %4477 = vmatpush3.msra.mxu0 %v2065_v50  ;;  %v9221_v42 = vld [vmem:[#allocation16_spill] sm:$0xff] }
 0x146   :  { %699 = vrot.lane.b32.xlu1 %v5345_v52, %s4963_s20  ;;  %697 = vrot.lane.b32.xlu0 %v5350_v53, %s4963_s20  ;;  %v142_v52 = vld [vmem:[%s9002_s0 + $0x3e8] sm:$0xff]  ;;  %v141_v53 = vld [vmem:[%s9002_s0 + $0x3e0] sm:$0xff] }
 0x147   :  { %4655 = vmatpush3.msra.mxu1 %v3032_v51 }
 0x148   :  { %v6106_v47 = vpop.permute.xlu1 %527  ;;  %v6108_v48 = vpop.permute.xlu0 %525 }
 0x149   :  { %9211 = vst [vmem:[#allocation135_spill] sm:$0xff] %v6106_v47  ;;  %9212 = vst [vmem:[#allocation136_spill] sm:$0xff] %v6108_v48  ;;  %v9220_v48 = vld [vmem:[#allocation13_spill] sm:$0xff] }
 0x14a   :  { %703 = vrot.lane.b32.xlu1 %v5359_v54, %s4963_s20  ;;  %701 = vrot.lane.b32.xlu0 %v5364_v55, %s4963_s20 }
 0x14c   :  { %v6120_v49 = vpop.permute.xlu1 %531  ;;  %v6122_v44 = vpop.permute.xlu0 %529 }
 0x14d   :  { %9213 = vst [vmem:[#allocation137_spill] sm:$0xff] %v6120_v49  ;;  %9214 = vst [vmem:[#allocation138_spill] sm:$0xff] %v6122_v44  ;;  %v9219_v49 = vld [vmem:[#allocation12_spill] sm:$0xff] }
 0x14e   :  { %707 = vrot.lane.b32.xlu1 %v142_v52, %s4963_s20  ;;  %705 = vrot.lane.b32.xlu0 %v141_v53, %s4963_s20  ;;  %v9217_v53 = vld [vmem:[#allocation8_spill] sm:$0xff] }
 0x150   :  { %v6126_v54 = vpop.permute.xlu1 %535  ;;  %v6128_v45 = vpop.permute.xlu0 %533 }
 0x151   :  { %9215 = vst [vmem:[#allocation139_spill] sm:$0xff] %v6126_v54  ;;  %9216 = vst [vmem:[#allocation140_spill] sm:$0xff] %v6128_v45  ;;  %v9218_v45 = vld [vmem:[#allocation9_spill] sm:$0xff] }
 0x152   :  { %771 = vrot.lane.b32.xlu1 %v5387_v58, %s4964_s24  ;;  %769 = vrot.lane.b32.xlu0 %v5392_v59, %s4964_s24 }
 0x154   :  { %v6134_v55 = vpop.permute.xlu1 %599  ;;  %v6136_v50 = vpop.permute.xlu0 %597 }
 0x156   :  { %775 = vrot.lane.b32.xlu1 %v5405_v62, %s4964_s24  ;;  %773 = vrot.lane.b32.xlu0 %v5410_v63, %s4964_s24 }
 0x158   :  { %v6142_v51 = vpop.permute.xlu1 %603  ;;  %v6144_v52 = vpop.permute.xlu0 %601 }
 0x15a   :  { %779 = vrot.lane.b32.xlu1 %v9217_v53, %s4964_s24  ;;  %777 = vrot.lane.b32.xlu0 %v9218_v45, %s4964_s24 }
 0x15c   :  { %v6150_v54 = vpop.permute.xlu1 %607  ;;  %v6152_v44 = vpop.permute.xlu0 %605 }
 0x15e   :  { %783 = vrot.lane.b32.xlu1 %v9219_v49, %s4964_s24  ;;  %781 = vrot.lane.b32.xlu0 %v9220_v48, %s4964_s24 }
 0x160   :  { %v6158_v47 = vpop.permute.xlu1 %611  ;;  %v6160_v46 = vpop.permute.xlu0 %609 }
 0x162   :  { %787 = vrot.lane.b32.xlu1 %v9221_v42, %s4964_s24  ;;  %785 = vrot.lane.b32.xlu0 %v9222_v43, %s4964_s24 }
 0x164   :  { %v6166_v41 = vpop.permute.xlu1 %615  ;;  %v6168_v40 = vpop.permute.xlu0 %613 }
 0x166   :  { %791 = vrot.lane.b32.xlu1 %v9223_v39, %s4964_s24  ;;  %789 = vrot.lane.b32.xlu0 %v9224_v38, %s4964_s24 }
 0x168   :  { %v6174_v37 = vpop.permute.xlu1 %619  ;;  %v6176_v36 = vpop.permute.xlu0 %617 }
 0x16a   :  { %795 = vrot.lane.b32.xlu1 %v9225_v35, %s4964_s24  ;;  %793 = vrot.lane.b32.xlu0 %v9226_v34, %s4964_s24 }
 0x16c   :  { %v6182_v33 = vpop.permute.xlu1 %623  ;;  %v6184_v32 = vpop.permute.xlu0 %621 }
 0x16e   :  { %799 = vrot.lane.b32.xlu1 %v9227_v31, %s4964_s24  ;;  %797 = vrot.lane.b32.xlu0 %v9228_v30, %s4964_s24  ;;  %v9232_v31 = vld [vmem:[#allocation37_spill] sm:$0xff] }
 0x170   :  { %v6190_v23 = vpop.permute.xlu1 %627  ;;  %v6192_v22 = vpop.permute.xlu0 %625 }
 0x172   :  { %803 = vrot.lane.b32.xlu1 %v9229_v20, %s4964_s24  ;;  %801 = vrot.lane.b32.xlu0 %v9230_v27, %s4964_s24  ;;  %v9236_v20 = vld [vmem:[#allocation41_spill] sm:$0xff] }
 0x174   :  { %v6198_v21 = vpop.permute.xlu1 %631  ;;  %v6200_v26 = vpop.permute.xlu0 %629 }
 0x176   :  { %807 = vrot.lane.b32.xlu1 %v9231_v25, %s4964_s24  ;;  %805 = vrot.lane.b32.xlu0 %v9232_v31, %s4964_s24  ;;  %v9240_v25 = vld [vmem:[#allocation45_spill] sm:$0xff] }
 0x178   :  { %v6206_v30 = vpop.permute.xlu1 %635  ;;  %v6208_v24 = vpop.permute.xlu0 %633 }
 0x179   :  { %9233 = vst [vmem:[#allocation8_spill] sm:$0xff] %v6206_v30  ;;  %9234 = vst [vmem:[#allocation9_spill] sm:$0xff] %v6208_v24  ;;  %v9243_v24 = vld [vmem:[#allocation48_spill] sm:$0xff] }
 0x17a   :  { %811 = vrot.lane.b32.xlu1 %v9235_v19, %s4964_s24  ;;  %809 = vrot.lane.b32.xlu0 %v9236_v20, %s4964_s24  ;;  %v9244_v19 = vld [vmem:[#allocation49_spill] sm:$0xff] }
 0x17b   :  { %v48_v20 = vld [vmem:[%s9002_s0 + $0xf8] sm:$0xff] }
 0x17c   :  { %v6214_v27 = vpop.permute.xlu1 %639  ;;  %v6216_v18 = vpop.permute.xlu0 %637 }
 0x17d   :  { %9237 = vst [vmem:[#allocation12_spill] sm:$0xff] %v6214_v27  ;;  %9238 = vst [vmem:[#allocation13_spill] sm:$0xff] %v6216_v18 }
 0x17e   :  { %815 = vrot.lane.b32.xlu1 %v9239_v17, %s4964_s24  ;;  %813 = vrot.lane.b32.xlu0 %v9240_v25, %s4964_s24  ;;  %v47_v17 = vld [vmem:[%s9002_s0 + $0xf0] sm:$0xff] }
 0x180   :  { %v6222_v31 = vpop.permute.xlu1 %643  ;;  %v6224_v30 = vpop.permute.xlu0 %641 }
 0x181   :  { %9241 = vst [vmem:[#allocation16_spill] sm:$0xff] %v6222_v31  ;;  %9242 = vst [vmem:[#allocation17_spill] sm:$0xff] %v6224_v30 }
 0x182   :  { %819 = vrot.lane.b32.xlu1 %v9243_v24, %s4964_s24  ;;  %817 = vrot.lane.b32.xlu0 %v9244_v19, %s4964_s24  ;;  %v9249_v19 = vld [vmem:[#allocation54_spill] sm:$0xff] }
 0x184   :  { %v6236_v18 = vpop.permute.xlu1 %647  ;;  %v6238_v25 = vpop.permute.xlu0 %645 }
 0x185   :  { %9245 = vst [vmem:[#allocation20_spill] sm:$0xff] %v6236_v18  ;;  %9246 = vst [vmem:[#allocation21_spill] sm:$0xff] %v6238_v25  ;;  %v9252_v25 = vld [vmem:[#allocation57_spill] sm:$0xff]  ;;  %v9303_v18 = vld [vmem:[#allocation4_spill] sm:$0xff] }
 0x186   :  { %823 = vrot.lane.b32.xlu1 %v48_v20, %s4964_s24  ;;  %821 = vrot.lane.b32.xlu0 %v47_v17, %s4964_s24  ;;  %v9253_v20 = vld [vmem:[#allocation58_spill] sm:$0xff] }
 0x188   :  { %v6242_v24 = vpop.permute.xlu1 %651  ;;  %v6244_v30 = vpop.permute.xlu0 %649 }
 0x189   :  { %9247 = vst [vmem:[#allocation24_spill] sm:$0xff] %v6242_v24  ;;  %9248 = vst [vmem:[#allocation25_spill] sm:$0xff] %v6244_v30  ;;  %v9256_v30 = vld [vmem:[#allocation61_spill] sm:$0xff] }
 0x18a   :  { %827 = vrot.lane.b32.xlu1 %v5633_v1, %s4964_s24  ;;  %825 = vrot.lane.b32.xlu0 %v9249_v19, %s4964_s24  ;;  %v9257_v1 = vld [vmem:[#allocation62_spill] sm:$0xff] }
 0x18c   :  { %v6250_v31 = vpop.permute.xlu1 %655  ;;  %v6252_v27 = vpop.permute.xlu0 %653 }
 0x18d   :  { %9250 = vst [vmem:[#allocation28_spill] sm:$0xff] %v6250_v31  ;;  %9251 = vst [vmem:[#allocation29_spill] sm:$0xff] %v6252_v27  ;;  %v9260_v27 = vld [vmem:[#allocation65_spill] sm:$0xff] }
 0x18e   :  { %831 = vrot.lane.b32.xlu1 %v9252_v25, %s4964_s24  ;;  %829 = vrot.lane.b32.xlu0 %v9253_v20, %s4964_s24  ;;  %v9261_v25 = vld [vmem:[#allocation66_spill] sm:$0xff] }
 0x190   :  { %v6258_v17 = vpop.permute.xlu1 %659  ;;  %v6260_v24 = vpop.permute.xlu0 %657 }
 0x191   :  { %9254 = vst [vmem:[#allocation32_spill] sm:$0xff] %v6258_v17  ;;  %9255 = vst [vmem:[#allocation33_spill] sm:$0xff] %v6260_v24  ;;  %v9264_v24 = vld [vmem:[#allocation69_spill] sm:$0xff] }
 0x192   :  { %835 = vrot.lane.b32.xlu1 %v9256_v30, %s4964_s24  ;;  %833 = vrot.lane.b32.xlu0 %v9257_v1, %s4964_s24  ;;  %v9265_v30 = vld [vmem:[#allocation70_spill] sm:$0xff] }
 0x194   :  { %v6266_v19 = vpop.permute.xlu1 %663  ;;  %v6268_v31 = vpop.permute.xlu0 %661 }
 0x195   :  { %9258 = vst [vmem:[#allocation36_spill] sm:$0xff] %v6266_v19  ;;  %9259 = vst [vmem:[#allocation37_spill] sm:$0xff] %v6268_v31  ;;  %v9268_v31 = vld [vmem:[#allocation73_spill] sm:$0xff] }
 0x196   :  { %839 = vrot.lane.b32.xlu1 %v9260_v27, %s4964_s24  ;;  %837 = vrot.lane.b32.xlu0 %v9261_v25, %s4964_s24  ;;  %v9269_v27 = vld [vmem:[#allocation74_spill] sm:$0xff] }
 0x198   :  { %v6274_v20 = vpop.permute.xlu1 %667  ;;  %v6276_v17 = vpop.permute.xlu0 %665 }
 0x199   :  { %9262 = vst [vmem:[#allocation40_spill] sm:$0xff] %v6274_v20  ;;  %9263 = vst [vmem:[#allocation41_spill] sm:$0xff] %v6276_v17  ;;  %v9272_v17 = vld [vmem:[#allocation77_spill] sm:$0xff] }
 0x19a   :  { %843 = vrot.lane.b32.xlu1 %v9264_v24, %s4964_s24  ;;  %841 = vrot.lane.b32.xlu0 %v9265_v30, %s4964_s24  ;;  %v9273_v24 = vld [vmem:[#allocation78_spill] sm:$0xff] }
 0x19c   :  { %v6282_v1 = vpop.permute.xlu1 %671  ;;  %v6284_v19 = vpop.permute.xlu0 %669 }
 0x19d   :  { %9266 = vst [vmem:[#allocation44_spill] sm:$0xff] %v6282_v1  ;;  %9267 = vst [vmem:[#allocation45_spill] sm:$0xff] %v6284_v19  ;;  %v9276_v19 = vld [vmem:[#allocation81_spill] sm:$0xff] }
 0x19e   :  { %847 = vrot.lane.b32.xlu1 %v9268_v31, %s4964_s24  ;;  %845 = vrot.lane.b32.xlu0 %v9269_v27, %s4964_s24  ;;  %v9277_v31 = vld [vmem:[#allocation82_spill] sm:$0xff] }
 0x1a0   :  { %v6290_v25 = vpop.permute.xlu1 %675  ;;  %v6292_v20 = vpop.permute.xlu0 %673 }
 0x1a1   :  { %9270 = vst [vmem:[#allocation48_spill] sm:$0xff] %v6290_v25  ;;  %9271 = vst [vmem:[#allocation49_spill] sm:$0xff] %v6292_v20  ;;  %v9280_v20 = vld [vmem:[#allocation85_spill] sm:$0xff] }
 0x1a2   :  { %851 = vrot.lane.b32.xlu1 %v9272_v17, %s4964_s24  ;;  %849 = vrot.lane.b32.xlu0 %v9273_v24, %s4964_s24  ;;  %v9281_v17 = vld [vmem:[#allocation86_spill] sm:$0xff] }
 0x1a4   :  { %v6298_v30 = vpop.permute.xlu1 %679  ;;  %v6300_v1 = vpop.permute.xlu0 %677 }
 0x1a5   :  { %9274 = vst [vmem:[#allocation54_spill] sm:$0xff] %v6298_v30  ;;  %9275 = vst [vmem:[#allocation57_spill] sm:$0xff] %v6300_v1  ;;  %v9284_v1 = vld [vmem:[#allocation89_spill] sm:$0xff] }
 0x1a6   :  { %855 = vrot.lane.b32.xlu1 %v9276_v19, %s4964_s24  ;;  %853 = vrot.lane.b32.xlu0 %v9277_v31, %s4964_s24  ;;  %v9285_v19 = vld [vmem:[#allocation90_spill] sm:$0xff] }
 0x1a8   :  { %v6306_v27 = vpop.permute.xlu1 %683  ;;  %v6308_v25 = vpop.permute.xlu0 %681 }
 0x1a9   :  { %9278 = vst [vmem:[#allocation58_spill] sm:$0xff] %v6306_v27  ;;  %9279 = vst [vmem:[#allocation61_spill] sm:$0xff] %v6308_v25  ;;  %v9288_v25 = vld [vmem:[#allocation93_spill] sm:$0xff] }
 0x1aa   :  { %859 = vrot.lane.b32.xlu1 %v9280_v20, %s4964_s24  ;;  %857 = vrot.lane.b32.xlu0 %v9281_v17, %s4964_s24  ;;  %v9289_v20 = vld [vmem:[#allocation94_spill] sm:$0xff] }
 0x1ac   :  { %v6314_v24 = vpop.permute.xlu1 %687  ;;  %v6316_v30 = vpop.permute.xlu0 %685 }
 0x1ad   :  { %9282 = vst [vmem:[#allocation62_spill] sm:$0xff] %v6314_v24  ;;  %9283 = vst [vmem:[#allocation65_spill] sm:$0xff] %v6316_v30 }
 0x1ae   :  { %863 = vrot.lane.b32.xlu1 %v9284_v1, %s4964_s24  ;;  %861 = vrot.lane.b32.xlu0 %v9285_v19, %s4964_s24  ;;  %v9292_v1 = vld [vmem:[#allocation97_spill] sm:$0xff] }
 0x1b0   :  { %v6322_v31 = vpop.permute.xlu1 %691  ;;  %v6324_v27 = vpop.permute.xlu0 %689 }
 0x1b1   :  { %9286 = vst [vmem:[#allocation66_spill] sm:$0xff] %v6322_v31  ;;  %9287 = vst [vmem:[#allocation69_spill] sm:$0xff] %v6324_v27 }
 0x1b2   :  { %867 = vrot.lane.b32.xlu1 %v9288_v25, %s4964_s24  ;;  %865 = vrot.lane.b32.xlu0 %v9289_v20, %s4964_s24  ;;  %v112_v25 = vld [vmem:[%s9002_s0 + $0x2f8] sm:$0xff] }
 0x1b4   :  { %v6330_v17 = vpop.permute.xlu1 %695  ;;  %v6332_v24 = vpop.permute.xlu0 %693 }
 0x1b5   :  { %9290 = vst [vmem:[#allocation70_spill] sm:$0xff] %v6330_v17  ;;  %9291 = vst [vmem:[#allocation73_spill] sm:$0xff] %v6332_v24  ;;  %v9301_v24 = vld [vmem:[#allocation2_spill] sm:$0xff]  ;;  %v9302_v17 = vld [vmem:[#allocation3_spill] sm:$0xff] }
 0x1b6   :  { %871 = vrot.lane.b32.xlu1 %v5831_v56, %s4964_s24  ;;  %869 = vrot.lane.b32.xlu0 %v9292_v1, %s4964_s24  ;;  %v111_v56 = vld [vmem:[%s9002_s0 + $0x2f0] sm:$0xff] }
 0x1b8   :  { %v6338_v19 = vpop.permute.xlu1 %699  ;;  %v6340_v31 = vpop.permute.xlu0 %697 }
 0x1b9   :  { %9293 = vst [vmem:[#allocation74_spill] sm:$0xff] %v6338_v19  ;;  %9294 = vst [vmem:[#allocation77_spill] sm:$0xff] %v6340_v31 }
 0x1ba   :  { %875 = vrot.lane.b32.xlu1 %v5849_v29, %s4964_s24  ;;  %873 = vrot.lane.b32.xlu0 %v5854_v3, %s4964_s24  ;;  %v17_v3 = vld [vmem:[%s9002_s0] sm:$0xff]  ;;  %v18_v29 = vld [vmem:[%s9002_s0 + $0x8] sm:$0xff] }
 0x1bc   :  { %v6352_v20 = vpop.permute.xlu1 %703  ;;  %v6354_v1 = vpop.permute.xlu0 %701 }
 0x1bd   :  { %9295 = vst [vmem:[#allocation78_spill] sm:$0xff] %v6352_v20  ;;  %9296 = vst [vmem:[#allocation81_spill] sm:$0xff] %v6354_v1  ;;  %v9299_v1 = vld [vmem:[#allocation5_spill] sm:$0xff]  ;;  %v9300_v20 = vld [vmem:[#allocation7_spill] sm:$0xff] }
 0x1be   :  { %879 = vrot.lane.b32.xlu1 %v112_v25, %s4964_s24  ;;  %877 = vrot.lane.b32.xlu0 %v111_v56, %s4964_s24  ;;  %v938_v25 = vsel %vm937_vm0, %v17_v3, %v9299_v1  ;;  %v939_v56 = vsel %vm937_vm0, %v18_v29, %v9300_v20 }
 0x1bf   :  { %v996_v27 = vsel %vm994_vm1, %v939_v56, %v5872_v60  ;;  %v940_v60 = vsel %vm937_vm0, %v9302_v17, %v9303_v18  ;;  %v9304_v56 = vld [vmem:[#allocation6_spill] sm:$0xff] }
 0x1c0   :  { %v6364_v31 = vpop.permute.xlu1 %707  ;;  %v6366_v19 = vpop.permute.xlu0 %705 }
 0x1c1   :  { %9297 = vst [vmem:[#allocation82_spill] sm:$0xff] %v6364_v31  ;;  %9298 = vst [vmem:[#allocation85_spill] sm:$0xff] %v6366_v19  ;;  %v995_v19 = vsel %vm994_vm1, %v938_v25, %v5874_v28  ;;  %v1053_v31 = vsel %vm1051_vm2, %v996_v27, %v6134_v55  ;;  %v941_v28 = vsel %vm937_vm0, %v9301_v24, %v9304_v56 }
 0x1c2   :  { %1167 = vrot.lane.b32.xlu1 %v9301_v24, %s4961_s19  ;;  %1165 = vrot.lane.b32.xlu0 %v9302_v17, %s4961_s19  ;;  %v1052_v1 = vsel %vm1051_vm2, %v995_v19, %v6136_v50  ;;  %v998_v55 = vsel %vm994_vm1, %v941_v28, %v5880_v61  ;;  %v997_v50 = vsel %vm994_vm1, %v940_v60, %v5882_v57  ;;  %v9305_v17 = vld [vmem:[#allocation10_spill] sm:$0xff]  ;;  %v9306_v19 = vld [vmem:[#allocation11_spill] sm:$0xff] }
 0x1c3   :  { %v1055_v18 = vsel %vm1051_vm2, %v998_v55, %v6142_v51  ;;  %v1054_v27 = vsel %vm1051_vm2, %v997_v50, %v6144_v52  ;;  %v942_v51 = vsel %vm937_vm0, %v5392_v59, %v9306_v19  ;;  %v9308_v60 = vld [vmem:[#allocation15_spill] sm:$0xff]  ;;  %v9309_v50 = vld [vmem:[#allocation18_spill] sm:$0xff] }
 0x1c4   :  { %v772_v20 = vpop.permute.xlu1 %771  ;;  %v770_v3 = vpop.permute.xlu0 %769  ;;  %v999_v25 = vsel %vm994_vm1, %v942_v51, %v5890_v2 }
 0x1c5   :  { %v1110_v29 = vsel %vm1108_vm3, %v1053_v31, %v772_v20  ;;  %v1109_v30 = vsel %vm1108_vm3, %v1052_v1, %v770_v3  ;;  %v9307_v3 = vld [vmem:[#allocation14_spill] sm:$0xff] }
 0x1c6   :  { %1171 = vrot.lane.b32.xlu1 %v5387_v58, %s4961_s19  ;;  %1169 = vrot.lane.b32.xlu0 %v5392_v59, %s4961_s19  ;;  %v1056_v59 = vsel %vm1051_vm2, %v999_v25, %v6152_v44  ;;  %v9313_v25 = vld [vmem:[#allocation26_spill] sm:$0xff] }
 0x1c7   :  { %4478 = vmatprep.mubr.msk.f32.mxu0 %vm2070_vm4, %v1109_v30  ;;  %4656 = vmatprep.mubr.msk.f32.mxu1 %vm2070_vm4, %v1109_v30  ;;  %v943_v30 = vsel %vm937_vm0, %v5387_v58, %v9305_v17 }
 0x1c8   :  { %4479 = vmatmul.mubr.msk.f32.vlgmr.msra.gmra.mxu0 %vm2070_vm4, %v1110_v29  ;;  %4657 = vmatmul.mubr.msk.f32.vlgmr.msra.gmra.mxu1 %vm2070_vm4, %v1110_v29  ;;  %v776_v24 = vpop.permute.xlu1 %775  ;;  %v774_v31 = vpop.permute.xlu0 %773  ;;  %v1000_v52 = vsel %vm994_vm1, %v943_v30, %v5888_v0  ;;  %v945_v29 = vsel %vm937_vm0, %v5405_v62, %v9307_v3  ;;  %v9312_v30 = vld [vmem:[#allocation23_spill] sm:$0xff] }
 0x1c9   :  { %v1112_v61 = vsel %vm1108_vm3, %v1055_v18, %v776_v24  ;;  %v1111_v57 = vsel %vm1108_vm3, %v1054_v27, %v774_v31  ;;  %v1057_v58 = vsel %vm1051_vm2, %v1000_v52, %v6150_v54  ;;  %v944_v54 = vsel %vm937_vm0, %v5410_v63, %v9308_v60  ;;  %v9310_v27 = vld [vmem:[#allocation19_spill] sm:$0xff] }
 0x1ca   :  { %1175 = vrot.lane.b32.xlu1 %v5405_v62, %s4961_s19  ;;  %1173 = vrot.lane.b32.xlu0 %v5410_v63, %s4961_s19  ;;  %v1002_v44 = vsel %vm994_vm1, %v945_v29, %v5896_v4  ;;  %v1001_v56 = vsel %vm994_vm1, %v944_v54, %v5898_v5  ;;  %v947_v18 = vsel %vm937_vm0, %v9217_v53, %v9309_v50 }
 0x1cb   :  { %4481 = vmatprep.mubr.msk.f32.mxu0 %vm2070_vm4, %v1111_v57  ;;  %4659 = vmatprep.mubr.msk.f32.mxu1 %vm2070_vm4, %v1111_v57  ;;  %v1059_v62 = vsel %vm1051_vm2, %v1002_v44, %v6158_v47  ;;  %v1058_v63 = vsel %vm1051_vm2, %v1001_v56, %v6160_v46  ;;  %v946_v47 = vsel %vm937_vm0, %v9218_v45, %v9310_v27  ;;  %v9311_v57 = vld [vmem:[#allocation22_spill] sm:$0xff]  ;;  %v6567_v56 = vld [vmem:[%s9002_s0 + $0x88] sm:$0xff] }
 0x1cc   :  { %4482 = vmatmul.mubr.msk.f32.gmra.mxu0 %vm2070_vm4, %v1112_v61  ;;  %4660 = vmatmul.mubr.msk.f32.gmra.mxu1 %vm2070_vm4, %v1112_v61  ;;  %v780_v1 = vpop.permute.xlu1 %779  ;;  %v778_v20 = vpop.permute.xlu0 %777  ;;  %v1004_v46 = vsel %vm994_vm1, %v947_v18, %v5904_v6  ;;  %v1003_v24 = vsel %vm994_vm1, %v946_v47, %v5906_v7  ;;  %v949_v17 = vsel %vm937_vm0, %v9219_v49, %v9311_v57  ;;  %v9322_v57 = vld [vmem:[#allocation8_spill] sm:$0xff] }
 0x1cd   :  { %v1114_v0 = vsel %vm1108_vm3, %v1057_v58, %v780_v1  ;;  %v1113_v2 = vsel %vm1108_vm3, %v1056_v59, %v778_v20  ;;  %v951_v58 = vsel %vm937_vm0, %v9221_v42, %v9313_v25  ;;  %v9314_v59 = vld [vmem:[#allocation27_spill] sm:$0xff]  ;;  %v6533_v20 = vld [vmem:[%s9002_s0 + $0x78] sm:$0xff]  ;;  %v6658_v25 = vld [vmem:[%s9002_s0 + $0xb0] sm:$0xff] }
 0x1ce   :  { %1179 = vrot.lane.b32.xlu1 %v9217_v53, %s4961_s19  ;;  %1177 = vrot.lane.b32.xlu0 %v9218_v45, %s4961_s19  ;;  %v1061_v53 = vsel %vm1051_vm2, %v1004_v46, %v6166_v41  ;;  %v1060_v45 = vsel %vm1051_vm2, %v1003_v24, %v6168_v40  ;;  %v948_v41 = vsel %vm937_vm0, %v9220_v48, %v9312_v30  ;;  %v9319_v24 = vld [vmem:[#allocation38_spill] sm:$0xff]  ;;  %v9323_v30 = vld [vmem:[#allocation9_spill] sm:$0xff] }
 0x1cf   :  { %4484 = vmatprep.mubr.msk.f32.mxu0 %vm2070_vm4, %v1113_v2  ;;  %4662 = vmatprep.mubr.msk.f32.mxu1 %vm2070_vm4, %v1113_v2  ;;  %v1006_v40 = vsel %vm994_vm1, %v949_v17, %v5912_v8  ;;  %v1005_v19 = vsel %vm994_vm1, %v948_v41, %v5914_v9  ;;  %v9316_v2 = vld [vmem:[#allocation31_spill] sm:$0xff] }
 0x1d0   :  { %4485 = vmatmul.mubr.msk.f32.gmra.mxu0 %vm2070_vm4, %v1114_v0  ;;  %4663 = vmatmul.mubr.msk.f32.gmra.mxu1 %vm2070_vm4, %v1114_v0  ;;  %v784_v28 = vpop.permute.xlu1 %783  ;;  %v782_v55 = vpop.permute.xlu0 %781  ;;  %v9315_v0 = vld [vmem:[#allocation30_spill] sm:$0xff] }
 0x1d1   :  { %v1116_v4 = vsel %vm1108_vm3, %v1059_v62, %v784_v28  ;;  %v1115_v5 = vsel %vm1108_vm3, %v1058_v63, %v782_v55  ;;  %v9317_v62 = vld [vmem:[#allocation34_spill] sm:$0xff]  ;;  %v9318_v63 = vld [vmem:[#allocation35_spill] sm:$0xff]  ;;  %v6583_v55 = vld [vmem:[%s9002_s0 + $0x98] sm:$0xff] }
 0x1d2   :  { %1183 = vrot.lane.b32.xlu1 %v9219_v49, %s4961_s19  ;;  %1181 = vrot.lane.b32.xlu0 %v9220_v48, %s4961_s19  ;;  %v1063_v49 = vsel %vm1051_vm2, %v1006_v40, %v6174_v37  ;;  %v1062_v48 = vsel %vm1051_vm2, %v1005_v19, %v6176_v36  ;;  %v950_v37 = vsel %vm937_vm0, %v9222_v43, %v9314_v59 }
 0x1d3   :  { %4487 = vmatprep.mubr.msk.f32.mxu0 %vm2070_vm4, %v1115_v5  ;;  %4665 = vmatprep.mubr.msk.f32.mxu1 %vm2070_vm4, %v1115_v5  ;;  %v1008_v36 = vsel %vm994_vm1, %v951_v58, %v5920_v10  ;;  %v1007_v1 = vsel %vm994_vm1, %v950_v37, %v5922_v11  ;;  %v9326_v58 = vld [vmem:[#allocation105_spill] sm:$0xff]  ;;  %v9327_v37 = vld [vmem:[#allocation106_spill] sm:$0xff] }
 0x1d4   :  { %4488 = vmatmul.mubr.msk.f32.gmra.mxu0 %vm2070_vm4, %v1116_v4  ;;  %4666 = vmatmul.mubr.msk.f32.gmra.mxu1 %vm2070_vm4, %v1116_v4  ;;  %v788_v31 = vpop.permute.xlu1 %787  ;;  %v786_v61 = vpop.permute.xlu0 %785  ;;  %v6590_v4 = vld [vmem:[%s9002_s0 + $0x90] sm:$0xff] }
 0x1d5   :  { %v1118_v6 = vsel %vm1108_vm3, %v1061_v53, %v788_v31  ;;  %v1117_v7 = vsel %vm1108_vm3, %v1060_v45, %v786_v61  ;;  %v957_v53 = vsel %vm937_vm0, %v6583_v55, %v9319_v24  ;;  %v9320_v45 = vld [vmem:[#allocation39_spill] sm:$0xff]  ;;  %v6624_v31 = vld [vmem:[%s9002_s0 + $0xa0] sm:$0xff]  ;;  %v6726_v24 = vld [vmem:[%s9002_s0 + $0xd0] sm:$0xff] }
 0x1d6   :  { %1187 = vrot.lane.b32.xlu1 %v9221_v42, %s4961_s19  ;;  %1185 = vrot.lane.b32.xlu0 %v9222_v43, %s4961_s19  ;;  %v1065_v42 = vsel %vm1051_vm2, %v1008_v36, %v6182_v33  ;;  %v1064_v43 = vsel %vm1051_vm2, %v1007_v1, %v6184_v32  ;;  %v953_v33 = vsel %vm937_vm0, %v6533_v20, %v9315_v0  ;;  %v6541_v32 = vld [vmem:[%s9002_s0 + $0x70] sm:$0xff] }
 0x1d7   :  { %4490 = vmatprep.mubr.msk.f32.mxu0 %vm2070_vm4, %v1117_v7  ;;  %4668 = vmatprep.mubr.msk.f32.mxu1 %vm2070_vm4, %v1117_v7  ;;  %v952_v3 = vsel %vm937_vm0, %v6541_v32, %v9316_v2  ;;  %v1010_v29 = vsel %vm994_vm1, %v953_v33, %v5928_v12  ;;  %v1014_v61 = vsel %vm994_vm1, %v957_v53, %v5944_v16  ;;  %v9328_v1 = vld [vmem:[#allocation12_spill] sm:$0xff]  ;;  %v9330_v33 = vld [vmem:[#allocation46_spill] sm:$0xff]  ;;  %v9338_v53 = vld [vmem:[#allocation109_spill] sm:$0xff] }
 0x1d8   :  { %4491 = vmatmul.mubr.msk.f32.gmra.mxu0 %vm2070_vm4, %v1118_v6  ;;  %4669 = vmatmul.mubr.msk.f32.gmra.mxu1 %vm2070_vm4, %v1118_v6  ;;  %v792_v51 = vpop.permute.xlu1 %791  ;;  %v790_v52 = vpop.permute.xlu0 %789  ;;  %v1009_v60 = vsel %vm994_vm1, %v952_v3, %v5930_v13  ;;  %v1067_v54 = vsel %vm1051_vm2, %v1010_v29, %v6190_v23  ;;  %v955_v23 = vsel %vm937_vm0, %v6567_v56, %v9317_v62  ;;  %v9321_v6 = vld [vmem:[#allocation104_spill] sm:$0xff]  ;;  %v9331_v3 = vld [vmem:[#allocation47_spill] sm:$0xff] }
 0x1d9   :  { %v1120_v8 = vsel %vm1108_vm3, %v1063_v49, %v792_v51  ;;  %v1119_v9 = vsel %vm1108_vm3, %v1062_v48, %v790_v52  ;;  %v1066_v44 = vsel %vm1051_vm2, %v1009_v60, %v6192_v22  ;;  %v6575_v22 = vld [vmem:[%s9002_s0 + $0x80] sm:$0xff]  ;;  %v1012_v5 = vsel %vm994_vm1, %v955_v23, %v5936_v14  ;;  %v9325_v52 = vld [vmem:[#allocation43_spill] sm:$0xff]  ;;  %v9335_v23 = vld [vmem:[#allocation17_spill] sm:$0xff] }
 0x1da   :  { %1191 = vrot.lane.b32.xlu1 %v9223_v39, %s4961_s19  ;;  %1189 = vrot.lane.b32.xlu0 %v9224_v38, %s4961_s19  ;;  %v954_v28 = vsel %vm937_vm0, %v6575_v22, %v9318_v63  ;;  %v1069_v18 = vsel %vm1051_vm2, %v1012_v5, %v6198_v21  ;;  %v956_v21 = vsel %vm937_vm0, %v6590_v4, %v9320_v45  ;;  %v9324_v48 = vld [vmem:[#allocation42_spill] sm:$0xff]  ;;  %v6685_v60 = vld [vmem:[%s9002_s0 + $0xc8] sm:$0xff] }
 0x1db   :  { %4493 = vmatprep.mubr.msk.f32.mxu0 %vm2070_vm4, %v1119_v9  ;;  %4671 = vmatprep.mubr.msk.f32.mxu1 %vm2070_vm4, %v1119_v9  ;;  %v1011_v50 = vsel %vm994_vm1, %v954_v28, %v5938_v15  ;;  %v1013_v7 = vsel %vm994_vm1, %v956_v21, %v9321_v6  ;;  %v1071_v17 = vsel %vm1051_vm2, %v1014_v61, %v9322_v57  ;;  %v6651_v9 = vld [vmem:[%s9002_s0 + $0xb8] sm:$0xff]  ;;  %v9339_v21 = vld [vmem:[#allocation110_spill] sm:$0xff]  ;;  %v9340_v6 = vld [vmem:[#allocation20_spill] sm:$0xff] }
 0x1dc   :  { %4494 = vmatmul.mubr.msk.f32.gmra.mxu0 %vm2070_vm4, %v1120_v8  ;;  %4672 = vmatmul.mubr.msk.f32.gmra.mxu1 %vm2070_vm4, %v1120_v8  ;;  %v796_v38 = vpop.permute.xlu1 %795  ;;  %v794_v39 = vpop.permute.xlu0 %793  ;;  %v1068_v27 = vsel %vm1051_vm2, %v1011_v50, %v6200_v26  ;;  %v6617_v26 = vld [vmem:[%s9002_s0 + $0xa8] sm:$0xff]  ;;  %v1070_v41 = vsel %vm1051_vm2, %v1013_v7, %v9323_v30  ;;  %v958_v8 = vsel %vm937_vm0, %v6624_v31, %v9325_v52  ;;  %v9341_v57 = vld [vmem:[#allocation21_spill] sm:$0xff] }
 0x1dd   :  { %v1122_v10 = vsel %vm1108_vm3, %v1065_v42, %v796_v38  ;;  %v1121_v11 = vsel %vm1108_vm3, %v1064_v43, %v794_v39  ;;  %v959_v51 = vsel %vm937_vm0, %v6617_v26, %v9324_v48  ;;  %v1015_v36 = vsel %vm994_vm1, %v958_v8, %v9327_v37  ;;  %v9329_v43 = vld [vmem:[#allocation13_spill] sm:$0xff]  ;;  %v6753_v52 = vld [vmem:[%s9002_s0 + $0xe8] sm:$0xff]  ;;  %v6760_v8 = vld [vmem:[%s9002_s0 + $0xe0] sm:$0xff] }
 0x1de   :  { %1195 = vrot.lane.b32.xlu1 %v9225_v35, %s4961_s19  ;;  %1193 = vrot.lane.b32.xlu0 %v9226_v34, %s4961_s19  ;;  %v1016_v59 = vsel %vm994_vm1, %v959_v51, %v9326_v58  ;;  %v1072_v38 = vsel %vm1051_vm2, %v1015_v36, %v9329_v43  ;;  %v961_v2 = vsel %vm937_vm0, %v6651_v9, %v9330_v33  ;;  %v9343_v48 = vld [vmem:[#allocation53_spill] sm:$0xff]  ;;  %v82_v58 = vld [vmem:[%s9002_s0 + $0x208] sm:$0xff]  ;;  %v9346_v43 = vld [vmem:[#allocation24_spill] sm:$0xff] }
 0x1df   :  { %4496 = vmatprep.mubr.msk.f32.mxu0 %vm2070_vm4, %v1121_v11  ;;  %4674 = vmatprep.mubr.msk.f32.mxu1 %vm2070_vm4, %v1121_v11  ;;  %v1073_v42 = vsel %vm1051_vm2, %v1016_v59, %v9328_v1  ;;  %v960_v29 = vsel %vm937_vm0, %v6658_v25, %v9331_v3  ;;  %v964_v51 = vsel %vm937_vm0, %v6726_v24, %v9343_v48  ;;  %v81_v59 = vld [vmem:[%s9002_s0 + $0x200] sm:$0xff]  ;;  %v9344_v37 = vld [vmem:[#allocation111_spill] sm:$0xff]  ;;  %v9345_v1 = vld [vmem:[#allocation112_spill] sm:$0xff] }
 0x1e0   :  { %4497 = vmatmul.mubr.msk.f32.gmra.mxu0 %vm2070_vm4, %v1122_v10  ;;  %4675 = vmatmul.mubr.msk.f32.gmra.mxu1 %vm2070_vm4, %v1122_v10  ;;  %v800_v34 = vpop.permute.xlu1 %799  ;;  %v798_v35 = vpop.permute.xlu0 %797  ;;  %v9348_v3 = vld [vmem:[#allocation55_spill] sm:$0xff] }
 0x1e1   :  { %v1124_v12 = vsel %vm1108_vm3, %v1067_v54, %v800_v34  ;;  %v1123_v13 = vsel %vm1108_vm3, %v1066_v44, %v798_v35  ;;  %v6692_v54 = vld [vmem:[%s9002_s0 + $0xc0] sm:$0xff]  ;;  %v9332_v44 = vld [vmem:[#allocation107_spill] sm:$0xff]  ;;  %v9333_v35 = vld [vmem:[#allocation108_spill] sm:$0xff] }
 0x1e2   :  { %1199 = vrot.lane.b32.xlu1 %v6583_v55, %s4961_s19  ;;  %1197 = vrot.lane.b32.xlu0 %v6590_v4, %s4961_s19  ;;  %v1018_v34 = vsel %vm994_vm1, %v961_v2, %v9332_v44  ;;  %v9349_v44 = vld [vmem:[#allocation56_spill] sm:$0xff] }
 0x1e3   :  { %4499 = vmatprep.mubr.msk.f32.mxu0 %vm2070_vm4, %v1123_v13  ;;  %4677 = vmatprep.mubr.msk.f32.mxu1 %vm2070_vm4, %v1123_v13  ;;  %v9334_v13 = vld [vmem:[#allocation16_spill] sm:$0xff] }
 0x1e4   :  { %4500 = vmatmul.mubr.msk.f32.gmra.mxu0 %vm2070_vm4, %v1124_v12  ;;  %4678 = vmatmul.mubr.msk.f32.gmra.mxu1 %vm2070_vm4, %v1124_v12  ;;  %v804_v47 = vpop.permute.xlu1 %803  ;;  %v802_v46 = vpop.permute.xlu0 %801  ;;  %v1017_v12 = vsel %vm994_vm1, %v960_v29, %v9333_v35  ;;  %v1075_v62 = vsel %vm1051_vm2, %v1018_v34, %v9334_v13  ;;  %v967_v29 = vsel %vm937_vm0, %v82_v58, %v9348_v3  ;;  %v4844_v35 = vld [vmem:[%s9002_s0 + $0x218] sm:$0xff] }
 0x1e5   :  { %v1126_v14 = vsel %vm1108_vm3, %v1069_v18, %v804_v47  ;;  %v1125_v15 = vsel %vm1108_vm3, %v1068_v27, %v802_v46  ;;  %v1074_v63 = vsel %vm1051_vm2, %v1017_v12, %v9335_v23  ;;  %v9336_v27 = vld [vmem:[#allocation50_spill] sm:$0xff]  ;;  %v9337_v46 = vld [vmem:[#allocation51_spill] sm:$0xff]  ;;  %v966_v34 = vsel %vm937_vm0, %v81_v59, %v9349_v44  ;;  %v4845_v12 = vld [vmem:[%s9002_s0 + $0x210] sm:$0xff] }
 0x1e6   :  { %1203 = vrot.lane.b32.xlu1 %v6617_v26, %s4961_s19  ;;  %1201 = vrot.lane.b32.xlu0 %v6624_v31, %s4961_s19  ;;  %v963_v47 = vsel %vm937_vm0, %v6685_v60, %v9336_v27  ;;  %v9350_v13 = vld [vmem:[#allocation113_spill] sm:$0xff]  ;;  %v9351_v23 = vld [vmem:[#allocation114_spill] sm:$0xff] }
 0x1e7   :  { %4502 = vmatprep.mubr.msk.f32.mxu0 %vm2070_vm4, %v1125_v15  ;;  %4680 = vmatprep.mubr.msk.f32.mxu1 %vm2070_vm4, %v1125_v15  ;;  %v6719_v15 = vld [vmem:[%s9002_s0 + $0xd8] sm:$0xff]  ;;  %v1020_v45 = vsel %vm994_vm1, %v963_v47, %v9338_v53  ;;  %v9354_v53 = vld [vmem:[#allocation59_spill] sm:$0xff] }
 0x1e8   :  { %4503 = vmatmul.mubr.msk.f32.gmra.mxu0 %vm2070_vm4, %v1126_v14  ;;  %4681 = vmatmul.mubr.msk.f32.gmra.mxu1 %vm2070_vm4, %v1126_v14  ;;  %v808_v40 = vpop.permute.xlu1 %807  ;;  %v806_v19 = vpop.permute.xlu0 %805  ;;  %v962_v14 = vsel %vm937_vm0, %v6692_v54, %v9337_v46  ;;  %v1077_v7 = vsel %vm1051_vm2, %v1020_v45, %v9340_v6  ;;  %v969_v45 = vsel %vm937_vm0, %v4844_v35, %v9354_v53  ;;  %v6817_v6 = vld [vmem:[%s9002_s0 + $0x228] sm:$0xff]  ;;  %v9365_v3 = vld [vmem:[#allocation37_spill] sm:$0xff] }
 0x1e9   :  { %v1128_v16 = vsel %vm1108_vm3, %v1071_v17, %v808_v40  ;;  %v1127_v49 = vsel %vm1108_vm3, %v1070_v41, %v806_v19  ;;  %v1019_v61 = vsel %vm994_vm1, %v962_v14, %v9339_v21  ;;  %v9355_v21 = vld [vmem:[#allocation60_spill] sm:$0xff]  ;;  %v9371_v53 = vld [vmem:[#allocation41_spill] sm:$0xff] }
 0x1ea   :  { %1207 = vrot.lane.b32.xlu1 %v6651_v9, %s4961_s19  ;;  %1205 = vrot.lane.b32.xlu0 %v6658_v25, %s4961_s19  ;;  %v1076_v17 = vsel %vm1051_vm2, %v1019_v61, %v9341_v57  ;;  %v968_v61 = vsel %vm937_vm0, %v4845_v12, %v9355_v21  ;;  %v9356_v57 = vld [vmem:[#allocation115_spill] sm:$0xff] }
 0x1eb   :  { %4505 = vmatprep.mubr.msk.f32.mxu0 %vm2070_vm4, %v1127_v49  ;;  %4683 = vmatprep.mubr.msk.f32.mxu1 %vm2070_vm4, %v1127_v49 }
 0x1ec   :  { %4506 = vmatmul.mubr.msk.f32.gmra.mxu0 %vm2070_vm4, %v1128_v16  ;;  %4684 = vmatmul.mubr.msk.f32.gmra.mxu1 %vm2070_vm4, %v1128_v16  ;;  %v812_v39 = vpop.permute.xlu1 %811  ;;  %v810_v10 = vpop.permute.xlu0 %809  ;;  %v9342_v16 = vld [vmem:[#allocation52_spill] sm:$0xff] }
 0x1ed   :  { %v1130_v11 = vsel %vm1108_vm3, %v1073_v42, %v812_v39  ;;  %v1129_v0 = vsel %vm1108_vm3, %v1072_v38, %v810_v10  ;;  %v965_v49 = vsel %vm937_vm0, %v6719_v15, %v9342_v16  ;;  %v1021_v42 = vsel %vm994_vm1, %v964_v51, %v9345_v1  ;;  %v9347_v39 = vld [vmem:[#allocation25_spill] sm:$0xff]  ;;  %v9361_v1 = vld [vmem:[#allocation64_spill] sm:$0xff] }
 0x1ee   :  { %1211 = vrot.lane.b32.xlu1 %v6685_v60, %s4961_s19  ;;  %1209 = vrot.lane.b32.xlu0 %v6692_v54, %s4961_s19  ;;  %v1022_v36 = vsel %vm994_vm1, %v965_v49, %v9344_v37  ;;  %v1078_v10 = vsel %vm1051_vm2, %v1021_v42, %v9347_v39  ;;  %v9359_v16 = vld [vmem:[#allocation33_spill] sm:$0xff]  ;;  %v9360_v37 = vld [vmem:[#allocation63_spill] sm:$0xff] }
 0x1ef   :  { %4508 = vmatprep.mubr.msk.f32.mxu0 %vm2070_vm4, %v1129_v0  ;;  %4686 = vmatprep.mubr.msk.f32.mxu1 %vm2070_vm4, %v1129_v0  ;;  %v1079_v38 = vsel %vm1051_vm2, %v1022_v36, %v9346_v43  ;;  %v971_v36 = vsel %vm937_vm0, %v6817_v6, %v9360_v37  ;;  %v6851_v43 = vld [vmem:[%s9002_s0 + $0x238] sm:$0xff]  ;;  %v9376_v37 = vld [vmem:[#allocation44_spill] sm:$0xff] }
 0x1f0   :  { %4509 = vmatmul.mubr.msk.f32.gmra.mxu0 %vm2070_vm4, %v1130_v11  ;;  %4687 = vmatmul.mubr.msk.f32.gmra.mxu1 %vm2070_vm4, %v1130_v11  ;;  %v816_v28 = vpop.permute.xlu1 %815  ;;  %v814_v5 = vpop.permute.xlu0 %813  ;;  %v9362_v39 = vld [vmem:[#allocation117_spill] sm:$0xff] }
 0x1f1   :  { %v1132_v50 = vsel %vm1108_vm3, %v1075_v62, %v816_v28  ;;  %v1131_v18 = vsel %vm1108_vm3, %v1074_v63, %v814_v5  ;;  %v1024_v62 = vsel %vm994_vm1, %v967_v29, %v9350_v13  ;;  %v1023_v63 = vsel %vm994_vm1, %v966_v34, %v9351_v23  ;;  %v9352_v28 = vld [vmem:[#allocation28_spill] sm:$0xff]  ;;  %v9366_v13 = vld [vmem:[#allocation67_spill] sm:$0xff] }
 0x1f2   :  { %1215 = vrot.lane.b32.xlu1 %v6719_v15, %s4961_s19  ;;  %1213 = vrot.lane.b32.xlu0 %v6726_v24, %s4961_s19  ;;  %v1081_v5 = vsel %vm1051_vm2, %v1024_v62, %v9352_v28  ;;  %v973_v62 = vsel %vm937_vm0, %v6851_v43, %v9366_v13  ;;  %v9367_v23 = vld [vmem:[#allocation68_spill] sm:$0xff]  ;;  %v6885_v28 = vld [vmem:[%s9002_s0 + $0x248] sm:$0xff] }
 0x1f3   :  { %4511 = vmatprep.mubr.msk.f32.mxu0 %vm2070_vm4, %v1131_v18  ;;  %4689 = vmatprep.mubr.msk.f32.mxu1 %vm2070_vm4, %v1131_v18  ;;  %v9381_v13 = vld [vmem:[#allocation124_spill] sm:$0xff] }
 0x1f4   :  { %4512 = vmatmul.mubr.msk.f32.gmra.mxu0 %vm2070_vm4, %v1132_v50  ;;  %4690 = vmatmul.mubr.msk.f32.gmra.mxu1 %vm2070_vm4, %v1132_v50  ;;  %v820_v30 = vpop.permute.xlu1 %819  ;;  %v818_v41 = vpop.permute.xlu0 %817  ;;  %v9353_v50 = vld [vmem:[#allocation29_spill] sm:$0xff] }
 0x1f5   :  { %v1134_v40 = vsel %vm1108_vm3, %v1077_v7, %v820_v30  ;;  %v1133_v19 = vsel %vm1108_vm3, %v1076_v17, %v818_v41  ;;  %v1080_v18 = vsel %vm1051_vm2, %v1023_v63, %v9353_v50  ;;  %v6824_v7 = vld [vmem:[%s9002_s0 + $0x220] sm:$0xff]  ;;  %v1026_v17 = vsel %vm994_vm1, %v969_v45, %v9356_v57  ;;  %v9357_v30 = vld [vmem:[#allocation116_spill] sm:$0xff]  ;;  %v9368_v50 = vld [vmem:[#allocation119_spill] sm:$0xff] }
 0x1f6   :  { %1219 = vrot.lane.b32.xlu1 %v6753_v52, %s4961_s19  ;;  %1217 = vrot.lane.b32.xlu0 %v6760_v8, %s4961_s19  ;;  %v1025_v41 = vsel %vm994_vm1, %v968_v61, %v9357_v30  ;;  %v970_v42 = vsel %vm937_vm0, %v6824_v7, %v9361_v1  ;;  %v9372_v30 = vld [vmem:[#allocation71_spill] sm:$0xff]  ;;  %v9377_v1 = vld [vmem:[#allocation45_spill] sm:$0xff] }
 0x1f7   :  { %4514 = vmatprep.mubr.msk.f32.mxu0 %vm2070_vm4, %v1133_v19  ;;  %4692 = vmatprep.mubr.msk.f32.mxu1 %vm2070_vm4, %v1133_v19  ;;  %v1082_v49 = vsel %vm1051_vm2, %v1025_v41, %v9359_v16  ;;  %v975_v41 = vsel %vm937_vm0, %v6885_v28, %v9372_v30  ;;  %v6919_v16 = vld [vmem:[%s9002_s0 + $0x258] sm:$0xff]  ;;  %v4858_v30 = vld [vmem:[%s9002_s0 + $0x28] sm:$0xff] }
 0x1f8   :  { %4515 = vmatmul.mubr.msk.f32.gmra.mxu0 %vm2070_vm4, %v1134_v40  ;;  %4693 = vmatmul.mubr.msk.f32.gmra.mxu1 %vm2070_vm4, %v1134_v40  ;;  %v824_v11 = vpop.permute.xlu1 %823  ;;  %v822_v0 = vpop.permute.xlu0 %821  ;;  %v9358_v40 = vld [vmem:[#allocation32_spill] sm:$0xff] }
 0x1f9   :  { %v1136_v33 = vsel %vm1108_vm3, %v1079_v38, %v824_v11  ;;  %v1135_v2 = vsel %vm1108_vm3, %v1078_v10, %v822_v0  ;;  %v1083_v19 = vsel %vm1051_vm2, %v1026_v17, %v9358_v40  ;;  %v6858_v38 = vld [vmem:[%s9002_s0 + $0x230] sm:$0xff]  ;;  %v1028_v10 = vsel %vm994_vm1, %v971_v36, %v9362_v39  ;;  %v9363_v11 = vld [vmem:[#allocation118_spill] sm:$0xff] }
 0x1fa   :  { %1223 = vrot.lane.b32.xlu1 %v4844_v35, %s4961_s19  ;;  %1221 = vrot.lane.b32.xlu0 %v4845_v12, %s4961_s19  ;;  %v1027_v0 = vsel %vm994_vm1, %v970_v42, %v9363_v11  ;;  %v972_v63 = vsel %vm937_vm0, %v6858_v38, %v9367_v23  ;;  %v9373_v40 = vld [vmem:[#allocation72_spill] sm:$0xff] }
 0x1fb   :  { %4517 = vmatprep.mubr.msk.f32.mxu0 %vm2070_vm4, %v1135_v2  ;;  %4695 = vmatprep.mubr.msk.f32.mxu1 %vm2070_vm4, %v1135_v2  ;;  %v1084_v29 = vsel %vm1051_vm2, %v1027_v0, %v9365_v3  ;;  %v9379_v3 = vld [vmem:[#allocation76_spill] sm:$0xff] }
 0x1fc   :  { %4518 = vmatmul.mubr.msk.f32.gmra.mxu0 %vm2070_vm4, %v1136_v33  ;;  %4696 = vmatmul.mubr.msk.f32.gmra.mxu1 %vm2070_vm4, %v1136_v33  ;;  %v828_v27 = vpop.permute.xlu1 %827  ;;  %v826_v47 = vpop.permute.xlu0 %825  ;;  %v9364_v33 = vld [vmem:[#allocation36_spill] sm:$0xff] }
 0x1fd   :  { %v1138_v46 = vsel %vm1108_vm3, %v1081_v5, %v828_v27  ;;  %v1137_v14 = vsel %vm1108_vm3, %v1080_v18, %v826_v47  ;;  %v1085_v2 = vsel %vm1051_vm2, %v1028_v10, %v9364_v33  ;;  %v6892_v5 = vld [vmem:[%s9002_s0 + $0x240] sm:$0xff]  ;;  %v1030_v18 = vsel %vm994_vm1, %v973_v62, %v9368_v50  ;;  %v9369_v27 = vld [vmem:[#allocation120_spill] sm:$0xff]  ;;  %v9378_v33 = vld [vmem:[#allocation75_spill] sm:$0xff] }
 0x1fe   :  { %1227 = vrot.lane.b32.xlu1 %v6817_v6, %s4961_s19  ;;  %1225 = vrot.lane.b32.xlu0 %v6824_v7, %s4961_s19  ;;  %v1029_v47 = vsel %vm994_vm1, %v972_v63, %v9369_v27  ;;  %v9382_v23 = vld [vmem:[#allocation48_spill] sm:$0xff]  ;;  %v9383_v50 = vld [vmem:[#allocation49_spill] sm:$0xff] }
 0x1ff   :  { %4520 = vmatprep.mubr.msk.f32.mxu0 %vm2070_vm4, %v1137_v14  ;;  %4698 = vmatprep.mubr.msk.f32.mxu1 %vm2070_vm4, %v1137_v14  ;;  %v1086_v45 = vsel %vm1051_vm2, %v1029_v47, %v9371_v53  ;;  %v6981_v53 = vld [vmem:[%s9002_s0 + $0x268] sm:$0xff] }
 0x200   :  { %4521 = vmatmul.mubr.msk.f32.gmra.mxu0 %vm2070_vm4, %v1138_v46  ;;  %4699 = vmatmul.mubr.msk.f32.gmra.mxu1 %vm2070_vm4, %v1138_v46  ;;  %v832_v48 = vpop.permute.xlu1 %831  ;;  %v830_v51 = vpop.permute.xlu0 %829  ;;  %v9370_v46 = vld [vmem:[#allocation40_spill] sm:$0xff]  ;;  %9384 = vst [vmem:[#allocation86_spill] sm:$0xff] %v6981_v53 }
 0x201   :  { %v1140_v58 = vsel %vm1108_vm3, %v1083_v19, %v832_v48  ;;  %v1139_v59 = vsel %vm1108_vm3, %v1082_v49, %v830_v51  ;;  %v1087_v14 = vsel %vm1051_vm2, %v1030_v18, %v9370_v46  ;;  %v974_v19 = vsel %vm937_vm0, %v6892_v5, %v9373_v40  ;;  %v6926_v49 = vld [vmem:[%s9002_s0 + $0x250] sm:$0xff]  ;;  %v9374_v48 = vld [vmem:[#allocation121_spill] sm:$0xff] }
 0x202   :  { %1231 = vrot.lane.b32.xlu1 %v6851_v43, %s4961_s19  ;;  %1229 = vrot.lane.b32.xlu0 %v6858_v38, %s4961_s19  ;;  %v1032_v51 = vsel %vm994_vm1, %v975_v41, %v9374_v48  ;;  %v4859_v41 = vld [vmem:[%s9002_s0 + $0x20] sm:$0xff]  ;;  %v9388_v40 = vld [vmem:[#allocation125_spill] sm:$0xff] }
 0x203   :  { %4523 = vmatprep.mubr.msk.f32.mxu0 %vm2070_vm4, %v1139_v59  ;;  %4701 = vmatprep.mubr.msk.f32.mxu1 %vm2070_vm4, %v1139_v59  ;;  %v1089_v36 = vsel %vm1051_vm2, %v1032_v51, %v9376_v37  ;;  %v9389_v48 = vld [vmem:[#allocation126_spill] sm:$0xff]  ;;  %v9391_v37 = vld [vmem:[#allocation57_spill] sm:$0xff] }
 0x204   :  { %4524 = vmatmul.mubr.msk.f32.gmra.mxu0 %vm2070_vm4, %v1140_v58  ;;  %4702 = vmatmul.mubr.msk.f32.gmra.mxu1 %vm2070_vm4, %v1140_v58  ;;  %v836_v44 = vpop.permute.xlu1 %835  ;;  %v834_v34 = vpop.permute.xlu0 %833  ;;  %v9375_v58 = vld [vmem:[#allocation122_spill] sm:$0xff] }
 0x205   :  { %v1142_v35 = vsel %vm1108_vm3, %v1085_v2, %v836_v44  ;;  %v1141_v12 = vsel %vm1108_vm3, %v1084_v29, %v834_v34  ;;  %v1031_v59 = vsel %vm994_vm1, %v974_v19, %v9375_v58  ;;  %v977_v2 = vsel %vm937_vm0, %v6919_v16, %v9378_v33  ;;  %v6953_v44 = vld [vmem:[%s9002_s0 + $0x118] sm:$0xff]  ;;  %v6960_v34 = vld [vmem:[%s9002_s0 + $0x110] sm:$0xff]  ;;  %v9390_v58 = vld [vmem:[#allocation54_spill] sm:$0xff] }
 0x206   :  { %1235 = vrot.lane.b32.xlu1 %v6885_v28, %s4961_s19  ;;  %1233 = vrot.lane.b32.xlu0 %v6892_v5, %s4961_s19  ;;  %v1088_v42 = vsel %vm1051_vm2, %v1031_v59, %v9377_v1  ;;  %v976_v29 = vsel %vm937_vm0, %v6926_v49, %v9379_v3  ;;  %v9395_v3 = vld [vmem:[#allocation84_spill] sm:$0xff] }
 0x207   :  { %4526 = vmatprep.mubr.msk.f32.mxu0 %vm2070_vm4, %v1141_v12  ;;  %4704 = vmatprep.mubr.msk.f32.mxu1 %vm2070_vm4, %v1141_v12  ;;  %v1033_v62 = vsel %vm994_vm1, %v976_v29, %v9381_v13  ;;  %v9396_v13 = vld [vmem:[#allocation127_spill] sm:$0xff] }
 0x208   :  { %4527 = vmatmul.mubr.msk.f32.gmra.mxu0 %vm2070_vm4, %v1142_v35  ;;  %4705 = vmatmul.mubr.msk.f32.gmra.mxu1 %vm2070_vm4, %v1142_v35  ;;  %v840_v21 = vpop.permute.xlu1 %839  ;;  %v838_v61 = vpop.permute.xlu0 %837  ;;  %v9380_v35 = vld [vmem:[#allocation123_spill] sm:$0xff]  ;;  %v1090_v18 = vsel %vm1051_vm2, %v1033_v62, %v9383_v50  ;;  %v9398_v50 = vld [vmem:[#allocation58_spill] sm:$0xff] }
 0x209   :  { %v1144_v57 = vsel %vm1108_vm3, %v1087_v14, %v840_v21  ;;  %v1143_v17 = vsel %vm1108_vm3, %v1086_v45, %v838_v61  ;;  %v1034_v12 = vsel %vm994_vm1, %v977_v2, %v9380_v35  ;;  %v9385_v45 = vld [vmem:[#allocation79_spill] sm:$0xff]  ;;  %v6989_v61 = vld [vmem:[%s9002_s0 + $0x260] sm:$0xff]  ;;  %v7027_v2 = vld [vmem:[%s9002_s0 + $0x270] sm:$0xff] }
 0x20a   :  { %1239 = vrot.lane.b32.xlu1 %v6919_v16, %s4961_s19  ;;  %1237 = vrot.lane.b32.xlu0 %v6926_v49, %s4961_s19  ;;  %v1091_v63 = vsel %vm1051_vm2, %v1034_v12, %v9382_v23  ;;  %v979_v21 = vsel %vm937_vm0, %v6981_v53, %v9385_v45  ;;  %9386 = vst [vmem:[#allocation89_spill] sm:$0xff] %v6989_v61  ;;  %9394 = vst [vmem:[#allocation93_spill] sm:$0xff] %v7027_v2  ;;  %v7035_v35 = vld [vmem:[%s9002_s0 + $0x128] sm:$0xff]  ;;  %v7042_v12 = vld [vmem:[%s9002_s0 + $0x120] sm:$0xff] }
 0x20b   :  { %4529 = vmatprep.mubr.msk.f32.mxu0 %vm2070_vm4, %v1143_v17  ;;  %4707 = vmatprep.mubr.msk.f32.mxu1 %vm2070_vm4, %v1143_v17  ;;  %v1036_v19 = vsel %vm994_vm1, %v979_v21, %v9388_v40  ;;  %v980_v29 = vsel %vm937_vm0, %v7027_v2, %v9395_v3  ;;  %v9397_v23 = vld [vmem:[#allocation128_spill] sm:$0xff]  ;;  %v4866_v3 = vld [vmem:[%s9002_s0 + $0x298] sm:$0xff] }
 0x20c   :  { %4530 = vmatmul.mubr.msk.f32.gmra.mxu0 %vm2070_vm4, %v1144_v57  ;;  %4708 = vmatmul.mubr.msk.f32.gmra.mxu1 %vm2070_vm4, %v1144_v57  ;;  %v844_v39 = vpop.permute.xlu1 %843  ;;  %v842_v10 = vpop.permute.xlu0 %841  ;;  %v9387_v57 = vld [vmem:[#allocation80_spill] sm:$0xff]  ;;  %v1093_v59 = vsel %vm1051_vm2, %v1036_v19, %v9390_v58  ;;  %v9403_v58 = vld [vmem:[#allocation130_spill] sm:$0xff] }
 0x20d   :  { %v1146_v11 = vsel %vm1108_vm3, %v1089_v36, %v844_v39  ;;  %v1145_v0 = vsel %vm1108_vm3, %v1088_v42, %v842_v10  ;;  %v978_v17 = vsel %vm937_vm0, %v6989_v61, %v9387_v57  ;;  %v4864_v57 = vld [vmem:[%s9002_s0 + $0x288] sm:$0xff]  ;;  %v9401_v40 = vld [vmem:[#allocation88_spill] sm:$0xff] }
 0x20e   :  { %1335 = vrot.lane.b32.xlu1 %v6953_v44, %s4962_s6  ;;  %1333 = vrot.lane.b32.xlu0 %v6960_v34, %s4962_s6  ;;  %v1035_v51 = vsel %vm994_vm1, %v978_v17, %v9389_v48  ;;  %v9400_v17 = vld [vmem:[#allocation87_spill] sm:$0xff]  ;;  %v9402_v48 = vld [vmem:[#allocation129_spill] sm:$0xff] }
 0x20f   :  { %4532 = vmatprep.mubr.msk.f32.mxu0 %vm2070_vm4, %v1145_v0  ;;  %4710 = vmatprep.mubr.msk.f32.mxu1 %vm2070_vm4, %v1145_v0  ;;  %v1092_v36 = vsel %vm1051_vm2, %v1035_v51, %v9391_v37  ;;  %v9393_v0 = vld [vmem:[#allocation83_spill] sm:$0xff]  ;;  %v9404_v37 = vld [vmem:[#allocation62_spill] sm:$0xff] }
 0x210   :  { %4533 = vmatmul.mubr.msk.f32.gmra.mxu0 %vm2070_vm4, %v1146_v11  ;;  %4711 = vmatmul.mubr.msk.f32.gmra.mxu1 %vm2070_vm4, %v1146_v11  ;;  %v848_v27 = vpop.permute.xlu1 %847  ;;  %v846_v47 = vpop.permute.xlu0 %845  ;;  %v7019_v11 = vld [vmem:[%s9002_s0 + $0x278] sm:$0xff] }
 0x211   :  { %v1148_v46 = vsel %vm1108_vm3, %v1091_v63, %v848_v27  ;;  %v1147_v14 = vsel %vm1108_vm3, %v1090_v18, %v846_v47  ;;  %9392 = vst [vmem:[#allocation90_spill] sm:$0xff] %v7019_v11  ;;  %v981_v33 = vsel %vm937_vm0, %v7019_v11, %v9393_v0  ;;  %v1037_v63 = vsel %vm994_vm1, %v980_v29, %v9397_v23  ;;  %v9399_v27 = vld [vmem:[#allocation61_spill] sm:$0xff]  ;;  %v9406_v29 = vld [vmem:[#allocation91_spill] sm:$0xff]  ;;  %v9407_v23 = vld [vmem:[#allocation92_spill] sm:$0xff] }
 0x212   :  { %1503 = vrot.lane.b32.xlu1 %v4858_v30, %s4963_s20  ;;  %1501 = vrot.lane.b32.xlu0 %v4859_v41, %s4963_s20  ;;  %v1038_v62 = vsel %vm994_vm1, %v981_v33, %v9396_v13  ;;  %v1094_v47 = vsel %vm1051_vm2, %v1037_v63, %v9399_v27  ;;  %v983_v30 = vsel %vm937_vm0, %v4864_v57, %v9400_v17  ;;  %v4865_v41 = vld [vmem:[%s9002_s0 + $0x280] sm:$0xff]  ;;  %v9408_v27 = vld [vmem:[#allocation131_spill] sm:$0xff]  ;;  %v9411_v57 = vld [vmem:[#allocation69_spill] sm:$0xff] }
 0x213   :  { %4535 = vmatprep.mubr.msk.f32.mxu0 %vm2070_vm4, %v1147_v14  ;;  %4713 = vmatprep.mubr.msk.f32.mxu1 %vm2070_vm4, %v1147_v14  ;;  %v1095_v18 = vsel %vm1051_vm2, %v1038_v62, %v9398_v50  ;;  %v982_v19 = vsel %vm937_vm0, %v4865_v41, %v9401_v40  ;;  %v1040_v51 = vsel %vm994_vm1, %v983_v30, %v9402_v48  ;;  %v4867_v62 = vld [vmem:[%s9002_s0 + $0x290] sm:$0xff]  ;;  %v4868_v50 = vld [vmem:[%s9002_s0 + $0x38] sm:$0xff]  ;;  %v4870_v48 = vld [vmem:[%s9002_s0 + $0x2a8] sm:$0xff] }
 0x214   :  { %4536 = vmatmul.mubr.msk.f32.gmra.mxu0 %vm2070_vm4, %v1148_v46  ;;  %4714 = vmatmul.mubr.msk.f32.gmra.mxu1 %vm2070_vm4, %v1148_v46  ;;  %v852_v1 = vpop.permute.xlu1 %851  ;;  %v850_v42 = vpop.permute.xlu0 %849  ;;  %v985_v13 = vsel %vm937_vm0, %v4866_v3, %v9406_v29  ;;  %v984_v63 = vsel %vm937_vm0, %v4867_v62, %v9407_v23  ;;  %v9416_v3 = vld [vmem:[#allocation70_spill] sm:$0xff] }
 0x215   :  { %v1150_v39 = vsel %vm1108_vm3, %v1093_v59, %v852_v1  ;;  %v1149_v10 = vsel %vm1108_vm3, %v1092_v36, %v850_v42  ;;  %v1039_v59 = vsel %vm994_vm1, %v982_v19, %v9403_v58  ;;  %v1097_v36 = vsel %vm1051_vm2, %v1040_v51, %v9404_v37  ;;  %v9405_v1 = vld [vmem:[#allocation65_spill] sm:$0xff]  ;;  %v9412_v51 = vld [vmem:[#allocation95_spill] sm:$0xff]  ;;  %v9413_v37 = vld [vmem:[#allocation96_spill] sm:$0xff] }
 0x216   :  { %1675 = vrot.lane.b32.xlu1 %v7035_v35, %s4964_s24  ;;  %1673 = vrot.lane.b32.xlu0 %v7042_v12, %s4964_s24  ;;  %v1096_v42 = vsel %vm1051_vm2, %v1039_v59, %v9405_v1  ;;  %v987_v58 = vsel %vm937_vm0, %v4870_v48, %v9412_v51  ;;  %v4871_v59 = vld [vmem:[%s9002_s0 + $0x2a0] sm:$0xff]  ;;  %v7133_v1 = vld [vmem:[%s9002_s0 + $0x138] sm:$0xff] }
 0x217   :  { %4538 = vmatprep.mubr.msk.f32.mxu0 %vm2070_vm4, %v1149_v10  ;;  %4716 = vmatprep.mubr.msk.f32.mxu1 %vm2070_vm4, %v1149_v10  ;;  %v9423_v48 = vld [vmem:[#allocation77_spill] sm:$0xff] }
 0x218   :  { %4539 = vmatmul.mubr.msk.f32.gmra.mxu0 %vm2070_vm4, %v1150_v39  ;;  %4717 = vmatmul.mubr.msk.f32.gmra.mxu1 %vm2070_vm4, %v1150_v39  ;;  %v856_v46 = vpop.permute.xlu1 %855  ;;  %v854_v14 = vpop.permute.xlu0 %853 }
 0x219   :  { %v1152_v45 = vsel %vm1108_vm3, %v1095_v18, %v856_v46  ;;  %v1151_v21 = vsel %vm1108_vm3, %v1094_v47, %v854_v14  ;;  %v4869_v18 = vld [vmem:[%s9002_s0 + $0x30] sm:$0xff]  ;;  %v1042_v47 = vsel %vm994_vm1, %v985_v13, %v9408_v27  ;;  %v9417_v13 = vld [vmem:[#allocation73_spill] sm:$0xff] }
 0x21a   :  { %1339 = vrot.lane.b32.xlu1 %v7035_v35, %s4962_s6  ;;  %1337 = vrot.lane.b32.xlu0 %v7042_v12, %s4962_s6  ;;  %v9409_v46 = vld [vmem:[#allocation132_spill] sm:$0xff]  ;;  %v4874_v27 = vld [vmem:[%s9002_s0 + $0x2b8] sm:$0xff] }
 0x21b   :  { %4541 = vmatprep.mubr.msk.f32.mxu0 %vm2070_vm4, %v1151_v21  ;;  %4719 = vmatprep.mubr.msk.f32.mxu1 %vm2070_vm4, %v1151_v21  ;;  %v1041_v14 = vsel %vm994_vm1, %v984_v63, %v9409_v46 }
 0x21c   :  { %4542 = vmatmul.mubr.msk.f32.gmra.mxu0 %vm2070_vm4, %v1152_v45  ;;  %4720 = vmatmul.mubr.msk.f32.gmra.mxu1 %vm2070_vm4, %v1152_v45  ;;  %v860_v39 = vpop.permute.xlu1 %859  ;;  %v858_v10 = vpop.permute.xlu0 %857  ;;  %v9410_v45 = vld [vmem:[#allocation66_spill] sm:$0xff]  ;;  %v1098_v17 = vsel %vm1051_vm2, %v1041_v14, %v9411_v57  ;;  %v4875_v14 = vld [vmem:[%s9002_s0 + $0x2b0] sm:$0xff]  ;;  %v9420_v57 = vld [vmem:[#allocation135_spill] sm:$0xff] }
 0x21d   :  { %v1154_v0 = vsel %vm1108_vm3, %v1097_v36, %v860_v39  ;;  %v1153_v33 = vsel %vm1108_vm3, %v1096_v42, %v858_v10  ;;  %v1099_v21 = vsel %vm1051_vm2, %v1042_v47, %v9410_v45  ;;  %v986_v36 = vsel %vm937_vm0, %v4871_v59, %v9413_v37  ;;  %v7140_v42 = vld [vmem:[%s9002_s0 + $0x130] sm:$0xff]  ;;  %v9414_v39 = vld [vmem:[#allocation133_spill] sm:$0xff]  ;;  %v9418_v47 = vld [vmem:[#allocation98_spill] sm:$0xff] }
 0x21e   :  { %1507 = vrot.lane.b32.xlu1 %v4868_v50, %s4963_s20  ;;  %1505 = vrot.lane.b32.xlu0 %v4869_v18, %s4963_s20  ;;  %v1044_v10 = vsel %vm994_vm1, %v987_v58, %v9414_v39  ;;  %v989_v46 = vsel %vm937_vm0, %v4874_v27, %v9418_v47  ;;  %v9419_v45 = vld [vmem:[#allocation99_spill] sm:$0xff]  ;;  %v9428_v27 = vld [vmem:[#allocation78_spill] sm:$0xff] }
 0x21f   :  { %4544 = vmatprep.mubr.msk.f32.mxu0 %vm2070_vm4, %v1153_v33  ;;  %4722 = vmatprep.mubr.msk.f32.mxu1 %vm2070_vm4, %v1153_v33  ;;  %v1101_v29 = vsel %vm1051_vm2, %v1044_v10, %v9416_v3  ;;  %v4876_v39 = vld [vmem:[%s9002_s0 + $0x2c8] sm:$0xff]  ;;  %v9424_v10 = vld [vmem:[#allocation100_spill] sm:$0xff]  ;;  %v9425_v3 = vld [vmem:[#allocation101_spill] sm:$0xff] }
 0x220   :  { %4545 = vmatmul.mubr.msk.f32.gmra.mxu0 %vm2070_vm4, %v1154_v0  ;;  %4723 = vmatmul.mubr.msk.f32.gmra.mxu1 %vm2070_vm4, %v1154_v0  ;;  %v864_v30 = vpop.permute.xlu1 %863  ;;  %v862_v41 = vpop.permute.xlu0 %861  ;;  %v9415_v0 = vld [vmem:[#allocation134_spill] sm:$0xff] }
 0x221   :  { %v1156_v40 = vsel %vm1108_vm3, %v1099_v21, %v864_v30  ;;  %v1155_v19 = vsel %vm1108_vm3, %v1098_v17, %v862_v41  ;;  %v1043_v33 = vsel %vm994_vm1, %v986_v36, %v9415_v0  ;;  %v988_v21 = vsel %vm937_vm0, %v4875_v14, %v9419_v45  ;;  %v9421_v30 = vld [vmem:[#allocation136_spill] sm:$0xff] }
 0x222   :  { %1679 = vrot.lane.b32.xlu1 %v7133_v1, %s4964_s24  ;;  %1677 = vrot.lane.b32.xlu0 %v7140_v42, %s4964_s24  ;;  %v1100_v62 = vsel %vm1051_vm2, %v1043_v33, %v9417_v13  ;;  %v1046_v17 = vsel %vm994_vm1, %v989_v46, %v9420_v57  ;;  %v1045_v41 = vsel %vm994_vm1, %v988_v21, %v9421_v30  ;;  %v4877_v33 = vld [vmem:[%s9002_s0 + $0x2c0] sm:$0xff]  ;;  %v4878_v13 = vld [vmem:[%s9002_s0 + $0x48] sm:$0xff]  ;;  %v9429_v46 = vld [vmem:[#allocation81_spill] sm:$0xff] }
 0x223   :  { %4547 = vmatprep.mubr.msk.f32.mxu0 %vm2070_vm4, %v1155_v19  ;;  %4725 = vmatprep.mubr.msk.f32.mxu1 %vm2070_vm4, %v1155_v19  ;;  %v1102_v51 = vsel %vm1051_vm2, %v1045_v41, %v9423_v48  ;;  %v991_v0 = vsel %vm937_vm0, %v4876_v39, %v9424_v10  ;;  %v4880_v30 = vld [vmem:[%s9002_s0 + $0x2d8] sm:$0xff]  ;;  %v9430_v41 = vld [vmem:[#allocation102_spill] sm:$0xff]  ;;  %v9431_v48 = vld [vmem:[#allocation103_spill] sm:$0xff] }
 0x224   :  { %4548 = vmatmul.mubr.msk.f32.gmra.mxu0 %vm2070_vm4, %v1156_v40  ;;  %4726 = vmatmul.mubr.msk.f32.gmra.mxu1 %vm2070_vm4, %v1156_v40  ;;  %v868_v23 = vpop.permute.xlu1 %867  ;;  %v866_v63 = vpop.permute.xlu0 %865  ;;  %v9422_v40 = vld [vmem:[#allocation74_spill] sm:$0xff]  ;;  %v9433_v39 = vld [vmem:[#allocation140_spill] sm:$0xff] }
 0x225   :  { %v1158_v50 = vsel %vm1108_vm3, %v1101_v29, %v868_v23  ;;  %v1157_v18 = vsel %vm1108_vm3, %v1100_v62, %v866_v63  ;;  %v1103_v19 = vsel %vm1051_vm2, %v1046_v17, %v9422_v40  ;;  %v990_v29 = vsel %vm937_vm0, %v4877_v33, %v9425_v3  ;;  %v4879_v62 = vld [vmem:[%s9002_s0 + $0x40] sm:$0xff]  ;;  %v9426_v23 = vld [vmem:[#allocation137_spill] sm:$0xff] }
 0x226   :  { %1343 = vrot.lane.b32.xlu1 %v7133_v1, %s4962_s6  ;;  %1341 = vrot.lane.b32.xlu0 %v7140_v42, %s4962_s6  ;;  %v1048_v63 = vsel %vm994_vm1, %v991_v0, %v9426_v23  ;;  %v993_v40 = vsel %vm937_vm0, %v4880_v30, %v9430_v41  ;;  %v9434_v0 = vld [vmem:[#allocation82_spill] sm:$0xff]  ;;  %v9435_v3 = vld [vmem:[#allocation85_spill] sm:$0xff] }
 0x227   :  { %4550 = vmatprep.mubr.msk.f32.mxu0 %vm2070_vm4, %v1157_v18  ;;  %4728 = vmatprep.mubr.msk.f32.mxu1 %vm2070_vm4, %v1157_v18  ;;  %v1105_v47 = vsel %vm1051_vm2, %v1048_v63, %v9428_v27  ;;  %v4884_v27 = vld [vmem:[%s9002_s0 + $0x58] sm:$0xff] }
 0x228   :  { %4551 = vmatmul.mubr.msk.f32.gmra.mxu0 %vm2070_vm4, %v1158_v50  ;;  %4729 = vmatmul.mubr.msk.f32.gmra.mxu1 %vm2070_vm4, %v1158_v50  ;;  %v872_v58 = vpop.permute.xlu1 %871  ;;  %v870_v59 = vpop.permute.xlu0 %869  ;;  %v9427_v50 = vld [vmem:[#allocation138_spill] sm:$0xff] }
 0x229   :  { %v1160_v37 = vsel %vm1108_vm3, %v1103_v19, %v872_v58  ;;  %v1159_v36 = vsel %vm1108_vm3, %v1102_v51, %v870_v59  ;;  %v1047_v18 = vsel %vm994_vm1, %v990_v29, %v9427_v50  ;;  %v4881_v19 = vld [vmem:[%s9002_s0 + $0x2d0] sm:$0xff]  ;;  %v7231_v58 = vld [vmem:[%s9002_s0 + $0x148] sm:$0xff]  ;;  %v7238_v59 = vld [vmem:[%s9002_s0 + $0x140] sm:$0xff] }
 0x22a   :  { %1511 = vrot.lane.b32.xlu1 %v4878_v13, %s4963_s20  ;;  %1509 = vrot.lane.b32.xlu0 %v4879_v62, %s4963_s20  ;;  %v1104_v14 = vsel %vm1051_vm2, %v1047_v18, %v9429_v46  ;;  %v992_v51 = vsel %vm937_vm0, %v4881_v19, %v9431_v48  ;;  %v4889_v19 = vld [vmem:[%s9002_s0 + $0x60] sm:$0xff] }
 0x22b   :  { %4553 = vmatprep.mubr.msk.f32.mxu0 %vm2070_vm4, %v1159_v36  ;;  %4731 = vmatprep.mubr.msk.f32.mxu1 %vm2070_vm4, %v1159_v36  ;;  %v1049_v10 = vsel %vm994_vm1, %v992_v51, %v9433_v39 }
 0x22c   :  { %4554 = vmatmul.mubr.msk.f32.gmra.mxu0 %vm2070_vm4, %v1160_v37  ;;  %4732 = vmatmul.mubr.msk.f32.gmra.mxu1 %vm2070_vm4, %v1160_v37  ;;  %v876_v45 = vpop.permute.xlu1 %875  ;;  %v874_v21 = vpop.permute.xlu0 %873  ;;  %v9432_v37 = vld [vmem:[#allocation139_spill] sm:$0xff]  ;;  %v1106_v29 = vsel %vm1051_vm2, %v1049_v10, %v9435_v3 }
 0x22d   :  { %v1162_v57 = vsel %vm1108_vm3, %v1105_v47, %v876_v45  ;;  %v1161_v17 = vsel %vm1108_vm3, %v1104_v14, %v874_v21  ;;  %v1050_v36 = vsel %vm994_vm1, %v993_v40, %v9432_v37  ;;  %v4885_v47 = vld [vmem:[%s9002_s0 + $0x50] sm:$0xff]  ;;  %v7283_v45 = vld [vmem:[%s9002_s0 + $0x158] sm:$0xff]  ;;  %v4888_v40 = vld [vmem:[%s9002_s0 + $0x68] sm:$0xff] }
 0x22e   :  { %1683 = vrot.lane.b32.xlu1 %v7231_v58, %s4964_s24  ;;  %1681 = vrot.lane.b32.xlu0 %v7238_v59, %s4964_s24  ;;  %v1107_v33 = vsel %vm1051_vm2, %v1050_v36, %v9434_v0  ;;  %v7290_v21 = vld [vmem:[%s9002_s0 + $0x150] sm:$0xff]  ;;  %v7321_v37 = vld [vmem:[%s9002_s0 + $0x168] sm:$0xff] }
 0x22f   :  { %4556 = vmatprep.mubr.msk.f32.mxu0 %vm2070_vm4, %v1161_v17  ;;  %4734 = vmatprep.mubr.msk.f32.mxu1 %vm2070_vm4, %v1161_v17  ;;  %v7328_v36 = vld [vmem:[%s9002_s0 + $0x160] sm:$0xff] }
 0x230   :  { %4557 = vmatmul.mubr.msk.f32.gmra.mxu0 %vm2070_vm4, %v1162_v57  ;;  %4735 = vmatmul.mubr.msk.f32.gmra.mxu1 %vm2070_vm4, %v1162_v57  ;;  %v880_v13 = vpop.permute.xlu1 %879  ;;  %v878_v62 = vpop.permute.xlu0 %877 }
 0x231   :  { %v1164_v23 = vsel %vm1108_vm3, %v1107_v33, %v880_v13  ;;  %v1163_v63 = vsel %vm1108_vm3, %v1106_v29, %v878_v62  ;;  %v7355_v13 = vld [vmem:[%s9002_s0 + $0x178] sm:$0xff]  ;;  %v7362_v62 = vld [vmem:[%s9002_s0 + $0x170] sm:$0xff] }
 0x232   :  { %1347 = vrot.lane.b32.xlu1 %v7231_v58, %s4962_s6  ;;  %1345 = vrot.lane.b32.xlu0 %v7238_v59, %s4962_s6 }
 0x233   :  { %4559 = vmatprep.mubr.msk.f32.mxu0 %vm2070_vm4, %v1163_v63  ;;  %4737 = vmatprep.mubr.msk.f32.mxu1 %vm2070_vm4, %v1163_v63 }
 0x234   :  { %4560 = vmatmul.mubr.msk.f32.gmra.mxu0 %vm2070_vm4, %v1164_v23  ;;  %4738 = vmatmul.mubr.msk.f32.gmra.mxu1 %vm2070_vm4, %v1164_v23  ;;  %v7264_v50 = vpop.permute.xlu1 %1167  ;;  %v7266_v18 = vpop.permute.xlu0 %1165 }
 0x236   :  { %1515 = vrot.lane.b32.xlu1 %v4884_v27, %s4963_s20  ;;  %1513 = vrot.lane.b32.xlu0 %v4885_v47, %s4963_s20 }
 0x238   :  { %v7276_v46 = vpop.permute.xlu1 %1171  ;;  %v7278_v14 = vpop.permute.xlu0 %1169 }
 0x23a   :  { %1687 = vrot.lane.b32.xlu1 %v7283_v45, %s4964_s24  ;;  %1685 = vrot.lane.b32.xlu0 %v7290_v21, %s4964_s24 }
 0x23c   :  { %v7294_v57 = vpop.permute.xlu1 %1175  ;;  %v7296_v17 = vpop.permute.xlu0 %1173 }
 0x23e   :  { %1351 = vrot.lane.b32.xlu1 %v7283_v45, %s4962_s6  ;;  %1349 = vrot.lane.b32.xlu0 %v7290_v21, %s4962_s6 }
 0x240   :  { %v7302_v30 = vpop.permute.xlu1 %1179  ;;  %v7304_v41 = vpop.permute.xlu0 %1177 }
 0x242   :  { %1519 = vrot.lane.b32.xlu1 %v4888_v40, %s4963_s20  ;;  %1517 = vrot.lane.b32.xlu0 %v4889_v19, %s4963_s20  ;;  %v7389_v40 = vld [vmem:[%s9002_s0 + $0x188] sm:$0xff]  ;;  %v7396_v19 = vld [vmem:[%s9002_s0 + $0x180] sm:$0xff] }
 0x243   :  { %9440 = vst [vmem:[#allocation2_spill] sm:$0xff] %v7396_v19 }
 0x244   :  { %v7314_v48 = vpop.permute.xlu1 %1183  ;;  %v7316_v51 = vpop.permute.xlu0 %1181 }
 0x246   :  { %1691 = vrot.lane.b32.xlu1 %v7321_v37, %s4964_s24  ;;  %1689 = vrot.lane.b32.xlu0 %v7328_v36, %s4964_s24 }
 0x248   :  { %v7332_v39 = vpop.permute.xlu1 %1187  ;;  %v7334_v10 = vpop.permute.xlu0 %1185 }
 0x24a   :  { %1355 = vrot.lane.b32.xlu1 %v7321_v37, %s4962_s6  ;;  %1353 = vrot.lane.b32.xlu0 %v7328_v36, %s4962_s6 }
 0x24c   :  { %v7340_v0 = vpop.permute.xlu1 %1191  ;;  %v7342_v33 = vpop.permute.xlu0 %1189 }
 0x24e   :  { %1523 = vrot.lane.b32.xlu1 %v6533_v20, %s4963_s20  ;;  %1521 = vrot.lane.b32.xlu0 %v6541_v32, %s4963_s20 }
 0x250   :  { %v7348_v3 = vpop.permute.xlu1 %1195  ;;  %v7350_v29 = vpop.permute.xlu0 %1193 }
 0x252   :  { %1695 = vrot.lane.b32.xlu1 %v7355_v13, %s4964_s24  ;;  %1693 = vrot.lane.b32.xlu0 %v7362_v62, %s4964_s24 }
 0x254   :  { %v7366_v20 = vpop.permute.xlu1 %1199  ;;  %v7368_v32 = vpop.permute.xlu0 %1197 }
 0x256   :  { %1359 = vrot.lane.b32.xlu1 %v7355_v13, %s4962_s6  ;;  %1357 = vrot.lane.b32.xlu0 %v7362_v62, %s4962_s6 }
 0x258   :  { %v7374_v23 = vpop.permute.xlu1 %1203  ;;  %v7376_v63 = vpop.permute.xlu0 %1201 }
 0x259   :  { %9436 = vst [vmem:[#allocation94_spill] sm:$0xff] %v7374_v23  ;;  %9437 = vst [vmem:[#allocation97_spill] sm:$0xff] %v7376_v63 }
 0x25a   :  { %1527 = vrot.lane.b32.xlu1 %v6567_v56, %s4963_s20  ;;  %1525 = vrot.lane.b32.xlu0 %v6575_v22, %s4963_s20 }
 0x25c   :  { %v7382_v27 = vpop.permute.xlu1 %1207  ;;  %v7384_v47 = vpop.permute.xlu0 %1205 }
 0x25d   :  { %9438 = vst [vmem:[#allocation5_spill] sm:$0xff] %v7382_v27  ;;  %9439 = vst [vmem:[#allocation7_spill] sm:$0xff] %v7384_v47 }
 0x25e   :  { %1699 = vrot.lane.b32.xlu1 %v7389_v40, %s4964_s24  ;;  %1697 = vrot.lane.b32.xlu0 %v7396_v19, %s4964_s24 }
 0x260   :  { %v7400_v56 = vpop.permute.xlu1 %1211  ;;  %v7402_v22 = vpop.permute.xlu0 %1209 }
 0x261   :  { %9441 = vst [vmem:[#allocation3_spill] sm:$0xff] %v7400_v56  ;;  %9442 = vst [vmem:[#allocation4_spill] sm:$0xff] %v7402_v22  ;;  %v7423_v22 = vld [vmem:[%s9002_s0 + $0x198] sm:$0xff] }
 0x262   :  { %1363 = vrot.lane.b32.xlu1 %v7389_v40, %s4962_s6  ;;  %1361 = vrot.lane.b32.xlu0 %v7396_v19, %s4962_s6  ;;  %9447 = vst [vmem:[#allocation15_spill] sm:$0xff] %v7423_v22 }
 0x264   :  { %v7408_v47 = vpop.permute.xlu1 %1215  ;;  %v7410_v27 = vpop.permute.xlu0 %1213 }
 0x265   :  { %9443 = vst [vmem:[#allocation6_spill] sm:$0xff] %v7408_v47  ;;  %9444 = vst [vmem:[#allocation10_spill] sm:$0xff] %v7410_v27  ;;  %v7430_v27 = vld [vmem:[%s9002_s0 + $0x190] sm:$0xff] }
 0x266   :  { %1531 = vrot.lane.b32.xlu1 %v6583_v55, %s4963_s20  ;;  %1529 = vrot.lane.b32.xlu0 %v6590_v4, %s4963_s20  ;;  %9448 = vst [vmem:[#allocation18_spill] sm:$0xff] %v7430_v27 }
 0x268   :  { %v7416_v2 = vpop.permute.xlu1 %1219  ;;  %v7418_v56 = vpop.permute.xlu0 %1217 }
 0x269   :  { %9445 = vst [vmem:[#allocation11_spill] sm:$0xff] %v7416_v2  ;;  %9446 = vst [vmem:[#allocation14_spill] sm:$0xff] %v7418_v56 }
 0x26a   :  { %1703 = vrot.lane.b32.xlu1 %v7423_v22, %s4964_s24  ;;  %1701 = vrot.lane.b32.xlu0 %v7430_v27, %s4964_s24 }
 0x26c   :  { %v7434_v55 = vpop.permute.xlu1 %1223  ;;  %v7436_v4 = vpop.permute.xlu0 %1221 }
 0x26d   :  { %9449 = vst [vmem:[#allocation19_spill] sm:$0xff] %v7434_v55  ;;  %9450 = vst [vmem:[#allocation22_spill] sm:$0xff] %v7436_v4  ;;  %v7457_v4 = vld [vmem:[%s9002_s0 + $0x1a8] sm:$0xff] }
 0x26e   :  { %1367 = vrot.lane.b32.xlu1 %v7423_v22, %s4962_s6  ;;  %1365 = vrot.lane.b32.xlu0 %v7430_v27, %s4962_s6  ;;  %9455 = vst [vmem:[#allocation31_spill] sm:$0xff] %v7457_v4 }
 0x270   :  { %v7442_v56 = vpop.permute.xlu1 %1227  ;;  %v7444_v2 = vpop.permute.xlu0 %1225 }
 0x271   :  { %9451 = vst [vmem:[#allocation23_spill] sm:$0xff] %v7442_v56  ;;  %9452 = vst [vmem:[#allocation26_spill] sm:$0xff] %v7444_v2  ;;  %v7464_v2 = vld [vmem:[%s9002_s0 + $0x1a0] sm:$0xff] }
 0x272   :  { %1535 = vrot.lane.b32.xlu1 %v6617_v26, %s4963_s20  ;;  %1533 = vrot.lane.b32.xlu0 %v6624_v31, %s4963_s20  ;;  %9456 = vst [vmem:[#allocation34_spill] sm:$0xff] %v7464_v2 }
 0x274   :  { %v7450_v47 = vpop.permute.xlu1 %1231  ;;  %v7452_v55 = vpop.permute.xlu0 %1229 }
 0x275   :  { %9453 = vst [vmem:[#allocation27_spill] sm:$0xff] %v7450_v47  ;;  %9454 = vst [vmem:[#allocation30_spill] sm:$0xff] %v7452_v55 }
 0x276   :  { %1707 = vrot.lane.b32.xlu1 %v7457_v4, %s4964_s24  ;;  %1705 = vrot.lane.b32.xlu0 %v7464_v2, %s4964_s24 }
 0x278   :  { %v7468_v26 = vpop.permute.xlu1 %1235  ;;  %v7470_v31 = vpop.permute.xlu0 %1233 }
 0x279   :  { %9457 = vst [vmem:[#allocation35_spill] sm:$0xff] %v7468_v26  ;;  %9458 = vst [vmem:[#allocation38_spill] sm:$0xff] %v7470_v31  ;;  %v7487_v31 = vld [vmem:[%s9002_s0 + $0x1b8] sm:$0xff] }
 0x27a   :  { %1371 = vrot.lane.b32.xlu1 %v7457_v4, %s4962_s6  ;;  %1369 = vrot.lane.b32.xlu0 %v7464_v2, %s4962_s6  ;;  %9461 = vst [vmem:[#allocation8_spill] sm:$0xff] %v7487_v31  ;;  %v4903_v4 = vld [vmem:[%s9002_s0 + $0x100] sm:$0xff] }
 0x27b   :  { %v1841_v11 = vsel %vm937_vm0, %v4903_v4, %v7266_v18 }
 0x27c   :  { %v7476_v55 = vpop.permute.xlu1 %1239  ;;  %v7478_v47 = vpop.permute.xlu0 %1237 }
 0x27d   :  { %9459 = vst [vmem:[#allocation39_spill] sm:$0xff] %v7476_v55  ;;  %9460 = vst [vmem:[#allocation104_spill] sm:$0xff] %v7478_v47  ;;  %v7494_v55 = vld [vmem:[%s9002_s0 + $0x1b0] sm:$0xff]  ;;  %v4902_v47 = vld [vmem:[%s9002_s0 + $0x108] sm:$0xff] }
 0x27e   :  { %1539 = vrot.lane.b32.xlu1 %v6651_v9, %s4963_s20  ;;  %1537 = vrot.lane.b32.xlu0 %v6658_v25, %s4963_s20  ;;  %9462 = vst [vmem:[#allocation9_spill] sm:$0xff] %v7494_v55  ;;  %v1842_v2 = vsel %vm937_vm0, %v4902_v47, %v7264_v50 }
 0x280   :  { %v1336_v56 = vpop.permute.xlu1 %1335  ;;  %v1334_v26 = vpop.permute.xlu0 %1333 }
 0x281   :  { %v1898_v27 = vsel %vm994_vm1, %v1842_v2, %v1336_v56 }
 0x282   :  { %1711 = vrot.lane.b32.xlu1 %v7487_v31, %s4964_s24  ;;  %1709 = vrot.lane.b32.xlu0 %v7494_v55, %s4964_s24 }
 0x284   :  { %v1504_v9 = vpop.permute.xlu1 %1503  ;;  %v1502_v25 = vpop.permute.xlu0 %1501 }
 0x285   :  { %v1954_v22 = vsel %vm1051_vm2, %v1898_v27, %v1504_v9 }
 0x286   :  { %1375 = vrot.lane.b32.xlu1 %v7487_v31, %s4962_s6  ;;  %1373 = vrot.lane.b32.xlu0 %v7494_v55, %s4962_s6  ;;  %v1897_v31 = vsel %vm994_vm1, %v1841_v11, %v1334_v26 }
 0x287   :  { %v1953_v23 = vsel %vm1051_vm2, %v1897_v31, %v1502_v25  ;;  %v1844_v25 = vsel %vm937_vm0, %v6953_v44, %v7276_v46 }
 0x288   :  { %v7514_v63 = vpop.f32.mrf.mxu0  ;;  %v7516_v55 = vpop.f32.mrf.mxu1 }
 0x289   :  { %v1676_v50 = vpop.permute.xlu1 %1675  ;;  %v1674_v47 = vpop.permute.xlu0 %1673 }
 0x28a   :  { %v2010_v61 = vsel %vm1108_vm3, %v1954_v22, %v1676_v50  ;;  %v2009_v53 = vsel %vm1108_vm3, %v1953_v23, %v1674_v47  ;;  %v7522_v19 = vpop.f32.mrf.mxu0  ;;  %v7524_v18 = vpop.f32.mrf.mxu1  ;;  %1543 = vrot.lane.b32.xlu1 %v6685_v60, %s4963_s20  ;;  %1541 = vrot.lane.b32.xlu0 %v6692_v54, %s4963_s20  ;;  %v7545_v54 = vld [vmem:[%s9002_s0 + $0x1c8] sm:$0xff]  ;;  %v1843_v50 = vsel %vm937_vm0, %v6960_v34, %v7278_v14 }
 0x28b   :  { %4562 = vmatprep.mubr.msk.f32.mxu0 %vm2070_vm4, %v2009_v53  ;;  %4740 = vmatprep.mubr.msk.f32.mxu1 %vm2070_vm4, %v2009_v53  ;;  %v7552_v53 = vld [vmem:[%s9002_s0 + $0x1c0] sm:$0xff] }
 0x28c   :  { %v7532_v11 = vpop.f32.mrf.mxu0  ;;  %4563 = vmatmul.mubr.msk.f32.gmra.mxu0 %vm2070_vm4, %v2010_v61  ;;  %v7535_v2 = vpop.f32.mrf.mxu1  ;;  %4741 = vmatmul.mubr.msk.f32.gmra.mxu1 %vm2070_vm4, %v2010_v61 }
 0x28d   :  { %9463 = vst [vmem:[#allocation42_spill] sm:$0xff] %v7532_v11  ;;  %9464 = vst [vmem:[#allocation43_spill] sm:$0xff] %v7535_v2  ;;  %v1340_v23 = vpop.permute.xlu1 %1339  ;;  %v1338_v27 = vpop.permute.xlu0 %1337 }
 0x28e   :  { %v7538_v56 = vpop.f32.mrf.mxu0  ;;  %v7540_v60 = vpop.f32.mrf.mxu1  ;;  %1715 = vrot.lane.b32.xlu1 %v7545_v54, %s4964_s24  ;;  %1713 = vrot.lane.b32.xlu0 %v7552_v53, %s4964_s24  ;;  %v1900_v47 = vsel %vm994_vm1, %v1844_v25, %v1340_v23 }
 0x28f   :  { %9465 = vst [vmem:[#allocation105_spill] sm:$0xff] %v7538_v56  ;;  %9466 = vst [vmem:[#allocation106_spill] sm:$0xff] %v7540_v60 }
 0x290   :  { %v7556_v61 = vpop.f32.mrf.mxu0  ;;  %v7558_v22 = vpop.f32.mrf.mxu1 }
 0x291   :  { %9467 = vst [vmem:[#allocation12_spill] sm:$0xff] %v7556_v61  ;;  %9468 = vst [vmem:[#allocation13_spill] sm:$0xff] %v7558_v22  ;;  %v1508_v4 = vpop.permute.xlu1 %1507  ;;  %v1506_v26 = vpop.permute.xlu0 %1505 }
 0x292   :  { %v7560_v31 = vpop.f32.mrf.mxu0  ;;  %v7562_v9 = vpop.f32.mrf.mxu1  ;;  %1379 = vrot.lane.b32.xlu1 %v7545_v54, %s4962_s6  ;;  %1377 = vrot.lane.b32.xlu0 %v7552_v53, %s4962_s6  ;;  %v1956_v61 = vsel %vm1051_vm2, %v1900_v47, %v1508_v4  ;;  %v1846_v47 = vsel %vm937_vm0, %v7035_v35, %v7294_v57 }
 0x293   :  { %9469 = vst [vmem:[#allocation46_spill] sm:$0xff] %v7560_v31  ;;  %9470 = vst [vmem:[#allocation47_spill] sm:$0xff] %v7562_v9  ;;  %v1899_v31 = vsel %vm994_vm1, %v1843_v50, %v1338_v27 }
 0x294   :  { %v7576_v22 = vpop.f32.mrf.mxu0  ;;  %v7578_v9 = vpop.f32.mrf.mxu1  ;;  %v1955_v60 = vsel %vm1051_vm2, %v1899_v31, %v1506_v26 }
 0x295   :  { %v1680_v56 = vpop.permute.xlu1 %1679  ;;  %v1678_v2 = vpop.permute.xlu0 %1677 }
 0x296   :  { %v2012_v44 = vsel %vm1108_vm3, %v1956_v61, %v1680_v56  ;;  %v2011_v46 = vsel %vm1108_vm3, %v1955_v60, %v1678_v2  ;;  %v7584_v11 = vpop.f32.mrf.mxu0  ;;  %v7586_v34 = vpop.f32.mrf.mxu1  ;;  %1547 = vrot.lane.b32.xlu1 %v6719_v15, %s4963_s20  ;;  %1545 = vrot.lane.b32.xlu0 %v6726_v24, %s4963_s20  ;;  %v7607_v24 = vld [vmem:[%s9002_s0 + $0x1d8] sm:$0xff]  ;;  %v7614_v60 = vld [vmem:[%s9002_s0 + $0x1d0] sm:$0xff] }
 0x297   :  { %4565 = vmatprep.mubr.msk.f32.mxu0 %vm2070_vm4, %v2011_v46  ;;  %4743 = vmatprep.mubr.msk.f32.mxu1 %vm2070_vm4, %v2011_v46 }
 0x298   :  { %v7594_v14 = vpop.f32.mrf.mxu0  ;;  %4566 = vmatmul.mubr.msk.f32.gmra.mxu0 %vm2070_vm4, %v2012_v44  ;;  %v7597_v23 = vpop.f32.mrf.mxu1  ;;  %4744 = vmatmul.mubr.msk.f32.gmra.mxu1 %vm2070_vm4, %v2012_v44  ;;  %v1845_v44 = vsel %vm937_vm0, %v7042_v12, %v7296_v17 }
 0x299   :  { %9471 = vst [vmem:[#allocation107_spill] sm:$0xff] %v7594_v14  ;;  %9472 = vst [vmem:[#allocation108_spill] sm:$0xff] %v7597_v23  ;;  %v1344_v2 = vpop.permute.xlu1 %1343  ;;  %v1342_v27 = vpop.permute.xlu0 %1341 }
 0x29a   :  { %v7600_v56 = vpop.f32.mrf.mxu0  ;;  %v7602_v15 = vpop.f32.mrf.mxu1  ;;  %1719 = vrot.lane.b32.xlu1 %v7607_v24, %s4964_s24  ;;  %1717 = vrot.lane.b32.xlu0 %v7614_v60, %s4964_s24  ;;  %v1902_v46 = vsel %vm994_vm1, %v1846_v47, %v1344_v2 }
 0x29b   :  { %9473 = vst [vmem:[#allocation16_spill] sm:$0xff] %v7600_v56  ;;  %9474 = vst [vmem:[#allocation17_spill] sm:$0xff] %v7602_v15 }
 0x29c   :  { %v7618_v61 = vpop.f32.mrf.mxu0  ;;  %v7620_v4 = vpop.f32.mrf.mxu1 }
 0x29d   :  { %9475 = vst [vmem:[#allocation50_spill] sm:$0xff] %v7618_v61  ;;  %9476 = vst [vmem:[#allocation51_spill] sm:$0xff] %v7620_v4  ;;  %v1512_v26 = vpop.permute.xlu1 %1511  ;;  %v1510_v31 = vpop.permute.xlu0 %1509 }
 0x29e   :  { %v7622_v25 = vpop.f32.mrf.mxu0  ;;  %v7624_v50 = vpop.f32.mrf.mxu1  ;;  %1383 = vrot.lane.b32.xlu1 %v7607_v24, %s4962_s6  ;;  %1381 = vrot.lane.b32.xlu0 %v7614_v60, %s4962_s6  ;;  %v1958_v61 = vsel %vm1051_vm2, %v1902_v46, %v1512_v26 }
 0x29f   :  { %9477 = vst [vmem:[#allocation109_spill] sm:$0xff] %v7622_v25  ;;  %9478 = vst [vmem:[#allocation110_spill] sm:$0xff] %v7624_v50  ;;  %v1901_v25 = vsel %vm994_vm1, %v1845_v44, %v1342_v27 }
 0x2a0   :  { %v7638_v4 = vpop.f32.mrf.mxu0  ;;  %v7640_v50 = vpop.f32.mrf.mxu1  ;;  %v1957_v15 = vsel %vm1051_vm2, %v1901_v25, %v1510_v31  ;;  %v1848_v31 = vsel %vm937_vm0, %v7133_v1, %v7302_v30  ;;  %v1847_v25 = vsel %vm937_vm0, %v7140_v42, %v7304_v41  ;;  %v4910_v42 = vld [vmem:[%s9002_s0 + $0xf8] sm:$0xff]  ;;  %v4911_v41 = vld [vmem:[%s9002_s0 + $0xf0] sm:$0xff] }
 0x2a1   :  { %v1684_v56 = vpop.permute.xlu1 %1683  ;;  %v1682_v23 = vpop.permute.xlu0 %1681 }
 0x2a2   :  { %v2014_v35 = vsel %vm1108_vm3, %v1958_v61, %v1684_v56  ;;  %v2013_v57 = vsel %vm1108_vm3, %v1957_v15, %v1682_v23  ;;  %v7646_v14 = vpop.f32.mrf.mxu0  ;;  %v7648_v12 = vpop.f32.mrf.mxu1  ;;  %1551 = vrot.lane.b32.xlu1 %v6753_v52, %s4963_s20  ;;  %1549 = vrot.lane.b32.xlu0 %v6760_v8, %s4963_s20  ;;  %v4908_v52 = vld [vmem:[%s9002_s0 + $0x1e8] sm:$0xff]  ;;  %v4909_v8 = vld [vmem:[%s9002_s0 + $0x1e0] sm:$0xff] }
 0x2a3   :  { %4568 = vmatprep.mubr.msk.f32.mxu0 %vm2070_vm4, %v2013_v57  ;;  %4746 = vmatprep.mubr.msk.f32.mxu1 %vm2070_vm4, %v2013_v57 }
 0x2a4   :  { %4569 = vmatmul.mubr.msk.f32.gmra.mxu0 %vm2070_vm4, %v2014_v35  ;;  %4747 = vmatmul.mubr.msk.f32.gmra.mxu1 %vm2070_vm4, %v2014_v35  ;;  %v7658_v2 = vpop.f32.mrf.mxu0  ;;  %v7660_v27 = vpop.f32.mrf.mxu1 }
 0x2a5   :  { %v1348_v17 = vpop.permute.xlu1 %1347  ;;  %v1346_v23 = vpop.permute.xlu0 %1345 }
 0x2a6   :  { %1723 = vrot.lane.b32.xlu1 %v4908_v52, %s4964_s24  ;;  %1721 = vrot.lane.b32.xlu0 %v4909_v8, %s4964_s24  ;;  %v7670_v61 = vpop.f32.mrf.mxu0  ;;  %v7672_v26 = vpop.f32.mrf.mxu1  ;;  %v1904_v47 = vsel %vm994_vm1, %v1848_v31, %v1348_v17  ;;  %v1903_v44 = vsel %vm994_vm1, %v1847_v25, %v1346_v23  ;;  %v80_v17 = vld [vmem:[%s9002_s0 + $0x1f8] sm:$0xff]  ;;  %v79_v23 = vld [vmem:[%s9002_s0 + $0x1f0] sm:$0xff] }
 0x2a7   :  { %9479 = vst [vmem:[#allocation20_spill] sm:$0xff] %v7672_v26 }
 0x2a8   :  { %v7686_v26 = vpop.f32.mrf.mxu0 }
 0x2a9   :  { %v1516_v56 = vpop.permute.xlu1 %1515  ;;  %v1514_v15 = vpop.permute.xlu0 %1513 }
 0x2aa   :  { %1387 = vrot.lane.b32.xlu1 %v4908_v52, %s4962_s6  ;;  %1385 = vrot.lane.b32.xlu0 %v4909_v8, %s4962_s6  ;;  %v1960_v46 = vsel %vm1051_vm2, %v1904_v47, %v1516_v56  ;;  %v1959_v35 = vsel %vm1051_vm2, %v1903_v44, %v1514_v15  ;;  %v7688_v8 = vpop.f32.mrf.mxu1  ;;  %v7710_v31 = vpop.f32.mrf.mxu0 }
 0x2ab   :  { %9480 = vst [vmem:[#allocation21_spill] sm:$0xff] %v7710_v31 }
 0x2ac   :  { %v7712_v25 = vpop.f32.mrf.mxu1 }
 0x2ad   :  { %v1688_v57 = vpop.permute.xlu1 %1687  ;;  %v1686_v52 = vpop.permute.xlu0 %1685  ;;  %9481 = vst [vmem:[#allocation52_spill] sm:$0xff] %v7712_v25 }
 0x2ae   :  { %v2016_v1 = vsel %vm1108_vm3, %v1960_v46, %v1688_v57  ;;  %v2015_v30 = vsel %vm1108_vm3, %v1959_v35, %v1686_v52  ;;  %1555 = vrot.lane.b32.xlu1 %v4910_v42, %s4963_s20  ;;  %1553 = vrot.lane.b32.xlu0 %v4911_v41, %s4963_s20  ;;  %v7716_v46 = vpop.f32.mrf.mxu0  ;;  %v7718_v35 = vpop.f32.mrf.mxu1  ;;  %v7723_v57 = vld [vmem:[%s9002_s0 + $0x318] sm:$0xff]  ;;  %v7730_v52 = vld [vmem:[%s9002_s0 + $0x310] sm:$0xff] }
 0x2af   :  { %4571 = vmatprep.mubr.msk.f32.mxu0 %vm2070_vm4, %v2015_v30  ;;  %4749 = vmatprep.mubr.msk.f32.mxu1 %vm2070_vm4, %v2015_v30  ;;  %9482 = vst [vmem:[#allocation53_spill] sm:$0xff] %v7716_v46  ;;  %9483 = vst [vmem:[#allocation111_spill] sm:$0xff] %v7718_v35  ;;  %v1849_v30 = vsel %vm937_vm0, %v7238_v59, %v7316_v51 }
 0x2b0   :  { %4572 = vmatmul.mubr.msk.f32.gmra.mxu0 %vm2070_vm4, %v2016_v1  ;;  %4750 = vmatmul.mubr.msk.f32.gmra.mxu1 %vm2070_vm4, %v2016_v1  ;;  %v1850_v1 = vsel %vm937_vm0, %v7231_v58, %v7314_v48  ;;  %v7744_v25 = vpop.f32.mrf.mxu0  ;;  %v7746_v31 = vpop.f32.mrf.mxu1 }
 0x2b1   :  { %v1352_v56 = vpop.permute.xlu1 %1351  ;;  %v1350_v15 = vpop.permute.xlu0 %1349 }
 0x2b2   :  { %1727 = vrot.lane.b32.xlu1 %v80_v17, %s4964_s24  ;;  %1725 = vrot.lane.b32.xlu0 %v79_v23, %s4964_s24  ;;  %v1906_v42 = vsel %vm994_vm1, %v1850_v1, %v1352_v56  ;;  %v1905_v41 = vsel %vm994_vm1, %v1849_v30, %v1350_v15  ;;  %v7758_v56 = vpop.f32.mrf.mxu0  ;;  %v7760_v15 = vpop.f32.mrf.mxu1  ;;  %v1852_v1 = vsel %vm937_vm0, %v7283_v45, %v7332_v39 }
 0x2b3   :  { %v1851_v30 = vsel %vm937_vm0, %v7290_v21, %v7334_v10 }
 0x2b5   :  { %v1520_v47 = vpop.permute.xlu1 %1519  ;;  %v1518_v44 = vpop.permute.xlu0 %1517 }
 0x2b6   :  { %1391 = vrot.lane.b32.xlu1 %v7723_v57, %s4962_s6  ;;  %1389 = vrot.lane.b32.xlu0 %v7730_v52, %s4962_s6  ;;  %v1962_v17 = vsel %vm1051_vm2, %v1906_v42, %v1520_v47  ;;  %v1961_v23 = vsel %vm1051_vm2, %v1905_v41, %v1518_v44 }
 0x2b9   :  { %v1692_v35 = vpop.permute.xlu1 %1691  ;;  %v1690_v46 = vpop.permute.xlu0 %1689 }
 0x2ba   :  { %v2018_v58 = vsel %vm1108_vm3, %v1962_v17, %v1692_v35  ;;  %v2017_v48 = vsel %vm1108_vm3, %v1961_v23, %v1690_v46  ;;  %1559 = vrot.lane.b32.xlu1 %v6817_v6, %s4963_s20  ;;  %1557 = vrot.lane.b32.xlu0 %v6824_v7, %s4963_s20  ;;  %v7765_v6 = vld [vmem:[%s9002_s0 + $0x328] sm:$0xff]  ;;  %v7772_v7 = vld [vmem:[%s9002_s0 + $0x320] sm:$0xff]  ;;  %v7776_v46 = vpop.f32.mrf.mxu0  ;;  %v7778_v35 = vpop.f32.mrf.mxu1 }
 0x2bb   :  { %4574 = vmatprep.mubr.msk.f32.mxu0 %vm2070_vm4, %v2017_v48  ;;  %4752 = vmatprep.mubr.msk.f32.mxu1 %vm2070_vm4, %v2017_v48  ;;  %9484 = vst [vmem:[#allocation112_spill] sm:$0xff] %v7776_v46  ;;  %9485 = vst [vmem:[#allocation24_spill] sm:$0xff] %v7778_v35 }
 0x2bc   :  { %4575 = vmatmul.mubr.msk.f32.gmra.mxu0 %vm2070_vm4, %v2018_v58  ;;  %4753 = vmatmul.mubr.msk.f32.gmra.mxu1 %vm2070_vm4, %v2018_v58  ;;  %v7794_v35 = vpop.f32.mrf.mxu0  ;;  %v7796_v46 = vpop.f32.mrf.mxu1 }
 0x2bd   :  { %v1356_v59 = vpop.permute.xlu1 %1355  ;;  %v1354_v51 = vpop.permute.xlu0 %1353 }
 0x2be   :  { %1731 = vrot.lane.b32.xlu1 %v7765_v6, %s4964_s24  ;;  %1729 = vrot.lane.b32.xlu0 %v7772_v7, %s4964_s24  ;;  %v1908_v42 = vsel %vm994_vm1, %v1852_v1, %v1356_v59  ;;  %v1907_v41 = vsel %vm994_vm1, %v1851_v30, %v1354_v51  ;;  %v7808_v59 = vpop.f32.mrf.mxu0  ;;  %v7810_v51 = vpop.f32.mrf.mxu1 }
 0x2c0   :  { %v7826_v1 = vpop.f32.mrf.mxu0  ;;  %v7828_v30 = vpop.f32.mrf.mxu1 }
 0x2c1   :  { %v1524_v47 = vpop.permute.xlu1 %1523  ;;  %v1522_v44 = vpop.permute.xlu0 %1521  ;;  %9486 = vst [vmem:[#allocation25_spill] sm:$0xff] %v7826_v1  ;;  %9487 = vst [vmem:[#allocation55_spill] sm:$0xff] %v7828_v30 }
 0x2c2   :  { %1395 = vrot.lane.b32.xlu1 %v7765_v6, %s4962_s6  ;;  %1393 = vrot.lane.b32.xlu0 %v7772_v7, %s4962_s6  ;;  %v1964_v17 = vsel %vm1051_vm2, %v1908_v42, %v1524_v47  ;;  %v1963_v23 = vsel %vm1051_vm2, %v1907_v41, %v1522_v44  ;;  %v1854_v42 = vsel %vm937_vm0, %v7321_v37, %v7340_v0  ;;  %v7844_v30 = vpop.f32.mrf.mxu0  ;;  %v7846_v1 = vpop.f32.mrf.mxu1 }
 0x2c3   :  { %v1853_v41 = vsel %vm937_vm0, %v7328_v36, %v7342_v33  ;;  %9488 = vst [vmem:[#allocation56_spill] sm:$0xff] %v7846_v1 }
 0x2c5   :  { %v1696_v58 = vpop.permute.xlu1 %1695  ;;  %v1694_v48 = vpop.permute.xlu0 %1693 }
 0x2c6   :  { %v2020_v45 = vsel %vm1108_vm3, %v1964_v17, %v1696_v58  ;;  %v2019_v39 = vsel %vm1108_vm3, %v1963_v23, %v1694_v48  ;;  %1563 = vrot.lane.b32.xlu1 %v6851_v43, %s4963_s20  ;;  %1561 = vrot.lane.b32.xlu0 %v6858_v38, %s4963_s20  ;;  %v7815_v43 = vld [vmem:[%s9002_s0 + $0x338] sm:$0xff]  ;;  %v7822_v38 = vld [vmem:[%s9002_s0 + $0x330] sm:$0xff] }
 0x2c7   :  { %4577 = vmatprep.mubr.msk.f32.mxu0 %vm2070_vm4, %v2019_v39  ;;  %4755 = vmatprep.mubr.msk.f32.mxu1 %vm2070_vm4, %v2019_v39 }
 0x2c8   :  { %4578 = vmatmul.mubr.msk.f32.gmra.mxu0 %vm2070_vm4, %v2020_v45  ;;  %4756 = vmatmul.mubr.msk.f32.gmra.mxu1 %vm2070_vm4, %v2020_v45 }
 0x2c9   :  { %v1360_v21 = vpop.permute.xlu1 %1359  ;;  %v1358_v10 = vpop.permute.xlu0 %1357 }
 0x2ca   :  { %1735 = vrot.lane.b32.xlu1 %v7815_v43, %s4964_s24  ;;  %1733 = vrot.lane.b32.xlu0 %v7822_v38, %s4964_s24  ;;  %v1910_v17 = vsel %vm994_vm1, %v1854_v42, %v1360_v21  ;;  %v1909_v23 = vsel %vm994_vm1, %v1853_v41, %v1358_v10  ;;  %v7858_v21 = vpop.f32.mrf.mxu0  ;;  %v7860_v10 = vpop.f32.mrf.mxu1 }
 0x2cb   :  { %9489 = vst [vmem:[#allocation113_spill] sm:$0xff] %v7858_v21  ;;  %9490 = vst [vmem:[#allocation114_spill] sm:$0xff] %v7860_v10 }
 0x2cc   :  { %v7876_v42 = vpop.f32.mrf.mxu0  ;;  %v7878_v41 = vpop.f32.mrf.mxu1 }
 0x2cd   :  { %v1528_v47 = vpop.permute.xlu1 %1527  ;;  %v1526_v44 = vpop.permute.xlu0 %1525  ;;  %9491 = vst [vmem:[#allocation28_spill] sm:$0xff] %v7876_v42  ;;  %9492 = vst [vmem:[#allocation29_spill] sm:$0xff] %v7878_v41 }
 0x2ce   :  { %1399 = vrot.lane.b32.xlu1 %v7815_v43, %s4962_s6  ;;  %1397 = vrot.lane.b32.xlu0 %v7822_v38, %s4962_s6  ;;  %v1966_v58 = vsel %vm1051_vm2, %v1910_v17, %v1528_v47  ;;  %v1965_v48 = vsel %vm1051_vm2, %v1909_v23, %v1526_v44  ;;  %v1856_v17 = vsel %vm937_vm0, %v7355_v13, %v7348_v3  ;;  %v7894_v41 = vpop.f32.mrf.mxu0  ;;  %v7896_v42 = vpop.f32.mrf.mxu1 }
 0x2cf   :  { %v1855_v23 = vsel %vm937_vm0, %v7362_v62, %v7350_v29  ;;  %9493 = vst [vmem:[#allocation59_spill] sm:$0xff] %v7894_v41  ;;  %9494 = vst [vmem:[#allocation60_spill] sm:$0xff] %v7896_v42 }
 0x2d1   :  { %v1700_v45 = vpop.permute.xlu1 %1699  ;;  %v1698_v39 = vpop.permute.xlu0 %1697 }
 0x2d2   :  { %v2022_v37 = vsel %vm1108_vm3, %v1966_v58, %v1700_v45  ;;  %v2021_v0 = vsel %vm1108_vm3, %v1965_v48, %v1698_v39  ;;  %1567 = vrot.lane.b32.xlu1 %v6885_v28, %s4963_s20  ;;  %1565 = vrot.lane.b32.xlu0 %v6892_v5, %s4963_s20  ;;  %v7865_v28 = vld [vmem:[%s9002_s0 + $0x348] sm:$0xff]  ;;  %v7872_v5 = vld [vmem:[%s9002_s0 + $0x340] sm:$0xff] }
 0x2d3   :  { %4580 = vmatprep.mubr.msk.f32.mxu0 %vm2070_vm4, %v2021_v0  ;;  %4758 = vmatprep.mubr.msk.f32.mxu1 %vm2070_vm4, %v2021_v0 }
 0x2d4   :  { %4581 = vmatmul.mubr.msk.f32.gmra.mxu0 %vm2070_vm4, %v2022_v37  ;;  %4759 = vmatmul.mubr.msk.f32.gmra.mxu1 %vm2070_vm4, %v2022_v37 }
 0x2d5   :  { %v1364_v36 = vpop.permute.xlu1 %1363  ;;  %v1362_v33 = vpop.permute.xlu0 %1361 }
 0x2d6   :  { %1739 = vrot.lane.b32.xlu1 %v7865_v28, %s4964_s24  ;;  %1737 = vrot.lane.b32.xlu0 %v7872_v5, %s4964_s24  ;;  %v1912_v58 = vsel %vm994_vm1, %v1856_v17, %v1364_v36  ;;  %v1911_v48 = vsel %vm994_vm1, %v1855_v23, %v1362_v33  ;;  %v7908_v36 = vpop.f32.mrf.mxu0  ;;  %v7910_v33 = vpop.f32.mrf.mxu1 }
 0x2d7   :  { %9495 = vst [vmem:[#allocation115_spill] sm:$0xff] %v7908_v36  ;;  %9496 = vst [vmem:[#allocation116_spill] sm:$0xff] %v7910_v33 }
 0x2d8   :  { %v7926_v17 = vpop.f32.mrf.mxu0  ;;  %v7928_v23 = vpop.f32.mrf.mxu1 }
 0x2d9   :  { %v1532_v47 = vpop.permute.xlu1 %1531  ;;  %v1530_v44 = vpop.permute.xlu0 %1529  ;;  %9497 = vst [vmem:[#allocation32_spill] sm:$0xff] %v7926_v17  ;;  %9498 = vst [vmem:[#allocation33_spill] sm:$0xff] %v7928_v23 }
 0x2da   :  { %1403 = vrot.lane.b32.xlu1 %v7865_v28, %s4962_s6  ;;  %1401 = vrot.lane.b32.xlu0 %v7872_v5, %s4962_s6  ;;  %v1968_v45 = vsel %vm1051_vm2, %v1912_v58, %v1532_v47  ;;  %v1967_v39 = vsel %vm1051_vm2, %v1911_v48, %v1530_v44  ;;  %v1858_v58 = vsel %vm937_vm0, %v7389_v40, %v7366_v20  ;;  %v9499_v48 = vld [vmem:[#allocation2_spill] sm:$0xff]  ;;  %v7944_v17 = vpop.f32.mrf.mxu0  ;;  %v7946_v33 = vpop.f32.mrf.mxu1 }
 0x2db   :  { %9500 = vst [vmem:[#allocation63_spill] sm:$0xff] %v7944_v17  ;;  %9501 = vst [vmem:[#allocation64_spill] sm:$0xff] %v7946_v33 }
 0x2dd   :  { %v1704_v37 = vpop.permute.xlu1 %1703  ;;  %v1702_v0 = vpop.permute.xlu0 %1701 }
 0x2de   :  { %v2024_v3 = vsel %vm1108_vm3, %v1968_v45, %v1704_v37  ;;  %v2023_v13 = vsel %vm1108_vm3, %v1967_v39, %v1702_v0  ;;  %1571 = vrot.lane.b32.xlu1 %v6919_v16, %s4963_s20  ;;  %1569 = vrot.lane.b32.xlu0 %v6926_v49, %s4963_s20  ;;  %v7915_v16 = vld [vmem:[%s9002_s0 + $0x358] sm:$0xff]  ;;  %v7922_v49 = vld [vmem:[%s9002_s0 + $0x350] sm:$0xff]  ;;  %v1857_v45 = vsel %vm937_vm0, %v9499_v48, %v7368_v32  ;;  %v9502_v32 = vld [vmem:[#allocation86_spill] sm:$0xff] }
 0x2df   :  { %4583 = vmatprep.mubr.msk.f32.mxu0 %vm2070_vm4, %v2023_v13  ;;  %4761 = vmatprep.mubr.msk.f32.mxu1 %vm2070_vm4, %v2023_v13 }
 0x2e0   :  { %4584 = vmatmul.mubr.msk.f32.gmra.mxu0 %vm2070_vm4, %v2024_v3  ;;  %4762 = vmatmul.mubr.msk.f32.gmra.mxu1 %vm2070_vm4, %v2024_v3 }
 0x2e1   :  { %v1368_v29 = vpop.permute.xlu1 %1367  ;;  %v1366_v62 = vpop.permute.xlu0 %1365 }
 0x2e2   :  { %1743 = vrot.lane.b32.xlu1 %v7915_v16, %s4964_s24  ;;  %1741 = vrot.lane.b32.xlu0 %v7922_v49, %s4964_s24  ;;  %v1914_v39 = vsel %vm994_vm1, %v1858_v58, %v1368_v29  ;;  %v1913_v37 = vsel %vm994_vm1, %v1857_v45, %v1366_v62  ;;  %v9503_v29 = vld [vmem:[#allocation89_spill] sm:$0xff]  ;;  %v7960_v58 = vpop.f32.mrf.mxu1 }
 0x2e3   :  { %9505 = vst [vmem:[#allocation118_spill] sm:$0xff] %v7960_v58 }
 0x2e5   :  { %v1536_v47 = vpop.permute.xlu1 %1535  ;;  %v1534_v44 = vpop.permute.xlu0 %1533 }
 0x2e6   :  { %1407 = vrot.lane.b32.xlu1 %v7915_v16, %s4962_s6  ;;  %1405 = vrot.lane.b32.xlu0 %v7922_v49, %s4962_s6  ;;  %v1970_v0 = vsel %vm1051_vm2, %v1914_v39, %v1536_v47  ;;  %v1969_v3 = vsel %vm1051_vm2, %v1913_v37, %v1534_v44  ;;  %v7958_v44 = vpop.f32.mrf.mxu0  ;;  %v7973_v37 = vpop.f32.mrf.mxu1 }
 0x2e7   :  { %9504 = vst [vmem:[#allocation117_spill] sm:$0xff] %v7958_v44  ;;  %9507 = vst [vmem:[#allocation37_spill] sm:$0xff] %v7973_v37 }
 0x2e8   :  { %v7971_v39 = vpop.f32.mrf.mxu0  ;;  %v7996_v42 = vpop.f32.mrf.mxu1 }
 0x2e9   :  { %v1708_v13 = vpop.permute.xlu1 %1707  ;;  %v1706_v23 = vpop.permute.xlu0 %1705  ;;  %9506 = vst [vmem:[#allocation36_spill] sm:$0xff] %v7971_v39  ;;  %9513 = vst [vmem:[#allocation68_spill] sm:$0xff] %v7996_v42 }
 0x2ea   :  { %v2026_v20 = vsel %vm1108_vm3, %v1970_v0, %v1708_v13  ;;  %v2025_v40 = vsel %vm1108_vm3, %v1969_v3, %v1706_v23  ;;  %1575 = vrot.lane.b32.xlu1 %v9502_v32, %s4963_s20  ;;  %1573 = vrot.lane.b32.xlu0 %v9503_v29, %s4963_s20  ;;  %v7967_v23 = vld [vmem:[%s9002_s0 + $0x360] sm:$0xff]  ;;  %v7980_v0 = vld [vmem:[%s9002_s0 + $0x368] sm:$0xff]  ;;  %v7994_v36 = vpop.f32.mrf.mxu0 }
 0x2eb   :  { %4586 = vmatprep.mubr.msk.f32.mxu0 %vm2070_vm4, %v2025_v40  ;;  %4764 = vmatprep.mubr.msk.f32.mxu1 %vm2070_vm4, %v2025_v40  ;;  %v9508_v3 = vld [vmem:[#allocation94_spill] sm:$0xff]  ;;  %v9509_v13 = vld [vmem:[#allocation15_spill] sm:$0xff]  ;;  %v9510_v40 = vld [vmem:[#allocation97_spill] sm:$0xff]  ;;  %9512 = vst [vmem:[#allocation67_spill] sm:$0xff] %v7994_v36 }
 0x2ec   :  { %4587 = vmatmul.mubr.msk.f32.gmra.mxu0 %vm2070_vm4, %v2026_v20  ;;  %4765 = vmatmul.mubr.msk.f32.gmra.mxu1 %vm2070_vm4, %v2026_v20  ;;  %v1860_v20 = vsel %vm937_vm0, %v9509_v13, %v9508_v3 }
 0x2ed   :  { %v1372_v62 = vpop.permute.xlu1 %1371  ;;  %v1370_v47 = vpop.permute.xlu0 %1369 }
 0x2ee   :  { %1241 = vrot.lane.b32.xlu1 %v9503_v29, %s4961_s19  ;;  %1745 = vrot.lane.b32.xlu0 %v7967_v23, %s4964_s24  ;;  %v9511_v29 = vld [vmem:[#allocation18_spill] sm:$0xff]  ;;  %v1916_v37 = vsel %vm994_vm1, %v1860_v20, %v1372_v62  ;;  %v4924_v20 = vld [vmem:[%s9002_s0 + $0x270] sm:$0xff] }
 0x2ef   :  { %v1859_v39 = vsel %vm937_vm0, %v9511_v29, %v9510_v40  ;;  %v8027_v40 = vld [vmem:[%s9002_s0 + $0x370] sm:$0xff]  ;;  %v9520_v29 = vld [vmem:[#allocation5_spill] sm:$0xff] }
 0x2f1   :  { %v1540_v48 = vpop.permute.xlu1 %1539  ;;  %v1538_v45 = vpop.permute.xlu0 %1537 }
 0x2f2   :  { %1243 = vrot.lane.b32.xlu1 %v9502_v32, %s4961_s19  ;;  %1747 = vrot.lane.b32.xlu0 %v7980_v0, %s4964_s24  ;;  %v1915_v32 = vsel %vm994_vm1, %v1859_v39, %v1370_v47  ;;  %v1972_v58 = vsel %vm1051_vm2, %v1916_v37, %v1540_v48  ;;  %v8008_v48 = vpop.f32.mrf.mxu0 }
 0x2f3   :  { %v1971_v44 = vsel %vm1051_vm2, %v1915_v32, %v1538_v45  ;;  %9514 = vst [vmem:[#allocation119_spill] sm:$0xff] %v8008_v48  ;;  %v9521_v32 = vld [vmem:[#allocation31_spill] sm:$0xff] }
 0x2f4   :  { %v8016_v39 = vpop.f32.mrf.mxu0 }
 0x2f5   :  { %v1712_v33 = vpop.permute.xlu1 %1711  ;;  %v1710_v17 = vpop.permute.xlu0 %1709  ;;  %9518 = vst [vmem:[#allocation40_spill] sm:$0xff] %v8016_v39 }
 0x2f6   :  { %v2028_v3 = vsel %vm1108_vm3, %v1972_v58, %v1712_v33  ;;  %v2027_v13 = vsel %vm1108_vm3, %v1971_v44, %v1710_v17  ;;  %1411 = vrot.lane.b32.xlu1 %v7980_v0, %s4962_s6  ;;  %1409 = vrot.lane.b32.xlu0 %v7967_v23, %s4962_s6  ;;  %v8010_v33 = vpop.f32.mrf.mxu1  ;;  %v9516_v17 = vld [vmem:[#allocation90_spill] sm:$0xff]  ;;  %v9517_v44 = vld [vmem:[#allocation93_spill] sm:$0xff]  ;;  %v8041_v36 = vpop.f32.mrf.mxu0 }
 0x2f7   :  { %4589 = vmatprep.mubr.msk.f32.mxu0 %vm2070_vm4, %v2027_v13  ;;  %4767 = vmatprep.mubr.msk.f32.mxu1 %vm2070_vm4, %v2027_v13  ;;  %9515 = vst [vmem:[#allocation120_spill] sm:$0xff] %v8010_v33  ;;  %v9522_v13 = vld [vmem:[#allocation7_spill] sm:$0xff]  ;;  %9524 = vst [vmem:[#allocation71_spill] sm:$0xff] %v8041_v36 }
 0x2f8   :  { %4590 = vmatmul.mubr.msk.f32.gmra.mxu0 %vm2070_vm4, %v2028_v3  ;;  %4768 = vmatmul.mubr.msk.f32.gmra.mxu1 %vm2070_vm4, %v2028_v3  ;;  %v8018_v37 = vpop.f32.mrf.mxu1  ;;  %v1862_v3 = vsel %vm937_vm0, %v9521_v32, %v9520_v29 }
 0x2f9   :  { %v1376_v62 = vpop.permute.xlu1 %1375  ;;  %v1374_v47 = vpop.permute.xlu0 %1373  ;;  %9519 = vst [vmem:[#allocation41_spill] sm:$0xff] %v8018_v37 }
 0x2fa   :  { %1579 = vrot.lane.b32.xlu1 %v9516_v17, %s4963_s20  ;;  %1577 = vrot.lane.b32.xlu0 %v9517_v44, %s4963_s20  ;;  %v9523_v17 = vld [vmem:[#allocation34_spill] sm:$0xff]  ;;  %v1918_v37 = vsel %vm994_vm1, %v1862_v3, %v1376_v62  ;;  %v8043_v41 = vpop.f32.mrf.mxu1  ;;  %v4926_v62 = vld [vmem:[%s9002_s0 + $0x278] sm:$0xff] }
 0x2fb   :  { %v1861_v44 = vsel %vm937_vm0, %v9523_v17, %v9522_v13  ;;  %9525 = vst [vmem:[#allocation72_spill] sm:$0xff] %v8043_v41  ;;  %v4928_v13 = vld [vmem:[%s9002_s0 + $0x288] sm:$0xff]  ;;  %v4929_v17 = vld [vmem:[%s9002_s0 + $0x280] sm:$0xff] }
 0x2fd   :  { %v1544_v58 = vpop.permute.xlu1 %1543  ;;  %v1542_v45 = vpop.permute.xlu0 %1541 }
 0x2fe   :  { %1245 = vrot.lane.b32.xlu1 %v4924_v20, %s4961_s19  ;;  %1749 = vrot.lane.b32.xlu0 %v8027_v40, %s4964_s24  ;;  %v1917_v20 = vsel %vm994_vm1, %v1861_v44, %v1374_v47  ;;  %v1974_v39 = vsel %vm1051_vm2, %v1918_v37, %v1544_v58  ;;  %v8054_v47 = vld [vmem:[%s9002_s0 + $0x378] sm:$0xff]  ;;  %v8064_v58 = vpop.f32.mrf.mxu1  ;;  %v9530_v44 = vld [vmem:[#allocation3_spill] sm:$0xff] }
 0x2ff   :  { %v1973_v33 = vsel %vm1051_vm2, %v1917_v20, %v1542_v45  ;;  %9527 = vst [vmem:[#allocation122_spill] sm:$0xff] %v8064_v58  ;;  %v9531_v20 = vld [vmem:[#allocation8_spill] sm:$0xff] }
 0x300   :  { %v8072_v3 = vpop.f32.mrf.mxu1 }
 0x301   :  { %v1716_v48 = vpop.permute.xlu1 %1715  ;;  %v1714_v42 = vpop.permute.xlu0 %1713  ;;  %9529 = vst [vmem:[#allocation45_spill] sm:$0xff] %v8072_v3 }
 0x302   :  { %v2030_v29 = vsel %vm1108_vm3, %v1974_v39, %v1716_v48  ;;  %v2029_v32 = vsel %vm1108_vm3, %v1973_v33, %v1714_v42  ;;  %1247 = vrot.lane.b32.xlu1 %v4926_v62, %s4961_s19  ;;  %1751 = vrot.lane.b32.xlu0 %v8054_v47, %s4964_s24  ;;  %v8062_v33 = vpop.f32.mrf.mxu0  ;;  %v9533_v62 = vld [vmem:[#allocation9_spill] sm:$0xff]  ;;  %v8094_v1 = vpop.f32.mrf.mxu1 }
 0x303   :  { %4592 = vmatprep.mubr.msk.f32.mxu0 %vm2070_vm4, %v2029_v32  ;;  %4770 = vmatprep.mubr.msk.f32.mxu1 %vm2070_vm4, %v2029_v32  ;;  %9526 = vst [vmem:[#allocation121_spill] sm:$0xff] %v8062_v33  ;;  %v9532_v32 = vld [vmem:[#allocation4_spill] sm:$0xff]  ;;  %9535 = vst [vmem:[#allocation76_spill] sm:$0xff] %v8094_v1 }
 0x304   :  { %4593 = vmatmul.mubr.msk.f32.gmra.mxu0 %vm2070_vm4, %v2030_v29  ;;  %4771 = vmatmul.mubr.msk.f32.gmra.mxu1 %vm2070_vm4, %v2030_v29  ;;  %v8070_v37 = vpop.f32.mrf.mxu0  ;;  %v1864_v29 = vsel %vm937_vm0, %v9531_v20, %v9530_v44  ;;  %v1863_v3 = vsel %vm937_vm0, %v9533_v62, %v9532_v32 }
 0x305   :  { %v1380_v42 = vpop.permute.xlu1 %1379  ;;  %v1378_v48 = vpop.permute.xlu0 %1377  ;;  %9528 = vst [vmem:[#allocation44_spill] sm:$0xff] %v8070_v37 }
 0x306   :  { %1415 = vrot.lane.b32.xlu1 %v8054_v47, %s4962_s6  ;;  %1413 = vrot.lane.b32.xlu0 %v8027_v40, %s4962_s6  ;;  %v1920_v37 = vsel %vm994_vm1, %v1864_v29, %v1380_v42  ;;  %v1919_v58 = vsel %vm994_vm1, %v1863_v3, %v1378_v48  ;;  %v8092_v21 = vpop.f32.mrf.mxu0  ;;  %v8102_v42 = vld [vmem:[%s9002_s0 + $0x380] sm:$0xff]  ;;  %v8112_v48 = vpop.f32.mrf.mxu1 }
 0x307   :  { %9534 = vst [vmem:[#allocation75_spill] sm:$0xff] %v8092_v21  ;;  %9537 = vst [vmem:[#allocation124_spill] sm:$0xff] %v8112_v48  ;;  %v9540_v3 = vld [vmem:[#allocation6_spill] sm:$0xff] }
 0x309   :  { %v1548_v45 = vpop.permute.xlu1 %1547  ;;  %v1546_v39 = vpop.permute.xlu0 %1545 }
 0x30a   :  { %1583 = vrot.lane.b32.xlu1 %v4928_v13, %s4963_s20  ;;  %1581 = vrot.lane.b32.xlu0 %v4929_v17, %s4963_s20  ;;  %v1976_v33 = vsel %vm1051_vm2, %v1920_v37, %v1548_v45  ;;  %v1975_v41 = vsel %vm1051_vm2, %v1919_v58, %v1546_v39  ;;  %v8124_v37 = vpop.f32.mrf.mxu1 }
 0x30b   :  { %9539 = vst [vmem:[#allocation49_spill] sm:$0xff] %v8124_v37 }
 0x30d   :  { %v1720_v36 = vpop.permute.xlu1 %1719  ;;  %v1718_v10 = vpop.permute.xlu0 %1717 }
 0x30e   :  { %v2032_v44 = vsel %vm1108_vm3, %v1976_v33, %v1720_v36  ;;  %v2031_v20 = vsel %vm1108_vm3, %v1975_v41, %v1718_v10  ;;  %1249 = vrot.lane.b32.xlu1 %v4929_v17, %s4961_s19  ;;  %1753 = vrot.lane.b32.xlu0 %v8102_v42, %s4964_s24  ;;  %v8110_v41 = vpop.f32.mrf.mxu0  ;;  %v8118_v33 = vld [vmem:[%s9002_s0 + $0x388] sm:$0xff]  ;;  %v9541_v17 = vld [vmem:[#allocation10_spill] sm:$0xff] }
 0x30f   :  { %4595 = vmatprep.mubr.msk.f32.mxu0 %vm2070_vm4, %v2031_v20  ;;  %4773 = vmatprep.mubr.msk.f32.mxu1 %vm2070_vm4, %v2031_v20  ;;  %9536 = vst [vmem:[#allocation123_spill] sm:$0xff] %v8110_v41  ;;  %v1865_v29 = vsel %vm937_vm0, %v7552_v53, %v9541_v17  ;;  %v8142_v41 = vpop.f32.mrf.mxu1  ;;  %v4932_v53 = vld [vmem:[%s9002_s0 + $0x298] sm:$0xff] }
 0x310   :  { %4596 = vmatmul.mubr.msk.f32.gmra.mxu0 %vm2070_vm4, %v2032_v44  ;;  %4774 = vmatmul.mubr.msk.f32.gmra.mxu1 %vm2070_vm4, %v2032_v44  ;;  %v8122_v39 = vpop.f32.mrf.mxu0  ;;  %9543 = vst [vmem:[#allocation80_spill] sm:$0xff] %v8142_v41 }
 0x311   :  { %v1384_v36 = vpop.permute.xlu1 %1383  ;;  %v1382_v10 = vpop.permute.xlu0 %1381  ;;  %9538 = vst [vmem:[#allocation48_spill] sm:$0xff] %v8122_v39 }
 0x312   :  { %1251 = vrot.lane.b32.xlu1 %v4928_v13, %s4961_s19  ;;  %1755 = vrot.lane.b32.xlu0 %v8118_v33, %s4964_s24  ;;  %v1866_v13 = vsel %vm937_vm0, %v7545_v54, %v9540_v3  ;;  %v1921_v62 = vsel %vm994_vm1, %v1865_v29, %v1382_v10  ;;  %v8140_v48 = vpop.f32.mrf.mxu0 }
 0x313   :  { %v1922_v32 = vsel %vm994_vm1, %v1866_v13, %v1384_v36  ;;  %9542 = vst [vmem:[#allocation79_spill] sm:$0xff] %v8140_v48  ;;  %v4933_v36 = vld [vmem:[%s9002_s0 + $0x290] sm:$0xff] }
 0x315   :  { %v1552_v58 = vpop.permute.xlu1 %1551  ;;  %v1550_v45 = vpop.permute.xlu0 %1549 }
 0x316   :  { %1419 = vrot.lane.b32.xlu1 %v8118_v33, %s4962_s6  ;;  %1417 = vrot.lane.b32.xlu0 %v8102_v42, %s4962_s6  ;;  %v1978_v44 = vsel %vm1051_vm2, %v1922_v32, %v1552_v58  ;;  %v1977_v20 = vsel %vm1051_vm2, %v1921_v62, %v1550_v45  ;;  %v8158_v45 = vpop.f32.mrf.mxu0  ;;  %v8178_v62 = vld [vmem:[%s9002_s0 + $0x398] sm:$0xff] }
 0x317   :  { %9544 = vst [vmem:[#allocation125_spill] sm:$0xff] %v8158_v45 }
 0x318   :  { %v8170_v29 = vpop.f32.mrf.mxu0 }
 0x319   :  { %v1724_v37 = vpop.permute.xlu1 %1723  ;;  %v1722_v39 = vpop.permute.xlu0 %1721  ;;  %9546 = vst [vmem:[#allocation54_spill] sm:$0xff] %v8170_v29 }
 0x31a   :  { %v2034_v54 = vsel %vm1108_vm3, %v1978_v44, %v1724_v37  ;;  %v2033_v3 = vsel %vm1108_vm3, %v1977_v20, %v1722_v39  ;;  %1587 = vrot.lane.b32.xlu1 %v4932_v53, %s4963_s20  ;;  %1585 = vrot.lane.b32.xlu0 %v4933_v36, %s4963_s20  ;;  %v8160_v39 = vpop.f32.mrf.mxu1  ;;  %v8166_v37 = vld [vmem:[%s9002_s0 + $0x390] sm:$0xff]  ;;  %v9548_v44 = vld [vmem:[#allocation11_spill] sm:$0xff]  ;;  %v8192_v41 = vpop.f32.mrf.mxu0 }
 0x31b   :  { %4598 = vmatprep.mubr.msk.f32.mxu0 %vm2070_vm4, %v2033_v3  ;;  %4776 = vmatprep.mubr.msk.f32.mxu1 %vm2070_vm4, %v2033_v3  ;;  %9545 = vst [vmem:[#allocation126_spill] sm:$0xff] %v8160_v39  ;;  %v1868_v20 = vsel %vm937_vm0, %v7607_v24, %v9548_v44  ;;  %9550 = vst [vmem:[#allocation83_spill] sm:$0xff] %v8192_v41 }
 0x31c   :  { %4599 = vmatmul.mubr.msk.f32.gmra.mxu0 %vm2070_vm4, %v2034_v54  ;;  %4777 = vmatmul.mubr.msk.f32.gmra.mxu1 %vm2070_vm4, %v2034_v54  ;;  %v8172_v32 = vpop.f32.mrf.mxu1  ;;  %v9549_v54 = vld [vmem:[#allocation14_spill] sm:$0xff] }
 0x31d   :  { %v1388_v10 = vpop.permute.xlu1 %1387  ;;  %v1386_v58 = vpop.permute.xlu0 %1385  ;;  %9547 = vst [vmem:[#allocation57_spill] sm:$0xff] %v8172_v32  ;;  %v1867_v3 = vsel %vm937_vm0, %v7614_v60, %v9549_v54  ;;  %v8226_v54 = vld [vmem:[%s9002_s0 + $0x3a0] sm:$0xff] }
 0x31e   :  { %1253 = vrot.lane.b32.xlu1 %v4933_v36, %s4961_s19  ;;  %1757 = vrot.lane.b32.xlu0 %v8166_v37, %s4964_s24  ;;  %v1924_v36 = vsel %vm994_vm1, %v1868_v20, %v1388_v10  ;;  %v8194_v48 = vpop.f32.mrf.mxu1 }
 0x31f   :  { %9551 = vst [vmem:[#allocation84_spill] sm:$0xff] %v8194_v48 }
 0x321   :  { %v1556_v13 = vpop.permute.xlu1 %1555  ;;  %v1554_v17 = vpop.permute.xlu0 %1553 }
 0x322   :  { %1255 = vrot.lane.b32.xlu1 %v4932_v53, %s4961_s19  ;;  %1759 = vrot.lane.b32.xlu0 %v8178_v62, %s4964_s24  ;;  %v1923_v53 = vsel %vm994_vm1, %v1867_v3, %v1386_v58  ;;  %v1980_v32 = vsel %vm1051_vm2, %v1924_v36, %v1556_v13  ;;  %v8206_v58 = vpop.f32.mrf.mxu0  ;;  %v4937_v13 = vld [vmem:[%s9002_s0 + $0x2a0] sm:$0xff]  ;;  %v4939_v3 = vld [vmem:[%s9002_s0 + $0x308] sm:$0xff] }
 0x323   :  { %v1979_v29 = vsel %vm1051_vm2, %v1923_v53, %v1554_v17  ;;  %9552 = vst [vmem:[#allocation127_spill] sm:$0xff] %v8206_v58  ;;  %v9556_v36 = vld [vmem:[#allocation19_spill] sm:$0xff] }
 0x324   :  { %v1870_v53 = vsel %vm937_vm0, %v4939_v3, %v9556_v36 }
 0x325   :  { %v1728_v39 = vpop.permute.xlu1 %1727  ;;  %v1726_v45 = vpop.permute.xlu0 %1725 }
 0x326   :  { %v2036_v24 = vsel %vm1108_vm3, %v1980_v32, %v1728_v39  ;;  %v2035_v44 = vsel %vm1108_vm3, %v1979_v29, %v1726_v45  ;;  %1423 = vrot.lane.b32.xlu1 %v8178_v62, %s4962_s6  ;;  %1421 = vrot.lane.b32.xlu0 %v8166_v37, %s4962_s6  ;;  %v8208_v39 = vpop.f32.mrf.mxu1  ;;  %v4936_v45 = vld [vmem:[%s9002_s0 + $0x2a8] sm:$0xff]  ;;  %v8218_v32 = vpop.f32.mrf.mxu0 }
 0x327   :  { %4601 = vmatprep.mubr.msk.f32.mxu0 %vm2070_vm4, %v2035_v44  ;;  %4779 = vmatprep.mubr.msk.f32.mxu1 %vm2070_vm4, %v2035_v44  ;;  %9553 = vst [vmem:[#allocation128_spill] sm:$0xff] %v8208_v39  ;;  %9554 = vst [vmem:[#allocation58_spill] sm:$0xff] %v8218_v32  ;;  %v9557_v44 = vld [vmem:[#allocation22_spill] sm:$0xff] }
 0x328   :  { %4602 = vmatmul.mubr.msk.f32.gmra.mxu0 %vm2070_vm4, %v2036_v24  ;;  %4780 = vmatmul.mubr.msk.f32.gmra.mxu1 %vm2070_vm4, %v2036_v24  ;;  %v8220_v20 = vpop.f32.mrf.mxu1  ;;  %v4940_v24 = vld [vmem:[%s9002_s0 + $0x300] sm:$0xff]  ;;  %v8244_v1 = vpop.f32.mrf.mxu0 }
 0x329   :  { %v1392_v60 = vpop.permute.xlu1 %1391  ;;  %v1390_v10 = vpop.permute.xlu0 %1389  ;;  %9555 = vst [vmem:[#allocation61_spill] sm:$0xff] %v8220_v20  ;;  %9558 = vst [vmem:[#allocation87_spill] sm:$0xff] %v8244_v1 }
 0x32a   :  { %1591 = vrot.lane.b32.xlu1 %v4936_v45, %s4963_s20  ;;  %1589 = vrot.lane.b32.xlu0 %v4937_v13, %s4963_s20  ;;  %v1926_v20 = vsel %vm994_vm1, %v1870_v53, %v1392_v60  ;;  %v8246_v3 = vpop.f32.mrf.mxu1  ;;  %v8254_v60 = vld [vmem:[%s9002_s0 + $0x3a8] sm:$0xff] }
 0x32b   :  { %9559 = vst [vmem:[#allocation88_spill] sm:$0xff] %v8246_v3 }
 0x32d   :  { %v1560_v17 = vpop.permute.xlu1 %1559  ;;  %v1558_v29 = vpop.permute.xlu0 %1557 }
 0x32e   :  { %1257 = vrot.lane.b32.xlu1 %v4937_v13, %s4961_s19  ;;  %1761 = vrot.lane.b32.xlu0 %v8226_v54, %s4964_s24  ;;  %v1869_v13 = vsel %vm937_vm0, %v4940_v24, %v9557_v44  ;;  %v1982_v39 = vsel %vm1051_vm2, %v1926_v20, %v1560_v17  ;;  %v9564_v20 = vld [vmem:[#allocation23_spill] sm:$0xff]  ;;  %v9565_v24 = vld [vmem:[#allocation26_spill] sm:$0xff] }
 0x32f   :  { %v1925_v32 = vsel %vm994_vm1, %v1869_v13, %v1390_v10  ;;  %v8262_v10 = vpop.f32.mrf.mxu0  ;;  %v1872_v53 = vsel %vm937_vm0, %v7723_v57, %v9564_v20  ;;  %v1871_v44 = vsel %vm937_vm0, %v7730_v52, %v9565_v24  ;;  %v8302_v52 = vld [vmem:[%s9002_s0 + $0x3b0] sm:$0xff]  ;;  %v9571_v24 = vld [vmem:[#allocation30_spill] sm:$0xff] }
 0x330   :  { %v1981_v58 = vsel %vm1051_vm2, %v1925_v32, %v1558_v29  ;;  %9560 = vst [vmem:[#allocation129_spill] sm:$0xff] %v8262_v10  ;;  %v4942_v29 = vld [vmem:[%s9002_s0 + $0x2b8] sm:$0xff]  ;;  %v4943_v32 = vld [vmem:[%s9002_s0 + $0x2b0] sm:$0xff] }
 0x331   :  { %v1732_v48 = vpop.permute.xlu1 %1731  ;;  %v1730_v41 = vpop.permute.xlu0 %1729 }
 0x332   :  { %v2038_v36 = vsel %vm1108_vm3, %v1982_v39, %v1732_v48  ;;  %v2037_v21 = vsel %vm1108_vm3, %v1981_v58, %v1730_v41  ;;  %1259 = vrot.lane.b32.xlu1 %v4936_v45, %s4961_s19  ;;  %1763 = vrot.lane.b32.xlu0 %v8254_v60, %s4964_s24  ;;  %v8264_v58 = vpop.f32.mrf.mxu1  ;;  %v8270_v17 = vpop.f32.mrf.mxu0 }
 0x333   :  { %4604 = vmatprep.mubr.msk.f32.mxu0 %vm2070_vm4, %v2037_v21  ;;  %4782 = vmatprep.mubr.msk.f32.mxu1 %vm2070_vm4, %v2037_v21  ;;  %9561 = vst [vmem:[#allocation130_spill] sm:$0xff] %v8264_v58  ;;  %9562 = vst [vmem:[#allocation62_spill] sm:$0xff] %v8270_v17 }
 0x334   :  { %4605 = vmatmul.mubr.msk.f32.gmra.mxu0 %vm2070_vm4, %v2038_v36  ;;  %4783 = vmatmul.mubr.msk.f32.gmra.mxu1 %vm2070_vm4, %v2038_v36  ;;  %v8272_v21 = vpop.f32.mrf.mxu1  ;;  %v8292_v3 = vpop.f32.mrf.mxu0 }
 0x335   :  { %v1396_v48 = vpop.permute.xlu1 %1395  ;;  %v1394_v41 = vpop.permute.xlu0 %1393  ;;  %9563 = vst [vmem:[#allocation65_spill] sm:$0xff] %v8272_v21 }
 0x336   :  { %1427 = vrot.lane.b32.xlu1 %v8254_v60, %s4962_s6  ;;  %1425 = vrot.lane.b32.xlu0 %v8226_v54, %s4962_s6  ;;  %v1928_v13 = vsel %vm994_vm1, %v1872_v53, %v1396_v48  ;;  %v1927_v36 = vsel %vm994_vm1, %v1871_v44, %v1394_v41  ;;  %v8294_v1 = vpop.f32.mrf.mxu1  ;;  %v1873_v44 = vsel %vm937_vm0, %v7772_v7, %v9571_v24  ;;  %v4946_v7 = vld [vmem:[%s9002_s0 + $0x2c8] sm:$0xff]  ;;  %v8363_v24 = vld [vmem:[%s9005_s3] ss:$0 sm:$0xff] }
 0x339   :  { %v1564_v39 = vpop.permute.xlu1 %1563  ;;  %v1562_v45 = vpop.permute.xlu0 %1561 }
 0x33a   :  { %1595 = vrot.lane.b32.xlu1 %v4942_v29, %s4963_s20  ;;  %1593 = vrot.lane.b32.xlu0 %v4943_v32, %s4963_s20  ;;  %v1984_v21 = vsel %vm1051_vm2, %v1928_v13, %v1564_v39  ;;  %v1983_v17 = vsel %vm1051_vm2, %v1927_v36, %v1562_v45  ;;  %v8318_v39 = vld [vmem:[%s9002_s0 + $0x3b8] sm:$0xff] }
 0x33d   :  { %v1736_v58 = vpop.permute.xlu1 %1735  ;;  %v1734_v10 = vpop.permute.xlu0 %1733 }
 0x33e   :  { %v2040_v57 = vsel %vm1108_vm3, %v1984_v21, %v1736_v58  ;;  %v2039_v20 = vsel %vm1108_vm3, %v1983_v17, %v1734_v10  ;;  %1261 = vrot.lane.b32.xlu1 %v4943_v32, %s4961_s19  ;;  %1765 = vrot.lane.b32.xlu0 %v8302_v52, %s4964_s24  ;;  %v8310_v10 = vpop.f32.mrf.mxu0  ;;  %v8312_v58 = vpop.f32.mrf.mxu1 }
 0x33f   :  { %4607 = vmatprep.mubr.msk.f32.mxu0 %vm2070_vm4, %v2039_v20  ;;  %4785 = vmatprep.mubr.msk.f32.mxu1 %vm2070_vm4, %v2039_v20  ;;  %9566 = vst [vmem:[#allocation91_spill] sm:$0xff] %v8310_v10  ;;  %9567 = vst [vmem:[#allocation92_spill] sm:$0xff] %v8312_v58 }
 0x340   :  { %4608 = vmatmul.mubr.msk.f32.gmra.mxu0 %vm2070_vm4, %v2040_v57  ;;  %4786 = vmatmul.mubr.msk.f32.gmra.mxu1 %vm2070_vm4, %v2040_v57  ;;  %v8322_v21 = vpop.f32.mrf.mxu0  ;;  %v8324_v32 = vpop.f32.mrf.mxu1 }
 0x341   :  { %v1400_v48 = vpop.permute.xlu1 %1399  ;;  %v1398_v41 = vpop.permute.xlu0 %1397  ;;  %9568 = vst [vmem:[#allocation131_spill] sm:$0xff] %v8322_v21  ;;  %9569 = vst [vmem:[#allocation132_spill] sm:$0xff] %v8324_v32 }
 0x342   :  { %1263 = vrot.lane.b32.xlu1 %v4942_v29, %s4961_s19  ;;  %1767 = vrot.lane.b32.xlu0 %v8318_v39, %s4964_s24  ;;  %v9570_v29 = vld [vmem:[#allocation27_spill] sm:$0xff]  ;;  %v1929_v36 = vsel %vm994_vm1, %v1873_v44, %v1398_v41  ;;  %v8340_v58 = vpop.f32.mrf.mxu0  ;;  %v8342_v10 = vpop.f32.mrf.mxu1 }
 0x343   :  { %v1874_v53 = vsel %vm937_vm0, %v7765_v6, %v9570_v29  ;;  %9572 = vst [vmem:[#allocation66_spill] sm:$0xff] %v8342_v10 }
 0x344   :  { %v1930_v13 = vsel %vm994_vm1, %v1874_v53, %v1400_v48  ;;  %v4947_v48 = vld [vmem:[%s9002_s0 + $0x2c0] sm:$0xff] }
 0x345   :  { %v1568_v45 = vpop.permute.xlu1 %1567  ;;  %v1566_v17 = vpop.permute.xlu0 %1565 }
 0x346   :  { %1431 = vrot.lane.b32.xlu1 %v8318_v39, %s4962_s6  ;;  %1429 = vrot.lane.b32.xlu0 %v8302_v52, %s4962_s6  ;;  %v1986_v57 = vsel %vm1051_vm2, %v1930_v13, %v1568_v45  ;;  %v1985_v20 = vsel %vm1051_vm2, %v1929_v36, %v1566_v17  ;;  %v8369_v36 = vld [vmem:[%s9002_s0 + $0x3c0] sm:$0xff] }
 0x349   :  { %v1740_v32 = vpop.permute.xlu1 %1739  ;;  %v1738_v21 = vpop.permute.xlu0 %1737 }
 0x34a   :  { %v2042_v6 = vsel %vm1108_vm3, %v1986_v57, %v1740_v32  ;;  %v2041_v29 = vsel %vm1108_vm3, %v1985_v20, %v1738_v21  ;;  %1599 = vrot.lane.b32.xlu1 %v4946_v7, %s4963_s20  ;;  %1597 = vrot.lane.b32.xlu0 %v4947_v48, %s4963_s20 }
 0x34b   :  { %4610 = vmatprep.mubr.msk.f32.mxu0 %vm2070_vm4, %v2041_v29  ;;  %4788 = vmatprep.mubr.msk.f32.mxu1 %vm2070_vm4, %v2041_v29 }
 0x34c   :  { %v4564_v41 = vpop.f32.mrf.mxu0  ;;  %4611 = vmatmul.mubr.msk.f32.gmra.mxu0 %vm2070_vm4, %v2042_v6  ;;  %v4742_v45 = vpop.f32.mrf.mxu1  ;;  %4789 = vmatmul.mubr.msk.f32.gmra.mxu1 %vm2070_vm4, %v2042_v6 }
 0x34d   :  { %v3663_v17 = vmax.f32 %v7514_v63, %v4564_v41  ;;  %v3719_v21 = vmax.f32 %v7516_v55, %v4742_v45  ;;  %v1404_v32 = vpop.permute.xlu1 %1403  ;;  %v1402_v53 = vpop.permute.xlu0 %1401  ;;  %v9573_v45 = vld [vmem:[#allocation35_spill] sm:$0xff] }
 0x34e   :  { %v2753_v44 = vpop.f32.mrf.mxu0  ;;  %v3383_v13 = vpop.f32.mrf.mxu1  ;;  %1265 = vrot.lane.b32.xlu1 %v4947_v48, %s4961_s19  ;;  %1769 = vrot.lane.b32.xlu0 %v8369_v36, %s4964_s24  ;;  %v8380_v48 = vld [vmem:[%s9002_s0 + $0x3c8] sm:$0xff] }
 0x34f   :  { %v3775_v63 = vmax.f32 %v3663_v17, %v3719_v21  ;;  %v3662_v55 = vmax.f32 %v7522_v19, %v2753_v44  ;;  %v3718_v57 = vmax.f32 %v7524_v18, %v3383_v13  ;;  %v1876_v19 = vsel %vm937_vm0, %v7815_v43, %v9573_v45  ;;  %v9574_v18 = vld [vmem:[#allocation38_spill] sm:$0xff] }
 0x350   :  { %v1875_v17 = vsel %vm937_vm0, %v7822_v38, %v9574_v18 }
 0x351   :  { %v3838_v20 = vadd.f32 %v8363_v24, %v3775_v63  ;;  %v3774_v6 = vmax.f32 %v3662_v55, %v3718_v57  ;;  %v1572_v29 = vpop.permute.xlu1 %1571  ;;  %v1570_v41 = vpop.permute.xlu0 %1569  ;;  %v1931_v13 = vsel %vm994_vm1, %v1875_v17, %v1402_v53 }
 0x352   :  { %1267 = vrot.lane.b32.xlu1 %v4946_v7, %s4961_s19  ;;  %1771 = vrot.lane.b32.xlu0 %v8380_v48, %s4964_s24  ;;  %v1932_v7 = vsel %vm994_vm1, %v1876_v19, %v1404_v32  ;;  %v1987_v43 = vsel %vm1051_vm2, %v1931_v13, %v1570_v41  ;;  %v9576_v41 = vld [vmem:[#allocation43_spill] sm:$0xff]  ;;  %v4951_v13 = vld [vmem:[%s9002_s0 + $0x2d0] sm:$0xff] }
 0x353   :  { %v3894_v21 = vmax.f32 %v3838_v20, 0.0  ;;  %v3837_v44 = vadd.f32 %v8363_v24, %v3774_v6  ;;  %v1988_v55 = vsel %vm1051_vm2, %v1932_v7, %v1572_v29  ;;  %v9575_v6 = vld [vmem:[#allocation42_spill] sm:$0xff]  ;;  %v4950_v7 = vld [vmem:[%s9002_s0 + $0x2d8] sm:$0xff] }
 0x355   :  { %3950 = vst.msk [vmem:[%s9006_s4 + $0x8] sm:$0xff] %vm994_vm1, %v3894_v21  ;;  %v3893_v63 = vmax.f32 %v3837_v44, 0.0  ;;  %v1744_v57 = vpop.permute.xlu1 %1743  ;;  %v1742_v45 = vpop.permute.xlu0 %1741 }
 0x356   :  { %v2044_v38 = vsel %vm1108_vm3, %v1988_v55, %v1744_v57  ;;  %v2043_v20 = vsel %vm1108_vm3, %v1987_v43, %v1742_v45  ;;  %1435 = vrot.lane.b32.xlu1 %v8380_v48, %s4962_s6  ;;  %1433 = vrot.lane.b32.xlu0 %v8369_v36, %s4962_s6  ;;  %v9577_v55 = vld [vmem:[#allocation105_spill] sm:$0xff]  ;;  %v9578_v57 = vld [vmem:[#allocation106_spill] sm:$0xff] }
 0x357   :  { %3949 = vst.msk [vmem:[%s9006_s4] sm:$0xff] %vm994_vm1, %v3893_v63  ;;  %4613 = vmatprep.mubr.msk.f32.mxu0 %vm2070_vm4, %v2043_v20  ;;  %4791 = vmatprep.mubr.msk.f32.mxu1 %vm2070_vm4, %v2043_v20 }
 0x358   :  { %v4567_v32 = vpop.f32.mrf.mxu0  ;;  %4614 = vmatmul.mubr.msk.f32.gmra.mxu0 %vm2070_vm4, %v2044_v38  ;;  %v4745_v53 = vpop.f32.mrf.mxu1  ;;  %4792 = vmatmul.mubr.msk.f32.gmra.mxu1 %vm2070_vm4, %v2044_v38 }
 0x359   :  { %v3665_v29 = vmax.f32 %v9575_v6, %v4567_v32  ;;  %v3721_v19 = vmax.f32 %v9576_v41, %v4745_v53  ;;  %v1408_v18 = vpop.permute.xlu1 %1407  ;;  %v1406_v17 = vpop.permute.xlu0 %1405  ;;  %v8430_v6 = vld [vmem:[%s9002_s0 + $0x3d0] sm:$0xff] }
 0x35a   :  { %v2763_v21 = vpop.f32.mrf.mxu0  ;;  %v3393_v44 = vpop.f32.mrf.mxu1  ;;  %1603 = vrot.lane.b32.xlu1 %v4950_v7, %s4963_s20  ;;  %1601 = vrot.lane.b32.xlu0 %v4951_v13, %s4963_s20 }
 0x35b   :  { %v3777_v63 = vmax.f32 %v3665_v29, %v3721_v19  ;;  %v3664_v43 = vmax.f32 %v9577_v55, %v2763_v21  ;;  %v3720_v45 = vmax.f32 %v9578_v57, %v3393_v44  ;;  %v9579_v29 = vld [vmem:[#allocation104_spill] sm:$0xff] }
 0x35c   :  { %v1877_v41 = vsel %vm937_vm0, %v7872_v5, %v9579_v29  ;;  %v8449_v5 = vld [vmem:[%s9002_s0 + $0x3d8] sm:$0xff]  ;;  %v9581_v29 = vld [vmem:[#allocation12_spill] sm:$0xff] }
 0x35d   :  { %v3840_v38 = vadd.f32 %v8363_v24, %v3777_v63  ;;  %v3776_v20 = vmax.f32 %v3664_v43, %v3720_v45  ;;  %v1576_v32 = vpop.permute.xlu1 %1575  ;;  %v1574_v53 = vpop.permute.xlu0 %1573  ;;  %v1933_v44 = vsel %vm994_vm1, %v1877_v41, %v1406_v17  ;;  %v9580_v17 = vld [vmem:[#allocation39_spill] sm:$0xff] }
 0x35e   :  { %1269 = vrot.lane.b32.xlu1 %v4951_v13, %s4961_s19  ;;  %1773 = vrot.lane.b32.xlu0 %v8430_v6, %s4964_s24  ;;  %v1989_v63 = vsel %vm1051_vm2, %v1933_v44, %v1574_v53  ;;  %v1878_v45 = vsel %vm937_vm0, %v7865_v28, %v9580_v17 }
 0x35f   :  { %v3896_v19 = vmax.f32 %v3840_v38, 0.0  ;;  %v3839_v21 = vadd.f32 %v8363_v24, %v3776_v20 }
 0x361   :  { %3952 = vst.msk [vmem:[%s9006_s4 + $0x18] sm:$0xff] %vm994_vm1, %v3896_v19  ;;  %v3895_v13 = vmax.f32 %v3839_v21, 0.0  ;;  %v1242_v55 = vpop.permute.xlu1 %1241  ;;  %v1746_v43 = vpop.permute.xlu0 %1745  ;;  %v9582_v19 = vld [vmem:[#allocation13_spill] sm:$0xff] }
 0x362   :  { %v2045_v57 = vsel %vm1108_vm3, %v1989_v63, %v1746_v43  ;;  %1271 = vrot.lane.b32.xlu1 %v4950_v7, %s4961_s19  ;;  %1775 = vrot.lane.b32.xlu0 %v8449_v5, %s4964_s24  ;;  %v1934_v7 = vsel %vm994_vm1, %v1878_v45, %v1408_v18 }
 0x363   :  { %3951 = vst.msk [vmem:[%s9006_s4 + $0x10] sm:$0xff] %vm994_vm1, %v3895_v13  ;;  %4616 = vmatprep.mubr.msk.f32.mxu0 %vm2070_vm4, %v2045_v57  ;;  %4794 = vmatprep.mubr.msk.f32.mxu1 %vm2070_vm4, %v2045_v57  ;;  %v1990_v53 = vsel %vm1051_vm2, %v1934_v7, %v1576_v32  ;;  %v9583_v57 = vld [vmem:[#allocation46_spill] sm:$0xff]  ;;  %v9584_v32 = vld [vmem:[#allocation47_spill] sm:$0xff] }
 0x364   :  { %v4570_v38 = vpop.f32.mrf.mxu0  ;;  %v4748_v20 = vpop.f32.mrf.mxu1 }
 0x365   :  { %v3667_v41 = vmax.f32 %v9581_v29, %v4570_v38  ;;  %v3723_v21 = vmax.f32 %v9582_v19, %v4748_v20  ;;  %v1244_v28 = vpop.permute.xlu1 %1243  ;;  %v1748_v44 = vpop.permute.xlu0 %1747  ;;  %v4954_v29 = vld [vmem:[%s9002_s0 + $0x2e8] sm:$0xff] }
 0x366   :  { %v2046_v63 = vsel %vm1108_vm3, %v1990_v53, %v1748_v44  ;;  %v2773_v43 = vpop.f32.mrf.mxu0  ;;  %v3403_v13 = vpop.f32.mrf.mxu1  ;;  %1439 = vrot.lane.b32.xlu1 %v8449_v5, %s4962_s6  ;;  %1437 = vrot.lane.b32.xlu0 %v8430_v6, %s4962_s6 }
 0x367   :  { %v3779_v18 = vmax.f32 %v3667_v41, %v3723_v21  ;;  %v3666_v17 = vmax.f32 %v9583_v57, %v2773_v43  ;;  %v3722_v45 = vmax.f32 %v9584_v32, %v3403_v13  ;;  %4617 = vmatmul.mubr.msk.f32.gmra.mxu0 %vm2070_vm4, %v2046_v63  ;;  %4795 = vmatmul.mubr.msk.f32.gmra.mxu1 %vm2070_vm4, %v2046_v63  ;;  %v4955_v41 = vld [vmem:[%s9002_s0 + $0x2e0] sm:$0xff] }
 0x368   :  { %v4956_v13 = vld [vmem:[%s9002_s0 + $0x3e0] sm:$0xff] }
 0x369   :  { %v3842_v7 = vadd.f32 %v8363_v24, %v3779_v18  ;;  %v3778_v38 = vmax.f32 %v3666_v17, %v3722_v45  ;;  %v1412_v20 = vpop.permute.xlu1 %1411  ;;  %v1410_v53 = vpop.permute.xlu0 %1409  ;;  %v1879_v18 = vsel %vm937_vm0, %v7922_v49, %v1242_v55  ;;  %v1880_v49 = vsel %vm937_vm0, %v7915_v16, %v1244_v28 }
 0x36a   :  { %1607 = vrot.lane.b32.xlu1 %v4954_v29, %s4963_s20  ;;  %1605 = vrot.lane.b32.xlu0 %v4955_v41, %s4963_s20  ;;  %v1935_v57 = vsel %vm994_vm1, %v1879_v18, %v1410_v53  ;;  %v4957_v53 = vld [vmem:[%s9002_s0 + $0x3e8] sm:$0xff]  ;;  %v1936_v16 = vsel %vm994_vm1, %v1880_v49, %v1412_v20 }
 0x36b   :  { %v3898_v19 = vmax.f32 %v3842_v7, 0.0  ;;  %v3841_v21 = vadd.f32 %v8363_v24, %v3778_v38  ;;  %v9585_v49 = vld [vmem:[#allocation107_spill] sm:$0xff] }
 0x36d   :  { %3954 = vst.msk [vmem:[%s9006_s4 + $0x28] sm:$0xff] %vm994_vm1, %v3898_v19  ;;  %v3897_v44 = vmax.f32 %v3841_v21, 0.0  ;;  %v1580_v63 = vpop.permute.xlu1 %1579  ;;  %v1578_v43 = vpop.permute.xlu0 %1577 }
 0x36e   :  { %1273 = vrot.lane.b32.xlu1 %v4955_v41, %s4961_s19  ;;  %1777 = vrot.lane.b32.xlu0 %v4956_v13, %s4964_s24  ;;  %v1991_v45 = vsel %vm1051_vm2, %v1935_v57, %v1578_v43  ;;  %v1992_v28 = vsel %vm1051_vm2, %v1936_v16, %v1580_v63 }
 0x36f   :  { %3953 = vst.msk [vmem:[%s9006_s4 + $0x20] sm:$0xff] %vm994_vm1, %v3897_v44 }
 0x370   :  { %v4573_v17 = vpop.f32.mrf.mxu0  ;;  %v4751_v32 = vpop.f32.mrf.mxu1 }
 0x371   :  { %v3669_v7 = vmax.f32 %v7576_v22, %v4573_v17  ;;  %v3725_v38 = vmax.f32 %v7578_v9, %v4751_v32  ;;  %v1246_v41 = vpop.permute.xlu1 %1245  ;;  %v1750_v19 = vpop.permute.xlu0 %1749  ;;  %v4958_v32 = vld [vmem:[%s9002_s0 + $0x2f8] sm:$0xff] }
 0x372   :  { %v2047_v55 = vsel %vm1108_vm3, %v1991_v45, %v1750_v19  ;;  %v2783_v21 = vpop.f32.mrf.mxu0  ;;  %v3413_v10 = vpop.f32.mrf.mxu1  ;;  %1275 = vrot.lane.b32.xlu1 %v4954_v29, %s4961_s19  ;;  %1779 = vrot.lane.b32.xlu0 %v4957_v53, %s4964_s24  ;;  %v144_v45 = vld [vmem:[%s9002_s0 + $0x3f8] sm:$0xff] }
 0x373   :  { %v3781_v22 = vmax.f32 %v3669_v7, %v3725_v38  ;;  %v3668_v9 = vmax.f32 %v7584_v11, %v2783_v21  ;;  %v3724_v44 = vmax.f32 %v7586_v34, %v3413_v10  ;;  %4619 = vmatprep.mubr.msk.f32.mxu0 %vm2070_vm4, %v2047_v55  ;;  %4797 = vmatprep.mubr.msk.f32.mxu1 %vm2070_vm4, %v2047_v55  ;;  %v143_v7 = vld [vmem:[%s9002_s0 + $0x3f0] sm:$0xff] }
 0x374   :  { %v9586_v21 = vld [vmem:[#allocation108_spill] sm:$0xff] }
 0x375   :  { %v3844_v29 = vadd.f32 %v8363_v24, %v3781_v22  ;;  %v3780_v43 = vmax.f32 %v3668_v9, %v3724_v44  ;;  %v1248_v18 = vpop.permute.xlu1 %1247  ;;  %v1752_v57 = vpop.permute.xlu0 %1751 }
 0x376   :  { %v2048_v17 = vsel %vm1108_vm3, %v1992_v28, %v1752_v57  ;;  %1443 = vrot.lane.b32.xlu1 %v4957_v53, %s4962_s6  ;;  %1441 = vrot.lane.b32.xlu0 %v4956_v13, %s4962_s6  ;;  %v4959_v13 = vld [vmem:[%s9002_s0 + $0x2f0] sm:$0xff]  ;;  %v1881_v28 = vsel %vm937_vm0, %v7967_v23, %v1246_v41 }
 0x377   :  { %v3900_v11 = vmax.f32 %v3844_v29, 0.0  ;;  %v3843_v34 = vadd.f32 %v8363_v24, %v3780_v43  ;;  %4620 = vmatmul.mubr.msk.f32.gmra.mxu0 %vm2070_vm4, %v2048_v17  ;;  %4798 = vmatmul.mubr.msk.f32.gmra.mxu1 %vm2070_vm4, %v2048_v17  ;;  %v9587_v43 = vld [vmem:[#allocation16_spill] sm:$0xff]  ;;  %v9588_v17 = vld [vmem:[#allocation17_spill] sm:$0xff] }
 0x379   :  { %3956 = vst.msk [vmem:[%s9006_s4 + $0x38] sm:$0xff] %vm994_vm1, %v3900_v11  ;;  %v3899_v10 = vmax.f32 %v3843_v34, 0.0  ;;  %v1416_v20 = vpop.permute.xlu1 %1415  ;;  %v1414_v63 = vpop.permute.xlu0 %1413 }
 0x37a   :  { %1611 = vrot.lane.b32.xlu1 %v4958_v32, %s4963_s20  ;;  %1609 = vrot.lane.b32.xlu0 %v4959_v13, %s4963_s20  ;;  %v1937_v34 = vsel %vm994_vm1, %v1881_v28, %v1414_v63 }
 0x37b   :  { %3955 = vst.msk [vmem:[%s9006_s4 + $0x30] sm:$0xff] %vm994_vm1, %v3899_v10 }
 0x37c   :  { %v4576_v38 = vpop.f32.mrf.mxu0  ;;  %v4754_v19 = vpop.f32.mrf.mxu1 }
 0x37d   :  { %v3671_v55 = vmax.f32 %v9585_v49, %v4576_v38  ;;  %v3727_v53 = vmax.f32 %v9586_v21, %v4754_v19  ;;  %v1584_v22 = vpop.permute.xlu1 %1583  ;;  %v1582_v9 = vpop.permute.xlu0 %1581 }
 0x37e   :  { %v2793_v44 = vpop.f32.mrf.mxu0  ;;  %v3423_v16 = vpop.f32.mrf.mxu1  ;;  %1783 = vrot.lane.b32.xlu1 %v144_v45, %s4964_s24  ;;  %1781 = vrot.lane.b32.xlu0 %v143_v7, %s4964_s24  ;;  %v1993_v32 = vsel %vm1051_vm2, %v1937_v34, %v1582_v9  ;;  %v1882_v7 = vsel %vm937_vm0, %v7980_v0, %v1248_v18  ;;  %v9589_v9 = vld [vmem:[#allocation50_spill] sm:$0xff] }
 0x37f   :  { %v3783_v29 = vmax.f32 %v3671_v55, %v3727_v53  ;;  %v3670_v57 = vmax.f32 %v9587_v43, %v2793_v44  ;;  %v3726_v11 = vmax.f32 %v9588_v17, %v3423_v16  ;;  %v1938_v63 = vsel %vm994_vm1, %v1882_v7, %v1416_v20  ;;  %v9590_v16 = vld [vmem:[#allocation51_spill] sm:$0xff] }
 0x380   :  { %v1994_v49 = vsel %vm1051_vm2, %v1938_v63, %v1584_v22 }
 0x381   :  { %v3846_v10 = vadd.f32 %v8363_v24, %v3783_v29  ;;  %v3782_v13 = vmax.f32 %v3670_v57, %v3726_v11  ;;  %v1250_v38 = vpop.permute.xlu1 %1249  ;;  %v1754_v19 = vpop.permute.xlu0 %1753  ;;  %v9591_v11 = vld [vmem:[#allocation109_spill] sm:$0xff] }
 0x382   :  { %v2049_v45 = vsel %vm1108_vm3, %v1993_v32, %v1754_v19 }
 0x383   :  { %v3902_v23 = vmax.f32 %v3846_v10, 0.0  ;;  %v3845_v41 = vadd.f32 %v8363_v24, %v3782_v13  ;;  %4622 = vmatprep.mubr.msk.f32.mxu0 %vm2070_vm4, %v2049_v45  ;;  %4800 = vmatprep.mubr.msk.f32.mxu1 %vm2070_vm4, %v2049_v45  ;;  %v9592_v10 = vld [vmem:[#allocation110_spill] sm:$0xff] }
 0x385   :  { %3958 = vst.msk [vmem:[%s9006_s4 + $0x48] sm:$0xff] %vm994_vm1, %v3902_v23  ;;  %v3901_v55 = vmax.f32 %v3845_v41, 0.0  ;;  %v1252_v21 = vpop.permute.xlu1 %1251  ;;  %v1756_v53 = vpop.permute.xlu0 %1755  ;;  %v1883_v23 = vsel %vm937_vm0, %v8027_v40, %v1250_v38 }
 0x386   :  { %v2050_v0 = vsel %vm1108_vm3, %v1994_v49, %v1756_v53  ;;  %v1884_v40 = vsel %vm937_vm0, %v8054_v47, %v1252_v21 }
 0x387   :  { %3957 = vst.msk [vmem:[%s9006_s4 + $0x40] sm:$0xff] %vm994_vm1, %v3901_v55  ;;  %4623 = vmatmul.mubr.msk.f32.gmra.mxu0 %vm2070_vm4, %v2050_v0  ;;  %4801 = vmatmul.mubr.msk.f32.gmra.mxu1 %vm2070_vm4, %v2050_v0 }
 0x388   :  { %v4579_v18 = vpop.f32.mrf.mxu0  ;;  %v4757_v20 = vpop.f32.mrf.mxu1 }
 0x389   :  { %v3673_v44 = vmax.f32 %v9589_v9, %v4579_v18  ;;  %v3729_v22 = vmax.f32 %v9590_v16, %v4757_v20  ;;  %v1420_v28 = vpop.permute.xlu1 %1419  ;;  %v1418_v29 = vpop.permute.xlu0 %1417 }
 0x38a   :  { %v2803_v43 = vpop.f32.mrf.mxu0  ;;  %v3433_v57 = vpop.f32.mrf.mxu1  ;;  %v1939_v49 = vsel %vm994_vm1, %v1883_v23, %v1418_v29  ;;  %v1940_v38 = vsel %vm994_vm1, %v1884_v40, %v1420_v28 }
 0x38b   :  { %v3785_v17 = vmax.f32 %v3673_v44, %v3729_v22  ;;  %v3672_v34 = vmax.f32 %v9591_v11, %v2803_v43  ;;  %v3728_v32 = vmax.f32 %v9592_v10, %v3433_v57 }
 0x38d   :  { %v3848_v13 = vadd.f32 %v8363_v24, %v3785_v17  ;;  %v3784_v19 = vmax.f32 %v3672_v34, %v3728_v32  ;;  %v1588_v45 = vpop.permute.xlu1 %1587  ;;  %v1586_v7 = vpop.permute.xlu0 %1585 }
 0x38e   :  { %v1995_v53 = vsel %vm1051_vm2, %v1939_v49, %v1586_v7  ;;  %v1996_v16 = vsel %vm1051_vm2, %v1940_v38, %v1588_v45 }
 0x38f   :  { %v3904_v41 = vmax.f32 %v3848_v13, 0.0  ;;  %v3847_v63 = vadd.f32 %v8363_v24, %v3784_v19 }
 0x391   :  { %3960 = vst.msk [vmem:[%s9006_s4 + $0x58] sm:$0xff] %vm994_vm1, %v3904_v41  ;;  %v3903_v55 = vmax.f32 %v3847_v63, 0.0  ;;  %v1254_v0 = vpop.permute.xlu1 %1253  ;;  %v1758_v18 = vpop.permute.xlu0 %1757 }
 0x392   :  { %v2051_v20 = vsel %vm1108_vm3, %v1995_v53, %v1758_v18  ;;  %v1885_v7 = vsel %vm937_vm0, %v8102_v42, %v1254_v0 }
 0x393   :  { %3959 = vst.msk [vmem:[%s9006_s4 + $0x50] sm:$0xff] %vm994_vm1, %v3903_v55  ;;  %4625 = vmatprep.mubr.msk.f32.mxu0 %vm2070_vm4, %v2051_v20  ;;  %4803 = vmatprep.mubr.msk.f32.mxu1 %vm2070_vm4, %v2051_v20 }
 0x394   :  { %v4582_v9 = vpop.f32.mrf.mxu0  ;;  %v4760_v44 = vpop.f32.mrf.mxu1 }
 0x395   :  { %v3675_v22 = vmax.f32 %v7638_v4, %v4582_v9  ;;  %v3731_v29 = vmax.f32 %v7640_v50, %v4760_v44  ;;  %v1256_v47 = vpop.permute.xlu1 %1255  ;;  %v1760_v21 = vpop.permute.xlu0 %1759 }
 0x396   :  { %v2052_v43 = vsel %vm1108_vm3, %v1996_v16, %v1760_v21  ;;  %v2813_v57 = vpop.f32.mrf.mxu0  ;;  %v3443_v17 = vpop.f32.mrf.mxu1  ;;  %v1886_v42 = vsel %vm937_vm0, %v8118_v33, %v1256_v47  ;;  %v9593_v16 = vld [vmem:[#allocation20_spill] sm:$0xff] }
 0x397   :  { %v3787_v11 = vmax.f32 %v3675_v22, %v3731_v29  ;;  %v3674_v34 = vmax.f32 %v7646_v14, %v2813_v57  ;;  %v3730_v10 = vmax.f32 %v7648_v12, %v3443_v17  ;;  %4626 = vmatmul.mubr.msk.f32.gmra.mxu0 %vm2070_vm4, %v2052_v43  ;;  %4804 = vmatmul.mubr.msk.f32.gmra.mxu1 %vm2070_vm4, %v2052_v43 }
 0x399   :  { %v3850_v28 = vadd.f32 %v8363_v24, %v3787_v11  ;;  %v3786_v4 = vmax.f32 %v3674_v34, %v3730_v10  ;;  %v1424_v32 = vpop.permute.xlu1 %1423  ;;  %v1422_v50 = vpop.permute.xlu0 %1421 }
 0x39a   :  { %v1941_v23 = vsel %vm994_vm1, %v1885_v7, %v1422_v50  ;;  %v9594_v7 = vld [vmem:[#allocation21_spill] sm:$0xff] }
 0x39b   :  { %v3906_v13 = vmax.f32 %v3850_v28, 0.0  ;;  %v3849_v19 = vadd.f32 %v8363_v24, %v3786_v4 }
 0x39d   :  { %3962 = vst.msk [vmem:[%s9006_s4 + $0x68] sm:$0xff] %vm994_vm1, %v3906_v13  ;;  %v3905_v14 = vmax.f32 %v3849_v19, 0.0  ;;  %v1592_v45 = vpop.permute.xlu1 %1591  ;;  %v1590_v12 = vpop.permute.xlu0 %1589 }
 0x39e   :  { %v1997_v49 = vsel %vm1051_vm2, %v1941_v23, %v1590_v12 }
 0x39f   :  { %3961 = vst.msk [vmem:[%s9006_s4 + $0x60] sm:$0xff] %vm994_vm1, %v3905_v14 }
 0x3a0   :  { %v4585_v41 = vpop.f32.mrf.mxu0  ;;  %v4763_v63 = vpop.f32.mrf.mxu1 }
 0x3a1   :  { %v3677_v55 = vmax.f32 %v7658_v2, %v4585_v41  ;;  %v3733_v53 = vmax.f32 %v7660_v27, %v4763_v63  ;;  %v1258_v18 = vpop.permute.xlu1 %1257  ;;  %v1762_v20 = vpop.permute.xlu0 %1761  ;;  %v1942_v2 = vsel %vm994_vm1, %v1886_v42, %v1424_v32  ;;  %v9595_v41 = vld [vmem:[#allocation52_spill] sm:$0xff] }
 0x3a2   :  { %v2053_v0 = vsel %vm1108_vm3, %v1997_v49, %v1762_v20  ;;  %v2823_v40 = vpop.f32.mrf.mxu0  ;;  %v3453_v38 = vpop.f32.mrf.mxu1  ;;  %v1998_v27 = vsel %vm1051_vm2, %v1942_v2, %v1592_v45  ;;  %v1887_v45 = vsel %vm937_vm0, %v8166_v37, %v1258_v18 }
 0x3a3   :  { %v3789_v9 = vmax.f32 %v3677_v55, %v3733_v53  ;;  %v3676_v44 = vmax.f32 %v7670_v61, %v2823_v40  ;;  %v3732_v22 = vmax.f32 %v9593_v16, %v3453_v38  ;;  %4628 = vmatprep.mubr.msk.f32.mxu0 %vm2070_vm4, %v2053_v0  ;;  %4806 = vmatprep.mubr.msk.f32.mxu1 %vm2070_vm4, %v2053_v0 }
 0x3a5   :  { %v3852_v29 = vadd.f32 %v8363_v24, %v3789_v9  ;;  %v3788_v33 = vmax.f32 %v3676_v44, %v3732_v22  ;;  %v1260_v47 = vpop.permute.xlu1 %1259  ;;  %v1764_v21 = vpop.permute.xlu0 %1763 }
 0x3a6   :  { %v2054_v43 = vsel %vm1108_vm3, %v1998_v27, %v1764_v21  ;;  %v1888_v0 = vsel %vm937_vm0, %v8178_v62, %v1260_v47  ;;  %v9596_v27 = vld [vmem:[#allocation53_spill] sm:$0xff] }
 0x3a7   :  { %v3908_v57 = vmax.f32 %v3852_v29, 0.0  ;;  %v3851_v61 = vadd.f32 %v8363_v24, %v3788_v33  ;;  %4629 = vmatmul.mubr.msk.f32.gmra.mxu0 %vm2070_vm4, %v2054_v43  ;;  %4807 = vmatmul.mubr.msk.f32.gmra.mxu1 %vm2070_vm4, %v2054_v43  ;;  %v9597_v33 = vld [vmem:[#allocation111_spill] sm:$0xff] }
 0x3a9   :  { %3964 = vst.msk [vmem:[%s9006_s4 + $0x78] sm:$0xff] %vm994_vm1, %v3908_v57  ;;  %v3907_v17 = vmax.f32 %v3851_v61, 0.0  ;;  %v1428_v11 = vpop.permute.xlu1 %1427  ;;  %v1426_v34 = vpop.permute.xlu0 %1425 }
 0x3aa   :  { %v1943_v49 = vsel %vm994_vm1, %v1887_v45, %v1426_v34  ;;  %v1944_v40 = vsel %vm994_vm1, %v1888_v0, %v1428_v11 }
 0x3ab   :  { %3963 = vst.msk [vmem:[%s9006_s4 + $0x70] sm:$0xff] %vm994_vm1, %v3907_v17 }
 0x3ac   :  { %v4588_v10 = vpop.f32.mrf.mxu0  ;;  %v4766_v28 = vpop.f32.mrf.mxu1 }
 0x3ad   :  { %v3679_v4 = vmax.f32 %v7686_v26, %v4588_v10  ;;  %v3735_v32 = vmax.f32 %v7688_v8, %v4766_v28  ;;  %v1596_v50 = vpop.permute.xlu1 %1595  ;;  %v1594_v13 = vpop.permute.xlu0 %1593 }
 0x3ae   :  { %v2833_v19 = vpop.f32.mrf.mxu0  ;;  %v3463_v14 = vpop.f32.mrf.mxu1  ;;  %v1999_v26 = vsel %vm1051_vm2, %v1943_v49, %v1594_v13  ;;  %v2000_v38 = vsel %vm1051_vm2, %v1944_v40, %v1596_v50  ;;  %v9599_v40 = vld [vmem:[#allocation24_spill] sm:$0xff] }
 0x3af   :  { %v3791_v12 = vmax.f32 %v3679_v4, %v3735_v32  ;;  %v3678_v23 = vmax.f32 %v9594_v7, %v2833_v19  ;;  %v3734_v63 = vmax.f32 %v9595_v41, %v3463_v14 }
 0x3b1   :  { %v3854_v55 = vadd.f32 %v8363_v24, %v3791_v12  ;;  %v3790_v53 = vmax.f32 %v3678_v23, %v3734_v63  ;;  %v1262_v8 = vpop.permute.xlu1 %1261  ;;  %v1766_v20 = vpop.permute.xlu0 %1765 }
 0x3b2   :  { %v2055_v42 = vsel %vm1108_vm3, %v1999_v26, %v1766_v20  ;;  %v1889_v50 = vsel %vm937_vm0, %v8226_v54, %v1262_v8 }
 0x3b3   :  { %v3910_v37 = vmax.f32 %v3854_v55, 0.0  ;;  %v3853_v18 = vadd.f32 %v8363_v24, %v3790_v53  ;;  %4631 = vmatprep.mubr.msk.f32.mxu0 %vm2070_vm4, %v2055_v42  ;;  %4809 = vmatprep.mubr.msk.f32.mxu1 %vm2070_vm4, %v2055_v42 }
 0x3b5   :  { %3966 = vst.msk [vmem:[%s9006_s4 + $0x88] sm:$0xff] %vm994_vm1, %v3910_v37  ;;  %v3909_v9 = vmax.f32 %v3853_v18, 0.0  ;;  %v1264_v44 = vpop.permute.xlu1 %1263  ;;  %v1768_v16 = vpop.permute.xlu0 %1767  ;;  %v9598_v37 = vld [vmem:[#allocation112_spill] sm:$0xff] }
 0x3b6   :  { %v2056_v62 = vsel %vm1108_vm3, %v2000_v38, %v1768_v16  ;;  %v1890_v54 = vsel %vm937_vm0, %v8254_v60, %v1264_v44 }
 0x3b7   :  { %3965 = vst.msk [vmem:[%s9006_s4 + $0x80] sm:$0xff] %vm994_vm1, %v3909_v9  ;;  %4632 = vmatmul.mubr.msk.f32.gmra.mxu0 %vm2070_vm4, %v2056_v62  ;;  %4810 = vmatmul.mubr.msk.f32.gmra.mxu1 %vm2070_vm4, %v2056_v62 }
 0x3b8   :  { %v4591_v22 = vpop.f32.mrf.mxu0  ;;  %v4769_v2 = vpop.f32.mrf.mxu1 }
 0x3b9   :  { %v3681_v29 = vmax.f32 %v9596_v27, %v4591_v22  ;;  %v3737_v47 = vmax.f32 %v9597_v33, %v4769_v2  ;;  %v1432_v21 = vpop.permute.xlu1 %1431  ;;  %v1430_v43 = vpop.permute.xlu0 %1429 }
 0x3ba   :  { %v2843_v57 = vpop.f32.mrf.mxu0  ;;  %v3473_v61 = vpop.f32.mrf.mxu1  ;;  %v1945_v14 = vsel %vm994_vm1, %v1889_v50, %v1430_v43  ;;  %v1946_v23 = vsel %vm994_vm1, %v1890_v54, %v1432_v21 }
 0x3bb   :  { %v3793_v17 = vmax.f32 %v3681_v29, %v3737_v47  ;;  %v3680_v11 = vmax.f32 %v7744_v25, %v2843_v57  ;;  %v3736_v34 = vmax.f32 %v7746_v31, %v3473_v61 }
 0x3bd   :  { %v3856_v10 = vadd.f32 %v8363_v24, %v3793_v17  ;;  %v3792_v28 = vmax.f32 %v3680_v11, %v3736_v34  ;;  %v1600_v4 = vpop.permute.xlu1 %1599  ;;  %v1598_v32 = vpop.permute.xlu0 %1597 }
 0x3be   :  { %v2001_v31 = vsel %vm1051_vm2, %v1945_v14, %v1598_v32  ;;  %v2002_v49 = vsel %vm1051_vm2, %v1946_v23, %v1600_v4  ;;  %v9600_v23 = vld [vmem:[#allocation25_spill] sm:$0xff] }
 0x3bf   :  { %v3912_v13 = vmax.f32 %v3856_v10, 0.0  ;;  %v3855_v19 = vadd.f32 %v8363_v24, %v3792_v28 }
 0x3c1   :  { %3968 = vst.msk [vmem:[%s9006_s4 + $0x98] sm:$0xff] %vm994_vm1, %v3912_v13  ;;  %v3911_v25 = vmax.f32 %v3855_v19, 0.0  ;;  %v1266_v45 = vpop.permute.xlu1 %1265  ;;  %v1770_v12 = vpop.permute.xlu0 %1769 }
 0x3c2   :  { %v2057_v7 = vsel %vm1108_vm3, %v2001_v31, %v1770_v12  ;;  %v1891_v29 = vsel %vm937_vm0, %v8302_v52, %v1266_v45 }
 0x3c3   :  { %3967 = vst.msk [vmem:[%s9006_s4 + $0x90] sm:$0xff] %vm994_vm1, %v3911_v25  ;;  %4634 = vmatprep.mubr.msk.f32.mxu0 %vm2070_vm4, %v2057_v7  ;;  %4812 = vmatprep.mubr.msk.f32.mxu1 %vm2070_vm4, %v2057_v7 }
 0x3c4   :  { %v4594_v41 = vpop.f32.mrf.mxu0  ;;  %v4772_v63 = vpop.f32.mrf.mxu1 }
 0x3c5   :  { %v3683_v55 = vmax.f32 %v7758_v56, %v4594_v41  ;;  %v3739_v26 = vmax.f32 %v7760_v15, %v4772_v63  ;;  %v1268_v60 = vpop.permute.xlu1 %1267  ;;  %v1772_v53 = vpop.permute.xlu0 %1771  ;;  %v9601_v63 = vld [vmem:[#allocation55_spill] sm:$0xff] }
 0x3c6   :  { %v2058_v8 = vsel %vm1108_vm3, %v2002_v49, %v1772_v53  ;;  %v2853_v20 = vpop.f32.mrf.mxu0  ;;  %v3483_v42 = vpop.f32.mrf.mxu1  ;;  %v1892_v52 = vsel %vm937_vm0, %v8318_v39, %v1268_v60 }
 0x3c7   :  { %v3795_v0 = vmax.f32 %v3683_v55, %v3739_v26  ;;  %v3682_v18 = vmax.f32 %v9598_v37, %v2853_v20  ;;  %v3738_v38 = vmax.f32 %v9599_v40, %v3483_v42  ;;  %4635 = vmatmul.mubr.msk.f32.gmra.mxu0 %vm2070_vm4, %v2058_v8  ;;  %4813 = vmatmul.mubr.msk.f32.gmra.mxu1 %vm2070_vm4, %v2058_v8 }
 0x3c9   :  { %v3858_v9 = vadd.f32 %v8363_v24, %v3795_v0  ;;  %v3794_v56 = vmax.f32 %v3682_v18, %v3738_v38  ;;  %v1436_v44 = vpop.permute.xlu1 %1435  ;;  %v1434_v15 = vpop.permute.xlu0 %1433  ;;  %v9602_v0 = vld [vmem:[#allocation56_spill] sm:$0xff] }
 0x3ca   :  { %v1947_v33 = vsel %vm994_vm1, %v1891_v29, %v1434_v15 }
 0x3cb   :  { %v3914_v16 = vmax.f32 %v3858_v9, 0.0  ;;  %v3857_v62 = vadd.f32 %v8363_v24, %v3794_v56 }
 0x3cd   :  { %3970 = vst.msk [vmem:[%s9006_s4 + $0xa8] sm:$0xff] %vm994_vm1, %v3914_v16  ;;  %v3913_v22 = vmax.f32 %v3857_v62, 0.0  ;;  %v1604_v2 = vpop.permute.xlu1 %1603  ;;  %v1602_v27 = vpop.permute.xlu0 %1601 }
 0x3ce   :  { %v2003_v43 = vsel %vm1051_vm2, %v1947_v33, %v1602_v27 }
 0x3cf   :  { %3969 = vst.msk [vmem:[%s9006_s4 + $0xa0] sm:$0xff] %vm994_vm1, %v3913_v22 }
 0x3d0   :  { %v4597_v47 = vpop.f32.mrf.mxu0  ;;  %v4775_v21 = vpop.f32.mrf.mxu1 }
 0x3d1   :  { %v3685_v57 = vmax.f32 %v7794_v35, %v4597_v47  ;;  %v3741_v61 = vmax.f32 %v7796_v46, %v4775_v21  ;;  %v1270_v17 = vpop.permute.xlu1 %1269  ;;  %v1774_v11 = vpop.permute.xlu0 %1773  ;;  %v1948_v46 = vsel %vm994_vm1, %v1892_v52, %v1436_v44  ;;  %v9603_v21 = vld [vmem:[#allocation113_spill] sm:$0xff] }
 0x3d2   :  { %v2059_v34 = vsel %vm1108_vm3, %v2003_v43, %v1774_v11  ;;  %v2863_v10 = vpop.f32.mrf.mxu0  ;;  %v3493_v28 = vpop.f32.mrf.mxu1  ;;  %v2004_v35 = vsel %vm1051_vm2, %v1948_v46, %v1604_v2  ;;  %v1893_v8 = vsel %vm937_vm0, %v8369_v36, %v1270_v17 }
 0x3d3   :  { %v3797_v4 = vmax.f32 %v3685_v57, %v3741_v61  ;;  %v3684_v32 = vmax.f32 %v7808_v59, %v2863_v10  ;;  %v3740_v50 = vmax.f32 %v7810_v51, %v3493_v28  ;;  %4637 = vmatprep.mubr.msk.f32.mxu0 %vm2070_vm4, %v2059_v34  ;;  %4815 = vmatprep.mubr.msk.f32.mxu1 %vm2070_vm4, %v2059_v34  ;;  %v9604_v57 = vld [vmem:[#allocation114_spill] sm:$0xff]  ;;  %v9605_v28 = vld [vmem:[#allocation28_spill] sm:$0xff] }
 0x3d5   :  { %v3860_v13 = vadd.f32 %v8363_v24, %v3797_v4  ;;  %v3796_v39 = vmax.f32 %v3684_v32, %v3740_v50  ;;  %v1272_v19 = vpop.permute.xlu1 %1271  ;;  %v1776_v14 = vpop.permute.xlu0 %1775  ;;  %v9606_v32 = vld [vmem:[#allocation29_spill] sm:$0xff] }
 0x3d6   :  { %v2060_v25 = vsel %vm1108_vm3, %v2004_v35, %v1776_v14  ;;  %v1894_v16 = vsel %vm937_vm0, %v8380_v48, %v1272_v19 }
 0x3d7   :  { %v3916_v31 = vmax.f32 %v3860_v13, 0.0  ;;  %v3859_v59 = vadd.f32 %v8363_v24, %v3796_v39  ;;  %4638 = vmatmul.mubr.msk.f32.gmra.mxu0 %vm2070_vm4, %v2060_v25  ;;  %4816 = vmatmul.mubr.msk.f32.gmra.mxu1 %vm2070_vm4, %v2060_v25 }
 0x3d9   :  { %3972 = vst.msk [vmem:[%s9006_s4 + $0xb8] sm:$0xff] %vm994_vm1, %v3916_v31  ;;  %v3915_v51 = vmax.f32 %v3859_v59, 0.0  ;;  %v1440_v45 = vpop.permute.xlu1 %1439  ;;  %v1438_v12 = vpop.permute.xlu0 %1437 }
 0x3da   :  { %v1949_v18 = vsel %vm994_vm1, %v1893_v8, %v1438_v12 }
 0x3db   :  { %3971 = vst.msk [vmem:[%s9006_s4 + $0xb0] sm:$0xff] %vm994_vm1, %v3915_v51 }
 0x3dc   :  { %v4600_v7 = vpop.f32.mrf.mxu0  ;;  %v4778_v54 = vpop.f32.mrf.mxu1 }
 0x3dd   :  { %v3687_v41 = vmax.f32 %v9600_v23, %v4600_v7  ;;  %v3743_v49 = vmax.f32 %v9601_v63, %v4778_v54  ;;  %v1608_v55 = vpop.permute.xlu1 %1607  ;;  %v1606_v26 = vpop.permute.xlu0 %1605 }
 0x3de   :  { %v2873_v60 = vpop.f32.mrf.mxu0  ;;  %v3503_v53 = vpop.f32.mrf.mxu1  ;;  %v2005_v38 = vsel %vm1051_vm2, %v1949_v18, %v1606_v26  ;;  %v9608_v26 = vld [vmem:[#allocation60_spill] sm:$0xff] }
 0x3df   :  { %v3799_v20 = vmax.f32 %v3687_v41, %v3743_v49  ;;  %v3686_v42 = vmax.f32 %v7844_v30, %v2873_v60  ;;  %v3742_v37 = vmax.f32 %v9602_v0, %v3503_v53  ;;  %v1950_v30 = vsel %vm994_vm1, %v1894_v16, %v1440_v45  ;;  %v9607_v49 = vld [vmem:[#allocation59_spill] sm:$0xff] }
 0x3e0   :  { %v2006_v22 = vsel %vm1051_vm2, %v1950_v30, %v1608_v55  ;;  %v9612_v30 = vld [vmem:[#allocation33_spill] sm:$0xff] }
 0x3e1   :  { %v3862_v40 = vadd.f32 %v8363_v24, %v3799_v20  ;;  %v3798_v9 = vmax.f32 %v3686_v42, %v3742_v37  ;;  %v1274_v56 = vpop.permute.xlu1 %1273  ;;  %v1778_v44 = vpop.permute.xlu0 %1777  ;;  %v9609_v42 = vld [vmem:[#allocation115_spill] sm:$0xff]  ;;  %v9610_v37 = vld [vmem:[#allocation116_spill] sm:$0xff] }
 0x3e2   :  { %v2061_v15 = vsel %vm1108_vm3, %v2005_v38, %v1778_v44  ;;  %v1895_v19 = vsel %vm937_vm0, %v8430_v6, %v1274_v56 }
 0x3e3   :  { %v3918_v36 = vmax.f32 %v3862_v40, 0.0  ;;  %v3861_v62 = vadd.f32 %v8363_v24, %v3798_v9  ;;  %4640 = vmatprep.mubr.msk.f32.mxu0 %vm2070_vm4, %v2061_v15  ;;  %4818 = vmatprep.mubr.msk.f32.mxu1 %vm2070_vm4, %v2061_v15 }
 0x3e5   :  { %3974 = vst.msk [vmem:[%s9006_s4 + $0xc8] sm:$0xff] %vm994_vm1, %v3918_v36  ;;  %v3917_v2 = vmax.f32 %v3861_v62, 0.0  ;;  %v1276_v27 = vpop.permute.xlu1 %1275  ;;  %v1780_v29 = vpop.permute.xlu0 %1779  ;;  %v9611_v36 = vld [vmem:[#allocation32_spill] sm:$0xff] }
 0x3e6   :  { %v2062_v48 = vsel %vm1108_vm3, %v2006_v22, %v1780_v29  ;;  %v1896_v14 = vsel %vm937_vm0, %v8449_v5, %v1276_v27 }
 0x3e7   :  { %3973 = vst.msk [vmem:[%s9006_s4 + $0xc0] sm:$0xff] %vm994_vm1, %v3917_v2  ;;  %4641 = vmatmul.mubr.msk.f32.gmra.mxu0 %vm2070_vm4, %v2062_v48  ;;  %4819 = vmatmul.mubr.msk.f32.gmra.mxu1 %vm2070_vm4, %v2062_v48  ;;  %v9613_v48 = vld [vmem:[#allocation63_spill] sm:$0xff] }
 0x3e8   :  { %v4603_v33 = vpop.f32.mrf.mxu0  ;;  %v4781_v47 = vpop.f32.mrf.mxu1 }
 0x3e9   :  { %v3689_v43 = vmax.f32 %v9603_v21, %v4603_v33  ;;  %v3745_v61 = vmax.f32 %v9604_v57, %v4781_v47  ;;  %v1444_v17 = vpop.permute.xlu1 %1443  ;;  %v1442_v11 = vpop.permute.xlu0 %1441  ;;  %v9614_v47 = vld [vmem:[#allocation64_spill] sm:$0xff] }
 0x3ea   :  { %v2883_v52 = vpop.f32.mrf.mxu0  ;;  %v3513_v34 = vpop.f32.mrf.mxu1  ;;  %v1952_v59 = vsel %vm994_vm1, %v1896_v14, %v1444_v17  ;;  %v1951_v51 = vsel %vm994_vm1, %v1895_v19, %v1442_v11  ;;  %v9618_v19 = vld [vmem:[#allocation37_spill] sm:$0xff] }
 0x3eb   :  { %v3801_v10 = vmax.f32 %v3689_v43, %v3745_v61  ;;  %v3688_v4 = vmax.f32 %v9605_v28, %v2883_v52  ;;  %v3744_v50 = vmax.f32 %v9606_v32, %v3513_v34 }
 0x3ed   :  { %v3864_v46 = vadd.f32 %v8363_v24, %v3801_v10  ;;  %v3800_v35 = vmax.f32 %v3688_v4, %v3744_v50  ;;  %v1612_v13 = vpop.permute.xlu1 %1611  ;;  %v1610_v39 = vpop.permute.xlu0 %1609  ;;  %v9615_v10 = vld [vmem:[#allocation117_spill] sm:$0xff]  ;;  %v9616_v4 = vld [vmem:[#allocation118_spill] sm:$0xff] }
 0x3ee   :  { %v2008_v12 = vsel %vm1051_vm2, %v1952_v59, %v1612_v13  ;;  %v2007_v6 = vsel %vm1051_vm2, %v1951_v51, %v1610_v39  ;;  %v9617_v13 = vld [vmem:[#allocation36_spill] sm:$0xff] }
 0x3ef   :  { %v3920_v25 = vmax.f32 %v3864_v46, 0.0  ;;  %v3863_v31 = vadd.f32 %v8363_v24, %v3800_v35 }
 0x3f1   :  { %3976 = vst.msk [vmem:[%s9006_s4 + $0xd8] sm:$0xff] %vm994_vm1, %v3920_v25  ;;  %v3919_v45 = vmax.f32 %v3863_v31, 0.0  ;;  %v1784_v7 = vpop.permute.xlu1 %1783  ;;  %v1782_v54 = vpop.permute.xlu0 %1781 }
 0x3f2   :  { %v2064_v5 = vsel %vm1108_vm3, %v2008_v12, %v1784_v7  ;;  %v2063_v23 = vsel %vm1108_vm3, %v2007_v6, %v1782_v54  ;;  %v9619_v7 = vld [vmem:[#allocation67_spill] sm:$0xff] }
 0x3f3   :  { %3975 = vst.msk [vmem:[%s9006_s4 + $0xd0] sm:$0xff] %vm994_vm1, %v3919_v45  ;;  %4643 = vmatprep.mubr.msk.f32.mxu0 %vm2070_vm4, %v2063_v23  ;;  %4821 = vmatprep.mubr.msk.f32.mxu1 %vm2070_vm4, %v2063_v23 }
 0x3f4   :  { %v4606_v41 = vpop.f32.mrf.mxu0  ;;  %4644 = vmatmul.mubr.msk.f32.gmra.mxu0 %vm2070_vm4, %v2064_v5  ;;  %v4784_v63 = vpop.f32.mrf.mxu1  ;;  %4822 = vmatmul.mubr.msk.f32.gmra.mxu1 %vm2070_vm4, %v2064_v5  ;;  %v9620_v5 = vld [vmem:[#allocation68_spill] sm:$0xff] }
 0x3f5   :  { %v3691_v55 = vmax.f32 %v9607_v49, %v4606_v41  ;;  %v3747_v60 = vmax.f32 %v9608_v26, %v4784_v63  ;;  %v9621_v49 = vld [vmem:[#allocation119_spill] sm:$0xff]  ;;  %v9622_v26 = vld [vmem:[#allocation120_spill] sm:$0xff] }
 0x3f6   :  { %v2893_v53 = vpop.f32.mrf.mxu0  ;;  %v3523_v8 = vpop.f32.mrf.mxu1 }
 0x3f7   :  { %v3803_v20 = vmax.f32 %v3691_v55, %v3747_v60  ;;  %v3690_v0 = vmax.f32 %v9609_v42, %v2893_v53  ;;  %v3746_v18 = vmax.f32 %v9610_v37, %v3523_v8  ;;  %v8850_v53 = vld [vmem:[%s9005_s3] ss:$0 sm:$0xff] }
 0x3f9   :  { %v3866_v40 = vadd.f32 %v8363_v24, %v3803_v20  ;;  %v3802_v38 = vmax.f32 %v3690_v0, %v3746_v18 }
 0x3fb   :  { %v3922_v9 = vmax.f32 %v3866_v40, 0.0  ;;  %v3865_v56 = vadd.f32 %v8363_v24, %v3802_v38  ;;  %v9623_v38 = vld [vmem:[#allocation40_spill] sm:$0xff] }
 0x3fd   :  { %3978 = vst.msk [vmem:[%s9006_s4 + $0xe8] sm:$0xff] %vm994_vm1, %v3922_v9  ;;  %v3921_v44 = vmax.f32 %v3865_v56, 0.0  ;;  %v9624_v56 = vld [vmem:[#allocation41_spill] sm:$0xff] }
 0x3ff   :  { %3977 = vst.msk [vmem:[%s9006_s4 + $0xe0] sm:$0xff] %vm994_vm1, %v3921_v44 }
 0x400   :  { %v4609_v15 = vpop.f32.mrf.mxu0  ;;  %v4787_v16 = vpop.f32.mrf.mxu1 }
 0x401   :  { %v3693_v62 = vmax.f32 %v9611_v36, %v4609_v15  ;;  %v3749_v22 = vmax.f32 %v9612_v30, %v4787_v16 }
 0x402   :  { %v2903_v2 = vpop.f32.mrf.mxu0  ;;  %v3533_v27 = vpop.f32.mrf.mxu1 }
 0x403   :  { %v3805_v29 = vmax.f32 %v3693_v62, %v3749_v22  ;;  %v3692_v33 = vmax.f32 %v9613_v48, %v2903_v2  ;;  %v3748_v21 = vmax.f32 %v9614_v47, %v3533_v27  ;;  %v9625_v62 = vld [vmem:[#allocation71_spill] sm:$0xff]  ;;  %v9626_v22 = vld [vmem:[#allocation72_spill] sm:$0xff] }
 0x405   :  { %v3868_v43 = vadd.f32 %v8363_v24, %v3805_v29  ;;  %v3804_v57 = vmax.f32 %v3692_v33, %v3748_v21 }
 0x407   :  { %v3924_v61 = vmax.f32 %v3868_v43, 0.0  ;;  %v3867_v17 = vadd.f32 %v8363_v24, %v3804_v57  ;;  %v9627_v57 = vld [vmem:[#allocation121_spill] sm:$0xff] }
 0x409   :  { %3980 = vst.msk [vmem:[%s9006_s4 + $0xf8] sm:$0xff] %vm994_vm1, %v3924_v61  ;;  %v3923_v11 = vmax.f32 %v3867_v17, 0.0  ;;  %v9628_v17 = vld [vmem:[#allocation122_spill] sm:$0xff] }
 0x40b   :  { %3979 = vst.msk [vmem:[%s9006_s4 + $0xf0] sm:$0xff] %vm994_vm1, %v3923_v11 }
 0x40c   :  { %v4612_v52 = vpop.f32.mrf.mxu0  ;;  %v4790_v34 = vpop.f32.mrf.mxu1 }
 0x40d   :  { %v3695_v28 = vmax.f32 %v9615_v10, %v4612_v52  ;;  %v3751_v32 = vmax.f32 %v9616_v4, %v4790_v34 }
 0x40e   :  { %v2913_v50 = vpop.f32.mrf.mxu0  ;;  %v3543_v46 = vpop.f32.mrf.mxu1 }
 0x40f   :  { %v3807_v35 = vmax.f32 %v3695_v28, %v3751_v32  ;;  %v3694_v39 = vmax.f32 %v9617_v13, %v2913_v50  ;;  %v3750_v14 = vmax.f32 %v9618_v19, %v3543_v46  ;;  %v9629_v28 = vld [vmem:[#allocation44_spill] sm:$0xff]  ;;  %v9630_v32 = vld [vmem:[#allocation45_spill] sm:$0xff] }
 0x411   :  { %v3870_v25 = vadd.f32 %v8363_v24, %v3807_v35  ;;  %v3806_v31 = vmax.f32 %v3694_v39, %v3750_v14 }
 0x413   :  { %v3926_v59 = vmax.f32 %v3870_v25, 0.0  ;;  %v3869_v51 = vadd.f32 %v8363_v24, %v3806_v31  ;;  %v9631_v31 = vld [vmem:[#allocation75_spill] sm:$0xff] }
 0x415   :  { %3982 = vst.msk [vmem:[%s9006_s4 + $0x108] sm:$0xff] %vm994_vm1, %v3926_v59  ;;  %v3925_v45 = vmax.f32 %v3869_v51, 0.0  ;;  %v9632_v51 = vld [vmem:[#allocation76_spill] sm:$0xff] }
 0x417   :  { %3981 = vst.msk [vmem:[%s9006_s4 + $0x100] sm:$0xff] %vm994_vm1, %v3925_v45 }
 0x418   :  { %v4615_v12 = vpop.f32.mrf.mxu0  ;;  %v4793_v6 = vpop.f32.mrf.mxu1 }
 0x419   :  { %v3697_v54 = vmax.f32 %v9619_v7, %v4615_v12  ;;  %v3753_v23 = vmax.f32 %v9620_v5, %v4793_v6 }
 0x41a   :  { %v2923_v41 = vpop.f32.mrf.mxu0  ;;  %v3553_v63 = vpop.f32.mrf.mxu1 }
 0x41b   :  { %v3809_v24 = vmax.f32 %v3697_v54, %v3753_v23  ;;  %v3696_v55 = vmax.f32 %v9621_v49, %v2923_v41  ;;  %v3752_v60 = vmax.f32 %v9622_v26, %v3553_v63  ;;  %v9633_v54 = vld [vmem:[#allocation123_spill] sm:$0xff]  ;;  %v9634_v23 = vld [vmem:[#allocation124_spill] sm:$0xff] }
 0x41d   :  { %v3872_v8 = vadd.f32 %v8850_v53, %v3809_v24  ;;  %v3808_v20 = vmax.f32 %v3696_v55, %v3752_v60 }
 0x41f   :  { %v3928_v42 = vmax.f32 %v3872_v8, 0.0  ;;  %v3871_v0 = vadd.f32 %v8850_v53, %v3808_v20  ;;  %v9635_v20 = vld [vmem:[#allocation48_spill] sm:$0xff] }
 0x421   :  { %3984 = vst.msk [vmem:[%s9006_s4 + $0x118] sm:$0xff] %vm994_vm1, %v3928_v42  ;;  %v3927_v37 = vmax.f32 %v3871_v0, 0.0  ;;  %v9636_v0 = vld [vmem:[#allocation49_spill] sm:$0xff] }
 0x423   :  { %3983 = vst.msk [vmem:[%s9006_s4 + $0x110] sm:$0xff] %vm994_vm1, %v3927_v37 }
 0x427   :  { %v4618_v18 = vpop.f32.mrf.mxu0  ;;  %v4796_v40 = vpop.f32.mrf.mxu1 }
 0x428   :  { %v3699_v9 = vmax.f32 %v9623_v38, %v4618_v18  ;;  %v3755_v44 = vmax.f32 %v9624_v56, %v4796_v40 }
 0x429   :  { %v2933_v15 = vpop.f32.mrf.mxu0  ;;  %v3563_v16 = vpop.f32.mrf.mxu1 }
 0x42a   :  { %v3811_v36 = vmax.f32 %v3699_v9, %v3755_v44  ;;  %v3698_v30 = vmax.f32 %v9625_v62, %v2933_v15  ;;  %v3754_v2 = vmax.f32 %v9626_v22, %v3563_v16  ;;  %v9637_v9 = vld [vmem:[#allocation79_spill] sm:$0xff]  ;;  %v9638_v44 = vld [vmem:[#allocation80_spill] sm:$0xff] }
 0x42c   :  { %v3874_v27 = vadd.f32 %v8850_v53, %v3811_v36  ;;  %v3810_v29 = vmax.f32 %v3698_v30, %v3754_v2 }
 0x42e   :  { %v3930_v48 = vmax.f32 %v3874_v27, 0.0  ;;  %v3873_v33 = vadd.f32 %v8850_v53, %v3810_v29  ;;  %v9639_v29 = vld [vmem:[#allocation125_spill] sm:$0xff] }
 0x430   :  { %3986 = vst.msk [vmem:[%s9006_s4 + $0x128] sm:$0xff] %vm994_vm1, %v3930_v48  ;;  %v3929_v47 = vmax.f32 %v3873_v33, 0.0  ;;  %v9640_v33 = vld [vmem:[#allocation126_spill] sm:$0xff] }
 0x432   :  { %3985 = vst.msk [vmem:[%s9006_s4 + $0x120] sm:$0xff] %vm994_vm1, %v3929_v47 }
 0x437   :  { %v4621_v21 = vpop.f32.mrf.mxu0  ;;  %v4799_v43 = vpop.f32.mrf.mxu1 }
 0x438   :  { %v3701_v61 = vmax.f32 %v9627_v57, %v4621_v21  ;;  %v3757_v11 = vmax.f32 %v9628_v17, %v4799_v43 }
 0x439   :  { %v2943_v52 = vpop.f32.mrf.mxu0  ;;  %v3573_v34 = vpop.f32.mrf.mxu1 }
 0x43a   :  { %v3813_v10 = vmax.f32 %v3701_v61, %v3757_v11  ;;  %v3700_v4 = vmax.f32 %v9629_v28, %v2943_v52  ;;  %v3756_v50 = vmax.f32 %v9630_v32, %v3573_v34  ;;  %v9641_v61 = vld [vmem:[#allocation54_spill] sm:$0xff]  ;;  %v9642_v11 = vld [vmem:[#allocation57_spill] sm:$0xff] }
 0x43c   :  { %v3876_v46 = vadd.f32 %v8850_v53, %v3813_v10  ;;  %v3812_v35 = vmax.f32 %v3700_v4, %v3756_v50 }
 0x43e   :  { %v3932_v13 = vmax.f32 %v3876_v46, 0.0  ;;  %v3875_v39 = vadd.f32 %v8850_v53, %v3812_v35  ;;  %v9643_v35 = vld [vmem:[#allocation83_spill] sm:$0xff] }
 0x440   :  { %3988 = vst.msk [vmem:[%s9006_s4 + $0x138] sm:$0xff] %vm994_vm1, %v3932_v13  ;;  %v3931_v19 = vmax.f32 %v3875_v39, 0.0  ;;  %v9644_v39 = vld [vmem:[#allocation84_spill] sm:$0xff] }
 0x442   :  { %3987 = vst.msk [vmem:[%s9006_s4 + $0x130] sm:$0xff] %vm994_vm1, %v3931_v19 }
 0x447   :  { %v4624_v14 = vpop.f32.mrf.mxu0  ;;  %v4802_v25 = vpop.f32.mrf.mxu1 }
 0x448   :  { %v3703_v59 = vmax.f32 %v9631_v31, %v4624_v14  ;;  %v3759_v45 = vmax.f32 %v9632_v51, %v4802_v25 }
 0x449   :  { %v2953_v12 = vpop.f32.mrf.mxu0  ;;  %v3583_v6 = vpop.f32.mrf.mxu1 }
 0x44a   :  { %v3815_v7 = vmax.f32 %v3703_v59, %v3759_v45  ;;  %v3702_v5 = vmax.f32 %v9633_v54, %v2953_v12  ;;  %v3758_v41 = vmax.f32 %v9634_v23, %v3583_v6  ;;  %v9645_v59 = vld [vmem:[#allocation127_spill] sm:$0xff]  ;;  %v9646_v45 = vld [vmem:[#allocation128_spill] sm:$0xff] }
 0x44c   :  { %v3878_v63 = vadd.f32 %v8850_v53, %v3815_v7  ;;  %v3814_v24 = vmax.f32 %v3702_v5, %v3758_v41 }
 0x44e   :  { %v3934_v49 = vmax.f32 %v3878_v63, 0.0  ;;  %v3877_v55 = vadd.f32 %v8850_v53, %v3814_v24  ;;  %v9647_v24 = vld [vmem:[#allocation58_spill] sm:$0xff] }
 0x450   :  { %3990 = vst.msk [vmem:[%s9006_s4 + $0x148] sm:$0xff] %vm994_vm1, %v3934_v49  ;;  %v3933_v26 = vmax.f32 %v3877_v55, 0.0  ;;  %v9648_v55 = vld [vmem:[#allocation61_spill] sm:$0xff] }
 0x452   :  { %3989 = vst.msk [vmem:[%s9006_s4 + $0x140] sm:$0xff] %vm994_vm1, %v3933_v26 }
 0x457   :  { %v4627_v60 = vpop.f32.mrf.mxu0  ;;  %v4805_v8 = vpop.f32.mrf.mxu1 }
 0x458   :  { %v3705_v42 = vmax.f32 %v9635_v20, %v4627_v60  ;;  %v3761_v37 = vmax.f32 %v9636_v0, %v4805_v8 }
 0x459   :  { %v2963_v18 = vpop.f32.mrf.mxu0  ;;  %v3593_v40 = vpop.f32.mrf.mxu1 }
 0x45a   :  { %v3817_v38 = vmax.f32 %v3705_v42, %v3761_v37  ;;  %v3704_v56 = vmax.f32 %v9637_v9, %v2963_v18  ;;  %v3760_v15 = vmax.f32 %v9638_v44, %v3593_v40  ;;  %v9649_v42 = vld [vmem:[#allocation87_spill] sm:$0xff]  ;;  %v9650_v37 = vld [vmem:[#allocation88_spill] sm:$0xff] }
 0x45c   :  { %v3880_v16 = vadd.f32 %v8850_v53, %v3817_v38  ;;  %v3816_v36 = vmax.f32 %v3704_v56, %v3760_v15 }
 0x45e   :  { %v3936_v62 = vmax.f32 %v3880_v16, 0.0  ;;  %v3879_v30 = vadd.f32 %v8850_v53, %v3816_v36  ;;  %v9651_v36 = vld [vmem:[#allocation129_spill] sm:$0xff] }
 0x460   :  { %3992 = vst.msk [vmem:[%s9006_s4 + $0x158] sm:$0xff] %vm994_vm1, %v3936_v62  ;;  %v3935_v22 = vmax.f32 %v3879_v30, 0.0  ;;  %v9652_v30 = vld [vmem:[#allocation130_spill] sm:$0xff] }
 0x462   :  { %3991 = vst.msk [vmem:[%s9006_s4 + $0x150] sm:$0xff] %vm994_vm1, %v3935_v22 }
 0x467   :  { %v4630_v2 = vpop.f32.mrf.mxu0  ;;  %v4808_v27 = vpop.f32.mrf.mxu1 }
 0x468   :  { %v3707_v48 = vmax.f32 %v9639_v29, %v4630_v2  ;;  %v3763_v47 = vmax.f32 %v9640_v33, %v4808_v27 }
 0x469   :  { %v2973_v21 = vpop.f32.mrf.mxu0  ;;  %v3603_v43 = vpop.f32.mrf.mxu1 }
 0x46a   :  { %v3819_v57 = vmax.f32 %v3707_v48, %v3763_v47  ;;  %v3706_v17 = vmax.f32 %v9641_v61, %v2973_v21  ;;  %v3762_v52 = vmax.f32 %v9642_v11, %v3603_v43  ;;  %v9653_v48 = vld [vmem:[#allocation62_spill] sm:$0xff]  ;;  %v9654_v47 = vld [vmem:[#allocation65_spill] sm:$0xff] }
 0x46c   :  { %v3882_v34 = vadd.f32 %v8850_v53, %v3819_v57  ;;  %v3818_v10 = vmax.f32 %v3706_v17, %v3762_v52 }
 0x46e   :  { %v3938_v28 = vmax.f32 %v3882_v34, 0.0  ;;  %v3881_v4 = vadd.f32 %v8850_v53, %v3818_v10 }
 0x470   :  { %3994 = vst.msk [vmem:[%s9006_s4 + $0x168] sm:$0xff] %vm994_vm1, %v3938_v28  ;;  %v3937_v32 = vmax.f32 %v3881_v4, 0.0 }
 0x472   :  { %3993 = vst.msk [vmem:[%s9006_s4 + $0x160] sm:$0xff] %vm994_vm1, %v3937_v32 }
 0x477   :  { %v4633_v50 = vpop.f32.mrf.mxu0  ;;  %v4811_v46 = vpop.f32.mrf.mxu1 }
 0x478   :  { %v3709_v13 = vmax.f32 %v9643_v35, %v4633_v50  ;;  %v3765_v19 = vmax.f32 %v9644_v39, %v4811_v46  ;;  %v9655_v46 = vld [vmem:[#allocation91_spill] sm:$0xff] }
 0x479   :  { %v2983_v14 = vpop.f32.mrf.mxu0  ;;  %v3613_v25 = vpop.f32.mrf.mxu1 }
 0x47a   :  { %v3821_v31 = vmax.f32 %v3709_v13, %v3765_v19  ;;  %v3708_v51 = vmax.f32 %v9645_v59, %v2983_v14  ;;  %v3764_v12 = vmax.f32 %v9646_v45, %v3613_v25  ;;  %v9656_v13 = vld [vmem:[#allocation92_spill] sm:$0xff] }
 0x47c   :  { %v3884_v6 = vadd.f32 %v8850_v53, %v3821_v31  ;;  %v3820_v7 = vmax.f32 %v3708_v51, %v3764_v12  ;;  %v9657_v51 = vld [vmem:[#allocation131_spill] sm:$0xff]  ;;  %v9658_v12 = vld [vmem:[#allocation132_spill] sm:$0xff] }
 0x47e   :  { %v3940_v54 = vmax.f32 %v3884_v6, 0.0  ;;  %v3883_v5 = vadd.f32 %v8850_v53, %v3820_v7 }
 0x480   :  { %3996 = vst.msk [vmem:[%s9006_s4 + $0x178] sm:$0xff] %vm994_vm1, %v3940_v54  ;;  %v3939_v23 = vmax.f32 %v3883_v5, 0.0 }
 0x482   :  { %3995 = vst.msk [vmem:[%s9006_s4 + $0x170] sm:$0xff] %vm994_vm1, %v3939_v23 }
 0x487   :  { %v4636_v41 = vpop.f32.mrf.mxu0  ;;  %v4814_v63 = vpop.f32.mrf.mxu1 }
 0x488   :  { %v3711_v49 = vmax.f32 %v9647_v24, %v4636_v41  ;;  %v3767_v26 = vmax.f32 %v9648_v55, %v4814_v63  ;;  %v9659_v41 = vld [vmem:[#allocation66_spill] sm:$0xff] }
 0x489   :  { %v2993_v60 = vpop.f32.mrf.mxu0  ;;  %v3623_v8 = vpop.f32.mrf.mxu1 }
 0x48a   :  { %v3823_v20 = vmax.f32 %v3711_v49, %v3767_v26  ;;  %v3710_v0 = vmax.f32 %v9649_v42, %v2993_v60  ;;  %v3766_v18 = vmax.f32 %v9650_v37, %v3623_v8 }
 0x48c   :  { %v3886_v40 = vadd.f32 %v8850_v53, %v3823_v20  ;;  %v3822_v38 = vmax.f32 %v3710_v0, %v3766_v18 }
 0x48e   :  { %v3942_v9 = vmax.f32 %v3886_v40, 0.0  ;;  %v3885_v56 = vadd.f32 %v8850_v53, %v3822_v38 }
 0x490   :  { %3998 = vst.msk [vmem:[%s9006_s4 + $0x188] sm:$0xff] %vm994_vm1, %v3942_v9  ;;  %v3941_v44 = vmax.f32 %v3885_v56, 0.0 }
 0x492   :  { %3997 = vst.msk [vmem:[%s9006_s4 + $0x180] sm:$0xff] %vm994_vm1, %v3941_v44 }
 0x497   :  { %v4639_v15 = vpop.f32.mrf.mxu0  ;;  %v4817_v16 = vpop.f32.mrf.mxu1 }
 0x498   :  { %v3713_v62 = vmax.f32 %v9651_v36, %v4639_v15  ;;  %v3769_v22 = vmax.f32 %v9652_v30, %v4817_v16 }
 0x499   :  { %v3003_v2 = vpop.f32.mrf.mxu0  ;;  %v3633_v27 = vpop.f32.mrf.mxu1 }
 0x49a   :  { %v3825_v29 = vmax.f32 %v3713_v62, %v3769_v22  ;;  %v3712_v33 = vmax.f32 %v9653_v48, %v3003_v2  ;;  %v3768_v21 = vmax.f32 %v9654_v47, %v3633_v27 }
 0x49c   :  { %v3888_v43 = vadd.f32 %v8850_v53, %v3825_v29  ;;  %v3824_v57 = vmax.f32 %v3712_v33, %v3768_v21 }
 0x49e   :  { %v3944_v61 = vmax.f32 %v3888_v43, 0.0  ;;  %v3887_v17 = vadd.f32 %v8850_v53, %v3824_v57 }
 0x4a0   :  { %4000 = vst.msk [vmem:[%s9006_s4 + $0x198] sm:$0xff] %vm994_vm1, %v3944_v61  ;;  %v3943_v11 = vmax.f32 %v3887_v17, 0.0 }
 0x4a2   :  { %3999 = vst.msk [vmem:[%s9006_s4 + $0x190] sm:$0xff] %vm994_vm1, %v3943_v11 }
 0x4a7   :  { %v4642_v52 = vpop.f32.mrf.mxu0  ;;  %v4820_v34 = vpop.f32.mrf.mxu1 }
 0x4a8   :  { %v3715_v10 = vmax.f32 %v8292_v3, %v4642_v52  ;;  %v3771_v28 = vmax.f32 %v8294_v1, %v4820_v34 }
 0x4a9   :  { %v3013_v4 = vpop.f32.mrf.mxu0  ;;  %v3643_v32 = vpop.f32.mrf.mxu1 }
 0x4aa   :  { %v3827_v50 = vmax.f32 %v3715_v10, %v3771_v28  ;;  %v3714_v35 = vmax.f32 %v9655_v46, %v3013_v4  ;;  %v3770_v39 = vmax.f32 %v9656_v13, %v3643_v32 }
 0x4ac   :  { %v3890_v19 = vadd.f32 %v8850_v53, %v3827_v50  ;;  %v3826_v14 = vmax.f32 %v3714_v35, %v3770_v39 }
 0x4ae   :  { %v3946_v25 = vmax.f32 %v3890_v19, 0.0  ;;  %v3889_v31 = vadd.f32 %v8850_v53, %v3826_v14 }
 0x4b0   :  { %4002 = vst.msk [vmem:[%s9006_s4 + $0x1a8] sm:$0xff] %vm994_vm1, %v3946_v25  ;;  %v3945_v3 = vmax.f32 %v3889_v31, 0.0 }
 0x4b2   :  { %4001 = vst.msk [vmem:[%s9006_s4 + $0x1a0] sm:$0xff] %vm994_vm1, %v3945_v3 }
 0x4b4   :  { %v4645_v1 = vpop.f32.mrf.mxu0  ;;  %v4823_v59 = vpop.f32.mrf.mxu1 }
 0x4b5   :  { %v3717_v45 = vmax.f32 %v9657_v51, %v4645_v1  ;;  %v3773_v6 = vmax.f32 %v9658_v12, %v4823_v59 }
 0x4b6   :  { %v3023_v7 = vpop.f32.mrf.mxu0  ;;  %v3653_v54 = vpop.f32.mrf.mxu1 }
 0x4b7   :  { %v3829_v5 = vmax.f32 %v3717_v45, %v3773_v6  ;;  %v3716_v23 = vmax.f32 %v8340_v58, %v3023_v7  ;;  %v3772_v63 = vmax.f32 %v9659_v41, %v3653_v54 }
 0x4b9   :  { %v3892_v24 = vadd.f32 %v8850_v53, %v3829_v5  ;;  %v3828_v49 = vmax.f32 %v3716_v23, %v3772_v63 }
 0x4bb   :  { %v3948_v55 = vmax.f32 %v3892_v24, 0.0  ;;  %v3891_v26 = vadd.f32 %v8850_v53, %v3828_v49 }
 0x4bd   :  { %4004 = vst.msk [vmem:[%s9006_s4 + $0x1b8] sm:$0xff] %vm994_vm1, %v3948_v55  ;;  %v3947_v60 = vmax.f32 %v3891_v26, 0.0 }
 0x4bf   :  { %4003 = vst.msk [vmem:[%s9006_s4 + $0x1b0] sm:$0xff] %vm994_vm1, %v3947_v60 }

// kernel: cnn_forward.4
= control target key start
LH: loop header
LB: loop body
LE: loop exit
PB: predicated region body
PF: predicated region fallthrough
CT: control target
= control target key end

     0   :  { %v1803_v0 = vmov 0.0   ;;  %vm1520_vm0 = vcmask 261120   ;;  %s3370_s1 = inlined_call_operand.vmem [shape: f32[640,32], index: 1, kind: input, shape index: {}]   ;;  %s3371_s0 = inlined_call_operand.vmem [shape: f32[2,18,8,128], index: 0, kind: input, shape index: {}]   ;;  %s3372_s2 = inlined_call_operand.vmem [shape: f32[640,32], index: 2, kind: input, shape index: {}]   ;;  %s3373_s3 = inlined_call_operand.vmem [shape: f32[1,32], index: 3, kind: input, shape index: {}]   ;;  %s3374_s4 = inlined_call_operand.vmem [shape: f32[2,7,8,32], index: 4, kind: output, shape index: {}]  }
   0x1   :  { %133 = vmatprep.subr.mxu0 %v1803_v0  ;;  %338 = vmatprep.subr.mxu1 %v1803_v0  ;;  %v68_v1 = vld [vmem:[%s3370_s1 + $0x78] sm:$0xff]  ;;  %v67_v3 = vld [vmem:[%s3370_s1 + $0x70] sm:$0xff]  ;;  %v66_v5 = vld [vmem:[%s3370_s1 + $0x68] sm:$0xff] }
   0x2   :  { %v100_v2 = vld [vmem:[%s3370_s1 + $0x178] sm:$0xff]  ;;  %134 = vmatpush1.msra.mxu0 %v68_v1  ;;  %v99_v4 = vld [vmem:[%s3370_s1 + $0x170] sm:$0xff]  ;;  %v98_v6 = vld [vmem:[%s3370_s1 + $0x168] sm:$0xff] }
   0x3   :  { %339 = vmatpush1.msra.mxu1 %v100_v2  ;;  %135 = vmatprep.subr.mxu0 %v1803_v0  ;;  %v65_v7 = vld [vmem:[%s3370_s1 + $0x60] sm:$0xff]  ;;  %v64_v9 = vld [vmem:[%s3370_s1 + $0x58] sm:$0xff]  ;;  %v63_v11 = vld [vmem:[%s3370_s1 + $0x50] sm:$0xff] }
   0x4   :  { %340 = vmatprep.subr.mxu1 %v1803_v0  ;;  %136 = vmatpush1.msra.mxu0 %v67_v3  ;;  %v97_v8 = vld [vmem:[%s3370_s1 + $0x160] sm:$0xff]  ;;  %v96_v10 = vld [vmem:[%s3370_s1 + $0x158] sm:$0xff]  ;;  %v95_v12 = vld [vmem:[%s3370_s1 + $0x150] sm:$0xff] }
   0x5   :  { %341 = vmatpush1.msra.mxu1 %v99_v4  ;;  %137 = vmatprep.subr.mxu0 %v1803_v0  ;;  %v62_v13 = vld [vmem:[%s3370_s1 + $0x48] sm:$0xff]  ;;  %v61_v15 = vld [vmem:[%s3370_s1 + $0x40] sm:$0xff]  ;;  %v60_v17 = vld [vmem:[%s3370_s1 + $0x38] sm:$0xff] }
   0x6   :  { %342 = vmatprep.subr.mxu1 %v1803_v0  ;;  %138 = vmatpush1.msra.mxu0 %v66_v5  ;;  %v94_v14 = vld [vmem:[%s3370_s1 + $0x148] sm:$0xff]  ;;  %v93_v16 = vld [vmem:[%s3370_s1 + $0x140] sm:$0xff]  ;;  %v92_v18 = vld [vmem:[%s3370_s1 + $0x138] sm:$0xff] }
   0x7   :  { %343 = vmatpush1.msra.mxu1 %v98_v6  ;;  %139 = vmatprep.subr.mxu0 %v1803_v0  ;;  %v59_v19 = vld [vmem:[%s3370_s1 + $0x30] sm:$0xff]  ;;  %v58_v21 = vld [vmem:[%s3370_s1 + $0x28] sm:$0xff]  ;;  %v57_v23 = vld [vmem:[%s3370_s1 + $0x20] sm:$0xff] }
   0x8   :  { %344 = vmatprep.subr.mxu1 %v1803_v0  ;;  %140 = vmatpush1.msra.mxu0 %v65_v7  ;;  %v91_v20 = vld [vmem:[%s3370_s1 + $0x130] sm:$0xff]  ;;  %v90_v22 = vld [vmem:[%s3370_s1 + $0x128] sm:$0xff]  ;;  %v89_v24 = vld [vmem:[%s3370_s1 + $0x120] sm:$0xff] }
   0x9   :  { %345 = vmatpush1.msra.mxu1 %v97_v8  ;;  %141 = vmatprep.subr.mxu0 %v1803_v0  ;;  %v56_v25 = vld [vmem:[%s3370_s1 + $0x18] sm:$0xff]  ;;  %v55_v27 = vld [vmem:[%s3370_s1 + $0x10] sm:$0xff]  ;;  %v54_v29 = vld [vmem:[%s3370_s1 + $0x8] sm:$0xff] }
   0xa   :  { %346 = vmatprep.subr.mxu1 %v1803_v0  ;;  %142 = vmatpush1.msra.mxu0 %v64_v9  ;;  %v88_v26 = vld [vmem:[%s3370_s1 + $0x118] sm:$0xff]  ;;  %v87_v28 = vld [vmem:[%s3370_s1 + $0x110] sm:$0xff]  ;;  %v86_v30 = vld [vmem:[%s3370_s1 + $0x108] sm:$0xff] }
   0xb   :  { %347 = vmatpush1.msra.mxu1 %v96_v10  ;;  %143 = vmatprep.subr.mxu0 %v1803_v0  ;;  %v53_v31 = vld [vmem:[%s3370_s1] sm:$0xff]  ;;  %v84_v33 = vld [vmem:[%s3370_s1 + $0xf8] sm:$0xff]  ;;  %v83_v35 = vld [vmem:[%s3370_s1 + $0xf0] sm:$0xff] }
   0xc   :  { %348 = vmatprep.subr.mxu1 %v1803_v0  ;;  %144 = vmatpush1.msra.mxu0 %v63_v11  ;;  %v85_v32 = vld [vmem:[%s3370_s1 + $0x100] sm:$0xff]  ;;  %v116_v34 = vld [vmem:[%s3370_s1 + $0x1f8] sm:$0xff]  ;;  %v115_v36 = vld [vmem:[%s3370_s1 + $0x1f0] sm:$0xff] }
   0xd   :  { %349 = vmatpush1.msra.mxu1 %v95_v12  ;;  %145 = vmatprep.subr.mxu0 %v1803_v0  ;;  %v82_v37 = vld [vmem:[%s3370_s1 + $0xe8] sm:$0xff]  ;;  %v81_v39 = vld [vmem:[%s3370_s1 + $0xe0] sm:$0xff]  ;;  %v80_v41 = vld [vmem:[%s3370_s1 + $0xd8] sm:$0xff] }
   0xe   :  { %350 = vmatprep.subr.mxu1 %v1803_v0  ;;  %146 = vmatpush1.msra.mxu0 %v62_v13  ;;  %v114_v38 = vld [vmem:[%s3370_s1 + $0x1e8] sm:$0xff]  ;;  %v113_v40 = vld [vmem:[%s3370_s1 + $0x1e0] sm:$0xff]  ;;  %v112_v42 = vld [vmem:[%s3370_s1 + $0x1d8] sm:$0xff] }
   0xf   :  { %351 = vmatpush1.msra.mxu1 %v94_v14  ;;  %147 = vmatprep.subr.mxu0 %v1803_v0  ;;  %v79_v43 = vld [vmem:[%s3370_s1 + $0xd0] sm:$0xff]  ;;  %v78_v45 = vld [vmem:[%s3370_s1 + $0xc8] sm:$0xff]  ;;  %v77_v47 = vld [vmem:[%s3370_s1 + $0xc0] sm:$0xff] }
  0x10   :  { %352 = vmatprep.subr.mxu1 %v1803_v0  ;;  %148 = vmatpush1.msra.mxu0 %v61_v15  ;;  %v111_v44 = vld [vmem:[%s3370_s1 + $0x1d0] sm:$0xff]  ;;  %v110_v46 = vld [vmem:[%s3370_s1 + $0x1c8] sm:$0xff]  ;;  %v109_v48 = vld [vmem:[%s3370_s1 + $0x1c0] sm:$0xff] }
  0x11   :  { %353 = vmatpush1.msra.mxu1 %v93_v16  ;;  %149 = vmatprep.subr.mxu0 %v1803_v0  ;;  %v76_v49 = vld [vmem:[%s3370_s1 + $0xb8] sm:$0xff]  ;;  %v75_v51 = vld [vmem:[%s3370_s1 + $0xb0] sm:$0xff]  ;;  %v74_v53 = vld [vmem:[%s3370_s1 + $0xa8] sm:$0xff] }
  0x12   :  { %354 = vmatprep.subr.mxu1 %v1803_v0  ;;  %150 = vmatpush1.msra.mxu0 %v60_v17  ;;  %v108_v50 = vld [vmem:[%s3370_s1 + $0x1b8] sm:$0xff]  ;;  %v107_v52 = vld [vmem:[%s3370_s1 + $0x1b0] sm:$0xff]  ;;  %v106_v54 = vld [vmem:[%s3370_s1 + $0x1a8] sm:$0xff] }
  0x13   :  { %355 = vmatpush1.msra.mxu1 %v92_v18  ;;  %151 = vmatprep.subr.mxu0 %v1803_v0  ;;  %v73_v55 = vld [vmem:[%s3370_s1 + $0xa0] sm:$0xff]  ;;  %v72_v57 = vld [vmem:[%s3370_s1 + $0x98] sm:$0xff]  ;;  %v71_v59 = vld [vmem:[%s3370_s1 + $0x90] sm:$0xff] }
  0x14   :  { %356 = vmatprep.subr.mxu1 %v1803_v0  ;;  %152 = vmatpush1.msra.mxu0 %v59_v19  ;;  %v105_v56 = vld [vmem:[%s3370_s1 + $0x1a0] sm:$0xff]  ;;  %v104_v58 = vld [vmem:[%s3370_s1 + $0x198] sm:$0xff]  ;;  %v103_v60 = vld [vmem:[%s3370_s1 + $0x190] sm:$0xff] }
  0x15   :  { %357 = vmatpush1.msra.mxu1 %v91_v20  ;;  %153 = vmatprep.subr.mxu0 %v1803_v0  ;;  %v70_v61 = vld [vmem:[%s3370_s1 + $0x88] sm:$0xff]  ;;  %v69_v63 = vld [vmem:[%s3370_s1 + $0x80] sm:$0xff]  ;;  %v2091_v3 = vld [vmem:[%s3371_s0 + $0x50] sm:$0xff] }
  0x16   :  { %358 = vmatprep.subr.mxu1 %v1803_v0  ;;  %154 = vmatpush1.msra.mxu0 %v58_v21  ;;  %v102_v62 = vld [vmem:[%s3370_s1 + $0x188] sm:$0xff]  ;;  %v101_v2 = vld [vmem:[%s3370_s1 + $0x180] sm:$0xff]  ;;  %v132_v6 = vld [vmem:[%s3370_s1 + $0x278] sm:$0xff] }
  0x17   :  { %359 = vmatpush1.msra.mxu1 %v90_v22  ;;  %155 = vmatprep.subr.mxu0 %v1803_v0  ;;  %v2083_v1 = vld [vmem:[%s3371_s0 + $0x48] sm:$0xff]  ;;  %v2098_v4 = vld [vmem:[%s3371_s0] sm:$0xff]  ;;  %v2113_v7 = vld [vmem:[%s3371_s0 + $0x58] sm:$0xff] }
  0x18   :  { %360 = vmatprep.subr.mxu1 %v1803_v0  ;;  %156 = vmatpush1.msra.mxu0 %v57_v23  ;;  %v2103_v5 = vld [vmem:[%s3371_s0 + $0x8] sm:$0xff]  ;;  %v131_v8 = vld [vmem:[%s3370_s1 + $0x270] sm:$0xff]  ;;  %v2130_v10 = vld [vmem:[%s3371_s0 + $0x60] sm:$0xff] }
  0x19   :  { %361 = vmatpush1.msra.mxu1 %v89_v24  ;;  %157 = vmatprep.subr.mxu0 %v1803_v0  ;;  %v2124_v9 = vld [vmem:[%s3371_s0 + $0x10] sm:$0xff]  ;;  %v763_v11 = vld [vmem:[%s3372_s2 + $0x78] sm:$0xff]  ;;  %v130_v12 = vld [vmem:[%s3370_s1 + $0x268] sm:$0xff] }
  0x1a   :  { %362 = vmatprep.subr.mxu1 %v1803_v0  ;;  %158 = vmatpush1.msra.mxu0 %v56_v25  ;;  %v2146_v13 = vld [vmem:[%s3371_s0 + $0x18] sm:$0xff]  ;;  %v2151_v14 = vld [vmem:[%s3371_s0 + $0x68] sm:$0xff]  ;;  %v762_v15 = vld [vmem:[%s3372_s2 + $0x70] sm:$0xff] }
  0x1b   :  { %363 = vmatpush1.msra.mxu1 %v88_v26  ;;  %159 = vmatprep.subr.mxu0 %v1803_v0  ;;  %v129_v16 = vld [vmem:[%s3370_s1 + $0x260] sm:$0xff]  ;;  %v2172_v18 = vld [vmem:[%s3371_s0 + $0x70] sm:$0xff]  ;;  %v761_v19 = vld [vmem:[%s3372_s2 + $0x68] sm:$0xff] }
  0x1c   :  { %364 = vmatprep.subr.mxu1 %v1803_v0  ;;  %160 = vmatpush1.msra.mxu0 %v55_v27  ;;  %v2167_v17 = vld [vmem:[%s3371_s0 + $0x20] sm:$0xff]  ;;  %v128_v20 = vld [vmem:[%s3370_s1 + $0x258] sm:$0xff]  ;;  %v2188_v21 = vld [vmem:[%s3371_s0 + $0x28] sm:$0xff] }
  0x1d   :  { %365 = vmatpush1.msra.mxu1 %v87_v28  ;;  %161 = vmatprep.subr.mxu0 %v1803_v0  ;;  %v2193_v22 = vld [vmem:[%s3371_s0 + $0x78] sm:$0xff]  ;;  %v760_v23 = vld [vmem:[%s3372_s2 + $0x60] sm:$0xff]  ;;  %v127_v24 = vld [vmem:[%s3370_s1 + $0x250] sm:$0xff] }
  0x1e   :  { %366 = vmatprep.subr.mxu1 %v1803_v0  ;;  %162 = vmatpush1.msra.mxu0 %v54_v29  ;;  %v2209_v25 = vld [vmem:[%s3371_s0 + $0x30] sm:$0xff]  ;;  %v759_v26 = vld [vmem:[%s3372_s2 + $0x58] sm:$0xff]  ;;  %v2218_v27 = vld [vmem:[%s3371_s0 + $0x80] sm:$0xff] }
  0x1f   :  { %367 = vmatpush1.msra.mxu1 %v86_v30  ;;  %163 = vmatprep.subr.mxu0 %v1803_v0  ;;  %v758_v28 = vld [vmem:[%s3372_s2 + $0x50] sm:$0xff]  ;;  %v2229_v29 = vld [vmem:[%s3371_s0 + $0x38] sm:$0xff] }
  0x20   :  { %368 = vmatprep.subr.mxu1 %v1803_v0  ;;  %164 = vmatpush1.msra.mxu0 %v53_v31  ;;  %v2236_v30 = vld [vmem:[%s3371_s0 + $0xd8] sm:$0xff]  ;;  %v2241_v31 = vld [vmem:[%s3371_s0 + $0xe0] sm:$0xff] }
  0x21   :  { %369 = vmatpush1.msra.mxu1 %v85_v32  ;;  %165 = vmatprep.subr.mxu0 %v1803_v0  ;;  %v126_v32 = vld [vmem:[%s3370_s1 + $0x248] sm:$0xff] }
  0x22   :  { %370 = vmatprep.subr.mxu1 %v1803_v0  ;;  %166 = vmatpush2.msra.mxu0 %v84_v33  ;;  %v757_v33 = vld [vmem:[%s3372_s2 + $0x48] sm:$0xff] }
  0x23   :  { %371 = vmatpush2.msra.mxu1 %v116_v34  ;;  %167 = vmatprep.subr.mxu0 %v1803_v0  ;;  %v2256_v34 = vld [vmem:[%s3371_s0 + $0x90] sm:$0xff] }
  0x24   :  { %372 = vmatprep.subr.mxu1 %v1803_v0  ;;  %168 = vmatpush2.msra.mxu0 %v83_v35  ;;  %v2261_v35 = vld [vmem:[%s3371_s0 + $0x98] sm:$0xff] }
  0x25   :  { %373 = vmatpush2.msra.mxu1 %v115_v36  ;;  %169 = vmatprep.subr.mxu0 %v1803_v0  ;;  %v2267_v36 = vld [vmem:[%s3371_s0 + $0xe8] sm:$0xff] }
  0x26   :  { %374 = vmatprep.subr.mxu1 %v1803_v0  ;;  %170 = vmatpush2.msra.mxu0 %v82_v37  ;;  %v125_v37 = vld [vmem:[%s3370_s1 + $0x240] sm:$0xff] }
  0x27   :  { %375 = vmatpush2.msra.mxu1 %v114_v38  ;;  %171 = vmatprep.subr.mxu0 %v1803_v0  ;;  %v756_v38 = vld [vmem:[%s3372_s2 + $0x40] sm:$0xff] }
  0x28   :  { %376 = vmatprep.subr.mxu1 %v1803_v0  ;;  %172 = vmatpush2.msra.mxu0 %v81_v39  ;;  %v2282_v39 = vld [vmem:[%s3371_s0 + $0xa0] sm:$0xff] }
  0x29   :  { %377 = vmatpush2.msra.mxu1 %v113_v40  ;;  %173 = vmatprep.subr.mxu0 %v1803_v0  ;;  %v2288_v40 = vld [vmem:[%s3371_s0 + $0xf0] sm:$0xff] }
  0x2a   :  { %378 = vmatprep.subr.mxu1 %v1803_v0  ;;  %174 = vmatpush2.msra.mxu0 %v80_v41  ;;  %v124_v41 = vld [vmem:[%s3370_s1 + $0x238] sm:$0xff] }
  0x2b   :  { %379 = vmatpush2.msra.mxu1 %v112_v42  ;;  %175 = vmatprep.subr.mxu0 %v1803_v0  ;;  %v755_v42 = vld [vmem:[%s3372_s2 + $0x38] sm:$0xff] }
  0x2c   :  { %380 = vmatprep.subr.mxu1 %v1803_v0  ;;  %176 = vmatpush2.msra.mxu0 %v79_v43  ;;  %v2303_v43 = vld [vmem:[%s3371_s0 + $0xa8] sm:$0xff] }
  0x2d   :  { %381 = vmatpush2.msra.mxu1 %v111_v44  ;;  %177 = vmatprep.subr.mxu0 %v1803_v0  ;;  %v2309_v44 = vld [vmem:[%s3371_s0 + $0xf8] sm:$0xff] }
  0x2e   :  { %382 = vmatprep.subr.mxu1 %v1803_v0  ;;  %178 = vmatpush2.msra.mxu0 %v78_v45  ;;  %v123_v45 = vld [vmem:[%s3370_s1 + $0x230] sm:$0xff] }
  0x2f   :  { %383 = vmatpush2.msra.mxu1 %v110_v46  ;;  %179 = vmatprep.subr.mxu0 %v1803_v0  ;;  %v754_v46 = vld [vmem:[%s3372_s2 + $0x30] sm:$0xff] }
  0x30   :  { %384 = vmatprep.subr.mxu1 %v1803_v0  ;;  %180 = vmatpush2.msra.mxu0 %v77_v47  ;;  %v2324_v47 = vld [vmem:[%s3371_s0 + $0xb0] sm:$0xff] }
  0x31   :  { %385 = vmatpush2.msra.mxu1 %v109_v48  ;;  %181 = vmatprep.subr.mxu0 %v1803_v0  ;;  %v2330_v48 = vld [vmem:[%s3371_s0 + $0x100] sm:$0xff] }
  0x32   :  { %386 = vmatprep.subr.mxu1 %v1803_v0  ;;  %182 = vmatpush2.msra.mxu0 %v76_v49  ;;  %v753_v49 = vld [vmem:[%s3372_s2 + $0x28] sm:$0xff] }
  0x33   :  { %387 = vmatpush2.msra.mxu1 %v108_v50  ;;  %183 = vmatprep.subr.mxu0 %v1803_v0  ;;  %v122_v50 = vld [vmem:[%s3370_s1 + $0x228] sm:$0xff] }
  0x34   :  { %388 = vmatprep.subr.mxu1 %v1803_v0  ;;  %184 = vmatpush2.msra.mxu0 %v75_v51  ;;  %v2345_v51 = vld [vmem:[%s3371_s0 + $0xb8] sm:$0xff] }
  0x35   :  { %389 = vmatpush2.msra.mxu1 %v107_v52  ;;  %185 = vmatprep.subr.mxu0 %v1803_v0  ;;  %v2351_v52 = vld [vmem:[%s3371_s0 + $0x108] sm:$0xff] }
  0x36   :  { %390 = vmatprep.subr.mxu1 %v1803_v0  ;;  %186 = vmatpush2.msra.mxu0 %v74_v53  ;;  %v752_v53 = vld [vmem:[%s3372_s2 + $0x20] sm:$0xff] }
  0x37   :  { %391 = vmatpush2.msra.mxu1 %v106_v54  ;;  %187 = vmatprep.subr.mxu0 %v1803_v0  ;;  %v121_v54 = vld [vmem:[%s3370_s1 + $0x220] sm:$0xff] }
  0x38   :  { %392 = vmatprep.subr.mxu1 %v1803_v0  ;;  %188 = vmatpush2.msra.mxu0 %v73_v55  ;;  %v2367_v55 = vld [vmem:[%s3371_s0 + $0xc0] sm:$0xff] }
  0x39   :  { %393 = vmatpush2.msra.mxu1 %v105_v56  ;;  %189 = vmatprep.subr.mxu0 %v1803_v0  ;;  %v751_v56 = vld [vmem:[%s3372_s2 + $0x18] sm:$0xff] }
  0x3a   :  { %394 = vmatprep.subr.mxu1 %v1803_v0  ;;  %190 = vmatpush2.msra.mxu0 %v72_v57  ;;  %v2376_v57 = vld [vmem:[%s3371_s0 + $0x110] sm:$0xff] }
  0x3b   :  { %395 = vmatpush2.msra.mxu1 %v104_v58  ;;  %191 = vmatprep.subr.mxu0 %v1803_v0  ;;  %v750_v58 = vld [vmem:[%s3372_s2 + $0x10] sm:$0xff] }
  0x3c   :  { %396 = vmatprep.subr.mxu1 %v1803_v0  ;;  %192 = vmatpush2.msra.mxu0 %v71_v59  ;;  %v2387_v59 = vld [vmem:[%s3371_s0 + $0xc8] sm:$0xff] }
  0x3d   :  { %397 = vmatpush2.msra.mxu1 %v103_v60  ;;  %193 = vmatprep.subr.mxu0 %v1803_v0  ;;  %v120_v60 = vld [vmem:[%s3370_s1 + $0x218] sm:$0xff] }
  0x3e   :  { %398 = vmatprep.subr.mxu1 %v1803_v0  ;;  %194 = vmatpush2.msra.mxu0 %v70_v61  ;;  %v749_v61 = vld [vmem:[%s3372_s2 + $0x8] sm:$0xff] }
  0x3f   :  { %399 = vmatpush2.msra.mxu1 %v102_v62  ;;  %195 = vmatprep.subr.mxu0 %v1803_v0  ;;  %v119_v62 = vld [vmem:[%s3370_s1 + $0x210] sm:$0xff] }
  0x40   :  { %400 = vmatprep.subr.mxu1 %v1803_v0  ;;  %196 = vmatpush2.msra.mxu0 %v69_v63  ;;  %v748_v63 = vld [vmem:[%s3372_s2] sm:$0xff] }
  0x41   :  { %197 = vmatprep.mubr.f32.mxu0 %v2083_v1  ;;  %401 = vmatpush2.msra.mxu1 %v101_v2  ;;  %v118_v2 = vld [vmem:[%s3370_s1 + $0x208] sm:$0xff] }
  0x42   :  { %402 = vmatprep.mubr.f32.mxu1 %v2091_v3  ;;  %198 = vmatmul.mubr.f32.vlgmr.msra.gmra.mxu0 %v2098_v4 }
  0x43   :  { %403 = vmatmul.mubr.f32.vlgmr.msra.gmra.mxu1 %v2103_v5  ;;  %1628 = vmatprep.subr.mxu0 %v132_v6 }
  0x44   :  { %202 = vmatprep.mubr.f32.mxu0 %v2091_v3  ;;  %1629 = vmatpush3.msra.mxu0 %v132_v6  ;;  %v779_v6 = vld [vmem:[%s3372_s2 + $0xf8] sm:$0xff] }
  0x45   :  { %407 = vmatprep.mubr.f32.mxu1 %v2113_v7  ;;  %1630 = vmatprep.subr.mxu0 %v131_v8 }
  0x46   :  { %828 = vmatprep.subr.mxu1 %v1803_v0  ;;  %203 = vmatmul.mubr.f32.gmra.mxu0 %v2103_v5 }
  0x47   :  { %408 = vmatmul.mubr.f32.gmra.mxu1 %v2124_v9  ;;  %207 = vmatprep.mubr.f32.mxu0 %v2113_v7 }
  0x48   :  { %412 = vmatprep.mubr.f32.mxu1 %v2130_v10  ;;  %1631 = vmatpush3.msra.mxu0 %v131_v8  ;;  %v117_v8 = vld [vmem:[%s3370_s1 + $0x200] sm:$0xff] }
  0x49   :  { %829 = vmatpush1.msra.mxu1 %v763_v11  ;;  %1632 = vmatprep.subr.mxu0 %v130_v12  ;;  %v778_v11 = vld [vmem:[%s3372_s2 + $0xf0] sm:$0xff] }
  0x4a   :  { %830 = vmatprep.subr.mxu1 %v1803_v0  ;;  %208 = vmatmul.mubr.f32.gmra.mxu0 %v2124_v9 }
  0x4b   :  { %413 = vmatmul.mubr.f32.gmra.mxu1 %v2146_v13  ;;  %212 = vmatprep.mubr.f32.mxu0 %v2130_v10 }
  0x4c   :  { %417 = vmatprep.mubr.f32.mxu1 %v2151_v14  ;;  %831 = vmatpush1.msra.mxu1 %v762_v15  ;;  %v776_v15 = vld [vmem:[%s3372_s2 + $0xe0] sm:$0xff] }
  0x4d   :  { %1633 = vmatpush3.msra.mxu0 %v130_v12  ;;  %832 = vmatprep.subr.mxu1 %v1803_v0  ;;  %v777_v12 = vld [vmem:[%s3372_s2 + $0xe8] sm:$0xff] }
  0x4e   :  { %1634 = vmatprep.subr.mxu0 %v129_v16  ;;  %213 = vmatmul.mubr.f32.gmra.mxu0 %v2146_v13 }
  0x4f   :  { %418 = vmatmul.mubr.f32.gmra.mxu1 %v2167_v17  ;;  %217 = vmatprep.mubr.f32.mxu0 %v2151_v14 }
  0x50   :  { %422 = vmatprep.mubr.f32.mxu1 %v2172_v18  ;;  %833 = vmatpush1.msra.mxu1 %v761_v19  ;;  %v2459_v19 = vld [vmem:[%s3371_s0 + $0x40] sm:$0xff] }
  0x51   :  { %1635 = vmatpush3.msra.mxu0 %v129_v16  ;;  %834 = vmatprep.subr.mxu1 %v1803_v0  ;;  %v775_v16 = vld [vmem:[%s3372_s2 + $0xd8] sm:$0xff] }
  0x52   :  { %1636 = vmatprep.subr.mxu0 %v128_v20  ;;  %218 = vmatmul.mubr.f32.gmra.mxu0 %v2167_v17 }
  0x53   :  { %423 = vmatmul.mubr.f32.gmra.mxu1 %v2188_v21  ;;  %222 = vmatprep.mubr.f32.mxu0 %v2172_v18 }
  0x54   :  { %427 = vmatprep.mubr.f32.mxu1 %v2193_v22  ;;  %835 = vmatpush1.msra.mxu1 %v760_v23  ;;  %v773_v23 = vld [vmem:[%s3372_s2 + $0xc8] sm:$0xff] }
  0x55   :  { %1637 = vmatpush3.msra.mxu0 %v128_v20  ;;  %836 = vmatprep.subr.mxu1 %v1803_v0  ;;  %v774_v20 = vld [vmem:[%s3372_s2 + $0xd0] sm:$0xff] }
  0x56   :  { %1638 = vmatprep.subr.mxu0 %v127_v24  ;;  %223 = vmatmul.mubr.f32.gmra.mxu0 %v2188_v21 }
  0x57   :  { %428 = vmatmul.mubr.f32.gmra.mxu1 %v2209_v25  ;;  %227 = vmatprep.mubr.f32.mxu0 %v2193_v22 }
  0x58   :  { %837 = vmatpush1.msra.mxu1 %v759_v26  ;;  %432 = vmatprep.mubr.f32.mxu1 %v2218_v27  ;;  %v771_v26 = vld [vmem:[%s3372_s2 + $0xb8] sm:$0xff] }
  0x59   :  { %838 = vmatprep.subr.mxu1 %v1803_v0  ;;  %1639 = vmatpush3.msra.mxu0 %v127_v24  ;;  %v772_v24 = vld [vmem:[%s3372_s2 + $0xc0] sm:$0xff] }
  0x5a   :  { %839 = vmatpush1.msra.mxu1 %v758_v28  ;;  %228 = vmatmul.mubr.f32.gmra.mxu0 %v2209_v25  ;;  %v770_v28 = vld [vmem:[%s3372_s2 + $0xb0] sm:$0xff] }
  0x5b   :  { %433 = vmatmul.mubr.f32.gmra.mxu1 %v2229_v29  ;;  %232 = vmatprep.mubr.f32.mxu0 %v2236_v30 }
  0x5c   :  { %437 = vmatprep.mubr.f32.mxu1 %v2241_v31  ;;  %840 = vmatprep.subr.mxu1 %v1803_v0 }
  0x5d   :  { %1640 = vmatprep.subr.mxu0 %v126_v32  ;;  %841 = vmatpush1.msra.mxu1 %v757_v33  ;;  %v768_v33 = vld [vmem:[%s3372_s2 + $0xa0] sm:$0xff] }
  0x5e   :  { %1641 = vmatpush3.msra.mxu0 %v126_v32  ;;  %842 = vmatprep.subr.mxu1 %v1803_v0  ;;  %v769_v32 = vld [vmem:[%s3372_s2 + $0xa8] sm:$0xff] }
  0x5f   :  { %233 = vmatmul.mubr.f32.gmra.mxu0 %v2256_v34  ;;  %438 = vmatmul.mubr.f32.gmra.mxu1 %v2261_v35 }
  0x60   :  { %237 = vmatprep.mubr.f32.mxu0 %v2241_v31  ;;  %442 = vmatprep.mubr.f32.mxu1 %v2267_v36 }
  0x61   :  { %1642 = vmatprep.subr.mxu0 %v125_v37  ;;  %843 = vmatpush1.msra.mxu1 %v756_v38  ;;  %v2524_v38 = vld [vmem:[%s3371_s0 + $0xd0] sm:$0xff] }
  0x62   :  { %1643 = vmatpush3.msra.mxu0 %v125_v37  ;;  %844 = vmatprep.subr.mxu1 %v1803_v0  ;;  %v767_v37 = vld [vmem:[%s3372_s2 + $0x98] sm:$0xff] }
  0x63   :  { %238 = vmatmul.mubr.f32.gmra.mxu0 %v2261_v35  ;;  %443 = vmatmul.mubr.f32.gmra.mxu1 %v2282_v39 }
  0x64   :  { %242 = vmatprep.mubr.f32.mxu0 %v2267_v36  ;;  %447 = vmatprep.mubr.f32.mxu1 %v2288_v40 }
  0x65   :  { %1644 = vmatprep.subr.mxu0 %v124_v41  ;;  %845 = vmatpush1.msra.mxu1 %v755_v42  ;;  %v765_v42 = vld [vmem:[%s3372_s2 + $0x88] sm:$0xff] }
  0x66   :  { %1645 = vmatpush3.msra.mxu0 %v124_v41  ;;  %846 = vmatprep.subr.mxu1 %v1803_v0  ;;  %v766_v41 = vld [vmem:[%s3372_s2 + $0x90] sm:$0xff] }
  0x67   :  { %243 = vmatmul.mubr.f32.gmra.mxu0 %v2282_v39  ;;  %448 = vmatmul.mubr.f32.gmra.mxu1 %v2303_v43 }
  0x68   :  { %247 = vmatprep.mubr.f32.mxu0 %v2288_v40  ;;  %452 = vmatprep.mubr.f32.mxu1 %v2309_v44 }
  0x69   :  { %1646 = vmatprep.subr.mxu0 %v123_v45  ;;  %847 = vmatpush1.msra.mxu1 %v754_v46  ;;  %v795_v46 = vld [vmem:[%s3372_s2 + $0x178] sm:$0xff] }
  0x6a   :  { %1647 = vmatpush3.msra.mxu0 %v123_v45  ;;  %848 = vmatprep.subr.mxu1 %v1803_v0  ;;  %v764_v45 = vld [vmem:[%s3372_s2 + $0x80] sm:$0xff] }
  0x6b   :  { %248 = vmatmul.mubr.f32.gmra.mxu0 %v2303_v43  ;;  %453 = vmatmul.mubr.f32.gmra.mxu1 %v2324_v47 }
  0x6c   :  { %252 = vmatprep.mubr.f32.mxu0 %v2309_v44  ;;  %457 = vmatprep.mubr.f32.mxu1 %v2330_v48 }
  0x6d   :  { %849 = vmatpush1.msra.mxu1 %v753_v49  ;;  %1648 = vmatprep.subr.mxu0 %v122_v50  ;;  %v794_v49 = vld [vmem:[%s3372_s2 + $0x170] sm:$0xff] }
  0x6e   :  { %850 = vmatprep.subr.mxu1 %v1803_v0  ;;  %1649 = vmatpush3.msra.mxu0 %v122_v50  ;;  %v793_v50 = vld [vmem:[%s3372_s2 + $0x168] sm:$0xff] }
  0x6f   :  { %253 = vmatmul.mubr.f32.gmra.mxu0 %v2324_v47  ;;  %458 = vmatmul.mubr.f32.gmra.mxu1 %v2345_v51 }
  0x70   :  { %257 = vmatprep.mubr.f32.mxu0 %v2330_v48  ;;  %462 = vmatprep.mubr.f32.mxu1 %v2351_v52 }
  0x71   :  { %851 = vmatpush1.msra.mxu1 %v752_v53  ;;  %1650 = vmatprep.subr.mxu0 %v121_v54  ;;  %v827_v53 = vld [vmem:[%s3372_s2 + $0x278] sm:$0xff] }
  0x72   :  { %852 = vmatprep.subr.mxu1 %v1803_v0  ;;  %1651 = vmatpush3.msra.mxu0 %v121_v54  ;;  %v791_v54 = vld [vmem:[%s3372_s2 + $0x158] sm:$0xff] }
  0x73   :  { %258 = vmatmul.mubr.f32.gmra.mxu0 %v2345_v51  ;;  %463 = vmatmul.mubr.f32.gmra.mxu1 %v2367_v55 }
  0x74   :  { %853 = vmatpush1.msra.mxu1 %v751_v56  ;;  %262 = vmatprep.mubr.f32.mxu0 %v2351_v52  ;;  %v790_v56 = vld [vmem:[%s3372_s2 + $0x150] sm:$0xff] }
  0x75   :  { %467 = vmatprep.mubr.f32.mxu1 %v2376_v57  ;;  %854 = vmatprep.subr.mxu1 %v1803_v0 }
  0x76   :  { %855 = vmatpush1.msra.mxu1 %v750_v58  ;;  %1652 = vmatprep.subr.mxu0 %v120_v60  ;;  %v789_v58 = vld [vmem:[%s3372_s2 + $0x148] sm:$0xff] }
  0x77   :  { %263 = vmatmul.mubr.f32.gmra.mxu0 %v2367_v55  ;;  %468 = vmatmul.mubr.f32.gmra.mxu1 %v2387_v59 }
  0x78   :  { %267 = vmatprep.mubr.f32.mxu0 %v2103_v5  ;;  %472 = vmatprep.mubr.f32.mxu1 %v2124_v9 }
  0x79   :  { %856 = vmatprep.subr.mxu1 %v1803_v0  ;;  %1653 = vmatpush3.msra.mxu0 %v120_v60  ;;  %v826_v60 = vld [vmem:[%s3372_s2 + $0x270] sm:$0xff] }
  0x7a   :  { %857 = vmatpush1.msra.mxu1 %v749_v61  ;;  %1654 = vmatprep.subr.mxu0 %v119_v62  ;;  %v788_v61 = vld [vmem:[%s3372_s2 + $0x140] sm:$0xff] }
  0x7b   :  { %268 = vmatmul.mubr.f32.gmra.mxu0 %v2083_v1  ;;  %473 = vmatmul.mubr.f32.gmra.mxu1 %v2091_v3 }
  0x7c   :  { %272 = vmatprep.mubr.f32.mxu0 %v2124_v9  ;;  %477 = vmatprep.mubr.f32.mxu1 %v2146_v13 }
  0x7d   :  { %858 = vmatprep.subr.mxu1 %v1803_v0  ;;  %1655 = vmatpush3.msra.mxu0 %v119_v62  ;;  %v787_v62 = vld [vmem:[%s3372_s2 + $0x138] sm:$0xff] }
  0x7e   :  { %859 = vmatpush1.msra.mxu1 %v748_v63  ;;  %1656 = vmatprep.subr.mxu0 %v118_v2  ;;  %v786_v63 = vld [vmem:[%s3372_s2 + $0x130] sm:$0xff] }
  0x7f   :  { %273 = vmatmul.mubr.f32.gmra.mxu0 %v2091_v3  ;;  %478 = vmatmul.mubr.f32.gmra.mxu1 %v2113_v7 }
  0x80   :  { %277 = vmatprep.mubr.f32.mxu0 %v2146_v13  ;;  %482 = vmatprep.mubr.f32.mxu1 %v2167_v17 }
  0x81   :  { %860 = vmatprep.subr.mxu1 %v1803_v0  ;;  %1657 = vmatpush3.msra.mxu0 %v118_v2  ;;  %v785_v2 = vld [vmem:[%s3372_s2 + $0x128] sm:$0xff] }
  0x82   :  { %861 = vmatpush2.msra.mxu1 %v779_v6  ;;  %1658 = vmatprep.subr.mxu0 %v117_v8  ;;  %v825_v6 = vld [vmem:[%s3372_s2 + $0x268] sm:$0xff] }
  0x83   :  { %278 = vmatmul.mubr.f32.gmra.mxu0 %v2113_v7  ;;  %483 = vmatmul.mubr.f32.gmra.mxu1 %v2130_v10 }
  0x84   :  { %282 = vmatprep.mubr.f32.mxu0 %v2167_v17  ;;  %487 = vmatprep.mubr.f32.mxu1 %v2188_v21 }
  0x85   :  { %862 = vmatprep.subr.mxu1 %v1803_v0  ;;  %1659 = vmatpush3.msra.mxu0 %v117_v8  ;;  %v784_v8 = vld [vmem:[%s3372_s2 + $0x120] sm:$0xff] }
  0x86   :  { %863 = vmatpush2.msra.mxu1 %v778_v11  ;;  %1033 = vmatprep.subr.mxu0 %v1803_v0  ;;  %v783_v11 = vld [vmem:[%s3372_s2 + $0x118] sm:$0xff] }
  0x87   :  { %283 = vmatmul.mubr.f32.gmra.mxu0 %v2130_v10  ;;  %488 = vmatmul.mubr.f32.gmra.mxu1 %v2151_v14 }
  0x88   :  { %864 = vmatprep.subr.mxu1 %v1803_v0  ;;  %287 = vmatprep.mubr.f32.mxu0 %v2188_v21 }
  0x89   :  { %492 = vmatprep.mubr.f32.mxu1 %v2209_v25  ;;  %865 = vmatpush2.msra.mxu1 %v777_v12  ;;  %v782_v12 = vld [vmem:[%s3372_s2 + $0x110] sm:$0xff] }
  0x8a   :  { %866 = vmatprep.subr.mxu1 %v1803_v0 }
  0x8b   :  { %288 = vmatmul.mubr.f32.gmra.mxu0 %v2151_v14  ;;  %493 = vmatmul.mubr.f32.gmra.mxu1 %v2172_v18 }
  0x8c   :  { %292 = vmatprep.mubr.f32.mxu0 %v2209_v25  ;;  %497 = vmatprep.mubr.f32.mxu1 %v2229_v29 }
  0x8d   :  { %867 = vmatpush2.msra.mxu1 %v776_v15  ;;  %v781_v15 = vld [vmem:[%s3372_s2 + $0x108] sm:$0xff] }
  0x8e   :  { %868 = vmatprep.subr.mxu1 %v1803_v0 }
  0x8f   :  { %293 = vmatmul.mubr.f32.gmra.mxu0 %v2172_v18  ;;  %498 = vmatmul.mubr.f32.gmra.mxu1 %v2193_v22 }
  0x90   :  { %869 = vmatpush2.msra.mxu1 %v775_v16  ;;  %297 = vmatprep.mubr.f32.mxu0 %v2229_v29  ;;  %v824_v16 = vld [vmem:[%s3372_s2 + $0x260] sm:$0xff] }
  0x91   :  { %502 = vmatprep.mubr.f32.mxu1 %v2459_v19  ;;  %870 = vmatprep.subr.mxu1 %v1803_v0 }
  0x92   :  { %871 = vmatpush2.msra.mxu1 %v774_v20  ;;  %v780_v20 = vld [vmem:[%s3372_s2 + $0x100] sm:$0xff] }
  0x93   :  { %298 = vmatmul.mubr.f32.gmra.mxu0 %v2193_v22  ;;  %503 = vmatmul.mubr.f32.gmra.mxu1 %v2218_v27 }
  0x94   :  { %302 = vmatprep.mubr.f32.mxu0 %v2261_v35  ;;  %507 = vmatprep.mubr.f32.mxu1 %v2282_v39 }
  0x95   :  { %872 = vmatprep.subr.mxu1 %v1803_v0 }
  0x96   :  { %873 = vmatpush2.msra.mxu1 %v773_v23  ;;  %v811_v23 = vld [vmem:[%s3372_s2 + $0x1f8] sm:$0xff] }
  0x97   :  { %303 = vmatmul.mubr.f32.gmra.mxu0 %v2236_v30  ;;  %508 = vmatmul.mubr.f32.gmra.mxu1 %v2241_v31 }
  0x98   :  { %307 = vmatprep.mubr.f32.mxu0 %v2282_v39  ;;  %512 = vmatprep.mubr.f32.mxu1 %v2303_v43 }
  0x99   :  { %874 = vmatprep.subr.mxu1 %v1803_v0 }
  0x9a   :  { %875 = vmatpush2.msra.mxu1 %v772_v24  ;;  %v823_v24 = vld [vmem:[%s3372_s2 + $0x258] sm:$0xff] }
  0x9b   :  { %308 = vmatmul.mubr.f32.gmra.mxu0 %v2241_v31  ;;  %513 = vmatmul.mubr.f32.gmra.mxu1 %v2267_v36 }
  0x9c   :  { %312 = vmatprep.mubr.f32.mxu0 %v2303_v43  ;;  %517 = vmatprep.mubr.f32.mxu1 %v2324_v47 }
  0x9d   :  { %876 = vmatprep.subr.mxu1 %v1803_v0 }
  0x9e   :  { %877 = vmatpush2.msra.mxu1 %v771_v26  ;;  %v809_v26 = vld [vmem:[%s3372_s2 + $0x1e8] sm:$0xff] }
  0x9f   :  { %313 = vmatmul.mubr.f32.gmra.mxu0 %v2267_v36  ;;  %518 = vmatmul.mubr.f32.gmra.mxu1 %v2288_v40 }
  0xa0   :  { %317 = vmatprep.mubr.f32.mxu0 %v2324_v47  ;;  %522 = vmatprep.mubr.f32.mxu1 %v2345_v51 }
  0xa1   :  { %878 = vmatprep.subr.mxu1 %v1803_v0 }
  0xa2   :  { %879 = vmatpush2.msra.mxu1 %v770_v28  ;;  %v2675_v28 = vld [vmem:[%s3371_s0 + $0x88] sm:$0xff] }
  0xa3   :  { %318 = vmatmul.mubr.f32.gmra.mxu0 %v2288_v40  ;;  %523 = vmatmul.mubr.f32.gmra.mxu1 %v2309_v44 }
  0xa4   :  { %880 = vmatprep.subr.mxu1 %v1803_v0  ;;  %322 = vmatprep.mubr.f32.mxu0 %v2345_v51 }
  0xa5   :  { %527 = vmatprep.mubr.f32.mxu1 %v2367_v55  ;;  %881 = vmatpush2.msra.mxu1 %v769_v32  ;;  %v808_v32 = vld [vmem:[%s3372_s2 + $0x1e0] sm:$0xff] }
  0xa6   :  { %882 = vmatprep.subr.mxu1 %v1803_v0 }
  0xa7   :  { %323 = vmatmul.mubr.f32.gmra.mxu0 %v2309_v44  ;;  %528 = vmatmul.mubr.f32.gmra.mxu1 %v2330_v48 }
  0xa8   :  { %327 = vmatprep.mubr.f32.mxu0 %v2367_v55  ;;  %532 = vmatprep.mubr.f32.mxu1 %v2387_v59 }
  0xa9   :  { %883 = vmatpush2.msra.mxu1 %v768_v33  ;;  %v807_v33 = vld [vmem:[%s3372_s2 + $0x1d8] sm:$0xff] }
  0xaa   :  { %884 = vmatprep.subr.mxu1 %v1803_v0 }
  0xab   :  { %328 = vmatmul.mubr.f32.gmra.mxu0 %v2330_v48  ;;  %533 = vmatmul.mubr.f32.gmra.mxu1 %v2351_v52 }
  0xac   :  { %885 = vmatpush2.msra.mxu1 %v767_v37  ;;  %332 = vmatprep.mubr.f32.mxu0 %v2387_v59  ;;  %v822_v37 = vld [vmem:[%s3372_s2 + $0x250] sm:$0xff] }
  0xad   :  { %886 = vmatprep.subr.mxu1 %v1803_v0  ;;  %537 = vmatprep.mubr.f32.mxu1 %v2524_v38 }
  0xae   :  { %887 = vmatpush2.msra.mxu1 %v766_v41  ;;  %v806_v41 = vld [vmem:[%s3372_s2 + $0x1d0] sm:$0xff] }
  0xaf   :  { %333 = vmatmul.mubr.f32.gmra.mxu0 %v2351_v52  ;;  %538 = vmatmul.mubr.f32.gmra.mxu1 %v2376_v57 }
  0xb0   :  { %888 = vmatprep.subr.mxu1 %v1803_v0  ;;  %1660 = vmatprep.mubr.f32.mxu0 %v2124_v9 }
  0xb1   :  { %889 = vmatpush2.msra.mxu1 %v765_v42  ;;  %892 = vmatprep.mubr.f32.mxu1 %v2083_v1  ;;  %v805_v42 = vld [vmem:[%s3372_s2 + $0x1c8] sm:$0xff] }
  0xb2   :  { %890 = vmatprep.subr.mxu1 %v1803_v0 }
  0xb3   :  { %891 = vmatpush2.msra.mxu1 %v764_v45  ;;  %1661 = vmatmul.mubr.f32.vlgmr.msra.gmra.mxu0 %v2146_v13  ;;  %v804_v45 = vld [vmem:[%s3372_s2 + $0x1c0] sm:$0xff] }
  0xb4   :  { %893 = vmatmul.mubr.f32.vlgmr.msra.gmra.mxu1 %v2098_v4  ;;  %1034 = vmatpush1.msra.mxu0 %v795_v46  ;;  %v792_v4 = vld [vmem:[%s3372_s2 + $0x160] sm:$0xff]  ;;  %v803_v46 = vld [vmem:[%s3372_s2 + $0x1b8] sm:$0xff] }
  0xb5   :  { %1035 = vmatprep.subr.mxu0 %v1803_v0  ;;  %1663 = vmatprep.mubr.f32.mxu0 %v2167_v17 }
  0xb6   :  { %1036 = vmatpush1.msra.mxu0 %v794_v49  ;;  %897 = vmatprep.mubr.f32.mxu1 %v2091_v3  ;;  %v821_v49 = vld [vmem:[%s3372_s2 + $0x248] sm:$0xff] }
  0xb7   :  { %1037 = vmatprep.subr.mxu0 %v1803_v0  ;;  %1664 = vmatmul.mubr.f32.gmra.mxu0 %v2188_v21 }
  0xb8   :  { %898 = vmatmul.mubr.f32.gmra.mxu1 %v2103_v5  ;;  %1038 = vmatpush1.msra.mxu0 %v793_v50  ;;  %v802_v50 = vld [vmem:[%s3372_s2 + $0x1b0] sm:$0xff] }
  0xb9   :  { %1039 = vmatprep.subr.mxu0 %v1803_v0  ;;  %1666 = vmatprep.mubr.f32.mxu0 %v2209_v25 }
  0xba   :  { %1040 = vmatpush1.msra.mxu0 %v792_v4  ;;  %902 = vmatprep.mubr.f32.mxu1 %v2113_v7  ;;  %v2728_v4 = vld [vmem:[%s3371_s0 + $0x118] sm:$0xff] }
  0xbb   :  { %1041 = vmatprep.subr.mxu0 %v1803_v0  ;;  %1702 = vmatprep.subr.mxu1 %v827_v53 }
  0xbc   :  { %1667 = vmatmul.mubr.f32.gmra.mxu0 %v2229_v29  ;;  %903 = vmatmul.mubr.f32.gmra.mxu1 %v2124_v9 }
  0xbd   :  { %1042 = vmatpush1.msra.mxu0 %v791_v54  ;;  %1703 = vmatpush3.msra.mxu1 %v827_v53  ;;  %v801_v53 = vld [vmem:[%s3372_s2 + $0x1a8] sm:$0xff]  ;;  %v800_v54 = vld [vmem:[%s3372_s2 + $0x1a0] sm:$0xff] }
  0xbe   :  { %1043 = vmatprep.subr.mxu0 %v1803_v0  ;;  %1669 = vmatprep.mubr.f32.mxu0 %v2459_v19 }
  0xbf   :  { %1044 = vmatpush1.msra.mxu0 %v790_v56  ;;  %907 = vmatprep.mubr.f32.mxu1 %v2130_v10  ;;  %v820_v56 = vld [vmem:[%s3372_s2 + $0x240] sm:$0xff] }
  0xc0   :  { %1045 = vmatprep.subr.mxu0 %v1803_v0  ;;  %1670 = vmatmul.mubr.f32.gmra.mxu0 %v2282_v39 }
  0xc1   :  { %908 = vmatmul.mubr.f32.gmra.mxu1 %v2146_v13  ;;  %1046 = vmatpush1.msra.mxu0 %v789_v58  ;;  %v799_v58 = vld [vmem:[%s3372_s2 + $0x198] sm:$0xff] }
  0xc2   :  { %1047 = vmatprep.subr.mxu0 %v1803_v0  ;;  %1704 = vmatprep.subr.mxu1 %v826_v60 }
  0xc3   :  { %1048 = vmatpush1.msra.mxu0 %v788_v61  ;;  %1672 = vmatprep.mubr.f32.mxu0 %v2303_v43  ;;  %v819_v61 = vld [vmem:[%s3372_s2 + $0x238] sm:$0xff] }
  0xc4   :  { %912 = vmatprep.mubr.f32.mxu1 %v2151_v14  ;;  %1049 = vmatprep.subr.mxu0 %v1803_v0 }
  0xc5   :  { %1705 = vmatpush3.msra.mxu1 %v826_v60  ;;  %1673 = vmatmul.mubr.f32.gmra.mxu0 %v2324_v47  ;;  %v798_v60 = vld [vmem:[%s3372_s2 + $0x190] sm:$0xff] }
  0xc6   :  { %913 = vmatmul.mubr.f32.gmra.mxu1 %v2167_v17  ;;  %1050 = vmatpush1.msra.mxu0 %v787_v62  ;;  %v797_v62 = vld [vmem:[%s3372_s2 + $0x188] sm:$0xff] }
  0xc7   :  { %1051 = vmatprep.subr.mxu0 %v1803_v0  ;;  %1675 = vmatprep.mubr.f32.mxu0 %v2345_v51 }
  0xc8   :  { %1052 = vmatpush1.msra.mxu0 %v786_v63  ;;  %917 = vmatprep.mubr.f32.mxu1 %v2172_v18  ;;  %v818_v63 = vld [vmem:[%s3372_s2 + $0x230] sm:$0xff] }
  0xc9   :  { %1053 = vmatprep.subr.mxu0 %v1803_v0  ;;  %1676 = vmatmul.mubr.f32.gmra.mxu0 %v2367_v55 }
  0xca   :  { %918 = vmatmul.mubr.f32.gmra.mxu1 %v2188_v21  ;;  %1054 = vmatpush1.msra.mxu0 %v785_v2  ;;  %v817_v2 = vld [vmem:[%s3372_s2 + $0x228] sm:$0xff] }
  0xcb   :  { %1055 = vmatprep.subr.mxu0 %v1803_v0  ;;  %1706 = vmatprep.subr.mxu1 %v825_v6 }
  0xcc   :  { %1056 = vmatpush1.msra.mxu0 %v784_v8  ;;  %1707 = vmatpush3.msra.mxu1 %v825_v6 }
  0xcd   :  { %1678 = vmatprep.mubr.f32.mxu0 %v2387_v59  ;;  %922 = vmatprep.mubr.f32.mxu1 %v2193_v22 }
  0xce   :  { %1057 = vmatprep.subr.mxu0 %v1803_v0  ;;  %1679 = vmatmul.mubr.f32.gmra.mxu0 %v2524_v38 }
  0xcf   :  { %923 = vmatmul.mubr.f32.gmra.mxu1 %v2209_v25  ;;  %1058 = vmatpush1.msra.mxu0 %v783_v11 }
  0xd0   :  { %1059 = vmatprep.subr.mxu0 %v1803_v0  ;;  %1681 = vmatprep.mubr.f32.mxu0 %v2113_v7 }
  0xd1   :  { %1060 = vmatpush1.msra.mxu0 %v782_v12  ;;  %927 = vmatprep.mubr.f32.mxu1 %v2236_v30  ;;  %v812_v12 = vld [vmem:[%s3372_s2 + $0x200] sm:$0xff] }
  0xd2   :  { %1061 = vmatprep.subr.mxu0 %v1803_v0  ;;  %1682 = vmatmul.mubr.f32.gmra.mxu0 %v2130_v10 }
  0xd3   :  { %928 = vmatmul.mubr.f32.gmra.mxu1 %v2256_v34  ;;  %1062 = vmatpush1.msra.mxu0 %v781_v15  ;;  %v810_v34 = vld [vmem:[%s3372_s2 + $0x1f0] sm:$0xff] }
  0xd4   :  { %1708 = vmatprep.subr.mxu1 %v824_v16  ;;  %1063 = vmatprep.subr.mxu0 %v1803_v0 }
  0xd5   :  { %1709 = vmatpush3.msra.mxu1 %v824_v16  ;;  %1064 = vmatpush1.msra.mxu0 %v780_v20 }
  0xd6   :  { %1684 = vmatprep.mubr.f32.mxu0 %v2151_v14  ;;  %932 = vmatprep.mubr.f32.mxu1 %v2241_v31 }
  0xd7   :  { %1065 = vmatprep.subr.mxu0 %v1803_v0  ;;  %1685 = vmatmul.mubr.f32.gmra.mxu0 %v2172_v18 }
  0xd8   :  { %933 = vmatmul.mubr.f32.gmra.mxu1 %v2261_v35  ;;  %1066 = vmatpush2.msra.mxu0 %v811_v23 }
  0xd9   :  { %1067 = vmatprep.subr.mxu0 %v1803_v0  ;;  %1687 = vmatprep.mubr.f32.mxu0 %v2193_v22 }
  0xda   :  { %1068 = vmatpush2.msra.mxu0 %v810_v34  ;;  %937 = vmatprep.mubr.f32.mxu1 %v2267_v36 }
  0xdb   :  { %1069 = vmatprep.subr.mxu0 %v1803_v0  ;;  %1710 = vmatprep.subr.mxu1 %v823_v24 }
  0xdc   :  { %1688 = vmatmul.mubr.f32.gmra.mxu0 %v2218_v27  ;;  %938 = vmatmul.mubr.f32.gmra.mxu1 %v2282_v39 }
  0xdd   :  { %1070 = vmatpush2.msra.mxu0 %v809_v26  ;;  %1711 = vmatpush3.msra.mxu1 %v823_v24 }
  0xde   :  { %1071 = vmatprep.subr.mxu0 %v1803_v0  ;;  %1690 = vmatprep.mubr.f32.mxu0 %v2675_v28 }
  0xdf   :  { %1072 = vmatpush2.msra.mxu0 %v808_v32  ;;  %942 = vmatprep.mubr.f32.mxu1 %v2288_v40 }
  0xe0   :  { %1073 = vmatprep.subr.mxu0 %v1803_v0  ;;  %1691 = vmatmul.mubr.f32.gmra.mxu0 %v2267_v36 }
  0xe1   :  { %943 = vmatmul.mubr.f32.gmra.mxu1 %v2303_v43  ;;  %1074 = vmatpush2.msra.mxu0 %v807_v33 }
  0xe2   :  { %1075 = vmatprep.subr.mxu0 %v1803_v0  ;;  %1712 = vmatprep.subr.mxu1 %v822_v37 }
  0xe3   :  { %1076 = vmatpush2.msra.mxu0 %v806_v41  ;;  %1693 = vmatprep.mubr.f32.mxu0 %v2288_v40 }
  0xe4   :  { %947 = vmatprep.mubr.f32.mxu1 %v2309_v44  ;;  %1077 = vmatprep.subr.mxu0 %v1803_v0 }
  0xe5   :  { %1713 = vmatpush3.msra.mxu1 %v822_v37  ;;  %1694 = vmatmul.mubr.f32.gmra.mxu0 %v2309_v44 }
  0xe6   :  { %948 = vmatmul.mubr.f32.gmra.mxu1 %v2324_v47  ;;  %1078 = vmatpush2.msra.mxu0 %v805_v42 }
  0xe7   :  { %1079 = vmatprep.subr.mxu0 %v1803_v0  ;;  %1696 = vmatprep.mubr.f32.mxu0 %v2330_v48 }
  0xe8   :  { %1080 = vmatpush2.msra.mxu0 %v804_v45  ;;  %952 = vmatprep.mubr.f32.mxu1 %v2330_v48 }
  0xe9   :  { %1081 = vmatprep.subr.mxu0 %v1803_v0  ;;  %1697 = vmatmul.mubr.f32.gmra.mxu0 %v2351_v52 }
  0xea   :  { %953 = vmatmul.mubr.f32.gmra.mxu1 %v2345_v51  ;;  %1082 = vmatpush2.msra.mxu0 %v803_v46 }
  0xeb   :  { %1083 = vmatprep.subr.mxu0 %v1803_v0  ;;  %1714 = vmatprep.subr.mxu1 %v821_v49 }
  0xec   :  { %1084 = vmatpush2.msra.mxu0 %v802_v50  ;;  %1715 = vmatpush3.msra.mxu1 %v821_v49 }
  0xed   :  { %1699 = vmatprep.mubr.f32.mxu0 %v2376_v57  ;;  %957 = vmatprep.mubr.f32.mxu1 %v2351_v52 }
  0xee   :  { %1085 = vmatprep.subr.mxu0 %v1803_v0  ;;  %1700 = vmatmul.mubr.f32.gmra.mxu0 %v2728_v4 }
  0xef   :  { %958 = vmatmul.mubr.f32.gmra.mxu1 %v2367_v55  ;;  %1086 = vmatpush2.msra.mxu0 %v801_v53 }
  0xf0   :  { %1087 = vmatprep.subr.mxu0 %v1803_v0  ;;  %962 = vmatprep.mubr.f32.mxu1 %v2103_v5 }
  0xf1   :  { %1088 = vmatpush2.msra.mxu0 %v800_v54  ;;  %1716 = vmatprep.subr.mxu1 %v820_v56 }
  0xf2   :  { %1089 = vmatprep.subr.mxu0 %v1803_v0  ;;  %1717 = vmatpush3.msra.mxu1 %v820_v56 }
  0xf3   :  { %963 = vmatmul.mubr.f32.gmra.mxu1 %v2083_v1  ;;  %1090 = vmatpush2.msra.mxu0 %v799_v58  ;;  %v796_v1 = vld [vmem:[%s3372_s2 + $0x180] sm:$0xff] }
  0xf4   :  { %1091 = vmatprep.subr.mxu0 %v1803_v0  ;;  %967 = vmatprep.mubr.f32.mxu1 %v2124_v9 }
  0xf5   :  { %1092 = vmatpush2.msra.mxu0 %v798_v60  ;;  %1097 = vmatprep.mubr.f32.mxu0 %v2091_v3 }
  0xf6   :  { %1093 = vmatprep.subr.mxu0 %v1803_v0  ;;  %1718 = vmatprep.subr.mxu1 %v819_v61 }
  0xf7   :  { %968 = vmatmul.mubr.f32.gmra.mxu1 %v2091_v3  ;;  %1094 = vmatpush2.msra.mxu0 %v797_v62  ;;  %v815_v3 = vld [vmem:[%s3372_s2 + $0x218] sm:$0xff] }
  0xf8   :  { %1095 = vmatprep.subr.mxu0 %v1803_v0  ;;  %972 = vmatprep.mubr.f32.mxu1 %v2146_v13  ;;  %v816_v0 = vld [vmem:[%s3372_s2 + $0x220] sm:$0xff] }
  0xf9   :  { %1096 = vmatpush2.msra.mxu0 %v796_v1  ;;  %1719 = vmatpush3.msra.mxu1 %v819_v61 }
  0xfa   :  { %1098 = vmatmul.mubr.f32.vlgmr.msra.gmra.mxu0 %v2103_v5  ;;  %1720 = vmatprep.subr.mxu1 %v818_v63  ;;  %v814_v5 = vld [vmem:[%s3372_s2 + $0x210] sm:$0xff] }
  0xfb   :  { %973 = vmatmul.mubr.f32.gmra.mxu1 %v2113_v7  ;;  %1102 = vmatprep.mubr.f32.mxu0 %v2113_v7 }
  0xfc   :  { %977 = vmatprep.mubr.f32.mxu1 %v2167_v17  ;;  %1721 = vmatpush3.msra.mxu1 %v818_v63 }
  0xfd   :  { %1722 = vmatprep.subr.mxu1 %v817_v2 }
  0xfe   :  { %1103 = vmatmul.mubr.f32.gmra.mxu0 %v2124_v9  ;;  %1723 = vmatpush3.msra.mxu1 %v817_v2 }
  0xff   :  { %978 = vmatmul.mubr.f32.gmra.mxu1 %v2130_v10  ;;  %1107 = vmatprep.mubr.f32.mxu0 %v2130_v10 }
 0x100   :  { %982 = vmatprep.mubr.f32.mxu1 %v2188_v21  ;;  %1724 = vmatprep.subr.mxu1 %v816_v0 }
 0x101   :  { %1725 = vmatpush3.msra.mxu1 %v816_v0 }
 0x102   :  { %1108 = vmatmul.mubr.f32.gmra.mxu0 %v2146_v13  ;;  %1726 = vmatprep.subr.mxu1 %v815_v3  ;;  %v199_v7 = vpop.f32.mrf.mxu0  ;;  %v813_v13 = vld [vmem:[%s3372_s2 + $0x208] sm:$0xff] }
 0x103   :  { %983 = vmatmul.mubr.f32.gmra.mxu1 %v2151_v14  ;;  %1112 = vmatprep.mubr.f32.mxu0 %v2151_v14  ;;  %v404_v9 = vpop.f32.mrf.mxu1 }
 0x104   :  { %987 = vmatprep.mubr.f32.mxu1 %v2209_v25  ;;  %v2797_v10 = vadd.f32 %v404_v9, %v199_v7  ;;  %1727 = vmatpush3.msra.mxu1 %v815_v3  ;;  %v201_v6 = vpop.f32.mrf.mxu0  ;;  %v1779_v9 = vld [vmem:[%s3371_s0 + $0x20] sm:$0xff] }
 0x105   :  { %v406_v8 = vpop.f32.mrf.mxu1  ;;  %1728 = vmatprep.subr.mxu1 %v814_v5 }
 0x106   :  { %1113 = vmatmul.mubr.f32.gmra.mxu0 %v2167_v17  ;;  %1729 = vmatpush3.msra.mxu1 %v814_v5  ;;  %v204_v14 = vpop.f32.mrf.mxu0  ;;  %v1778_v5 = vld [vmem:[%s3371_s0 + $0x18] sm:$0xff] }
 0x107   :  { %988 = vmatmul.mubr.f32.gmra.mxu1 %v2172_v18  ;;  %1117 = vmatprep.mubr.f32.mxu0 %v2172_v18  ;;  %v409_v11 = vpop.f32.mrf.mxu1 }
 0x108   :  { %992 = vmatprep.mubr.f32.mxu1 %v2229_v29  ;;  %v2809_v15 = vadd.f32 %v409_v11, %v204_v14  ;;  %1730 = vmatprep.subr.mxu1 %v813_v13  ;;  %v206_v16 = vpop.f32.mrf.mxu0  ;;  %v1780_v14 = vld [vmem:[%s3371_s0 + $0x28] sm:$0xff] }
 0x109   :  { %v411_v20 = vpop.f32.mrf.mxu1  ;;  %1731 = vmatpush3.msra.mxu1 %v813_v13 }
 0x10a   :  { %1118 = vmatmul.mubr.f32.gmra.mxu0 %v2188_v21  ;;  %1732 = vmatprep.subr.mxu1 %v812_v12  ;;  %v209_v17 = vpop.f32.mrf.mxu0 }
 0x10b   :  { %993 = vmatmul.mubr.f32.gmra.mxu1 %v2193_v22  ;;  %1122 = vmatprep.mubr.f32.mxu0 %v2193_v22  ;;  %v414_v18 = vpop.f32.mrf.mxu1 }
 0x10c   :  { %997 = vmatprep.mubr.f32.mxu1 %v2261_v35  ;;  %v2815_v23 = vadd.f32 %v414_v18, %v209_v17  ;;  %1733 = vmatpush3.msra.mxu1 %v812_v12  ;;  %v211_v34 = vpop.f32.mrf.mxu0  ;;  %v1781_v12 = vld [vmem:[%s3371_s0 + $0x30] sm:$0xff] }
 0x10d   :  { %v416_v24 = vpop.f32.mrf.mxu1  ;;  %v1782_v18 = vld [vmem:[%s3371_s0 + $0x50] sm:$0xff]  ;;  %v1783_v34 = vld [vmem:[%s3371_s0 + $0x38] sm:$0xff] }
 0x10e   :  { %1123 = vmatmul.mubr.f32.gmra.mxu0 %v2209_v25  ;;  %v214_v21 = vpop.f32.mrf.mxu0 }
 0x10f   :  { %998 = vmatmul.mubr.f32.gmra.mxu1 %v2236_v30  ;;  %1127 = vmatprep.mubr.f32.mxu0 %v2218_v27  ;;  %v419_v26 = vpop.f32.mrf.mxu1 }
 0x110   :  { %1002 = vmatprep.mubr.f32.mxu1 %v2282_v39  ;;  %v2821_v22 = vadd.f32 %v419_v26, %v214_v21  ;;  %v216_v32 = vpop.f32.mrf.mxu0 }
 0x111   :  { %v421_v33 = vpop.f32.mrf.mxu1 }
 0x112   :  { %1128 = vmatmul.mubr.f32.gmra.mxu0 %v2229_v29  ;;  %v219_v37 = vpop.f32.mrf.mxu0 }
 0x113   :  { %1003 = vmatmul.mubr.f32.gmra.mxu1 %v2241_v31  ;;  %1132 = vmatprep.mubr.f32.mxu0 %v2241_v31  ;;  %v424_v25 = vpop.f32.mrf.mxu1 }
 0x114   :  { %1007 = vmatprep.mubr.f32.mxu1 %v2303_v43  ;;  %v2827_v30 = vadd.f32 %v424_v25, %v219_v37  ;;  %v221_v27 = vpop.f32.mrf.mxu0  ;;  %v1784_v37 = vld [vmem:[%s3371_s0 + $0x58] sm:$0xff]  ;;  %v1785_v25 = vld [vmem:[%s3371_s0 + $0xa0] sm:$0xff] }
 0x115   :  { %v426_v41 = vpop.f32.mrf.mxu1 }
 0x116   :  { %1133 = vmatmul.mubr.f32.gmra.mxu0 %v2261_v35  ;;  %v224_v42 = vpop.f32.mrf.mxu0 }
 0x117   :  { %1008 = vmatmul.mubr.f32.gmra.mxu1 %v2267_v36  ;;  %1137 = vmatprep.mubr.f32.mxu0 %v2267_v36  ;;  %v429_v29 = vpop.f32.mrf.mxu1 }
 0x118   :  { %1012 = vmatprep.mubr.f32.mxu1 %v2324_v47  ;;  %v2833_v45 = vadd.f32 %v429_v29, %v224_v42  ;;  %v226_v31 = vpop.f32.mrf.mxu0  ;;  %v1786_v42 = vld [vmem:[%s3371_s0 + $0xa8] sm:$0xff] }
 0x119   :  { %v431_v46 = vpop.f32.mrf.mxu1 }
 0x11a   :  { %1138 = vmatmul.mubr.f32.gmra.mxu0 %v2282_v39  ;;  %v229_v49 = vpop.f32.mrf.mxu0 }
 0x11b   :  { %1013 = vmatmul.mubr.f32.gmra.mxu1 %v2288_v40  ;;  %1142 = vmatprep.mubr.f32.mxu0 %v2288_v40  ;;  %v434_v35 = vpop.f32.mrf.mxu1 }
 0x11c   :  { %1017 = vmatprep.mubr.f32.mxu1 %v2345_v51  ;;  %v2839_v50 = vadd.f32 %v434_v35, %v229_v49  ;;  %v231_v36 = vpop.f32.mrf.mxu0  ;;  %v1787_v49 = vld [vmem:[%s3371_s0 + $0x60] sm:$0xff] }
 0x11d   :  { %v436_v53 = vpop.f32.mrf.mxu1 }
 0x11e   :  { %1143 = vmatmul.mubr.f32.gmra.mxu0 %v2303_v43 }
 0x11f   :  { %1018 = vmatmul.mubr.f32.gmra.mxu1 %v2309_v44  ;;  %1147 = vmatprep.mubr.f32.mxu0 %v2309_v44  ;;  %v234_v54 = vpop.f32.mrf.mxu0  ;;  %v439_v39 = vpop.f32.mrf.mxu1 }
 0x120   :  { %1022 = vmatprep.mubr.f32.mxu1 %v2367_v55  ;;  %v2845_v56 = vadd.f32 %v439_v39, %v234_v54 }
 0x121   :  { %v236_v40 = vpop.f32.mrf.mxu0  ;;  %v441_v58 = vpop.f32.mrf.mxu1 }
 0x122   :  { %1148 = vmatmul.mubr.f32.gmra.mxu0 %v2324_v47  ;;  %v1788_v40 = vld [vmem:[%s3371_s0 + $0x68] sm:$0xff] }
 0x123   :  { %1023 = vmatmul.mubr.f32.gmra.mxu1 %v2330_v48  ;;  %1152 = vmatprep.mubr.f32.mxu0 %v2330_v48  ;;  %v239_v60 = vpop.f32.mrf.mxu0  ;;  %v444_v43 = vpop.f32.mrf.mxu1  ;;  %v1777_v48 = vld [vmem:[%s3371_s0 + $0x10] sm:$0xff] }
 0x124   :  { %1027 = vmatprep.mubr.f32.mxu1 %v2387_v59  ;;  %v2851_v61 = vadd.f32 %v444_v43, %v239_v60 }
 0x125   :  { %v241_v44 = vpop.f32.mrf.mxu0  ;;  %v446_v62 = vpop.f32.mrf.mxu1 }
 0x126   :  { %1153 = vmatmul.mubr.f32.gmra.mxu0 %v2345_v51  ;;  %v1789_v44 = vld [vmem:[%s3371_s0 + $0x70] sm:$0xff] }
 0x127   :  { %1028 = vmatmul.mubr.f32.gmra.mxu1 %v2351_v52  ;;  %1157 = vmatprep.mubr.f32.mxu0 %v2351_v52  ;;  %v244_v1 = vpop.f32.mrf.mxu0  ;;  %v449_v63 = vpop.f32.mrf.mxu1 }
 0x128   :  { %1734 = vmatprep.mubr.f32.mxu1 %v1777_v48  ;;  %v2859_v2 = vadd.f32 %v449_v63, %v244_v1 }
 0x129   :  { %v246_v0 = vpop.f32.mrf.mxu0  ;;  %v451_v3 = vpop.f32.mrf.mxu1 }
 0x12a   :  { %1158 = vmatmul.mubr.f32.gmra.mxu0 %v2367_v55 }
 0x12b   :  { %1735 = vmatmul.mubr.f32.vlgmr.msra.gmra.mxu1 %v1778_v5  ;;  %1162 = vmatprep.mubr.f32.mxu0 %v2376_v57  ;;  %v249_v52 = vpop.f32.mrf.mxu0  ;;  %v454_v7 = vpop.f32.mrf.mxu1 }
 0x12c   :  { %1737 = vmatprep.mubr.f32.mxu1 %v1779_v9  ;;  %v2869_v6 = vadd.f32 %v454_v7, %v249_v52 }
 0x12d   :  { %v251_v8 = vpop.f32.mrf.mxu0  ;;  %v456_v13 = vpop.f32.mrf.mxu1 }
 0x12e   :  { %1163 = vmatmul.mubr.f32.gmra.mxu0 %v2387_v59 }
 0x12f   :  { %1738 = vmatmul.mubr.f32.gmra.mxu1 %v1780_v14  ;;  %1167 = vmatprep.mubr.f32.mxu0 %v1777_v48  ;;  %v254_v57 = vpop.f32.mrf.mxu0  ;;  %v459_v11 = vpop.f32.mrf.mxu1 }
 0x130   :  { %1740 = vmatprep.mubr.f32.mxu1 %v1781_v12  ;;  %v2878_v16 = vadd.f32 %v459_v11, %v254_v57  ;;  %v1792_v11 = vld [vmem:[%s3371_s0 + $0xe0] sm:$0xff] }
 0x131   :  { %v256_v20 = vpop.f32.mrf.mxu0  ;;  %v461_v17 = vpop.f32.mrf.mxu1 }
 0x132   :  { %1168 = vmatmul.mubr.f32.gmra.mxu0 %v1782_v18 }
 0x133   :  { %1741 = vmatmul.mubr.f32.gmra.mxu1 %v1783_v34  ;;  %1172 = vmatprep.mubr.f32.mxu0 %v1778_v5  ;;  %v259_v24 = vpop.f32.mrf.mxu0  ;;  %v464_v21 = vpop.f32.mrf.mxu1 }
 0x134   :  { %1743 = vmatprep.mubr.f32.mxu1 %v2459_v19  ;;  %v2887_v26 = vadd.f32 %v464_v21, %v259_v24  ;;  %v1793_v24 = vld [vmem:[%s3371_s0 + $0xe8] sm:$0xff]  ;;  %v1794_v21 = vld [vmem:[%s3371_s0 + $0xb0] sm:$0xff] }
 0x135   :  { %v261_v32 = vpop.f32.mrf.mxu0  ;;  %v466_v33 = vpop.f32.mrf.mxu1 }
 0x136   :  { %1173 = vmatmul.mubr.f32.gmra.mxu0 %v1784_v37 }
 0x137   :  { %1744 = vmatmul.mubr.f32.gmra.mxu1 %v1785_v25  ;;  %1177 = vmatprep.mubr.f32.mxu0 %v1779_v9  ;;  %v264_v27 = vpop.f32.mrf.mxu0  ;;  %v469_v41 = vpop.f32.mrf.mxu1  ;;  %v1791_v9 = vld [vmem:[%s3371_s0 + $0x80] sm:$0xff] }
 0x138   :  { %1746 = vmatprep.mubr.f32.mxu1 %v1786_v42  ;;  %v2898_v29 = vadd.f32 %v469_v41, %v264_v27  ;;  %v1796_v41 = vld [vmem:[%s3371_s0 + $0xf8] sm:$0xff] }
 0x139   :  { %v266_v31 = vpop.f32.mrf.mxu0  ;;  %v471_v46 = vpop.f32.mrf.mxu1 }
 0x13a   :  { %1178 = vmatmul.mubr.f32.gmra.mxu0 %v1787_v49 }
 0x13b   :  { %1747 = vmatmul.mubr.f32.gmra.mxu1 %v2324_v47  ;;  %1182 = vmatprep.mubr.f32.mxu0 %v1780_v14  ;;  %v269_v35 = vpop.f32.mrf.mxu0  ;;  %v474_v36 = vpop.f32.mrf.mxu1 }
 0x13c   :  { %1749 = vmatprep.mubr.f32.mxu1 %v2345_v51  ;;  %v2905_v53 = vadd.f32 %v474_v36, %v269_v35 }
 0x13d   :  { %v271_v54 = vpop.f32.mrf.mxu0  ;;  %v476_v39 = vpop.f32.mrf.mxu1 }
 0x13e   :  { %1183 = vmatmul.mubr.f32.gmra.mxu0 %v1788_v40  ;;  %v1799_v39 = vld [vmem:[%s3371_s0 + $0x108] sm:$0xff] }
 0x13f   :  { %1750 = vmatmul.mubr.f32.gmra.mxu1 %v2367_v55  ;;  %1187 = vmatprep.mubr.f32.mxu0 %v1781_v12  ;;  %v274_v58 = vpop.f32.mrf.mxu0  ;;  %v479_v60 = vpop.f32.mrf.mxu1 }
 0x140   :  { %1752 = vmatprep.mubr.f32.mxu1 %v2387_v59  ;;  %v2912_v47 = vadd.f32 %v479_v60, %v274_v58  ;;  %v1790_v59 = vld [vmem:[%s3371_s0 + $0x78] sm:$0xff] }
 0x141   :  { %v276_v43 = vpop.f32.mrf.mxu0  ;;  %v481_v51 = vpop.f32.mrf.mxu1 }
 0x142   :  { %1188 = vmatmul.mubr.f32.gmra.mxu0 %v1789_v44  ;;  %v1801_v43 = vld [vmem:[%s3371_s0 + $0x110] sm:$0xff] }
 0x143   :  { %1753 = vmatmul.mubr.f32.gmra.mxu1 %v2524_v38  ;;  %1192 = vmatprep.mubr.f32.mxu0 %v1783_v34  ;;  %v279_v62 = vpop.f32.mrf.mxu0  ;;  %v484_v1 = vpop.f32.mrf.mxu1 }
 0x144   :  { %1755 = vmatprep.mubr.f32.mxu1 %v1784_v37  ;;  %v2918_v55 = vadd.f32 %v484_v1, %v279_v62  ;;  %v1802_v1 = vld [vmem:[%s3371_s0 + $0xc8] sm:$0xff] }
 0x145   :  { %v281_v63 = vpop.f32.mrf.mxu0  ;;  %v486_v48 = vpop.f32.mrf.mxu1 }
 0x146   :  { %1193 = vmatmul.mubr.f32.gmra.mxu0 %v1790_v59 }
 0x147   :  { %1756 = vmatmul.mubr.f32.gmra.mxu1 %v1787_v49  ;;  %1197 = vmatprep.mubr.f32.mxu0 %v2459_v19  ;;  %v284_v0 = vpop.f32.mrf.mxu0  ;;  %v489_v3 = vpop.f32.mrf.mxu1  ;;  %v1798_v49 = vld [vmem:[%s3371_s0 + $0x100] sm:$0xff] }
 0x148   :  { %1758 = vmatprep.mubr.f32.mxu1 %v1788_v40  ;;  %v2924_v5 = vadd.f32 %v489_v3, %v284_v0  ;;  %v1800_v40 = vld [vmem:[%s3371_s0 + $0xc0] sm:$0xff] }
 0x149   :  { %v286_v52 = vpop.f32.mrf.mxu0  ;;  %v491_v7 = vpop.f32.mrf.mxu1 }
 0x14a   :  { %1198 = vmatmul.mubr.f32.gmra.mxu0 %v1791_v9 }
 0x14b   :  { %1759 = vmatmul.mubr.f32.gmra.mxu1 %v1789_v44  ;;  %1202 = vmatprep.mubr.f32.mxu0 %v1785_v25  ;;  %v289_v8 = vpop.f32.mrf.mxu0  ;;  %v494_v13 = vpop.f32.mrf.mxu1 }
 0x14c   :  { %1761 = vmatprep.mubr.f32.mxu1 %v1790_v59  ;;  %v2929_v14 = vadd.f32 %v494_v13, %v289_v8 }
 0x14d   :  { %v291_v19 = vpop.f32.mrf.mxu0  ;;  %v496_v57 = vpop.f32.mrf.mxu1 }
 0x14e   :  { %1203 = vmatmul.mubr.f32.gmra.mxu0 %v1792_v11 }
 0x14f   :  { %1762 = vmatmul.mubr.f32.gmra.mxu1 %v1791_v9  ;;  %1207 = vmatprep.mubr.f32.mxu0 %v1786_v42  ;;  %v294_v12 = vpop.f32.mrf.mxu0  ;;  %v499_v20 = vpop.f32.mrf.mxu1  ;;  %v1797_v42 = vld [vmem:[%s3371_s0 + $0xb8] sm:$0xff] }
 0x150   :  { %1764 = vmatprep.mubr.f32.mxu1 %v2675_v28  ;;  %v2935_v17 = vadd.f32 %v499_v20, %v294_v12  ;;  %v1795_v28 = vld [vmem:[%s3371_s0 + $0xf0] sm:$0xff] }
 0x151   :  { %v296_v18 = vpop.f32.mrf.mxu0  ;;  %v501_v34 = vpop.f32.mrf.mxu1 }
 0x152   :  { %1208 = vmatmul.mubr.f32.gmra.mxu0 %v1793_v24 }
 0x153   :  { %1765 = vmatmul.mubr.f32.gmra.mxu1 %v1793_v24  ;;  %1212 = vmatprep.mubr.f32.mxu0 %v1794_v21  ;;  %v299_v32 = vpop.f32.mrf.mxu0  ;;  %v504_v33 = vpop.f32.mrf.mxu1 }
 0x154   :  { %1767 = vmatprep.mubr.f32.mxu1 %v1795_v28  ;;  %v2946_v37 = vadd.f32 %v504_v33, %v299_v32 }
 0x155   :  { %v301_v25 = vpop.f32.mrf.mxu0  ;;  %v506_v27 = vpop.f32.mrf.mxu1 }
 0x156   :  { %1213 = vmatmul.mubr.f32.gmra.mxu0 %v1795_v28 }
 0x157   :  { %1768 = vmatmul.mubr.f32.gmra.mxu1 %v1796_v41  ;;  %1217 = vmatprep.mubr.f32.mxu0 %v1797_v42  ;;  %v304_v31 = vpop.f32.mrf.mxu0  ;;  %v509_v46 = vpop.f32.mrf.mxu1 }
 0x158   :  { %1770 = vmatprep.mubr.f32.mxu1 %v1798_v49  ;;  %v2957_v35 = vadd.f32 %v509_v46, %v304_v31 }
 0x159   :  { %v306_v36 = vpop.f32.mrf.mxu0  ;;  %v511_v54 = vpop.f32.mrf.mxu1 }
 0x15a   :  { %1218 = vmatmul.mubr.f32.gmra.mxu0 %v1796_v41 }
 0x15b   :  { %1771 = vmatmul.mubr.f32.gmra.mxu1 %v1799_v39  ;;  %1222 = vmatprep.mubr.f32.mxu0 %v1800_v40  ;;  %v309_v58 = vpop.f32.mrf.mxu0  ;;  %v514_v60 = vpop.f32.mrf.mxu1 }
 0x15c   :  { %1773 = vmatprep.mubr.f32.mxu1 %v1801_v43  ;;  %v2968_v51 = vadd.f32 %v514_v60, %v309_v58 }
 0x15d   :  { %v311_v44 = vpop.f32.mrf.mxu0  ;;  %v516_v62 = vpop.f32.mrf.mxu1 }
 0x15e   :  { %1223 = vmatmul.mubr.f32.gmra.mxu0 %v1798_v49 }
 0x15f   :  { %1227 = vmatprep.mubr.f32.mxu0 %v1802_v1  ;;  %1774 = vmatmul.mubr.f32.gmra.mxu1 %v2728_v4  ;;  %v314_v63 = vpop.f32.mrf.mxu0  ;;  %v519_v48 = vpop.f32.mrf.mxu1 }
 0x160   :  { %v2974_v59 = vadd.f32 %v519_v48, %v314_v63 }
 0x161   :  { %v316_v0 = vpop.f32.mrf.mxu0  ;;  %v521_v3 = vpop.f32.mrf.mxu1 }
 0x162   :  { %1228 = vmatmul.mubr.f32.gmra.mxu0 %v1799_v39 }
 0x163   :  { %1232 = vmatprep.mubr.f32.mxu0 %v2524_v38  ;;  %v319_v52 = vpop.f32.mrf.mxu0  ;;  %v524_v7 = vpop.f32.mrf.mxu1 }
 0x164   :  { %v2977_v9 = vadd.f32 %v524_v7, %v319_v52 }
 0x165   :  { %v321_v8 = vpop.f32.mrf.mxu0  ;;  %v526_v13 = vpop.f32.mrf.mxu1 }
 0x166   :  { %1233 = vmatmul.mubr.f32.gmra.mxu0 %v1801_v43 }
 0x167   :  { %v324_v19 = vpop.f32.mrf.mxu0  ;;  %v529_v57 = vpop.f32.mrf.mxu1 }
 0x168   :  { %v2979_v11 = vadd.f32 %v529_v57, %v324_v19 }
 0x169   :  { %v326_v4 = vpop.f32.mrf.mxu0  ;;  %v531_v12 = vpop.f32.mrf.mxu1 }
 0x16b   :  { %v329_v20 = vpop.f32.mrf.mxu0  ;;  %v534_v18 = vpop.f32.mrf.mxu1 }
 0x16c   :  { %v2981_v34 = vadd.f32 %v534_v18, %v329_v20 }
 0x16d   :  { %v331_v24 = vpop.f32.mrf.mxu0  ;;  %v536_v21 = vpop.f32.mrf.mxu1 }
 0x16f   :  { %v334_v38 = vpop.f32.mrf.mxu0  ;;  %v539_v32 = vpop.f32.mrf.mxu1 }
 0x170   :  { %v2983_v33 = vadd.f32 %v539_v32, %v334_v38 }
 0x171   :  { %v336_v28 = vpop.f32.mrf.mxu0  ;;  %v541_v25 = vpop.f32.mrf.mxu1 }
 0x173   :  { %v1662_v27 = vpop.f32.mrf.mxu0 }
 0x174   :  { %v2986_v41 = vadd.f32 %v1662_v27, %v2809_v15  ;;  %v2988_v42 = vpop.f32.mrf.mxu1 }
 0x175   :  { %v609_v31 = vpop.f32.mrf.mxu0 }
 0x176   :  { %v2991_v46 = vadd.f32 %v609_v31, %v2797_v10  ;;  %v896_v49 = vpop.f32.mrf.mxu1 }
 0x177   :  { %v1665_v36 = vpop.f32.mrf.mxu0 }
 0x178   :  { %v2994_v54 = vadd.f32 %v1665_v36, %v2821_v22  ;;  %v2996_v39 = vpop.f32.mrf.mxu1 }
 0x179   :  { %v619_v40 = vpop.f32.mrf.mxu0 }
 0x17a   :  { %v2999_v58 = vadd.f32 %v619_v40, %v2815_v23  ;;  %v901_v60 = vpop.f32.mrf.mxu1 }
 0x17c   :  { %v1668_v15 = vpop.f32.mrf.mxu0  ;;  %v3001_v43 = vpop.f32.mrf.mxu1 }
 0x17d   :  { %v3004_v44 = vadd.f32 %v1668_v15, %v2833_v45 }
 0x17e   :  { %v629_v10 = vpop.f32.mrf.mxu0  ;;  %v906_v62 = vpop.f32.mrf.mxu1 }
 0x17f   :  { %v3007_v1 = vadd.f32 %v629_v10, %v2827_v30 }
 0x180   :  { %v1671_v22 = vpop.f32.mrf.mxu0 }
 0x181   :  { %v3010_v63 = vadd.f32 %v1671_v22, %v2845_v56  ;;  %v3012_v48 = vpop.f32.mrf.mxu1 }
 0x182   :  { %v639_v23 = vpop.f32.mrf.mxu0 }
 0x183   :  { %3391 = vst [vmem:[#allocation2_spill] sm:$0xff] %v3010_v63  ;;  %v3015_v0 = vadd.f32 %v639_v23, %v2839_v50  ;;  %v911_v3 = vpop.f32.mrf.mxu1 }
 0x185   :  { %3392 = vst [vmem:[#allocation3_spill] sm:$0xff] %v3015_v0  ;;  %v1674_v52 = vpop.f32.mrf.mxu0 }
 0x186   :  { %v3018_v45 = vadd.f32 %v1674_v52, %v2859_v2  ;;  %v3020_v7 = vpop.f32.mrf.mxu1 }
 0x187   :  { %v649_v8 = vpop.f32.mrf.mxu0 }
 0x188   :  { %3393 = vst [vmem:[#allocation4_spill] sm:$0xff] %v3018_v45  ;;  %v3023_v30 = vadd.f32 %v649_v8, %v2851_v61  ;;  %v916_v13 = vpop.f32.mrf.mxu1 }
 0x189   :  { %v1677_v56 = vpop.f32.mrf.mxu0 }
 0x18a   :  { %3394 = vst [vmem:[#allocation5_spill] sm:$0xff] %v3023_v30  ;;  %v3026_v19 = vadd.f32 %v1677_v56, %v2878_v16  ;;  %v3028_v57 = vpop.f32.mrf.mxu1 }
 0x18b   :  { %v659_v50 = vpop.f32.mrf.mxu0 }
 0x18c   :  { %3395 = vst [vmem:[#allocation6_spill] sm:$0xff] %v3026_v19  ;;  %v3031_v4 = vadd.f32 %v659_v50, %v2869_v6  ;;  %v921_v12 = vpop.f32.mrf.mxu1 }
 0x18e   :  { %3396 = vst [vmem:[#allocation7_spill] sm:$0xff] %v3031_v4  ;;  %v1680_v2 = vpop.f32.mrf.mxu0 }
 0x18f   :  { %v3034_v20 = vadd.f32 %v1680_v2, %v2898_v29  ;;  %v3036_v18 = vpop.f32.mrf.mxu1 }
 0x190   :  { %v669_v61 = vpop.f32.mrf.mxu0 }
 0x191   :  { %3397 = vst [vmem:[#allocation8_spill] sm:$0xff] %v3034_v20  ;;  %v3039_v24 = vadd.f32 %v669_v61, %v2887_v26  ;;  %v926_v21 = vpop.f32.mrf.mxu1 }
 0x192   :  { %v1683_v16 = vpop.f32.mrf.mxu0 }
 0x193   :  { %3398 = vst [vmem:[#allocation9_spill] sm:$0xff] %v3039_v24  ;;  %v3042_v38 = vadd.f32 %v1683_v16, %v2912_v47  ;;  %v3044_v32 = vpop.f32.mrf.mxu1 }
 0x194   :  { %v679_v6 = vpop.f32.mrf.mxu0 }
 0x195   :  { %v3049_v29 = vadd.f32 %v679_v6, %v2905_v53  ;;  %v931_v25 = vpop.f32.mrf.mxu1 }
 0x197   :  { %v1686_v26 = vpop.f32.mrf.mxu0 }
 0x198   :  { %v3054_v31 = vadd.f32 %v1686_v26, %v2924_v5  ;;  %v3056_v49 = vpop.f32.mrf.mxu1 }
 0x199   :  { %v689_v47 = vpop.f32.mrf.mxu0 }
 0x19a   :  { %v3061_v40 = vadd.f32 %v689_v47, %v2918_v55  ;;  %v936_v60 = vpop.f32.mrf.mxu1 }
 0x19c   :  { %v1689_v15 = vpop.f32.mrf.mxu0  ;;  %v3065_v10 = vpop.f32.mrf.mxu1 }
 0x19d   :  { %3399 = vst [vmem:[#allocation10_spill] sm:$0xff] %v3065_v10  ;;  %v3068_v62 = vadd.f32 %v1689_v15, %v2935_v17 }
 0x19e   :  { %v699_v5 = vpop.f32.mrf.mxu0  ;;  %v941_v22 = vpop.f32.mrf.mxu1 }
 0x19f   :  { %v3073_v3 = vadd.f32 %v699_v5, %v2929_v14 }
 0x1a0   :  { %v1692_v55 = vpop.f32.mrf.mxu0 }
 0x1a1   :  { %v3078_v8 = vadd.f32 %v1692_v55, %v2957_v35  ;;  %v3080_v13 = vpop.f32.mrf.mxu1 }
 0x1a2   :  { %3401 = vst [vmem:[#allocation12_spill] sm:$0xff] %v3080_v13  ;;  %v709_v56 = vpop.f32.mrf.mxu0 }
 0x1a3   :  { %3400 = vst [vmem:[#allocation11_spill] sm:$0xff] %v3078_v8  ;;  %v3085_v50 = vadd.f32 %v709_v56, %v2946_v37  ;;  %v946_v12 = vpop.f32.mrf.mxu1 }
 0x1a5   :  { %3402 = vst [vmem:[#allocation13_spill] sm:$0xff] %v3085_v50  ;;  %v1695_v2 = vpop.f32.mrf.mxu0 }
 0x1a6   :  { %v3090_v61 = vadd.f32 %v1695_v2, %v2974_v59  ;;  %v3092_v21 = vpop.f32.mrf.mxu1 }
 0x1a7   :  { %3404 = vst [vmem:[#allocation15_spill] sm:$0xff] %v3092_v21  ;;  %v719_v35 = vpop.f32.mrf.mxu0 }
 0x1a8   :  { %3403 = vst [vmem:[#allocation14_spill] sm:$0xff] %v3090_v61  ;;  %v3097_v6 = vadd.f32 %v719_v35, %v2968_v51  ;;  %v951_v25 = vpop.f32.mrf.mxu1 }
 0x1a9   :  { %v1698_v37 = vpop.f32.mrf.mxu0 }
 0x1aa   :  { %3405 = vst [vmem:[#allocation16_spill] sm:$0xff] %v3097_v6  ;;  %v3102_v47 = vadd.f32 %v1698_v37, %v2979_v11  ;;  %v3104_v60 = vpop.f32.mrf.mxu1 }
 0x1ab   :  { %3407 = vst [vmem:[#allocation18_spill] sm:$0xff] %v3104_v60  ;;  %v729_v59 = vpop.f32.mrf.mxu0 }
 0x1ac   :  { %3406 = vst [vmem:[#allocation17_spill] sm:$0xff] %v3102_v47  ;;  %v3109_v5 = vadd.f32 %v729_v59, %v2977_v9  ;;  %v956_v22 = vpop.f32.mrf.mxu1 }
 0x1ae   :  { %3408 = vst [vmem:[#allocation19_spill] sm:$0xff] %v3109_v5  ;;  %v1701_v55 = vpop.f32.mrf.mxu0 }
 0x1af   :  { %v3114_v56 = vadd.f32 %v1701_v55, %v2983_v33  ;;  %v3116_v12 = vpop.f32.mrf.mxu1 }
 0x1b0   :  { %3410 = vst [vmem:[#allocation21_spill] sm:$0xff] %v3116_v12  ;;  %v739_v11 = vpop.f32.mrf.mxu0 }
 0x1b1   :  { %3409 = vst [vmem:[#allocation20_spill] sm:$0xff] %v3114_v56  ;;  %v3121_v35 = vadd.f32 %v739_v11, %v2981_v34  ;;  %v961_v25 = vpop.f32.mrf.mxu1 }
 0x1b3   :  { %3411 = vst [vmem:[#allocation22_spill] sm:$0xff] %v3121_v35  ;;  %v3125_v37 = vpop.f32.mrf.mxu1 }
 0x1b5   :  { %v966_v59 = vpop.f32.mrf.mxu1 }
 0x1b7   :  { %v3127_v22 = vpop.f32.mrf.mxu1 }
 0x1b9   :  { %v971_v33 = vpop.f32.mrf.mxu1 }
 0x1ba   :  { %v3129_v55 = vpop.f32.mrf.mxu0 }
 0x1bb   :  { %v3131_v15 = vpop.f32.mrf.mxu1 }
 0x1bc   :  { %v1101_v51 = vpop.f32.mrf.mxu0 }
 0x1bd   :  { %v976_v26 = vpop.f32.mrf.mxu1 }
 0x1be   :  { %v3133_v2 = vpop.f32.mrf.mxu0 }
 0x1bf   :  { %v3135_v34 = vpop.f32.mrf.mxu1 }
 0x1c0   :  { %v1106_v11 = vpop.f32.mrf.mxu0 }
 0x1c1   :  { %v981_v25 = vpop.f32.mrf.mxu1 }
 0x1c2   :  { %v3137_v16 = vpop.f32.mrf.mxu0 }
 0x1c3   :  { %v3139_v9 = vpop.f32.mrf.mxu1 }
 0x1c4   :  { %v1111_v59 = vpop.f32.mrf.mxu0 }
 0x1c5   :  { %v986_v14 = vpop.f32.mrf.mxu1 }
 0x1c6   :  { %v3141_v17 = vpop.f32.mrf.mxu0 }
 0x1c7   :  { %v3143_v33 = vpop.f32.mrf.mxu1 }
 0x1c8   :  { %v1116_v52 = vpop.f32.mrf.mxu0 }
 0x1c9   :  { %v991_v23 = vpop.f32.mrf.mxu1 }
 0x1ca   :  { %v3145_v51 = vpop.f32.mrf.mxu0 }
 0x1cb   :  { %v3147_v26 = vpop.f32.mrf.mxu1 }
 0x1cc   :  { %v1121_v53 = vpop.f32.mrf.mxu0 }
 0x1cd   :  { %v996_v36 = vpop.f32.mrf.mxu1 }
 0x1ce   :  { %v3149_v11 = vpop.f32.mrf.mxu0 }
 0x1cf   :  { %v3151_v25 = vpop.f32.mrf.mxu1 }
 0x1d0   :  { %v1126_v27 = vpop.f32.mrf.mxu0 }
 0x1d1   :  { %v1001_v28 = vpop.f32.mrf.mxu1 }
 0x1d2   :  { %v3153_v59 = vpop.f32.mrf.mxu0 }
 0x1d3   :  { %v3155_v14 = vpop.f32.mrf.mxu1 }
 0x1d4   :  { %3412 = vst [vmem:[#allocation23_spill] sm:$0xff] %v3155_v14  ;;  %v1131_v56 = vpop.f32.mrf.mxu0 }
 0x1d5   :  { %v1006_v20 = vpop.f32.mrf.mxu1 }
 0x1d6   :  { %v3157_v52 = vpop.f32.mrf.mxu0 }
 0x1d7   :  { %v3159_v23 = vpop.f32.mrf.mxu1 }
 0x1d8   :  { %3413 = vst [vmem:[#allocation24_spill] sm:$0xff] %v3159_v23  ;;  %v1136_v35 = vpop.f32.mrf.mxu0 }
 0x1d9   :  { %v1011_v24 = vpop.f32.mrf.mxu1 }
 0x1da   :  { %v3161_v53 = vpop.f32.mrf.mxu0 }
 0x1db   :  { %3414 = vst [vmem:[#allocation25_spill] sm:$0xff] %v3161_v53  ;;  %v3163_v36 = vpop.f32.mrf.mxu1 }
 0x1dc   :  { %3415 = vst [vmem:[#allocation26_spill] sm:$0xff] %v3163_v36  ;;  %v1141_v12 = vpop.f32.mrf.mxu0 }
 0x1dd   :  { %v1016_v47 = vpop.f32.mrf.mxu1 }
 0x1de   :  { %v3165_v27 = vpop.f32.mrf.mxu0 }
 0x1df   :  { %3416 = vst [vmem:[#allocation27_spill] sm:$0xff] %v3165_v27  ;;  %v3167_v28 = vpop.f32.mrf.mxu1 }
 0x1e0   :  { %3417 = vst [vmem:[#allocation28_spill] sm:$0xff] %v3167_v28  ;;  %v1146_v19 = vpop.f32.mrf.mxu0 }
 0x1e1   :  { %v1021_v60 = vpop.f32.mrf.mxu1 }
 0x1e2   :  { %v3169_v56 = vpop.f32.mrf.mxu0 }
 0x1e3   :  { %3418 = vst [vmem:[#allocation29_spill] sm:$0xff] %v3169_v56  ;;  %v3171_v20 = vpop.f32.mrf.mxu1 }
 0x1e4   :  { %3419 = vst [vmem:[#allocation30_spill] sm:$0xff] %v3171_v20  ;;  %v1151_v5 = vpop.f32.mrf.mxu0 }
 0x1e5   :  { %v1026_v4 = vpop.f32.mrf.mxu1 }
 0x1e6   :  { %v3173_v35 = vpop.f32.mrf.mxu0 }
 0x1e7   :  { %3420 = vst [vmem:[#allocation31_spill] sm:$0xff] %v3173_v35  ;;  %v3175_v24 = vpop.f32.mrf.mxu1 }
 0x1e8   :  { %3421 = vst [vmem:[#allocation32_spill] sm:$0xff] %v3175_v24  ;;  %v1156_v21 = vpop.f32.mrf.mxu0 }
 0x1e9   :  { %v1031_v6 = vpop.f32.mrf.mxu1 }
 0x1ea   :  { %v3177_v12 = vpop.f32.mrf.mxu0 }
 0x1eb   :  { %3422 = vst [vmem:[#allocation33_spill] sm:$0xff] %v3177_v12  ;;  %v1736_v47 = vpop.f32.mrf.mxu1 }
 0x1ec   :  { %v1161_v30 = vpop.f32.mrf.mxu0 }
 0x1ed   :  { %v1304_v61 = vpop.f32.mrf.mxu1 }
 0x1ee   :  { %v3179_v28 = vpop.f32.mrf.mxu0 }
 0x1ef   :  { %3423 = vst [vmem:[#allocation34_spill] sm:$0xff] %v3179_v28  ;;  %v1739_v19 = vpop.f32.mrf.mxu1 }
 0x1f0   :  { %v1166_v60 = vpop.f32.mrf.mxu0 }
 0x1f1   :  { %v1314_v45 = vpop.f32.mrf.mxu1 }
 0x1f2   :  { %v1169_v56 = vpop.f32.mrf.mxu0 }
 0x1f3   :  { %v3181_v20 = vpop.f32.mrf.mxu1 }
 0x1f4   :  { %v1171_v4 = vpop.f32.mrf.mxu0 }
 0x1f5   :  { %v3183_v5 = vpop.f32.mrf.mxu1 }
 0x1f6   :  { %v1174_v35 = vpop.f32.mrf.mxu0 }
 0x1f7   :  { %v3185_v24 = vpop.f32.mrf.mxu1 }
 0x1f8   :  { %v1176_v21 = vpop.f32.mrf.mxu0 }
 0x1f9   :  { %v3187_v6 = vpop.f32.mrf.mxu1  ;;  %v1105_v21 = vadd.f32 %v3133_v2, %v2996_v39 }
 0x1fa   :  { %v1179_v12 = vpop.f32.mrf.mxu0 }
 0x1fb   :  { %v3189_v30 = vpop.f32.mrf.mxu1 }
 0x1fc   :  { %3424 = vst [vmem:[#allocation35_spill] sm:$0xff] %v3189_v30  ;;  %v1181_v13 = vpop.f32.mrf.mxu0  ;;  %v1175_v30 = vadd.f32 %v1174_v35, %v3127_v22  ;;  %v1110_v35 = vadd.f32 %v3137_v16, %v3001_v43 }
 0x1fd   :  { %v3191_v28 = vpop.f32.mrf.mxu1 }
 0x1fe   :  { %3425 = vst [vmem:[#allocation36_spill] sm:$0xff] %v3191_v28  ;;  %v1184_v60 = vpop.f32.mrf.mxu0  ;;  %v1100_v28 = vadd.f32 %v3129_v55, %v2988_v42  ;;  %v3215_v42 = vld [vmem:[%s3373_s3] ss:$0 sm:$0xff]  ;;  %v1180_v55 = vadd.f32 %v1179_v12, %v3131_v15  ;;  %v1315_v43 = vadd.f32 %v1314_v45, %v1110_v35 }
 0x1ff   :  { %v3193_v36 = vpop.f32.mrf.mxu1  ;;  %v1185_v10 = vadd.f32 %v1184_v60, %v3135_v34  ;;  %v1120_v34 = vadd.f32 %v3145_v51, %v3020_v7 }
 0x200   :  { %3426 = vst [vmem:[#allocation37_spill] sm:$0xff] %v3193_v36  ;;  %v1186_v50 = vpop.f32.mrf.mxu0  ;;  %v1310_v36 = vadd.f32 %v1736_v47, %v1105_v21 }
 0x201   :  { %v3195_v0 = vpop.f32.mrf.mxu1  ;;  %v1170_v50 = vadd.f32 %v1169_v56, %v3125_v37 }
 0x202   :  { %3427 = vst [vmem:[#allocation38_spill] sm:$0xff] %v3195_v0  ;;  %v1189_v4 = vpop.f32.mrf.mxu0 }
 0x203   :  { %v3197_v8 = vpop.f32.mrf.mxu1  ;;  %v1190_v7 = vadd.f32 %v1189_v4, %v3139_v9 }
 0x204   :  { %3428 = vst [vmem:[#allocation39_spill] sm:$0xff] %v3197_v8  ;;  %v1191_v63 = vpop.f32.mrf.mxu0 }
 0x205   :  { %v3199_v14 = vpop.f32.mrf.mxu1  ;;  %v1115_v63 = vadd.f32 %v3141_v17, %v3012_v48  ;;  %v3430_v48 = vmax.f32 %v2986_v41, %v3042_v38  ;;  %v1125_v41 = vadd.f32 %v3149_v11, %v3028_v57  ;;  %v1135_v38 = vadd.f32 %v3157_v52, %v3044_v32 }
 0x206   :  { %3429 = vst [vmem:[#allocation40_spill] sm:$0xff] %v3199_v14  ;;  %v1194_v13 = vpop.f32.mrf.mxu0  ;;  %v1305_v14 = vadd.f32 %v1304_v61, %v1100_v28  ;;  %v1325_v57 = vadd.f32 %v3183_v5, %v1120_v34  ;;  %v1130_v5 = vadd.f32 %v3153_v59, %v3036_v18  ;;  %v3434_v18 = vmax.f32 %v3004_v44, %v3068_v62  ;;  %v3438_v44 = vld [vmem:[#allocation27_spill] sm:$0xff] }
 0x207   :  { %v1757_v23 = vpop.f32.mrf.mxu1  ;;  %v1320_v53 = vadd.f32 %v1739_v19, %v1115_v63  ;;  %v1195_v45 = vadd.f32 %v1194_v13, %v3143_v33  ;;  %v1330_v47 = vadd.f32 %v3181_v20, %v1125_v41 }
 0x208   :  { %v1380_v0 = vadd.f32 %v1757_v23, %v1175_v30  ;;  %v1196_v27 = vpop.f32.mrf.mxu0  ;;  %v1335_v63 = vadd.f32 %v3187_v6, %v1130_v5  ;;  %v3436_v6 = vld [vmem:[#allocation25_spill] sm:$0xff] }
 0x209   :  { %v1374_v8 = vpop.f32.mrf.mxu1 }
 0x20a   :  { %v1458_v39 = vmax.f32 %v1310_v36, %v1380_v0  ;;  %v1375_v2 = vadd.f32 %v1374_v8, %v1170_v50  ;;  %v1199_v22 = vpop.f32.mrf.mxu0  ;;  %v3431_v36 = vmax.f32 %v2991_v46, %v3049_v29  ;;  %v3432_v46 = vmax.f32 %v2994_v54, %v3054_v31 }
 0x20b   :  { %v1760_v37 = vpop.f32.mrf.mxu1  ;;  %v3433_v54 = vmax.f32 %v2999_v58, %v3061_v40  ;;  %v1200_v30 = vadd.f32 %v1199_v22, %v3147_v26 }
 0x20c   :  { %v1472_v17 = vmax.f32 %v3430_v48, %v1458_v39  ;;  %v1457_v61 = vmax.f32 %v1305_v14, %v1375_v2  ;;  %v1390_v0 = vadd.f32 %v1760_v37, %v1185_v10  ;;  %v1201_v8 = vpop.f32.mrf.mxu0  ;;  %v3435_v39 = vmax.f32 %v3007_v1, %v3073_v3  ;;  %v3437_v48 = vld [vmem:[#allocation10_spill] sm:$0xff]  ;;  %v3440_v3 = vld [vmem:[#allocation23_spill] sm:$0xff] }
 0x20d   :  { %v1384_v16 = vpop.f32.mrf.mxu1  ;;  %v1145_v62 = vadd.f32 %v3438_v44, %v3437_v48 }
 0x20e   :  { %v1493_v23 = vadd.f32 %v3215_v42, %v1472_v17  ;;  %v1471_v27 = vmax.f32 %v3431_v36, %v1457_v61  ;;  %v1460_v15 = vmax.f32 %v1320_v53, %v1390_v0  ;;  %v1385_v28 = vadd.f32 %v1384_v16, %v1180_v55  ;;  %v1204_v56 = vpop.f32.mrf.mxu0  ;;  %v3439_v61 = vld [vmem:[#allocation24_spill] sm:$0xff]  ;;  %v3442_v16 = vld [vmem:[#allocation11_spill] sm:$0xff] }
 0x20f   :  { %v1763_v10 = vpop.f32.mrf.mxu1  ;;  %v1205_v32 = vadd.f32 %v1204_v56, %v3151_v25  ;;  %v1340_v25 = vadd.f32 %v3185_v24, %v1135_v38  ;;  %v1140_v55 = vadd.f32 %v3436_v6, %v3056_v49  ;;  %v3445_v56 = vld [vmem:[#allocation36_spill] sm:$0xff] }
 0x210   :  { %v1507_v51 = vmax.f32 %v1493_v23, 0.0  ;;  %v1492_v14 = vadd.f32 %v3215_v42, %v1471_v27  ;;  %v1474_v29 = vmax.f32 %v3432_v46, %v1460_v15  ;;  %v1459_v53 = vmax.f32 %v1315_v43, %v1385_v28  ;;  %v1206_v12 = vpop.f32.mrf.mxu0  ;;  %v3441_v43 = vld [vmem:[#allocation2_spill] sm:$0xff]  ;;  %v3444_v15 = vld [vmem:[#allocation35_spill] sm:$0xff]  ;;  %v3447_v46 = vld [vmem:[#allocation13_spill] sm:$0xff] }
 0x211   :  { %v1400_v11 = vadd.f32 %v1763_v10, %v1195_v45  ;;  %v1394_v9 = vpop.f32.mrf.mxu1  ;;  %v3443_v49 = vmax.f32 %v3441_v43, %v3442_v16  ;;  %v1350_v28 = vadd.f32 %v3444_v15, %v1145_v62  ;;  %v1345_v41 = vadd.f32 %v3445_v56, %v1140_v55  ;;  %v3468_v56 = vld [vmem:[#allocation30_spill] sm:$0xff] }
 0x212   :  { %1522 = vst.msk [vmem:[%s3374_s4 + $0x8] sm:$0xff] %vm1520_vm0, %v1507_v51  ;;  %v1506_v33 = vmax.f32 %v1492_v14, 0.0  ;;  %v1495_v52 = vadd.f32 %v3215_v42, %v1474_v29  ;;  %v1473_v31 = vmax.f32 %v3433_v54, %v1459_v53  ;;  %v1395_v19 = vadd.f32 %v1394_v9, %v1190_v7  ;;  %v1209_v20 = vpop.f32.mrf.mxu0  ;;  %v3446_v14 = vld [vmem:[#allocation3_spill] sm:$0xff] }
 0x213   :  { %v1462_v60 = vmax.f32 %v1330_v47, %v1400_v11  ;;  %v1766_v4 = vpop.f32.mrf.mxu1  ;;  %v1210_v34 = vadd.f32 %v1209_v20, %v3440_v3  ;;  %v3448_v29 = vmax.f32 %v3446_v14, %v3447_v46  ;;  %v3463_v3 = vld [vmem:[#allocation7_spill] sm:$0xff]  ;;  %v3471_v14 = vld [vmem:[#allocation17_spill] sm:$0xff] }
 0x214   :  { %1521 = vst.msk [vmem:[%s3374_s4] sm:$0xff] %vm1520_vm0, %v1506_v33  ;;  %v1509_v21 = vmax.f32 %v1495_v52, 0.0  ;;  %v1494_v58 = vadd.f32 %v3215_v42, %v1473_v31  ;;  %v1461_v40 = vmax.f32 %v1325_v57, %v1395_v19  ;;  %v1410_v13 = vadd.f32 %v1766_v4, %v1205_v32  ;;  %v1211_v50 = vpop.f32.mrf.mxu0  ;;  %v3449_v32 = vld [vmem:[#allocation26_spill] sm:$0xff]  ;;  %v3450_v33 = vld [vmem:[#allocation12_spill] sm:$0xff]  ;;  %v3451_v52 = vld [vmem:[#allocation29_spill] sm:$0xff] }
 0x215   :  { %v1476_v59 = vmax.f32 %v3434_v18, %v1462_v60  ;;  %v1404_v26 = vpop.f32.mrf.mxu1  ;;  %v1150_v54 = vadd.f32 %v3451_v52, %v3450_v33  ;;  %v3456_v50 = vld [vmem:[#allocation5_spill] sm:$0xff]  ;;  %v3475_v52 = vld [vmem:[#allocation32_spill] sm:$0xff] }
 0x216   :  { %1524 = vst.msk [vmem:[%s3374_s4 + $0x18] sm:$0xff] %vm1520_vm0, %v1509_v21  ;;  %v1508_v24 = vmax.f32 %v1494_v58, 0.0  ;;  %v1475_v2 = vmax.f32 %v3435_v39, %v1461_v40  ;;  %v1464_v22 = vmax.f32 %v1340_v25, %v1410_v13  ;;  %v1405_v35 = vadd.f32 %v1404_v26, %v1200_v30  ;;  %v1214_v37 = vpop.f32.mrf.mxu0  ;;  %v3452_v25 = vld [vmem:[#allocation4_spill] sm:$0xff]  ;;  %v3453_v30 = vld [vmem:[#allocation14_spill] sm:$0xff]  ;;  %v3459_v39 = vld [vmem:[#allocation15_spill] sm:$0xff] }
 0x217   :  { %v1497_v17 = vadd.f32 %v3215_v42, %v1476_v59  ;;  %v1215_v0 = vadd.f32 %v1214_v37, %v3439_v61  ;;  %v1769_v8 = vpop.f32.mrf.mxu1  ;;  %v3454_v60 = vmax.f32 %v3452_v25, %v3453_v30  ;;  %v3455_v58 = vld [vmem:[#allocation38_spill] sm:$0xff]  ;;  %v3461_v37 = vld [vmem:[#allocation28_spill] sm:$0xff]  ;;  %v3477_v25 = vld [vmem:[#allocation9_spill] sm:$0xff] }
 0x218   :  { %1523 = vst.msk [vmem:[%s3374_s4 + $0x10] sm:$0xff] %vm1520_vm0, %v1508_v24  ;;  %v1496_v1 = vadd.f32 %v3215_v42, %v1475_v2  ;;  %v1478_v23 = vmax.f32 %v3443_v49, %v1464_v22  ;;  %v1463_v36 = vmax.f32 %v1335_v63, %v1405_v35  ;;  %v1216_v27 = vpop.f32.mrf.mxu0  ;;  %v1355_v40 = vadd.f32 %v3455_v58, %v1150_v54  ;;  %v3457_v63 = vld [vmem:[#allocation16_spill] sm:$0xff]  ;;  %v3460_v2 = vld [vmem:[#allocation31_spill] sm:$0xff]  ;;  %v3478_v30 = vld [vmem:[#allocation22_spill] sm:$0xff] }
 0x219   :  { %v1511_v38 = vmax.f32 %v1497_v17, 0.0  ;;  %v1420_v7 = vadd.f32 %v1769_v8, %v1215_v0  ;;  %v1414_v45 = vpop.f32.mrf.mxu1  ;;  %v3458_v18 = vmax.f32 %v3456_v50, %v3457_v63  ;;  %v1155_v22 = vadd.f32 %v3460_v2, %v3459_v39  ;;  %v3462_v17 = vld [vmem:[#allocation37_spill] sm:$0xff]  ;;  %v3480_v50 = vld [vmem:[#allocation8_spill] sm:$0xff] }
 0x21a   :  { %v1510_v10 = vmax.f32 %v1496_v1, 0.0  ;;  %v1499_v51 = vadd.f32 %v3215_v42, %v1478_v23  ;;  %v1477_v53 = vmax.f32 %v3448_v29, %v1463_v36  ;;  %v1415_v12 = vadd.f32 %v1414_v45, %v1210_v34  ;;  %v1219_v47 = vpop.f32.mrf.mxu0  ;;  %v3464_v34 = vld [vmem:[#allocation19_spill] sm:$0xff]  ;;  %v3466_v36 = vld [vmem:[#allocation18_spill] sm:$0xff]  ;;  %v3467_v27 = vld [vmem:[#allocation33_spill] sm:$0xff] }
 0x21b   :  { %1526 = vst.msk [vmem:[%s3374_s4 + $0x28] sm:$0xff] %vm1520_vm0, %v1511_v38  ;;  %v1466_v57 = vmax.f32 %v1350_v28, %v1420_v7  ;;  %v1220_v11 = vadd.f32 %v1219_v47, %v3449_v32  ;;  %v1772_v9 = vpop.f32.mrf.mxu1  ;;  %v1360_v61 = vadd.f32 %v3462_v17, %v1155_v22  ;;  %v3465_v43 = vmax.f32 %v3463_v3, %v3464_v34  ;;  %v3469_v45 = vld [vmem:[#allocation40_spill] sm:$0xff]  ;;  %v3474_v32 = vld [vmem:[#allocation34_spill] sm:$0xff] }
 0x21c   :  { %1525 = vst.msk [vmem:[%s3374_s4 + $0x20] sm:$0xff] %vm1520_vm0, %v1510_v10  ;;  %v1513_v31 = vmax.f32 %v1499_v51, 0.0  ;;  %v1498_v19 = vadd.f32 %v3215_v42, %v1477_v53  ;;  %v1465_v20 = vmax.f32 %v1345_v41, %v1415_v12  ;;  %v1221_v5 = vpop.f32.mrf.mxu0  ;;  %v1160_v15 = vadd.f32 %v3467_v27, %v3466_v36  ;;  %v3470_v51 = vld [vmem:[#allocation6_spill] sm:$0xff]  ;;  %v3481_v63 = vld [vmem:[#allocation20_spill] sm:$0xff] }
 0x21d   :  { %v1480_v4 = vmax.f32 %v3454_v60, %v1466_v57  ;;  %v1424_v21 = vpop.f32.mrf.mxu1  ;;  %v3472_v46 = vmax.f32 %v3470_v51, %v3471_v14  ;;  %v3473_v57 = vld [vmem:[#allocation21_spill] sm:$0xff]  ;;  %v3479_v60 = vmax.f32 %v3477_v25, %v3478_v30 }
 0x21e   :  { %1528 = vst.msk [vmem:[%s3374_s4 + $0x38] sm:$0xff] %vm1520_vm0, %v1513_v31  ;;  %v1512_v13 = vmax.f32 %v1498_v19, 0.0  ;;  %v1479_v59 = vmax.f32 %v3458_v18, %v1465_v20  ;;  %v1425_v26 = vadd.f32 %v1424_v21, %v1220_v11  ;;  %v1224_v24 = vpop.f32.mrf.mxu0  ;;  %v1365_v10 = vadd.f32 %v3469_v45, %v1160_v15  ;;  %v3476_v19 = vld [vmem:[#allocation39_spill] sm:$0xff] }
 0x21f   :  { %v1501_v35 = vadd.f32 %v3215_v42, %v1480_v4  ;;  %v1225_v6 = vadd.f32 %v1224_v24, %v3461_v37  ;;  %v1775_v55 = vpop.f32.mrf.mxu1  ;;  %v1165_v11 = vadd.f32 %v3474_v32, %v3473_v57  ;;  %v3482_v18 = vmax.f32 %v3480_v50, %v3481_v63 }
 0x220   :  { %1527 = vst.msk [vmem:[%s3374_s4 + $0x30] sm:$0xff] %vm1520_vm0, %v1512_v13  ;;  %v1500_v48 = vadd.f32 %v3215_v42, %v1479_v59  ;;  %v1467_v44 = vmax.f32 %v1355_v40, %v1425_v26  ;;  %v1226_v62 = vpop.f32.mrf.mxu0 }
 0x221   :  { %v1515_v0 = vmax.f32 %v1501_v35, 0.0  ;;  %v1430_v8 = vadd.f32 %v1772_v9, %v1225_v6  ;;  %v1434_v23 = vpop.f32.mrf.mxu1  ;;  %v1370_v20 = vadd.f32 %v3476_v19, %v1165_v11 }
 0x222   :  { %v1514_v1 = vmax.f32 %v1500_v48, 0.0  ;;  %v1481_v16 = vmax.f32 %v3465_v43, %v1467_v44  ;;  %v1229_v49 = vpop.f32.mrf.mxu0 }
 0x223   :  { %1530 = vst.msk [vmem:[%s3374_s4 + $0x48] sm:$0xff] %vm1520_vm0, %v1515_v0  ;;  %v1468_v28 = vmax.f32 %v1360_v61, %v1430_v8  ;;  %v1230_v41 = vadd.f32 %v1229_v49, %v3468_v56 }
 0x224   :  { %1529 = vst.msk [vmem:[%s3374_s4 + $0x40] sm:$0xff] %vm1520_vm0, %v1514_v1  ;;  %v1502_v38 = vadd.f32 %v3215_v42, %v1481_v16  ;;  %v1231_v7 = vpop.f32.mrf.mxu0 }
 0x225   :  { %v1482_v29 = vmax.f32 %v3472_v46, %v1468_v28  ;;  %v1435_v53 = vadd.f32 %v1434_v23, %v1230_v41 }
 0x226   :  { %v1516_v12 = vmax.f32 %v1502_v38, 0.0  ;;  %v1234_v47 = vpop.f32.mrf.mxu0 }
 0x227   :  { %v1503_v9 = vadd.f32 %v3215_v42, %v1482_v29  ;;  %v1469_v33 = vmax.f32 %v1365_v10, %v1435_v53  ;;  %v1235_v54 = vadd.f32 %v1234_v47, %v3475_v52 }
 0x228   :  { %1531 = vst.msk [vmem:[%s3374_s4 + $0x50] sm:$0xff] %vm1520_vm0, %v1516_v12  ;;  %v1236_v31 = vpop.f32.mrf.mxu0 }
 0x229   :  { %v1517_v5 = vmax.f32 %v1503_v9, 0.0  ;;  %v1483_v4 = vmax.f32 %v3479_v60, %v1469_v33  ;;  %v1440_v21 = vadd.f32 %v1775_v55, %v1235_v54 }
 0x22b   :  { %1532 = vst.msk [vmem:[%s3374_s4 + $0x58] sm:$0xff] %vm1520_vm0, %v1517_v5  ;;  %v1504_v58 = vadd.f32 %v3215_v42, %v1483_v4  ;;  %v1470_v40 = vmax.f32 %v1370_v20, %v1440_v21 }
 0x22d   :  { %v1518_v13 = vmax.f32 %v1504_v58, 0.0  ;;  %v1484_v59 = vmax.f32 %v3482_v18, %v1470_v40 }
 0x22f   :  { %1533 = vst.msk [vmem:[%s3374_s4 + $0x60] sm:$0xff] %vm1520_vm0, %v1518_v13  ;;  %v1505_v26 = vadd.f32 %v3215_v42, %v1484_v59 }
 0x231   :  { %v1519_v24 = vmax.f32 %v1505_v26, 0.0 }
 0x233   :  { %1534 = vst.msk [vmem:[%s3374_s4 + $0x68] sm:$0xff] %vm1520_vm0, %v1519_v24 }

// kernel: cnn_forward.5
= control target key start
LH: loop header
LB: loop body
LE: loop exit
PB: predicated region body
PF: predicated region fallthrough
CT: control target
= control target key end

     0   :  { %v1107_v27 = vmov 1983009808   ;;  %v258_v29 = vlaneseq  ;;  %s1832_s0 = inlined_call_operand.vmem [shape: f32[2,1792], index: 0, kind: input, shape index: {}]   ;;  %s1833_s1 = inlined_call_operand.vmem [shape: f32[1792,10], index: 1, kind: input, shape index: {}]   ;;  %s1834_s2 = inlined_call_operand.vmem [shape: f32[1,10], index: 2, kind: input, shape index: {}]   ;;  %s1835_s3 = inlined_call_operand.hbm [shape: f32[2,10], index: 3, kind: output, shape index: {}]  }
   0x1   :  { %v50_v0 = vld [vmem:[%s1833_s1 + $0xf8] sm:$0xff]  ;;  %v49_v2 = vld [vmem:[%s1833_s1 + $0xf0] sm:$0xff]  ;;  %v48_v6 = vld [vmem:[%s1833_s1 + $0xe8] sm:$0xff]  ;;  %v256_v28 = vunpack.c.l.s4 %v1107_v27 }
   0x2   :  { %v34_v1 = vld [vmem:[%s1833_s1 + $0x78] sm:$0xff]  ;;  %835 = vmatprep.subr.mxu0 %v50_v0  ;;  %v33_v4 = vld [vmem:[%s1833_s1 + $0x70] sm:$0xff]  ;;  %v32_v8 = vld [vmem:[%s1833_s1 + $0x68] sm:$0xff]  ;;  %v259_v39 = vshrl.u32 %v258_v29, 7 }
   0x3   :  { %v82_v3 = vld [vmem:[%s1833_s1 + $0x1f8] sm:$0xff]  ;;  %836 = vmatpush3.msra.mxu0 %v34_v1  ;;  %v81_v7 = vld [vmem:[%s1833_s1 + $0x1f0] sm:$0xff]  ;;  %v80_v10 = vld [vmem:[%s1833_s1 + $0x1e8] sm:$0xff]  ;;  %v257_v38 = vunpack.c.0.s8 %v256_v28 }
   0x4   :  { %v66_v5 = vld [vmem:[%s1833_s1 + $0x178] sm:$0xff]  ;;  %870 = vmatprep.subr.mxu1 %v82_v3  ;;  %837 = vmatprep.subr.mxu0 %v49_v2  ;;  %v65_v9 = vld [vmem:[%s1833_s1 + $0x170] sm:$0xff]  ;;  %v47_v11 = vld [vmem:[%s1833_s1 + $0xe0] sm:$0xff] }
   0x5   :  { %871 = vmatpush3.msra.mxu1 %v66_v5  ;;  %838 = vmatpush3.msra.mxu0 %v33_v4  ;;  %v64_v12 = vld [vmem:[%s1833_s1 + $0x168] sm:$0xff]  ;;  %v31_v13 = vld [vmem:[%s1833_s1 + $0x60] sm:$0xff]  ;;  %v46_v15 = vld [vmem:[%s1833_s1 + $0xd8] sm:$0xff]  ;;  %v1258_v48 = vsub.s32 %v257_v38, %v259_v39 }
   0x6   :  { %872 = vmatprep.subr.mxu1 %v81_v7  ;;  %839 = vmatprep.subr.mxu0 %v48_v6  ;;  %v79_v14 = vld [vmem:[%s1833_s1 + $0x1e0] sm:$0xff]  ;;  %v30_v17 = vld [vmem:[%s1833_s1 + $0x58] sm:$0xff]  ;;  %v45_v19 = vld [vmem:[%s1833_s1 + $0xd0] sm:$0xff] }
   0x7   :  { %873 = vmatpush3.msra.mxu1 %v65_v9  ;;  %840 = vmatpush3.msra.mxu0 %v32_v8  ;;  %v63_v16 = vld [vmem:[%s1833_s1 + $0x160] sm:$0xff]  ;;  %v78_v18 = vld [vmem:[%s1833_s1 + $0x1d8] sm:$0xff]  ;;  %v29_v21 = vld [vmem:[%s1833_s1 + $0x50] sm:$0xff] }
   0x8   :  { %874 = vmatprep.subr.mxu1 %v80_v10  ;;  %841 = vmatprep.subr.mxu0 %v47_v11  ;;  %v62_v20 = vld [vmem:[%s1833_s1 + $0x158] sm:$0xff]  ;;  %v77_v22 = vld [vmem:[%s1833_s1 + $0x1d0] sm:$0xff]  ;;  %v44_v23 = vld [vmem:[%s1833_s1 + $0xc8] sm:$0xff] }
   0x9   :  { %875 = vmatpush3.msra.mxu1 %v64_v12  ;;  %842 = vmatpush3.msra.mxu0 %v31_v13  ;;  %v61_v24 = vld [vmem:[%s1833_s1 + $0x150] sm:$0xff]  ;;  %v28_v25 = vld [vmem:[%s1833_s1 + $0x48] sm:$0xff]  ;;  %v43_v30 = vld [vmem:[%s1833_s1 + $0xc0] sm:$0xff] }
   0xa   :  { %876 = vmatprep.subr.mxu1 %v79_v14  ;;  %843 = vmatprep.subr.mxu0 %v46_v15  ;;  %v76_v26 = vld [vmem:[%s1833_s1 + $0x1c8] sm:$0xff]  ;;  %v27_v32 = vld [vmem:[%s1833_s1 + $0x40] sm:$0xff]  ;;  %v42_v34 = vld [vmem:[%s1833_s1 + $0xb8] sm:$0xff] }
   0xb   :  { %877 = vmatpush3.msra.mxu1 %v63_v16  ;;  %844 = vmatpush3.msra.mxu0 %v30_v17  ;;  %v60_v31 = vld [vmem:[%s1833_s1 + $0x148] sm:$0xff]  ;;  %v75_v33 = vld [vmem:[%s1833_s1 + $0x1c0] sm:$0xff]  ;;  %v26_v36 = vld [vmem:[%s1833_s1 + $0x38] sm:$0xff] }
   0xc   :  { %878 = vmatprep.subr.mxu1 %v78_v18  ;;  %845 = vmatprep.subr.mxu0 %v45_v19  ;;  %v59_v35 = vld [vmem:[%s1833_s1 + $0x140] sm:$0xff]  ;;  %v74_v37 = vld [vmem:[%s1833_s1 + $0x1b8] sm:$0xff]  ;;  %v41_v40 = vld [vmem:[%s1833_s1 + $0xb0] sm:$0xff] }
   0xd   :  { %879 = vmatpush3.msra.mxu1 %v62_v20  ;;  %846 = vmatpush3.msra.mxu0 %v29_v21  ;;  %v58_v41 = vld [vmem:[%s1833_s1 + $0x138] sm:$0xff]  ;;  %v25_v42 = vld [vmem:[%s1833_s1 + $0x30] sm:$0xff]  ;;  %v40_v44 = vld [vmem:[%s1833_s1 + $0xa8] sm:$0xff] }
   0xe   :  { %880 = vmatprep.subr.mxu1 %v77_v22  ;;  %847 = vmatprep.subr.mxu0 %v44_v23  ;;  %v73_v43 = vld [vmem:[%s1833_s1 + $0x1b0] sm:$0xff]  ;;  %v24_v46 = vld [vmem:[%s1833_s1 + $0x28] sm:$0xff]  ;;  %v39_v49 = vld [vmem:[%s1833_s1 + $0xa0] sm:$0xff] }
   0xf   :  { %881 = vmatpush3.msra.mxu1 %v61_v24  ;;  %848 = vmatpush3.msra.mxu0 %v28_v25  ;;  %v57_v45 = vld [vmem:[%s1833_s1 + $0x130] sm:$0xff]  ;;  %v72_v47 = vld [vmem:[%s1833_s1 + $0x1a8] sm:$0xff]  ;;  %v15_v51 = vld [vmem:[%s1832_s0] sm:$0xff] }
  0x10   :  { %882 = vmatprep.subr.mxu1 %v76_v26  ;;  %849 = vmatprep.subr.mxu0 %v43_v30  ;;  %v56_v50 = vld [vmem:[%s1833_s1 + $0x128] sm:$0xff]  ;;  %v23_v52 = vld [vmem:[%s1833_s1 + $0x20] sm:$0xff]  ;;  %v38_v54 = vld [vmem:[%s1833_s1 + $0x98] sm:$0xff]  ;;  %v261_v58 = vrot.slane %v15_v51, %v1258_v48  ;;  %v254_v59 = vcombine.high %v15_v51, %v15_v51 }
  0x11   :  { %883 = vmatpush3.msra.mxu1 %v60_v31  ;;  %850 = vmatpush3.msra.mxu0 %v27_v32  ;;  %v71_v53 = vld [vmem:[%s1833_s1 + $0x1a0] sm:$0xff]  ;;  %v22_v56 = vld [vmem:[%s1833_s1 + $0x18] sm:$0xff]  ;;  %v37_v60 = vld [vmem:[%s1833_s1 + $0x90] sm:$0xff] }
  0x12   :  { %884 = vmatprep.subr.mxu1 %v75_v33  ;;  %851 = vmatprep.subr.mxu0 %v42_v34  ;;  %v55_v55 = vld [vmem:[%s1833_s1 + $0x120] sm:$0xff]  ;;  %v70_v57 = vld [vmem:[%s1833_s1 + $0x198] sm:$0xff]  ;;  %v21_v62 = vld [vmem:[%s1833_s1 + $0x10] sm:$0xff]  ;;  %v269_v4 = vcombine.high %v261_v58, %v261_v58  ;;  %v268_v5 = vrot.slane %v254_v59, %v1258_v48 }
  0x13   :  { %885 = vmatpush3.msra.mxu1 %v59_v35  ;;  %852 = vmatpush3.msra.mxu0 %v26_v36  ;;  %v54_v61 = vld [vmem:[%s1833_s1 + $0x118] sm:$0xff]  ;;  %v69_v63 = vld [vmem:[%s1833_s1 + $0x190] sm:$0xff]  ;;  %v36_v0 = vld [vmem:[%s1833_s1 + $0x88] sm:$0xff] }
  0x14   :  { %886 = vmatprep.subr.mxu1 %v74_v37  ;;  %853 = vmatprep.subr.mxu0 %v41_v40  ;;  %v53_v1 = vld [vmem:[%s1833_s1 + $0x110] sm:$0xff]  ;;  %v20_v2 = vld [vmem:[%s1833_s1 + $0x8] sm:$0xff]  ;;  %v35_v6 = vld [vmem:[%s1833_s1 + $0x80] sm:$0xff]  ;;  %v270_v12 = vcombine.high %v268_v5, %v268_v5 }
  0x15   :  { %887 = vmatpush3.msra.mxu1 %v58_v41  ;;  %854 = vmatpush3.msra.mxu0 %v25_v42  ;;  %v68_v3 = vld [vmem:[%s1833_s1 + $0x188] sm:$0xff]  ;;  %v19_v7 = vld [vmem:[%s1833_s1] sm:$0xff]  ;;  %v114_v10 = vld [vmem:[%s1833_s1 + $0x2f8] sm:$0xff] }
  0x16   :  { %888 = vmatprep.subr.mxu1 %v73_v43  ;;  %855 = vmatprep.subr.mxu0 %v40_v44  ;;  %v52_v8 = vld [vmem:[%s1833_s1 + $0x108] sm:$0xff]  ;;  %v67_v9 = vld [vmem:[%s1833_s1 + $0x180] sm:$0xff]  ;;  %v98_v13 = vld [vmem:[%s1833_s1 + $0x278] sm:$0xff] }
  0x17   :  { %889 = vmatpush3.msra.mxu1 %v57_v45  ;;  %856 = vmatpush3.msra.mxu0 %v24_v46  ;;  %v51_v11 = vld [vmem:[%s1833_s1 + $0x100] sm:$0xff]  ;;  %v113_v14 = vld [vmem:[%s1833_s1 + $0x2f0] sm:$0xff]  ;;  %v146_v15 = vld [vmem:[%s1833_s1 + $0x3f8] sm:$0xff] }
  0x18   :  { %890 = vmatprep.subr.mxu1 %v72_v47  ;;  %857 = vmatprep.subr.mxu0 %v39_v49  ;;  %v97_v16 = vld [vmem:[%s1833_s1 + $0x270] sm:$0xff]  ;;  %v130_v17 = vld [vmem:[%s1833_s1 + $0x378] sm:$0xff]  ;;  %v112_v18 = vld [vmem:[%s1833_s1 + $0x2e8] sm:$0xff] }
  0x19   :  { %891 = vmatpush3.msra.mxu1 %v56_v50  ;;  %858 = vmatpush3.msra.mxu0 %v23_v52  ;;  %v145_v19 = vld [vmem:[%s1833_s1 + $0x3f0] sm:$0xff]  ;;  %v96_v20 = vld [vmem:[%s1833_s1 + $0x268] sm:$0xff]  ;;  %v111_v22 = vld [vmem:[%s1833_s1 + $0x2e0] sm:$0xff] }
  0x1a   :  { %892 = vmatprep.subr.mxu1 %v71_v53  ;;  %859 = vmatprep.subr.mxu0 %v38_v54  ;;  %v129_v21 = vld [vmem:[%s1833_s1 + $0x370] sm:$0xff]  ;;  %v144_v23 = vld [vmem:[%s1833_s1 + $0x3e8] sm:$0xff]  ;;  %v95_v24 = vld [vmem:[%s1833_s1 + $0x260] sm:$0xff] }
  0x1b   :  { %893 = vmatpush3.msra.mxu1 %v55_v55  ;;  %860 = vmatpush3.msra.mxu0 %v22_v56  ;;  %v128_v25 = vld [vmem:[%s1833_s1 + $0x368] sm:$0xff]  ;;  %v110_v26 = vld [vmem:[%s1833_s1 + $0x2d8] sm:$0xff]  ;;  %v143_v27 = vld [vmem:[%s1833_s1 + $0x3e0] sm:$0xff] }
  0x1c   :  { %894 = vmatprep.subr.mxu1 %v70_v57  ;;  %861 = vmatprep.subr.mxu0 %v37_v60  ;;  %v94_v28 = vld [vmem:[%s1833_s1 + $0x258] sm:$0xff]  ;;  %v127_v29 = vld [vmem:[%s1833_s1 + $0x360] sm:$0xff]  ;;  %v109_v30 = vld [vmem:[%s1833_s1 + $0x2d0] sm:$0xff] }
  0x1d   :  { %895 = vmatpush3.msra.mxu1 %v54_v61  ;;  %862 = vmatpush3.msra.mxu0 %v21_v62  ;;  %v142_v31 = vld [vmem:[%s1833_s1 + $0x3d8] sm:$0xff]  ;;  %v93_v32 = vld [vmem:[%s1833_s1 + $0x250] sm:$0xff]  ;;  %v108_v34 = vld [vmem:[%s1833_s1 + $0x2c8] sm:$0xff] }
  0x1e   :  { %896 = vmatprep.subr.mxu1 %v69_v63  ;;  %863 = vmatprep.subr.mxu0 %v36_v0  ;;  %v126_v33 = vld [vmem:[%s1833_s1 + $0x358] sm:$0xff]  ;;  %v141_v35 = vld [vmem:[%s1833_s1 + $0x3d0] sm:$0xff]  ;;  %v92_v36 = vld [vmem:[%s1833_s1 + $0x248] sm:$0xff] }
  0x1f   :  { %897 = vmatpush3.msra.mxu1 %v53_v1  ;;  %864 = vmatpush3.msra.mxu0 %v20_v2  ;;  %v125_v37 = vld [vmem:[%s1833_s1 + $0x350] sm:$0xff]  ;;  %v107_v38 = vld [vmem:[%s1833_s1 + $0x2c0] sm:$0xff]  ;;  %v140_v39 = vld [vmem:[%s1833_s1 + $0x3c8] sm:$0xff] }
  0x20   :  { %898 = vmatprep.subr.mxu1 %v68_v3  ;;  %865 = vmatprep.subr.mxu0 %v35_v6  ;;  %v91_v40 = vld [vmem:[%s1833_s1 + $0x240] sm:$0xff]  ;;  %v124_v41 = vld [vmem:[%s1833_s1 + $0x348] sm:$0xff]  ;;  %v106_v42 = vld [vmem:[%s1833_s1 + $0x2b8] sm:$0xff] }
  0x21   :  { %391 = vmatprep.mubr.f32.mxu0 %v269_v4  ;;  %866 = vmatpush3.msra.mxu0 %v19_v7  ;;  %v139_v43 = vld [vmem:[%s1833_s1 + $0x3c0] sm:$0xff]  ;;  %v90_v44 = vld [vmem:[%s1833_s1 + $0x238] sm:$0xff]  ;;  %v105_v46 = vld [vmem:[%s1833_s1 + $0x2b0] sm:$0xff] }
  0x22   :  { %899 = vmatpush3.msra.mxu1 %v52_v8  ;;  %392 = vmatmul.mubr.f32.vlgmr.msra.gmra.mxu0 %v261_v58  ;;  %v123_v45 = vld [vmem:[%s1833_s1 + $0x340] sm:$0xff]  ;;  %v138_v47 = vld [vmem:[%s1833_s1 + $0x3b8] sm:$0xff]  ;;  %v89_v49 = vld [vmem:[%s1833_s1 + $0x230] sm:$0xff] }
  0x23   :  { %900 = vmatprep.subr.mxu1 %v67_v9  ;;  %905 = vmatprep.subr.mxu0 %v114_v10  ;;  %v122_v50 = vld [vmem:[%s1833_s1 + $0x338] sm:$0xff]  ;;  %v104_v51 = vld [vmem:[%s1833_s1 + $0x2a8] sm:$0xff]  ;;  %v137_v52 = vld [vmem:[%s1833_s1 + $0x3b0] sm:$0xff] }
  0x24   :  { %901 = vmatpush3.msra.mxu1 %v51_v11  ;;  %461 = vmatprep.mubr.f32.mxu1 %v270_v12  ;;  %v88_v53 = vld [vmem:[%s1833_s1 + $0x228] sm:$0xff]  ;;  %v121_v54 = vld [vmem:[%s1833_s1 + $0x330] sm:$0xff]  ;;  %v103_v55 = vld [vmem:[%s1833_s1 + $0x2a0] sm:$0xff] }
  0x25   :  { %906 = vmatpush3.msra.mxu0 %v98_v13  ;;  %462 = vmatmul.mubr.f32.vlgmr.msra.gmra.mxu1 %v268_v5  ;;  %v136_v56 = vld [vmem:[%s1833_s1 + $0x3a8] sm:$0xff]  ;;  %v87_v57 = vld [vmem:[%s1833_s1 + $0x220] sm:$0xff]  ;;  %v102_v60 = vld [vmem:[%s1833_s1 + $0x298] sm:$0xff] }
  0x26   :  { %907 = vmatprep.subr.mxu0 %v113_v14  ;;  %940 = vmatprep.subr.mxu1 %v146_v15  ;;  %v16_v58 = vld [vmem:[%s1832_s0 + $0x8] sm:$0xff]  ;;  %v135_v61 = vld [vmem:[%s1833_s1 + $0x3a0] sm:$0xff]  ;;  %v86_v62 = vld [vmem:[%s1833_s1 + $0x218] sm:$0xff] }
  0x27   :  { %908 = vmatpush3.msra.mxu0 %v97_v16  ;;  %941 = vmatpush3.msra.mxu1 %v130_v17  ;;  %v120_v59 = vld [vmem:[%s1833_s1 + $0x328] sm:$0xff]  ;;  %v119_v63 = vld [vmem:[%s1833_s1 + $0x320] sm:$0xff]  ;;  %v101_v0 = vld [vmem:[%s1833_s1 + $0x290] sm:$0xff]  ;;  %v271_v1 = vcombine.high %v16_v58, %v16_v58  ;;  %v278_v4 = vrot.slane %v16_v58, %v1258_v48 }
  0x28   :  { %909 = vmatprep.subr.mxu0 %v112_v18  ;;  %942 = vmatprep.subr.mxu1 %v145_v19  ;;  %v134_v2 = vld [vmem:[%s1833_s1 + $0x398] sm:$0xff]  ;;  %v85_v3 = vld [vmem:[%s1833_s1 + $0x210] sm:$0xff]  ;;  %v100_v6 = vld [vmem:[%s1833_s1 + $0x288] sm:$0xff] }
  0x29   :  { %910 = vmatpush3.msra.mxu0 %v96_v20  ;;  %943 = vmatpush3.msra.mxu1 %v129_v21  ;;  %v118_v5 = vld [vmem:[%s1833_s1 + $0x318] sm:$0xff]  ;;  %v133_v7 = vld [vmem:[%s1833_s1 + $0x390] sm:$0xff]  ;;  %v84_v8 = vld [vmem:[%s1833_s1 + $0x208] sm:$0xff]  ;;  %v285_v11 = vrot.slane %v271_v1, %v1258_v48  ;;  %v286_v14 = vcombine.high %v278_v4, %v278_v4 }
  0x2a   :  { %911 = vmatprep.subr.mxu0 %v111_v22  ;;  %944 = vmatprep.subr.mxu1 %v144_v23  ;;  %v117_v9 = vld [vmem:[%s1833_s1 + $0x310] sm:$0xff]  ;;  %v99_v10 = vld [vmem:[%s1833_s1 + $0x280] sm:$0xff]  ;;  %v132_v12 = vld [vmem:[%s1833_s1 + $0x388] sm:$0xff] }
  0x2b   :  { %912 = vmatpush3.msra.mxu0 %v95_v24  ;;  %945 = vmatpush3.msra.mxu1 %v128_v25  ;;  %v83_v13 = vld [vmem:[%s1833_s1 + $0x200] sm:$0xff]  ;;  %v116_v15 = vld [vmem:[%s1833_s1 + $0x308] sm:$0xff]  ;;  %v178_v17 = vld [vmem:[%s1833_s1 + $0x4f8] sm:$0xff]  ;;  %v287_v19 = vcombine.high %v285_v11, %v285_v11 }
  0x2c   :  { %913 = vmatprep.subr.mxu0 %v110_v26  ;;  %946 = vmatprep.subr.mxu1 %v143_v27  ;;  %v131_v16 = vld [vmem:[%s1833_s1 + $0x380] sm:$0xff]  ;;  %v162_v20 = vld [vmem:[%s1833_s1 + $0x478] sm:$0xff]  ;;  %v177_v21 = vld [vmem:[%s1833_s1 + $0x4f0] sm:$0xff] }
  0x2d   :  { %914 = vmatpush3.msra.mxu0 %v94_v28  ;;  %947 = vmatpush3.msra.mxu1 %v127_v29  ;;  %v115_v18 = vld [vmem:[%s1833_s1 + $0x300] sm:$0xff]  ;;  %v210_v22 = vld [vmem:[%s1833_s1 + $0x5f8] sm:$0xff]  ;;  %v161_v23 = vld [vmem:[%s1833_s1 + $0x470] sm:$0xff] }
  0x2e   :  { %915 = vmatprep.subr.mxu0 %v109_v30  ;;  %948 = vmatprep.subr.mxu1 %v142_v31  ;;  %v194_v24 = vld [vmem:[%s1833_s1 + $0x578] sm:$0xff]  ;;  %v176_v25 = vld [vmem:[%s1833_s1 + $0x4e8] sm:$0xff]  ;;  %v209_v26 = vld [vmem:[%s1833_s1 + $0x5f0] sm:$0xff] }
  0x2f   :  { %916 = vmatpush3.msra.mxu0 %v93_v32  ;;  %949 = vmatpush3.msra.mxu1 %v126_v33  ;;  %v160_v27 = vld [vmem:[%s1833_s1 + $0x468] sm:$0xff]  ;;  %v193_v28 = vld [vmem:[%s1833_s1 + $0x570] sm:$0xff]  ;;  %v175_v29 = vld [vmem:[%s1833_s1 + $0x4e0] sm:$0xff] }
  0x30   :  { %917 = vmatprep.subr.mxu0 %v108_v34  ;;  %950 = vmatprep.subr.mxu1 %v141_v35  ;;  %v208_v30 = vld [vmem:[%s1833_s1 + $0x5e8] sm:$0xff]  ;;  %v159_v31 = vld [vmem:[%s1833_s1 + $0x460] sm:$0xff]  ;;  %v174_v33 = vld [vmem:[%s1833_s1 + $0x4d8] sm:$0xff] }
  0x31   :  { %918 = vmatpush3.msra.mxu0 %v92_v36  ;;  %951 = vmatpush3.msra.mxu1 %v125_v37  ;;  %v192_v32 = vld [vmem:[%s1833_s1 + $0x568] sm:$0xff]  ;;  %v207_v34 = vld [vmem:[%s1833_s1 + $0x5e0] sm:$0xff]  ;;  %v158_v35 = vld [vmem:[%s1833_s1 + $0x458] sm:$0xff] }
  0x32   :  { %919 = vmatprep.subr.mxu0 %v107_v38  ;;  %952 = vmatprep.subr.mxu1 %v140_v39  ;;  %v191_v36 = vld [vmem:[%s1833_s1 + $0x560] sm:$0xff]  ;;  %v173_v37 = vld [vmem:[%s1833_s1 + $0x4d0] sm:$0xff]  ;;  %v206_v38 = vld [vmem:[%s1833_s1 + $0x5d8] sm:$0xff] }
  0x33   :  { %920 = vmatpush3.msra.mxu0 %v91_v40  ;;  %953 = vmatpush3.msra.mxu1 %v124_v41  ;;  %v157_v39 = vld [vmem:[%s1833_s1 + $0x450] sm:$0xff] }
  0x34   :  { %921 = vmatprep.subr.mxu0 %v106_v42  ;;  %954 = vmatprep.subr.mxu1 %v139_v43 }
  0x35   :  { %922 = vmatpush3.msra.mxu0 %v90_v44  ;;  %955 = vmatpush3.msra.mxu1 %v123_v45 }
  0x36   :  { %923 = vmatprep.subr.mxu0 %v105_v46  ;;  %956 = vmatprep.subr.mxu1 %v138_v47 }
  0x37   :  { %924 = vmatpush3.msra.mxu0 %v89_v49  ;;  %957 = vmatpush3.msra.mxu1 %v122_v50 }
  0x38   :  { %925 = vmatprep.subr.mxu0 %v104_v51  ;;  %958 = vmatprep.subr.mxu1 %v137_v52 }
  0x39   :  { %926 = vmatpush3.msra.mxu0 %v88_v53  ;;  %959 = vmatpush3.msra.mxu1 %v121_v54 }
  0x3a   :  { %927 = vmatprep.subr.mxu0 %v103_v55  ;;  %960 = vmatprep.subr.mxu1 %v136_v56 }
  0x3b   :  { %928 = vmatpush3.msra.mxu0 %v87_v57  ;;  %961 = vmatpush3.msra.mxu1 %v120_v59 }
  0x3c   :  { %929 = vmatprep.subr.mxu0 %v102_v60  ;;  %962 = vmatprep.subr.mxu1 %v135_v61 }
  0x3d   :  { %930 = vmatpush3.msra.mxu0 %v86_v62  ;;  %963 = vmatpush3.msra.mxu1 %v119_v63 }
  0x3e   :  { %931 = vmatprep.subr.mxu0 %v101_v0  ;;  %964 = vmatprep.subr.mxu1 %v134_v2 }
  0x3f   :  { %932 = vmatpush3.msra.mxu0 %v85_v3  ;;  %965 = vmatpush3.msra.mxu1 %v118_v5 }
  0x40   :  { %933 = vmatprep.subr.mxu0 %v100_v6  ;;  %966 = vmatprep.subr.mxu1 %v133_v7 }
  0x41   :  { %934 = vmatpush3.msra.mxu0 %v84_v8  ;;  %967 = vmatpush3.msra.mxu1 %v117_v9 }
  0x42   :  { %935 = vmatprep.subr.mxu0 %v99_v10  ;;  %968 = vmatprep.subr.mxu1 %v132_v12 }
  0x43   :  { %936 = vmatpush3.msra.mxu0 %v83_v13  ;;  %531 = vmatprep.mubr.f32.mxu0 %v286_v14 }
  0x44   :  { %969 = vmatpush3.msra.mxu1 %v116_v15  ;;  %532 = vmatmul.mubr.f32.vlgmr.msra.gmra.mxu0 %v278_v4 }
  0x45   :  { %970 = vmatprep.subr.mxu1 %v131_v16  ;;  %975 = vmatprep.subr.mxu0 %v178_v17 }
  0x46   :  { %971 = vmatpush3.msra.mxu1 %v115_v18  ;;  %601 = vmatprep.mubr.f32.mxu1 %v287_v19 }
  0x47   :  { %976 = vmatpush3.msra.mxu0 %v162_v20  ;;  %602 = vmatmul.mubr.f32.vlgmr.msra.gmra.mxu1 %v285_v11 }
  0x48   :  { %977 = vmatprep.subr.mxu0 %v177_v21  ;;  %1010 = vmatprep.subr.mxu1 %v210_v22 }
  0x49   :  { %978 = vmatpush3.msra.mxu0 %v161_v23  ;;  %1011 = vmatpush3.msra.mxu1 %v194_v24 }
  0x4a   :  { %979 = vmatprep.subr.mxu0 %v176_v25  ;;  %1012 = vmatprep.subr.mxu1 %v209_v26 }
  0x4b   :  { %980 = vmatpush3.msra.mxu0 %v160_v27  ;;  %1013 = vmatpush3.msra.mxu1 %v193_v28 }
  0x4c   :  { %981 = vmatprep.subr.mxu0 %v175_v29  ;;  %1014 = vmatprep.subr.mxu1 %v208_v30 }
  0x4d   :  { %982 = vmatpush3.msra.mxu0 %v159_v31  ;;  %1015 = vmatpush3.msra.mxu1 %v192_v32 }
  0x4e   :  { %983 = vmatprep.subr.mxu0 %v174_v33 }
  0x4f   :  { %8 = vsyncpa [#allocation3], 0  ;;  %1016 = vmatprep.subr.mxu1 %v207_v34  ;;  %984 = vmatpush3.msra.mxu0 %v158_v35  ;;  %v190_v40 = vld [vmem:[%s1833_s1 + $0x558] sm:$0xff]  ;;  %v172_v41 = vld [vmem:[%s1833_s1 + $0x4c8] sm:$0xff]  ;;  %vm817_vm0 = vcmask 74752  }
  0x50   :  { %1017 = vmatpush3.msra.mxu1 %v191_v36  ;;  %985 = vmatprep.subr.mxu0 %v173_v37  ;;  %v205_v42 = vld [vmem:[%s1833_s1 + $0x5d0] sm:$0xff]  ;;  %v156_v43 = vld [vmem:[%s1833_s1 + $0x448] sm:$0xff]  ;;  %v171_v45 = vld [vmem:[%s1833_s1 + $0x4c0] sm:$0xff] }
  0x51   :  { %1018 = vmatprep.subr.mxu1 %v206_v38  ;;  %986 = vmatpush3.msra.mxu0 %v157_v39  ;;  %v189_v44 = vld [vmem:[%s1833_s1 + $0x550] sm:$0xff]  ;;  %v204_v46 = vld [vmem:[%s1833_s1 + $0x5c8] sm:$0xff]  ;;  %v155_v47 = vld [vmem:[%s1833_s1 + $0x440] sm:$0xff] }
  0x52   :  { %1019 = vmatpush3.msra.mxu1 %v190_v40  ;;  %987 = vmatprep.subr.mxu0 %v172_v41  ;;  %v188_v49 = vld [vmem:[%s1833_s1 + $0x548] sm:$0xff]  ;;  %v170_v50 = vld [vmem:[%s1833_s1 + $0x4b8] sm:$0xff]  ;;  %v203_v51 = vld [vmem:[%s1833_s1 + $0x5c0] sm:$0xff] }
  0x53   :  { %1020 = vmatprep.subr.mxu1 %v205_v42  ;;  %988 = vmatpush3.msra.mxu0 %v156_v43  ;;  %v154_v52 = vld [vmem:[%s1833_s1 + $0x438] sm:$0xff]  ;;  %v187_v53 = vld [vmem:[%s1833_s1 + $0x540] sm:$0xff]  ;;  %v169_v54 = vld [vmem:[%s1833_s1 + $0x4b0] sm:$0xff] }
  0x54   :  { %1021 = vmatpush3.msra.mxu1 %v189_v44  ;;  %989 = vmatprep.subr.mxu0 %v171_v45  ;;  %v202_v55 = vld [vmem:[%s1833_s1 + $0x5b8] sm:$0xff]  ;;  %v153_v56 = vld [vmem:[%s1833_s1 + $0x430] sm:$0xff]  ;;  %v168_v58 = vld [vmem:[%s1833_s1 + $0x4a8] sm:$0xff] }
  0x55   :  { %1022 = vmatprep.subr.mxu1 %v204_v46  ;;  %990 = vmatpush3.msra.mxu0 %v155_v47  ;;  %v186_v57 = vld [vmem:[%s1833_s1 + $0x538] sm:$0xff]  ;;  %v201_v59 = vld [vmem:[%s1833_s1 + $0x5b0] sm:$0xff]  ;;  %v152_v60 = vld [vmem:[%s1833_s1 + $0x428] sm:$0xff] }
  0x56   :  { %1023 = vmatpush3.msra.mxu1 %v188_v49  ;;  %991 = vmatprep.subr.mxu0 %v170_v50  ;;  %v185_v61 = vld [vmem:[%s1833_s1 + $0x530] sm:$0xff]  ;;  %v167_v62 = vld [vmem:[%s1833_s1 + $0x4a0] sm:$0xff]  ;;  %v200_v63 = vld [vmem:[%s1833_s1 + $0x5a8] sm:$0xff] }
  0x57   :  { %1024 = vmatprep.subr.mxu1 %v203_v51  ;;  %992 = vmatpush3.msra.mxu0 %v154_v52  ;;  %v151_v0 = vld [vmem:[%s1833_s1 + $0x420] sm:$0xff]  ;;  %v17_v1 = vld [vmem:[%s1832_s0 + $0x10] sm:$0xff]  ;;  %v184_v2 = vld [vmem:[%s1833_s1 + $0x528] sm:$0xff] }
  0x58   :  { %1025 = vmatpush3.msra.mxu1 %v187_v53  ;;  %993 = vmatprep.subr.mxu0 %v169_v54  ;;  %v166_v3 = vld [vmem:[%s1833_s1 + $0x498] sm:$0xff]  ;;  %v199_v4 = vld [vmem:[%s1833_s1 + $0x5a0] sm:$0xff]  ;;  %v165_v7 = vld [vmem:[%s1833_s1 + $0x490] sm:$0xff]  ;;  %v288_v8 = vcombine.high %v17_v1, %v17_v1  ;;  %v295_v11 = vrot.slane %v17_v1, %v1258_v48 }
  0x59   :  { %1026 = vmatprep.subr.mxu1 %v202_v55  ;;  %994 = vmatpush3.msra.mxu0 %v153_v56  ;;  %v150_v5 = vld [vmem:[%s1833_s1 + $0x418] sm:$0xff]  ;;  %v183_v6 = vld [vmem:[%s1833_s1 + $0x520] sm:$0xff]  ;;  %v149_v10 = vld [vmem:[%s1833_s1 + $0x410] sm:$0xff] }
  0x5a   :  { %1027 = vmatpush3.msra.mxu1 %v186_v57  ;;  %995 = vmatprep.subr.mxu0 %v168_v58  ;;  %v198_v9 = vld [vmem:[%s1833_s1 + $0x598] sm:$0xff]  ;;  %v164_v13 = vld [vmem:[%s1833_s1 + $0x488] sm:$0xff]  ;;  %v197_v14 = vld [vmem:[%s1833_s1 + $0x590] sm:$0xff]  ;;  %v302_v18 = vrot.slane %v288_v8, %v1258_v48  ;;  %v303_v21 = vcombine.high %v295_v11, %v295_v11 }
  0x5b   :  { %1028 = vmatprep.subr.mxu1 %v201_v59  ;;  %996 = vmatpush3.msra.mxu0 %v152_v60  ;;  %v182_v12 = vld [vmem:[%s1833_s1 + $0x518] sm:$0xff]  ;;  %v148_v15 = vld [vmem:[%s1833_s1 + $0x408] sm:$0xff]  ;;  %v181_v16 = vld [vmem:[%s1833_s1 + $0x510] sm:$0xff] }
  0x5c   :  { %1029 = vmatpush3.msra.mxu1 %v185_v61  ;;  %997 = vmatprep.subr.mxu0 %v167_v62  ;;  %v163_v17 = vld [vmem:[%s1833_s1 + $0x480] sm:$0xff]  ;;  %v196_v19 = vld [vmem:[%s1833_s1 + $0x588] sm:$0xff]  ;;  %v1722_v23 = vld.sshfl [vmem:[%s1832_s0 + $0x18] sm:$0x33 pattern:$0x76325410]  ;;  %v304_v26 = vcombine.high %v302_v18, %v302_v18 }
  0x5d   :  { %1030 = vmatprep.subr.mxu1 %v200_v63  ;;  %998 = vmatpush3.msra.mxu0 %v151_v0  ;;  %v147_v20 = vld [vmem:[%s1833_s1 + $0x400] sm:$0xff]  ;;  %v180_v22 = vld [vmem:[%s1833_s1 + $0x508] sm:$0xff]  ;;  %v242_v24 = vld [vmem:[%s1833_s1 + $0x6f8] sm:$0xff]  ;;  %v312_v29 = vcombine.high %v1722_v23, %v1722_v23 }
  0x5e   :  { %1031 = vmatpush3.msra.mxu1 %v184_v2  ;;  %999 = vmatprep.subr.mxu0 %v166_v3  ;;  %v195_v48 = vld [vmem:[%s1833_s1 + $0x580] sm:$0xff]  ;;  %v226_v27 = vld [vmem:[%s1833_s1 + $0x678] sm:$0xff]  ;;  %v241_v28 = vld [vmem:[%s1833_s1 + $0x6f0] sm:$0xff] }
  0x5f   :  { %1032 = vmatprep.subr.mxu1 %v199_v4  ;;  %1000 = vmatpush3.msra.mxu0 %v150_v5  ;;  %v179_v25 = vld [vmem:[%s1833_s1 + $0x500] sm:$0xff]  ;;  %v225_v30 = vld [vmem:[%s1833_s1 + $0x670] sm:$0xff]  ;;  %v240_v31 = vld [vmem:[%s1833_s1 + $0x6e8] sm:$0xff] }
  0x60   :  { %1033 = vmatpush3.msra.mxu1 %v183_v6  ;;  %1001 = vmatprep.subr.mxu0 %v165_v7  ;;  %v224_v32 = vld [vmem:[%s1833_s1 + $0x668] sm:$0xff]  ;;  %v239_v33 = vld [vmem:[%s1833_s1 + $0x6e0] sm:$0xff]  ;;  %v238_v35 = vld [vmem:[%s1833_s1 + $0x6d8] sm:$0xff] }
  0x61   :  { %1034 = vmatprep.subr.mxu1 %v198_v9  ;;  %1002 = vmatpush3.msra.mxu0 %v149_v10  ;;  %v223_v34 = vld [vmem:[%s1833_s1 + $0x660] sm:$0xff]  ;;  %v222_v36 = vld [vmem:[%s1833_s1 + $0x658] sm:$0xff]  ;;  %v237_v37 = vld [vmem:[%s1833_s1 + $0x6d0] sm:$0xff] }
  0x62   :  { %1035 = vmatpush3.msra.mxu1 %v182_v12  ;;  %1003 = vmatprep.subr.mxu0 %v164_v13  ;;  %v221_v38 = vld [vmem:[%s1833_s1 + $0x650] sm:$0xff]  ;;  %v236_v39 = vld [vmem:[%s1833_s1 + $0x6c8] sm:$0xff]  ;;  %v235_v41 = vld [vmem:[%s1833_s1 + $0x6c0] sm:$0xff] }
  0x63   :  { %1036 = vmatprep.subr.mxu1 %v197_v14  ;;  %1004 = vmatpush3.msra.mxu0 %v148_v15  ;;  %v220_v40 = vld [vmem:[%s1833_s1 + $0x648] sm:$0xff]  ;;  %v219_v42 = vld [vmem:[%s1833_s1 + $0x640] sm:$0xff]  ;;  %v234_v43 = vld [vmem:[%s1833_s1 + $0x6b8] sm:$0xff] }
  0x64   :  { %1037 = vmatpush3.msra.mxu1 %v181_v16  ;;  %1005 = vmatprep.subr.mxu0 %v163_v17  ;;  %v218_v44 = vld [vmem:[%s1833_s1 + $0x638] sm:$0xff]  ;;  %v233_v45 = vld [vmem:[%s1833_s1 + $0x6b0] sm:$0xff]  ;;  %v232_v47 = vld [vmem:[%s1833_s1 + $0x6a8] sm:$0xff] }
  0x65   :  { %1038 = vmatprep.subr.mxu1 %v196_v19  ;;  %1006 = vmatpush3.msra.mxu0 %v147_v20  ;;  %v217_v46 = vld [vmem:[%s1833_s1 + $0x630] sm:$0xff]  ;;  %v216_v49 = vld [vmem:[%s1833_s1 + $0x628] sm:$0xff]  ;;  %v231_v50 = vld [vmem:[%s1833_s1 + $0x6a0] sm:$0xff] }
  0x66   :  { %671 = vmatprep.mubr.f32.mxu0 %v303_v21  ;;  %1039 = vmatpush3.msra.mxu1 %v180_v22  ;;  %v215_v51 = vld [vmem:[%s1833_s1 + $0x620] sm:$0xff]  ;;  %v230_v52 = vld [vmem:[%s1833_s1 + $0x698] sm:$0xff]  ;;  %v229_v54 = vld [vmem:[%s1833_s1 + $0x690] sm:$0xff] }
  0x67   :  { %672 = vmatmul.mubr.f32.vlgmr.msra.gmra.mxu0 %v295_v11  ;;  %1040 = vmatprep.subr.mxu1 %v195_v48  ;;  %v214_v53 = vld [vmem:[%s1833_s1 + $0x618] sm:$0xff]  ;;  %v213_v55 = vld [vmem:[%s1833_s1 + $0x610] sm:$0xff]  ;;  %v228_v56 = vld [vmem:[%s1833_s1 + $0x688] sm:$0xff] }
  0x68   :  { %1045 = vmatprep.subr.mxu0 %v242_v24  ;;  %1041 = vmatpush3.msra.mxu1 %v179_v25  ;;  %v212_v57 = vld [vmem:[%s1833_s1 + $0x608] sm:$0xff]  ;;  %v227_v58 = vld [vmem:[%s1833_s1 + $0x680] sm:$0xff] }
  0x69   :  { %741 = vmatprep.mubr.f32.mxu1 %v304_v26  ;;  %1046 = vmatpush3.msra.mxu0 %v226_v27  ;;  %v211_v59 = vld [vmem:[%s1833_s1 + $0x600] sm:$0xff]  ;;  %s1108_s1 = smov [#allocation2]  }
  0x6a   :  { %742 = vmatmul.mubr.f32.vlgmr.msra.gmra.mxu1 %v302_v18  ;;  %1047 = vmatprep.subr.mxu0 %v241_v28  ;;  %v833_v1 = vld [vmem:[%s1834_s2] ss:$0 sm:$0xff]  ;;  %s825_s2 = sshll.u32 %s1108_s1, 4  ;;  %s826_s2 = int_to_ptr.vmem [resolvable:$true] %s825_s2 }
  0x6b   :  { %1048 = vmatpush3.msra.mxu0 %v225_v30  ;;  %811 = vmatprep.mubr.f32.mxu0 %v312_v29  ;;  %s1085_s8 = scalar_lea.vmem %s826_s2, 32  ;;  %p1090_p1 = scmp.lt.s32.totalorder %s826_s2, %s826_s2 }
  0x6c   :  { %1049 = vmatprep.subr.mxu0 %v240_v31  ;;  %p1086_p0 = scmp.ne.s32.totalorder %s826_s2, %s1085_s8  ;;  %p1091_p2 = scmp.lt.s32.totalorder %s1085_s8, %s1085_s8 }
  0x6d   :  { %1050 = vmatpush3.msra.mxu0 %v224_v32 }
  0x6e   :  { %1051 = vmatprep.subr.mxu0 %v239_v33  ;;  %p1092_p3 = por %p1091_p2, %p1090_p1 }
  0x6f   :  { %1052 = vmatpush3.msra.mxu0 %v223_v34 }
  0x70   :  { %1053 = vmatprep.subr.mxu0 %v238_v35  ;;  %p1093_p4 = pnand %p1092_p3, %p1086_p0 }
  0x71   :  { %1054 = vmatpush3.msra.mxu0 %v222_v36 }
  0x72   :  { %1055 = vmatprep.subr.mxu0 %v237_v37 }
  0x73   :  { %1056 = vmatpush3.msra.mxu0 %v221_v38 }
  0x74   :  { %1057 = vmatprep.subr.mxu0 %v236_v39 }
  0x75   :  { %1058 = vmatpush3.msra.mxu0 %v220_v40 }
  0x76   :  { %1059 = vmatprep.subr.mxu0 %v235_v41 }
  0x77   :  { %1060 = vmatpush3.msra.mxu0 %v219_v42 }
  0x78   :  { %1061 = vmatprep.subr.mxu0 %v234_v43 }
  0x79   :  { %1062 = vmatpush3.msra.mxu0 %v218_v44 }
  0x7a   :  { %1063 = vmatprep.subr.mxu0 %v233_v45 }
  0x7b   :  { %1064 = vmatpush3.msra.mxu0 %v217_v46 }
  0x7c   :  { %1065 = vmatprep.subr.mxu0 %v232_v47 }
  0x7d   :  { %1066 = vmatpush3.msra.mxu0 %v216_v49 }
  0x7e   :  { %1067 = vmatprep.subr.mxu0 %v231_v50 }
  0x7f   :  { %1068 = vmatpush3.msra.mxu0 %v215_v51 }
  0x80   :  { %1069 = vmatprep.subr.mxu0 %v230_v52 }
  0x81   :  { %1070 = vmatpush3.msra.mxu0 %v214_v53 }
  0x82   :  { %1071 = vmatprep.subr.mxu0 %v229_v54 }
  0x83   :  { %1072 = vmatpush3.msra.mxu0 %v213_v55 }
  0x84   :  { %1073 = vmatprep.subr.mxu0 %v228_v56 }
  0x85   :  { %1074 = vmatpush3.msra.mxu0 %v212_v57 }
  0x86   :  { %1075 = vmatprep.subr.mxu0 %v227_v58 }
  0x87   :  { %1076 = vmatpush3.msra.mxu0 %v211_v59 }
  0x88   :  { %812 = vmatmul.mubr.f32.vlgmr.msra.gmra.mxu0 %v1722_v23 }
  0xe2   :  { %v867_v60 = vpop.f32.mrf.mxu0 }
  0xe4   :  { %v868_v61 = vpop.f32.mrf.mxu0 }
  0xe5   :  { %v902_v62 = vpop.f32.mrf.mxu1  ;;  %v869_v0 = vadd.f32 %v868_v61, %v867_v60 }
  0xe7   :  { %v903_v2 = vpop.f32.mrf.mxu1  ;;  %v394_v5 = vadd.f32 %v869_v0, %v833_v1 }
  0xe8   :  { %v904_v6 = vadd.f32 %v903_v2, %v902_v62 }
  0xea   :  { %v464_v10 = vadd.f32 %v904_v6, %v394_v5 }
 0x104   :  { %v937_v63 = vpop.f32.mrf.mxu0 }
 0x106   :  { %v938_v3 = vpop.f32.mrf.mxu0 }
 0x107   :  { %v972_v4 = vpop.f32.mrf.mxu1  ;;  %v939_v8 = vadd.f32 %v938_v3, %v937_v63 }
 0x109   :  { %v973_v9 = vpop.f32.mrf.mxu1  ;;  %v534_v13 = vadd.f32 %v939_v8, %v464_v10 }
 0x10a   :  { %v974_v14 = vadd.f32 %v973_v9, %v972_v4 }
 0x10c   :  { %v604_v17 = vadd.f32 %v974_v14, %v534_v13 }
 0x127   :  { %v1007_v7 = vpop.f32.mrf.mxu0 }
 0x129   :  { %v1008_v11 = vpop.f32.mrf.mxu0 }
 0x12a   :  { %v1042_v12 = vpop.f32.mrf.mxu1  ;;  %v1009_v15 = vadd.f32 %v1008_v11, %v1007_v7 }
 0x12c   :  { %v1043_v16 = vpop.f32.mrf.mxu1  ;;  %v674_v18 = vadd.f32 %v1009_v15, %v604_v17 }
 0x12d   :  { %v1044_v19 = vadd.f32 %v1043_v16, %v1042_v12 }
 0x12f   :  { %v744_v22 = vadd.f32 %v1044_v19, %v674_v18 }
 0x148   :  { %v1077_v20 = vpop.f32.mrf.mxu0 }
 0x14a   :  { %v1078_v21 = vpop.f32.mrf.mxu0 }
 0x14b   :  { %v1079_v48 = vadd.f32 %v1078_v21, %v1077_v20 }
 0x14d   :  { %v814_v23 = vadd.f32 %v1079_v48, %v744_v22 }
 0x14f   :  { %818 = vst.msk [vmem:[#allocation2] sm:$0x3] %vm817_vm0, %v814_v23 }
 0x150   :  { %1096 = shalt.err (!%p1093_p4)
}
 0x151   :  { %828 = dma.vmem_to_hbm [thread:$0]  %s826_s2, 32, %s1835_s3, [#allocation3]  }
 0x152   :  { %1105 = dma.done.wait [#allocation3], 32  }
 0x153   :  { %1106 = vsyncadd [#allocation3], 4294967264 }
 0x154   :  { %832 = vsyncpa [#allocation3], 1 }

</bundles_post_ra>
